<compile_context>
chip_gen: v7x
topology: tpu7x:2x2x1
jax: 0.10.0
libtpu: 0.0.40
codegen_flags: <defaults>
</compile_context>

<pallas_src>
import functools
import math
import types

import jax
import jax.numpy as jnp
from jax.experimental import pallas as pl
from jax.experimental.pallas import tpu as pltpu

_INV_SQRT2 = 0.7071067811865476


# ----------------------------------------------------------------------------
# helpers
# ----------------------------------------------------------------------------
def _round_up(x, m):
    return ((x + m - 1) // m) * m


def _fit(dim, max_tile, mult):
    """Return (padded_dim, tile): padded_dim % tile == 0 and tile % mult == 0."""
    p = _round_up(dim, mult)
    if p <= max_tile:
        return p, p
    t = (max_tile // mult) * mult
    while t >= mult:
        if p % t == 0:
            return p, t
        t -= mult
    return _round_up(p, max_tile), max_tile  # unreachable in practice


# ----------------------------------------------------------------------------
# Pallas kernels
# ----------------------------------------------------------------------------
def _matmul_kernel(x_ref, w_ref, b_ref, *refs, activation):
    if len(refs) == 3:
        res_ref, o_ref, acc_ref = refs
    else:
        o_ref, acc_ref = refs
        res_ref = None

    @pl.when(pl.program_id(2) == 0)
    def _init():
        acc_ref[...] = jnp.zeros_like(acc_ref)

    acc_ref[...] += jnp.dot(x_ref[...], w_ref[...],
                            preferred_element_type=jnp.float32)

    @pl.when(pl.program_id(2) == pl.num_programs(2) - 1)
    def _finish():
        out = acc_ref[...] + b_ref[...]
        if activation == "relu":
            out = jnp.maximum(out, 0.0)
        elif activation == "gelu":
            out = 0.5 * out * (1.0 + jax.lax.erf(out * _INV_SQRT2))
        if res_ref is not None:
            out = out + res_ref[...]          # fused residual (kept in f32)
        o_ref[...] = out.astype(o_ref.dtype)


def pallas_linear(x, w, b=None, activation="none", out_dtype=jnp.float32,
                  res=None, n_valid=None):
    """x: (M, K) @ w: (Kp, Np) (pre-padded, bf16) + b -> (M, n_valid).

    bf16 MXU operands, f32 accumulation, fused bias/activation/residual epilogue.
    """
    M, K = x.shape
    Kp, Np = w.shape
    assert Kp % 128 == 0 and Np % 128 == 0 and K <= Kp, (K, Kp, Np)
    if n_valid is None:
        n_valid = Np

    mult_m = 16 if jnp.dtype(out_dtype) == jnp.dtype(jnp.bfloat16) else 8
    Mp, tm = _fit(M, 512, mult_m)
    _, tk = _fit(Kp, 512, 128)
    _, tn = _fit(Np, 512, 128)

    xb = x.astype(jnp.bfloat16)
    if (Mp, Kp) != (M, K):
        xb = jnp.pad(xb, ((0, Mp - M), (0, Kp - K)))
    if b is None:
        b = jnp.zeros((1, Np), jnp.float32)

    args = [xb, w.astype(jnp.bfloat16), b]
    in_specs = [
        pl.BlockSpec((tm, tk), lambda i, j, k: (i, k)),
        pl.BlockSpec((tk, tn), lambda i, j, k: (k, j)),
        pl.BlockSpec((1, tn), lambda i, j, k: (0, j)),
    ]
    if res is not None:
        r = res.astype(jnp.float32)
        if r.shape != (Mp, Np):
            r = jnp.pad(r, ((0, Mp - r.shape[0]), (0, Np - r.shape[1])))
        args.append(r)
        in_specs.append(pl.BlockSpec((tm, tn), lambda i, j, k: (i, j)))

    grid = (Mp // tm, Np // tn, Kp // tk)
    kernel = functools.partial(_matmul_kernel, activation=activation)
    cost = pl.CostEstimate(
        flops=2 * Mp * Np * Kp,
        transcendentals=Mp * Np if activation == "gelu" else 0,
        bytes_accessed=2 * (Mp * Kp + Kp * Np) + 4 * Mp * Np)
    out = pl.pallas_call(
        kernel,
        grid=grid,
        in_specs=in_specs,
        out_specs=pl.BlockSpec((tm, tn), lambda i, j, k: (i, j)),
        out_shape=jax.ShapeDtypeStruct((Mp, Np), out_dtype),
        scratch_shapes=[pltpu.VMEM((tm, tn), jnp.float32)],
        compiler_params=pltpu.CompilerParams(
            dimension_semantics=("parallel", "parallel", "arbitrary"),
            vmem_limit_bytes=48 * 1024 * 1024),
        cost_estimate=cost,
    )(*args)
    if (Mp, Np) != (M, n_valid):
        out = out[:M, :n_valid]
    return out


def _layernorm_kernel(x_ref, g_ref, b_ref, o_ref, *, eps):
    x = x_ref[...].astype(jnp.float32)
    mean = jnp.mean(x, axis=-1, keepdims=True)
    xc = x - mean
    var = jnp.mean(xc * xc, axis=-1, keepdims=True)
    y = xc * jax.lax.rsqrt(var + eps)
    o_ref[...] = (y * g_ref[...] + b_ref[...]).astype(o_ref.dtype)


def pallas_layernorm(x, gamma, beta, eps=1e-5, out_dtype=jnp.bfloat16):
    shape = x.shape
    D = shape[-1]
    x2 = x.reshape(-1, D)
    M = x2.shape[0]
    mult = 16 if jnp.dtype(out_dtype) == jnp.dtype(jnp.bfloat16) else 8
    Mp, tm = _fit(M, 512, mult)
    if Mp != M:
        x2 = jnp.pad(x2, ((0, Mp - M), (0, 0)))
    kernel = functools.partial(_layernorm_kernel, eps=eps)
    out = pl.pallas_call(
        kernel,
        grid=(Mp // tm,),
        in_specs=[
            pl.BlockSpec((tm, D), lambda i: (i, 0)),
            pl.BlockSpec((1, D), lambda i: (0, 0)),
            pl.BlockSpec((1, D), lambda i: (0, 0)),
        ],
        out_specs=pl.BlockSpec((tm, D), lambda i: (i, 0)),
        out_shape=jax.ShapeDtypeStruct((Mp, D), out_dtype),
        compiler_params=pltpu.CompilerParams(dimension_semantics=("parallel",)),
    )(x2, gamma, beta)
    if Mp != M:
        out = out[:M]
    return out.reshape(shape)


def _mha_kernel(q_ref, kv_ref, wo_ref, bo_ref, res_ref, o_ref, *,
                num_heads, scale, kv_valid):
    """Fused MHA + output projection + residual for one batch element.

    q_ref: (1, Lq, E)  kv_ref: (1, Lk, 2E) packed [K | V]  wo_ref: (E, E)
    Per-head attention outputs are lane-concatenated and projected by ONE full-depth
    (Lq,E)@(E,E) matmul; the residual (f32) is added in the same epilogue.
    """
    q = q_ref[0]                       # (Lq, E)  bf16
    kv = kv_ref[0]                     # (Lk, 2E) bf16
    Lq, E = q.shape
    Lk = kv.shape[0]
    hd = E // num_heads
    k = kv[:, :E]
    v = kv[:, E:]

    mask = None
    if kv_valid is not None and kv_valid < Lk:
        mask = jax.lax.broadcasted_iota(jnp.int32, (Lq, Lk), 1) < kv_valid

    heads = []
    for h in range(num_heads):
        sl = slice(h * hd, (h + 1) * hd)
        s = jax.lax.dot_general(q[:, sl], k[:, sl], (((1,), (1,)), ((), ())),
                                preferred_element_type=jnp.float32) * scale
        if mask is not None:
            s = jnp.where(mask, s, -1e30)
        m = jnp.max(s, axis=-1, keepdims=True)
        p = jnp.exp(s - m)
        p = p * pl.reciprocal(jnp.sum(p, axis=-1, keepdims=True), approx=True)
        heads.append(jnp.dot(p.astype(jnp.bfloat16), v[:, sl],
                             preferred_element_type=jnp.float32))     # (Lq, hd)
    ctx = jnp.concatenate(heads, axis=-1).astype(jnp.bfloat16)        # (Lq, E)
    out = jnp.dot(ctx, wo_ref[...], preferred_element_type=jnp.float32)
    out = out + bo_ref[...] + res_ref[0]
    o_ref[0] = out.astype(o_ref.dtype)


def pallas_mha(q, kv, wo, bo, res, num_heads, scale, kv_valid=None):
    B, Lq, E = q.shape
    Lk = kv.shape[1]
    kernel = functools.partial(_mha_kernel, num_heads=num_heads, scale=scale,
                               kv_valid=kv_valid)
    cost = pl.CostEstimate(
        flops=4 * B * Lq * Lk * E + 2 * B * Lq * E * E,
        transcendentals=B * num_heads * Lq * Lk,
        bytes_accessed=2 * B * (Lq * E + Lk * 2 * E) + 2 * E * E + 8 * B * Lq * E)
    return pl.pallas_call(
        kernel,
        grid=(B,),
        in_specs=[
            pl.BlockSpec((1, Lq, E), lambda i: (i, 0, 0)),
            pl.BlockSpec((1, Lk, 2 * E), lambda i: (i, 0, 0)),
            pl.BlockSpec((E, E), lambda i: (0, 0)),
            pl.BlockSpec((1, E), lambda i: (0, 0)),
            pl.BlockSpec((1, Lq, E), lambda i: (i, 0, 0)),
        ],
        out_specs=pl.BlockSpec((1, Lq, E), lambda i: (i, 0, 0)),
        out_shape=jax.ShapeDtypeStruct((B, Lq, E), jnp.float32),
        compiler_params=pltpu.CompilerParams(dimension_semantics=("parallel",)),
        cost_estimate=cost,
    )(q.astype(jnp.bfloat16), kv.astype(jnp.bfloat16),
      wo.astype(jnp.bfloat16), bo, res.astype(jnp.float32))


def _bmm_kernel(a_ref, b_ref, o_ref):
    o_ref[0] = jnp.dot(a_ref[0], b_ref[0], preferred_element_type=jnp.float32)


def pallas_bmm(a, b):
    """Tiny hypernet bmm; parallel batch grid so a 2-TC chip can shard it."""
    B, M, K = a.shape
    _, _, N = b.shape
    return pl.pallas_call(
        _bmm_kernel,
        grid=(B,),
        in_specs=[
            pl.BlockSpec((1, M, K), lambda i: (i, 0, 0)),
            pl.BlockSpec((1, K, N), lambda i: (i, 0, 0)),
        ],
        out_specs=pl.BlockSpec((1, M, N), lambda i: (i, 0, 0)),
        out_shape=jax.ShapeDtypeStruct((B, M, N), jnp.float32),
        compiler_params=pltpu.CompilerParams(dimension_semantics=("parallel",)),
    )(a.astype(jnp.bfloat16), b.astype(jnp.bfloat16))


def _conv3x3_kernel(x_ref, w_ref, o_ref, *, H, W, C, Co):
    # x_ref: (1, H+2, (W+2)*C) bf16 (lane-flattened padded rows)
    # w_ref: (3, 3*C, Co) bf16 (row index = kw*C + c)
    x = x_ref[0]
    cols = []
    for wi in range(W):
        acc = jnp.zeros((H, Co), jnp.float32)
        for kh in range(3):
            xs = x[kh:kh + H, wi * C:(wi + 3) * C]            # (H, 3C), lane-aligned
            acc = acc + jnp.dot(xs, w_ref[kh],
                                preferred_element_type=jnp.float32)
        cols.append(acc)
    o_ref[0] = jnp.concatenate(cols, axis=-1).astype(o_ref.dtype)


def conv3x3_nhwc(x, w9):
    """Same-padded 3x3 conv (no bias), NHWC, 3-tap in-kernel accumulation (no im2col)."""
    B, H, W, C = x.shape
    Co = w9.shape[-1]
    xp = jnp.pad(x.astype(jnp.bfloat16), ((0, 0), (1, 1), (1, 1), (0, 0)))
    xp = xp.reshape(B, H + 2, (W + 2) * C)
    kernel = functools.partial(_conv3x3_kernel, H=H, W=W, C=C, Co=Co)
    out = pl.pallas_call(
        kernel,
        grid=(B,),
        in_specs=[
            pl.BlockSpec((1, H + 2, (W + 2) * C), lambda i: (i, 0, 0)),
            pl.BlockSpec((3, 3 * C, Co), lambda i: (0, 0, 0)),
        ],
        out_specs=pl.BlockSpec((1, H, W * Co), lambda i: (i, 0, 0)),
        out_shape=jax.ShapeDtypeStruct((B, H, W * Co), jnp.float32),
        compiler_params=pltpu.CompilerParams(dimension_semantics=("parallel",)),
    )(xp, w9)
    # TODO(synk): tile over output rows / channels for full-size SAM necks where the
    #             padded feature map does not fit in a single VMEM block.
    return out.reshape(B, H, W, Co)


# ----------------------------------------------------------------------------
# Higher-level ops built on the kernels
# ----------------------------------------------------------------------------
def gelu(x):
    # exact (erf) GELU like PyTorch nn.GELU default (plain JAX, non-fused spots only)
    return jax.nn.gelu(x, approximate=False)


_FUSED_GELU = None


def gelu_fused_supported():
    """Probe once whether erf lowers inside the Mosaic matmul epilogue."""
    global _FUSED_GELU
    if _FUSED_GELU is None:
        try:
            xp = jnp.zeros((8, 128), jnp.float32)
            wp = jnp.zeros((128, 128), jnp.bfloat16)
            jax.block_until_ready(pallas_linear(xp, wp, activation="gelu"))
            _FUSED_GELU = True
        except Exception:
            _FUSED_GELU = False
    return _FUSED_GELU


def linear(x, p, activation="none", out_dtype=jnp.float32, res=None):
    shp = x.shape
    n = p["n"]
    x2 = x.reshape(-1, shp[-1])
    r2 = None if res is None else res.reshape(-1, n)
    out = pallas_linear(x2, p["w"], p["b"], activation=activation,
                        out_dtype=out_dtype, res=r2, n_valid=n)
    return out.reshape(shp[:-1] + (n,))


def linear_gelu(x, p, out_dtype=jnp.bfloat16):
    if gelu_fused_supported():
        return linear(x, p, activation="gelu", out_dtype=out_dtype)
    # TODO(synk): unfused fallback when erf does not lower in Mosaic on this jaxlib.
    return gelu(linear(x, p)).astype(out_dtype)


def mlp3(x, layers, res=None):
    # MLP(in, hidden, out, num_layers=3): Linear-ReLU-Linear-ReLU-Linear (dropout=id)
    h = linear(x, layers[0], activation="relu", out_dtype=jnp.bfloat16)
    h = linear(h, layers[1], activation="relu", out_dtype=jnp.bfloat16)
    return linear(h, layers[2], res=res)


def multihead_attention(q_in, kv_in, res, p, num_heads, kv_valid=None):
    E = p["q"]["n"]
    hd = E // num_heads
    q = linear(q_in, p["q"], out_dtype=jnp.bfloat16)      # (B, Lq, E)
    kv = linear(kv_in, p["kv"], out_dtype=jnp.bfloat16)   # (B, Lk, 2E) packed K|V
    return pallas_mha(q, kv, p["out"]["w"], p["out"]["b"], res, num_heads,
                      1.0 / math.sqrt(hd), kv_valid)


def group_norm_nhwc(x, p, num_groups, eps=1e-5):
    # tiny tensors; stats computed in plain JAX (not the hot path)
    B, H, W, C = x.shape
    cg = C // num_groups
    xg = x.reshape(B, H * W, num_groups, cg).astype(jnp.float32)
    mean = jnp.mean(xg, axis=(1, 3), keepdims=True)
    var = jnp.mean((xg - mean) ** 2, axis=(1, 3), keepdims=True)
    xg = (xg - mean) * jax.lax.rsqrt(var + eps)
    x = xg.reshape(B, H, W, C)
    return x * p["g"].reshape(1, 1, 1, C) + p["b"].reshape(1, 1, 1, C)


def conv_transpose2x2_nhwc(x, p, activation="none"):
    # ConvTranspose2d(k=2, s=2) == per-pixel linear to (2*2*C_out) + pixel shuffle (NHWC).
    # TODO(synk): real PyTorch ConvTranspose2d weights (C_in, C_out, 2, 2) need a permute
    #             into this (C_in, kh*kw*C_out) layout; weights here are synthetic.
    B, H, W, C = x.shape
    Co = p["n"] // 4
    out = linear(x, p, activation=activation)             # (B, H, W, 4*Co) f32
    out = out.reshape(B, H, W, 2, 2, Co).transpose(0, 1, 3, 2, 4, 5)
    return out.reshape(B, 2 * H, 2 * W, Co)


# ----------------------------------------------------------------------------
# Model forward passes
# ----------------------------------------------------------------------------
def transformer_block(x, p, num_heads):
    xn = pallas_layernorm(x, p["norm1"]["g"], p["norm1"]["b"])
    x = multihead_attention(xn, xn, x, p["attn"], num_heads)          # residual fused
    xn = pallas_layernorm(x, p["norm2"]["g"], p["norm2"]["b"])
    h = linear_gelu(xn, p["mlp_fc1"])                                 # fused GELU, bf16
    return linear(h, p["mlp_fc2"], res=x)                             # residual fused


def vision_transformer(image, p, cfg):
    B, C, H, W = image.shape
    ph, pw = H // cfg.patch, W // cfg.patch
    # patch-embed conv (kernel == stride == patch) as a matmul on flattened patches
    patches = image.reshape(B, C, ph, cfg.patch, pw, cfg.patch)
    patches = patches.transpose(0, 2, 4, 1, 3, 5).reshape(
        B, ph * pw, C * cfg.patch * cfg.patch)
    x = linear(patches, p["patch"]) + p["pos_embed"]
    for blk in p["blocks"]:
        x = transformer_block(x, blk, cfg.vit_heads)
    x = pallas_layernorm(x, p["norm"]["g"], p["norm"]["b"])   # bf16 -> neck matmul
    return x.reshape(B, ph, pw, cfg.vit_e)                    # NHWC


def image_encoder(image, P, cfg):
    x = vision_transformer(image, P["vit"], cfg)              # (B, h, w, vit_e)
    n = P["neck"]
    x = linear(x, n["conv1"])                                 # 1x1 conv (bias-free)
    x = group_norm_nhwc(x, n["gn1"], 32)
    x = conv3x3_nhwc(x, n["conv2_w"])
    x = group_norm_nhwc(x, n["gn2"], 32)
    return x                                                  # (B, h, w, e) f32


def positional_encoding(coords, pos_proj, num_pos_feats=128):
    coords = 2.0 * coords.astype(jnp.float32) - 1.0
    nf = num_pos_feats // 4
    freq = jnp.power(10000.0, -jnp.arange(nf, dtype=jnp.float32) / nf)
    xe = coords[..., 0:1] * freq
    ye = coords[..., 1:2] * freq
    pe = jnp.concatenate([jnp.sin(xe), jnp.cos(xe), jnp.sin(ye), jnp.cos(ye)], axis=-1)
    return linear(pe, pos_proj)


def prompt_encoder(prompts, P, cfg):
    p = P["prompt"]
    sparse = []
    if "points" in prompts and "point_labels" in prompts:
        pos = positional_encoding(prompts["points"], p["pos_proj"])
        type_enc = p["point_embed"][prompts["point_labels"]]
        sparse.append(pos + type_enc)
    if "boxes" in prompts:
        boxes = prompts["boxes"]
        B, nb, _ = boxes.shape
        tl = positional_encoding(boxes[:, :, :2], p["pos_proj"]) + p["box_embed"][0]
        br = positional_encoding(boxes[:, :, 2:], p["pos_proj"]) + p["box_embed"][1]
        sparse.append(jnp.stack([tl, br], axis=2).reshape(B, nb * 2, cfg.e))
    sparse_embeddings = jnp.concatenate(sparse, axis=1) if sparse else None
    # TODO(synk): dense-mask conv branch ('mask' in prompts) not exercised here; no
    #             not-a-point / padding embedding as in real SAM (fidelity gap only).
    dense = p["no_mask_embed"].reshape(1, 1, cfg.e)  # spatially constant per channel
    return sparse_embeddings, dense


def decoder_layer(tokens, image_flat, p, num_heads, t_valid):
    tn = pallas_layernorm(tokens, p["norm1"]["g"], p["norm1"]["b"])
    tokens = multihead_attention(tn, tn, tokens, p["self_attn"], num_heads,
                                 kv_valid=t_valid)
    tn = pallas_layernorm(tokens, p["norm2"]["g"], p["norm2"]["b"])
    tokens = multihead_attention(tn, image_flat, tokens, p["cross_t2i"], num_heads)
    tn = pallas_layernorm(tokens, p["norm3"]["g"], p["norm3"]["b"])
    tokens = mlp3(tn, p["mlp"], res=tokens)
    imn = pallas_layernorm(image_flat, p["norm4"]["g"], p["norm4"]["b"])
    image_flat = multihead_attention(imn, tokens, image_flat, p["cross_i2t"], num_heads,
                                     kv_valid=t_valid)
    return tokens, image_flat


def mask_decoder(image_emb, sparse, dense, P, cfg):
    d = P["decoder"]
    B, H, W, C = image_emb.shape
    out_tok = jnp.broadcast_to(d["output_tokens"][None], (B, 4, cfg.e))
    tokens = jnp.concatenate([out_tok, sparse], axis=1) if sparse is not None else out_tok
    t_valid = tokens.shape[1]
    t_pad = _round_up(t_valid, 8)
    if t_pad != t_valid:
        # pad token rows to a sublane multiple; padded rows are masked out as keys
        # inside the attention kernels and never read as outputs.
        tokens = jnp.pad(tokens, ((0, 0), (0, t_pad - t_valid), (0, 0)))
    image_flat = image_emb.reshape(B, H * W, C) + dense
    for lp in d["layers"]:
        tokens, image_flat = decoder_layer(tokens, image_flat, lp, cfg.dec_heads, t_valid)
    x = image_flat.reshape(B, H, W, C)
    x = conv_transpose2x2_nhwc(x, d["up1"])
    x = group_norm_nhwc(x, d["up1_gn"], 8)
    x = gelu(x)
    if gelu_fused_supported():
        x = conv_transpose2x2_nhwc(x, d["up2"], activation="gelu")   # fused GELU
    else:
        x = gelu(conv_transpose2x2_nhwc(x, d["up2"]))
    Hu, Wu, C8 = 4 * H, 4 * W, cfg.e // 8
    hyper_in = tokens[:, :4]
    mask_weights = mlp3(hyper_in[:, :3], d["hyper_mlp"])             # (B, 3, E//8)
    xT = x.reshape(B, Hu * Wu, C8).transpose(0, 2, 1)                # (B, E//8, Hu*Wu)
    masks = pallas_bmm(mask_weights, xT).reshape(B, 3, Hu, Wu)
    iou = mlp3(hyper_in[:, 3], d["iou_mlp"])                         # (B, 3)
    return masks, iou


def sam_forward(image, prompts, P, cfg):
    image_embedding = image_encoder(image, P, cfg)
    sparse, dense = prompt_encoder(prompts, P, cfg)
    return mask_decoder(image_embedding, sparse, dense, P, cfg)


# ----------------------------------------------------------------------------
# Deterministic parameter init (shapes follow the PyTorch module, values synthetic).
# Weights are stored bf16 and pre-padded to lane-aligned (Kp, Np) once at init.
# ----------------------------------------------------------------------------
class ParamGen:
    def __init__(self, key):
        self.key = key

    def _next(self):
        self.key, sub = jax.random.split(self.key)
        return sub

    def normal(self, shape, std=0.02, dtype=jnp.float32):
        return (std * jax.random.normal(self._next(), shape, jnp.float32)).astype(dtype)

    def lin(self, din, dout):
        kp, npad = _round_up(din, 128), _round_up(dout, 128)
        w = jnp.pad(self.normal((din, dout), dtype=jnp.bfloat16),
                    ((0, kp - din), (0, npad - dout)))
        return {"w": w, "b": jnp.zeros((1, npad), jnp.float32), "n": dout}

    def ln(self, d):
        return {"g": jnp.ones((1, d), jnp.float32), "b": jnp.zeros((1, d), jnp.float32)}

    def gn(self, c):
        return {"g": jnp.ones((c,), jnp.float32), "b": jnp.zeros((c,), jnp.float32)}

    def mha(self, d):
        # fused KV projection (K|V packed along the output axis) + output projection
        return {"q": self.lin(d, d), "kv": self.lin(d, 2 * d), "out": self.lin(d, d)}


def init_params(cfg, key):
    g = ParamGen(key)
    vit = {
        "patch": g.lin(3 * cfg.patch * cfg.patch, cfg.vit_e),
        "pos_embed": g.normal((1, cfg.num_patches, cfg.vit_e)),
        "blocks": [{
            "norm1": g.ln(cfg.vit_e), "attn": g.mha(cfg.vit_e), "norm2": g.ln(cfg.vit_e),
            "mlp_fc1": g.lin(cfg.vit_e, 4 * cfg.vit_e),
            "mlp_fc2": g.lin(4 * cfg.vit_e, cfg.vit_e),
        } for _ in range(cfg.vit_layers)],
        "norm": g.ln(cfg.vit_e),
    }
    neck = {"conv1": g.lin(cfg.vit_e, cfg.e), "gn1": g.gn(cfg.e),
            "conv2_w": g.normal((3, 3 * cfg.e, cfg.e), dtype=jnp.bfloat16),
            "gn2": g.gn(cfg.e)}
    prompt = {"point_embed": g.normal((2, cfg.e)), "box_embed": g.normal((2, cfg.e)),
              "no_mask_embed": g.normal((1, cfg.e)), "pos_proj": g.lin(128, cfg.e)}
    dec = {
        "output_tokens": g.normal((4, cfg.e)),
        "layers": [{
            "self_attn": g.mha(cfg.e), "cross_t2i": g.mha(cfg.e), "cross_i2t": g.mha(cfg.e),
            "mlp": [g.lin(cfg.e, 2 * cfg.e), g.lin(2 * cfg.e, 2 * cfg.e),
                    g.lin(2 * cfg.e, cfg.e)],
            "norm1": g.ln(cfg.e), "norm2": g.ln(cfg.e),
            "norm3": g.ln(cfg.e), "norm4": g.ln(cfg.e),
        } for _ in range(cfg.dec_layers)],
        "up1": g.lin(cfg.e, (cfg.e // 4) * 4),
        "up1_gn": g.gn(cfg.e // 4),
        "up2": g.lin(cfg.e // 4, (cfg.e // 8) * 4),
        "hyper_mlp": [g.lin(cfg.e, cfg.e), g.lin(cfg.e, cfg.e), g.lin(cfg.e, cfg.e // 8)],
        "iou_mlp": [g.lin(cfg.e, 256), g.lin(256, 256), g.lin(256, 3)],
    }
    return {"vit": vit, "neck": neck, "prompt": prompt, "decoder": dec}


# ----------------------------------------------------------------------------
if __name__ == "__main__":
    # Scaled-down SAM config (same structure as the PyTorch module, smaller dims).
    cfg = types.SimpleNamespace(img=64, patch=16, vit_e=128, vit_heads=4, vit_layers=2,
                                e=128, dec_layers=2, dec_heads=8)
    cfg.num_patches = (cfg.img // cfg.patch) ** 2    # 16
    cfg.feat = cfg.img // cfg.patch                  # 4x4 image-embedding grid

    gelu_fused_supported()                           # probe once, outside jit

    key = jax.random.PRNGKey(0)
    k_params, k_img, k_pts = jax.random.split(key, 3)
    params = init_params(cfg, k_params)

    B = 2
    image = jax.random.uniform(k_img, (B, 3, cfg.img, cfg.img), jnp.float32)   # NCHW
    points = jax.random.uniform(k_pts, (B, 2, 2), jnp.float32)                 # (B, P, 2)
    point_labels = jnp.array([[1, 0], [0, 1]], dtype=jnp.int32)
    prompts = {"points": points, "point_labels": point_labels}

    fwd = jax.jit(functools.partial(sam_forward, P=params, cfg=cfg))
    masks, iou_scores = fwd(image, prompts)
    masks = jax.block_until_ready(masks)
    iou_scores = jax.block_until_ready(iou_scores)

    assert masks.shape == (B, 3, 4 * cfg.feat, 4 * cfg.feat), masks.shape
    assert iou_scores.shape == (B, 3), iou_scores.shape
    assert bool(jnp.isfinite(masks).all()) and bool(jnp.isfinite(iou_scores).all())
    print("KERNEL_OK")
</pallas_src>

<mosaic_0001>
module attributes {stable_mosaic.version = 11 : i64} {
  func.func @_matmul_kernel(%arg0: i32, %arg1: i32, %arg2: i32, %arg3: memref<8x128xbf16, #tpu.memory_space<vmem>>, %arg4: memref<128x128xbf16, #tpu.memory_space<vmem>>, %arg5: memref<1x128xf32, #tpu.memory_space<vmem>>, %arg6: memref<8x128xf32, #tpu.memory_space<vmem>>, %arg7: memref<8x128xf32, #tpu.memory_space<vmem>>) attributes {dimension_semantics = [#tpu.dimension_semantics<parallel>, #tpu.dimension_semantics<parallel>, #tpu.dimension_semantics<arbitrary>], iteration_bounds = array<i64: 1, 1, 1>, scalar_prefetch = 0 : i64, scratch_operands = 1 : i64, tpu.core_type = #tpu.core_type<tc>, window_params = [{transform_indices = @transform_0, window_bounds = array<i64: 8, 128>}, {transform_indices = @transform_1, window_bounds = array<i64: 128, 128>}, {transform_indices = @transform_2, window_bounds = array<i64: 1, 128>}, {transform_indices = @transform_3, window_bounds = array<i64: 8, 128>}]} {
    %c0_i32 = arith.constant 0 : i32
    %0 = arith.cmpi eq, %arg2, %c0_i32 : i32
    %1 = arith.extui %0 : i1 to i32
    %c0_i32_0 = arith.constant 0 : i32
    %2 = arith.cmpi ne, %1, %c0_i32_0 : i32
    scf.if %2 {
      %cst_10 = arith.constant 0.000000e+00 : f32
      %12 = vector.broadcast %cst_10 : f32 to vector<8x128xf32>
      %c0_11 = arith.constant 0 : index
      %c0_12 = arith.constant 0 : index
      %13 = vector.load %arg7[%c0_11, %c0_12] : memref<8x128xf32, #tpu.memory_space<vmem>>, vector<8x128xf32>
      tpu.vector_store %arg7[%c0_11, %c0_12], %12 {strides = array<i32>} : memref<8x128xf32, #tpu.memory_space<vmem>>, vector<8x128xf32>,
    } else {
    }
    %c0 = arith.constant 0 : index
    %c0_1 = arith.constant 0 : index
    %3 = vector.load %arg7[%c0, %c0_1] : memref<8x128xf32, #tpu.memory_space<vmem>>, vector<8x128xf32>
    %c0_2 = arith.constant 0 : index
    %c0_3 = arith.constant 0 : index
    %4 = vector.load %arg3[%c0_2, %c0_3] : memref<8x128xbf16, #tpu.memory_space<vmem>>, vector<8x128xbf16>
    %c0_4 = arith.constant 0 : index
    %c0_5 = arith.constant 0 : index
    %5 = vector.load %arg4[%c0_4, %c0_5] : memref<128x128xbf16, #tpu.memory_space<vmem>>, vector<128x128xbf16>
    %cst = arith.constant dense<0.000000e+00> : vector<8x128xf32>
    %6 = tpu.matmul %4, %5, %cst {dimension_numbers = #tpu.dot_dimension_numbers<[1], [0], [0], [1], [0, 0, 1, 1], [], []>} : vector<8x128xbf16>, vector<128x128xbf16>, vector<8x128xf32> -> vector<8x128xf32>
    %7 = arith.addf %3, %6 : vector<8x128xf32>
    %c0_6 = arith.constant 0 : index
    %c0_7 = arith.constant 0 : index
    %8 = vector.load %arg7[%c0_6, %c0_7] : memref<8x128xf32, #tpu.memory_space<vmem>>, vector<8x128xf32>
    tpu.vector_store %arg7[%c0_6, %c0_7], %7 {strides = array<i32>} : memref<8x128xf32, #tpu.memory_space<vmem>>, vector<8x128xf32>,
    %c0_i32_8 = arith.constant 0 : i32
    %9 = arith.cmpi eq, %arg2, %c0_i32_8 : i32
    %10 = arith.extui %9 : i1 to i32
    %c0_i32_9 = arith.constant 0 : i32
    %11 = arith.cmpi ne, %10, %c0_i32_9 : i32
    scf.if %11 {
      %c0_10 = arith.constant 0 : index
      %c0_11 = arith.constant 0 : index
      %12 = vector.load %arg7[%c0_10, %c0_11] : memref<8x128xf32, #tpu.memory_space<vmem>>, vector<8x128xf32>
      %c0_12 = arith.constant 0 : index
      %c0_13 = arith.constant 0 : index
      %13 = vector.load %arg5[%c0_12, %c0_13] : memref<1x128xf32, #tpu.memory_space<vmem>>, vector<1x128xf32>
      %14 = vector.broadcast %13 : vector<1x128xf32> to vector<8x128xf32>
      %15 = arith.addf %12, %14 : vector<8x128xf32>
      %cst_14 = arith.constant 5.000000e-01 : f32
      %16 = vector.broadcast %cst_14 : f32 to vector<8x128xf32>
      %17 = arith.mulf %16, %15 : vector<8x128xf32>
      %cst_15 = arith.constant 0.707106769 : f32
      %18 = vector.broadcast %cst_15 : f32 to vector<8x128xf32>
      %19 = arith.mulf %15, %18 : vector<8x128xf32>
      %20 = math.erf %19 : vector<8x128xf32>
      %cst_16 = arith.constant 1.000000e+00 : f32
      %21 = vector.broadcast %cst_16 : f32 to vector<8x128xf32>
      %22 = arith.addf %21, %20 : vector<8x128xf32>
      %23 = arith.mulf %17, %22 : vector<8x128xf32>
      %c0_17 = arith.constant 0 : index
      %c0_18 = arith.constant 0 : index
      %24 = vector.load %arg6[%c0_17, %c0_18] : memref<8x128xf32, #tpu.memory_space<vmem>>, vector<8x128xf32>
      tpu.vector_store %arg6[%c0_17, %c0_18], %23 {strides = array<i32>} : memref<8x128xf32, #tpu.memory_space<vmem>>, vector<8x128xf32>,
    } else {
    }
    return
  }
  func.func @transform_0(%arg0: i32, %arg1: i32, %arg2: i32) -> (i32, i32) {
    %c0_i32 = arith.constant 0 : i32
    return %arg0, %arg2 : i32, i32
  }
  func.func @transform_1(%arg0: i32, %arg1: i32, %arg2: i32) -> (i32, i32) {
    %c0_i32 = arith.constant 0 : i32
    return %arg2, %arg1 : i32, i32
  }
  func.func @transform_2(%arg0: i32, %arg1: i32, %arg2: i32) -> (i32, i32) {
    %c0_i32 = arith.constant 0 : i32
    %c0_i32_0 = arith.constant 0 : i32
    return %c0_i32, %arg1 : i32, i32
  }
  func.func @transform_3(%arg0: i32, %arg1: i32, %arg2: i32) -> (i32, i32) {
    %c0_i32 = arith.constant 0 : i32
    return %arg0, %arg1 : i32, i32
  }
}

module attributes {stable_mosaic.version = 11 : i64} {
  func.func @_layernorm_kernel(%arg0: i32, %arg1: memref<32x128xf32, #tpu.memory_space<vmem>>, %arg2: memref<1x128xf32, #tpu.memory_space<vmem>>, %arg3: memref<1x128xf32, #tpu.memory_space<vmem>>, %arg4: memref<32x128xbf16, #tpu.memory_space<vmem>>) attributes {dimension_semantics = [#tpu.dimension_semantics<parallel>], iteration_bounds = array<i64: 1>, scalar_prefetch = 0 : i64, scratch_operands = 0 : i64, tpu.core_type = #tpu.core_type<tc>, window_params = [{transform_indices = @transform_0, window_bounds = array<i64: 32, 128>}, {pipeline_mode = #tpu.pipeline_mode<synchronous>, transform_indices = @transform_1, window_bounds = array<i64: 1, 128>}, {pipeline_mode = #tpu.pipeline_mode<synchronous>, transform_indices = @transform_2, window_bounds = array<i64: 1, 128>}, {transform_indices = @transform_3, window_bounds = array<i64: 32, 128>}]} {
    %c0 = arith.constant 0 : index
    %c0_0 = arith.constant 0 : index
    %0 = vector.load %arg1[%c0, %c0_0] : memref<32x128xf32, #tpu.memory_space<vmem>>, vector<32x128xf32>
    %cst = arith.constant dense<0.000000e+00> : vector<32xf32>
    %1 = vector.multi_reduction <add>, %0, %cst [1] : vector<32x128xf32> to vector<32xf32>
    %2 = vector.shape_cast %1 : vector<32xf32> to vector<32x1xf32>
    %cst_1 = arith.constant 1.280000e+02 : f32
    %3 = vector.broadcast %cst_1 : f32 to vector<32x1xf32>
    %4 = arith.divf %2, %3 : vector<32x1xf32>
    %5 = vector.broadcast %4 : vector<32x1xf32> to vector<32x128xf32>
    %6 = arith.subf %0, %5 : vector<32x128xf32>
    %7 = arith.mulf %6, %6 : vector<32x128xf32>
    %cst_2 = arith.constant dense<0.000000e+00> : vector<32xf32>
    %8 = vector.multi_reduction <add>, %7, %cst_2 [1] : vector<32x128xf32> to vector<32xf32>
    %9 = vector.shape_cast %8 : vector<32xf32> to vector<32x1xf32>
    %cst_3 = arith.constant 1.280000e+02 : f32
    %10 = vector.broadcast %cst_3 : f32 to vector<32x1xf32>
    %11 = arith.divf %9, %10 : vector<32x1xf32>
    %cst_4 = arith.constant 9.99999974E-6 : f32
    %12 = vector.broadcast %cst_4 : f32 to vector<32x1xf32>
    %13 = arith.addf %11, %12 : vector<32x1xf32>
    %14 = math.rsqrt %13 : vector<32x1xf32>
    %15 = vector.broadcast %14 : vector<32x1xf32> to vector<32x128xf32>
    %16 = arith.mulf %6, %15 : vector<32x128xf32>
    %c0_5 = arith.constant 0 : index
    %c0_6 = arith.constant 0 : index
    %17 = vector.load %arg2[%c0_5, %c0_6] : memref<1x128xf32, #tpu.memory_space<vmem>>, vector<1x128xf32>
    %18 = vector.broadcast %17 : vector<1x128xf32> to vector<32x128xf32>
    %19 = arith.mulf %16, %18 : vector<32x128xf32>
    %c0_7 = arith.constant 0 : index
    %c0_8 = arith.constant 0 : index
    %20 = vector.load %arg3[%c0_7, %c0_8] : memref<1x128xf32, #tpu.memory_space<vmem>>, vector<1x128xf32>
    %21 = vector.broadcast %20 : vector<1x128xf32> to vector<32x128xf32>
    %22 = arith.addf %19, %21 : vector<32x128xf32>
    %23 = arith.truncf %22 : vector<32x128xf32> to vector<32x128xbf16>
    %c0_9 = arith.constant 0 : index
    %c0_10 = arith.constant 0 : index
    %24 = vector.load %arg4[%c0_9, %c0_10] : memref<32x128xbf16, #tpu.memory_space<vmem>>, vector<32x128xbf16>
    tpu.vector_store %arg4[%c0_9, %c0_10], %23 {strides = array<i32>} : memref<32x128xbf16, #tpu.memory_space<vmem>>, vector<32x128xbf16>,
    return
  }
  func.func @transform_0(%arg0: i32) -> (i32, i32) {
    %c0_i32 = arith.constant 0 : i32
    %c0_i32_0 = arith.constant 0 : i32
    return %arg0, %c0_i32 : i32, i32
  }
  func.func @transform_1(%arg0: i32) -> (i32, i32) {
    %c0_i32 = arith.constant 0 : i32
    %c0_i32_0 = arith.constant 0 : i32
    %c0_i32_1 = arith.constant 0 : i32
    return %c0_i32, %c0_i32_0 : i32, i32
  }
  func.func @transform_2(%arg0: i32) -> (i32, i32) {
    %c0_i32 = arith.constant 0 : i32
    %c0_i32_0 = arith.constant 0 : i32
    %c0_i32_1 = arith.constant 0 : i32
    return %c0_i32, %c0_i32_0 : i32, i32
  }
  func.func @transform_3(%arg0: i32) -> (i32, i32) {
    %c0_i32 = arith.constant 0 : i32
    %c0_i32_0 = arith.constant 0 : i32
    return %arg0, %c0_i32 : i32, i32
  }
}

module attributes {stable_mosaic.version = 11 : i64} {
  func.func @_matmul_kernel(%arg0: i32, %arg1: i32, %arg2: i32, %arg3: memref<32x384xbf16, #tpu.memory_space<vmem>>, %arg4: memref<384x128xbf16, #tpu.memory_space<vmem>>, %arg5: memref<1x128xf32, #tpu.memory_space<vmem>>, %arg6: memref<32x128xf32, #tpu.memory_space<vmem>>, %arg7: memref<32x128xf32, #tpu.memory_space<vmem>>) attributes {dimension_semantics = [#tpu.dimension_semantics<parallel>, #tpu.dimension_semantics<parallel>, #tpu.dimension_semantics<arbitrary>], iteration_bounds = array<i64: 1, 1, 2>, scalar_prefetch = 0 : i64, scratch_operands = 1 : i64, tpu.core_type = #tpu.core_type<tc>, window_params = [{transform_indices = @transform_0, window_bounds = array<i64: 32, 384>}, {transform_indices = @transform_1, window_bounds = array<i64: 384, 128>}, {transform_indices = @transform_2, window_bounds = array<i64: 1, 128>}, {transform_indices = @transform_3, window_bounds = array<i64: 32, 128>}]} {
    %c0_i32 = arith.constant 0 : i32
    %0 = arith.cmpi eq, %arg2, %c0_i32 : i32
    %1 = arith.extui %0 : i1 to i32
    %c0_i32_0 = arith.constant 0 : i32
    %2 = arith.cmpi ne, %1, %c0_i32_0 : i32
    scf.if %2 {
      %cst_9 = arith.constant 0.000000e+00 : f32
      %12 = vector.broadcast %cst_9 : f32 to vector<32x128xf32>
      %c0_10 = arith.constant 0 : index
      %c0_11 = arith.constant 0 : index
      %13 = vector.load %arg7[%c0_10, %c0_11] : memref<32x128xf32, #tpu.memory_space<vmem>>, vector<32x128xf32>
      tpu.vector_store %arg7[%c0_10, %c0_11], %12 {strides = array<i32>} : memref<32x128xf32, #tpu.memory_space<vmem>>, vector<32x128xf32>,
    } else {
    }
    %c0 = arith.constant 0 : index
    %c0_1 = arith.constant 0 : index
    %3 = vector.load %arg7[%c0, %c0_1] : memref<32x128xf32, #tpu.memory_space<vmem>>, vector<32x128xf32>
    %c0_2 = arith.constant 0 : index
    %c0_3 = arith.constant 0 : index
    %4 = vector.load %arg3[%c0_2, %c0_3] : memref<32x384xbf16, #tpu.memory_space<vmem>>, vector<32x384xbf16>
    %c0_4 = arith.constant 0 : index
    %c0_5 = arith.constant 0 : index
    %5 = vector.load %arg4[%c0_4, %c0_5] : memref<384x128xbf16, #tpu.memory_space<vmem>>, vector<384x128xbf16>
    %cst = arith.constant dense<0.000000e+00> : vector<32x128xf32>
    %6 = tpu.matmul %4, %5, %cst {dimension_numbers = #tpu.dot_dimension_numbers<[1], [0], [0], [1], [0, 0, 1, 1], [], []>} : vector<32x384xbf16>, vector<384x128xbf16>, vector<32x128xf32> -> vector<32x128xf32>
    %7 = arith.addf %3, %6 : vector<32x128xf32>
    %c0_6 = arith.constant 0 : index
    %c0_7 = arith.constant 0 : index
    %8 = vector.load %arg7[%c0_6, %c0_7] : memref<32x128xf32, #tpu.memory_space<vmem>>, vector<32x128xf32>
    tpu.vector_store %arg7[%c0_6, %c0_7], %7 {strides = array<i32>} : memref<32x128xf32, #tpu.memory_space<vmem>>, vector<32x128xf32>,
    %c1_i32 = arith.constant 1 : i32
    %9 = arith.cmpi eq, %arg2, %c1_i32 : i32
    %10 = arith.extui %9 : i1 to i32
    %c0_i32_8 = arith.constant 0 : i32
    %11 = arith.cmpi ne, %10, %c0_i32_8 : i32
    scf.if %11 {
      %c0_9 = arith.constant 0 : index
      %c0_10 = arith.constant 0 : index
      %12 = vector.load %arg7[%c0_9, %c0_10] : memref<32x128xf32, #tpu.memory_space<vmem>>, vector<32x128xf32>
      %c0_11 = arith.constant 0 : index
      %c0_12 = arith.constant 0 : index
      %13 = vector.load %arg5[%c0_11, %c0_12] : memref<1x128xf32, #tpu.memory_space<vmem>>, vector<1x128xf32>
      %14 = vector.broadcast %13 : vector<1x128xf32> to vector<32x128xf32>
      %15 = arith.addf %12, %14 : vector<32x128xf32>
      %c0_13 = arith.constant 0 : index
      %c0_14 = arith.constant 0 : index
      %16 = vector.load %arg6[%c0_13, %c0_14] : memref<32x128xf32, #tpu.memory_space<vmem>>, vector<32x128xf32>
      tpu.vector_store %arg6[%c0_13, %c0_14], %15 {strides = array<i32>} : memref<32x128xf32, #tpu.memory_space<vmem>>, vector<32x128xf32>,
    } else {
    }
    return
  }
  func.func @transform_0(%arg0: i32, %arg1: i32, %arg2: i32) -> (i32, i32) {
    %c0_i32 = arith.constant 0 : i32
    return %arg0, %arg2 : i32, i32
  }
  func.func @transform_1(%arg0: i32, %arg1: i32, %arg2: i32) -> (i32, i32) {
    %c0_i32 = arith.constant 0 : i32
    return %arg2, %arg1 : i32, i32
  }
  func.func @transform_2(%arg0: i32, %arg1: i32, %arg2: i32) -> (i32, i32) {
    %c0_i32 = arith.constant 0 : i32
    %c0_i32_0 = arith.constant 0 : i32
    return %c0_i32, %arg1 : i32, i32
  }
  func.func @transform_3(%arg0: i32, %arg1: i32, %arg2: i32) -> (i32, i32) {
    %c0_i32 = arith.constant 0 : i32
    return %arg0, %arg1 : i32, i32
  }
}

module attributes {stable_mosaic.version = 11 : i64} {
  func.func @_matmul_kernel(%arg0: i32, %arg1: i32, %arg2: i32, %arg3: memref<32x128xbf16, #tpu.memory_space<vmem>>, %arg4: memref<128x128xbf16, #tpu.memory_space<vmem>>, %arg5: memref<1x128xf32, #tpu.memory_space<vmem>>, %arg6: memref<32x128xbf16, #tpu.memory_space<vmem>>, %arg7: memref<32x128xf32, #tpu.memory_space<vmem>>) attributes {dimension_semantics = [#tpu.dimension_semantics<parallel>, #tpu.dimension_semantics<parallel>, #tpu.dimension_semantics<arbitrary>], iteration_bounds = array<i64: 1, 1, 1>, scalar_prefetch = 0 : i64, scratch_operands = 1 : i64, tpu.core_type = #tpu.core_type<tc>, window_params = [{transform_indices = @transform_0, window_bounds = array<i64: 32, 128>}, {transform_indices = @transform_1, window_bounds = array<i64: 128, 128>}, {transform_indices = @transform_2, window_bounds = array<i64: 1, 128>}, {transform_indices = @transform_3, window_bounds = array<i64: 32, 128>}]} {
    %c0_i32 = arith.constant 0 : i32
    %0 = arith.cmpi eq, %arg2, %c0_i32 : i32
    %1 = arith.extui %0 : i1 to i32
    %c0_i32_0 = arith.constant 0 : i32
    %2 = arith.cmpi ne, %1, %c0_i32_0 : i32
    scf.if %2 {
      %cst_10 = arith.constant 0.000000e+00 : f32
      %12 = vector.broadcast %cst_10 : f32 to vector<32x128xf32>
      %c0_11 = arith.constant 0 : index
      %c0_12 = arith.constant 0 : index
      %13 = vector.load %arg7[%c0_11, %c0_12] : memref<32x128xf32, #tpu.memory_space<vmem>>, vector<32x128xf32>
      tpu.vector_store %arg7[%c0_11, %c0_12], %12 {strides = array<i32>} : memref<32x128xf32, #tpu.memory_space<vmem>>, vector<32x128xf32>,
    } else {
    }
    %c0 = arith.constant 0 : index
    %c0_1 = arith.constant 0 : index
    %3 = vector.load %arg7[%c0, %c0_1] : memref<32x128xf32, #tpu.memory_space<vmem>>, vector<32x128xf32>
    %c0_2 = arith.constant 0 : index
    %c0_3 = arith.constant 0 : index
    %4 = vector.load %arg3[%c0_2, %c0_3] : memref<32x128xbf16, #tpu.memory_space<vmem>>, vector<32x128xbf16>
    %c0_4 = arith.constant 0 : index
    %c0_5 = arith.constant 0 : index
    %5 = vector.load %arg4[%c0_4, %c0_5] : memref<128x128xbf16, #tpu.memory_space<vmem>>, vector<128x128xbf16>
    %cst = arith.constant dense<0.000000e+00> : vector<32x128xf32>
    %6 = tpu.matmul %4, %5, %cst {dimension_numbers = #tpu.dot_dimension_numbers<[1], [0], [0], [1], [0, 0, 1, 1], [], []>} : vector<32x128xbf16>, vector<128x128xbf16>, vector<32x128xf32> -> vector<32x128xf32>
    %7 = arith.addf %3, %6 : vector<32x128xf32>
    %c0_6 = arith.constant 0 : index
    %c0_7 = arith.constant 0 : index
    %8 = vector.load %arg7[%c0_6, %c0_7] : memref<32x128xf32, #tpu.memory_space<vmem>>, vector<32x128xf32>
    tpu.vector_store %arg7[%c0_6, %c0_7], %7 {strides = array<i32>} : memref<32x128xf32, #tpu.memory_space<vmem>>, vector<32x128xf32>,
    %c0_i32_8 = arith.constant 0 : i32
    %9 = arith.cmpi eq, %arg2, %c0_i32_8 : i32
    %10 = arith.extui %9 : i1 to i32
    %c0_i32_9 = arith.constant 0 : i32
    %11 = arith.cmpi ne, %10, %c0_i32_9 : i32
    scf.if %11 {
      %c0_10 = arith.constant 0 : index
      %c0_11 = arith.constant 0 : index
      %12 = vector.load %arg7[%c0_10, %c0_11] : memref<32x128xf32, #tpu.memory_space<vmem>>, vector<32x128xf32>
      %c0_12 = arith.constant 0 : index
      %c0_13 = arith.constant 0 : index
      %13 = vector.load %arg5[%c0_12, %c0_13] : memref<1x128xf32, #tpu.memory_space<vmem>>, vector<1x128xf32>
      %14 = vector.broadcast %13 : vector<1x128xf32> to vector<32x128xf32>
      %15 = arith.addf %12, %14 : vector<32x128xf32>
      %16 = arith.truncf %15 : vector<32x128xf32> to vector<32x128xbf16>
      %c0_14 = arith.constant 0 : index
      %c0_15 = arith.constant 0 : index
      %17 = vector.load %arg6[%c0_14, %c0_15] : memref<32x128xbf16, #tpu.memory_space<vmem>>, vector<32x128xbf16>
      tpu.vector_store %arg6[%c0_14, %c0_15], %16 {strides = array<i32>} : memref<32x128xbf16, #tpu.memory_space<vmem>>, vector<32x128xbf16>,
    } else {
    }
    return
  }
  func.func @transform_0(%arg0: i32, %arg1: i32, %arg2: i32) -> (i32, i32) {
    %c0_i32 = arith.constant 0 : i32
    return %arg0, %arg2 : i32, i32
  }
  func.func @transform_1(%arg0: i32, %arg1: i32, %arg2: i32) -> (i32, i32) {
    %c0_i32 = arith.constant 0 : i32
    return %arg2, %arg1 : i32, i32
  }
  func.func @transform_2(%arg0: i32, %arg1: i32, %arg2: i32) -> (i32, i32) {
    %c0_i32 = arith.constant 0 : i32
    %c0_i32_0 = arith.constant 0 : i32
    return %c0_i32, %arg1 : i32, i32
  }
  func.func @transform_3(%arg0: i32, %arg1: i32, %arg2: i32) -> (i32, i32) {
    %c0_i32 = arith.constant 0 : i32
    return %arg0, %arg1 : i32, i32
  }
}

module attributes {stable_mosaic.version = 11 : i64} {
  func.func @_mha_kernel(%arg0: i32, %arg1: memref<1x16x128xbf16, #tpu.memory_space<vmem>>, %arg2: memref<1x16x256xbf16, #tpu.memory_space<vmem>>, %arg3: memref<128x128xbf16, #tpu.memory_space<vmem>>, %arg4: memref<1x128xf32, #tpu.memory_space<vmem>>, %arg5: memref<1x16x128xf32, #tpu.memory_space<vmem>>, %arg6: memref<1x16x128xf32, #tpu.memory_space<vmem>>) attributes {dimension_semantics = [#tpu.dimension_semantics<parallel>], iteration_bounds = array<i64: 2>, scalar_prefetch = 0 : i64, scratch_operands = 0 : i64, tpu.core_type = #tpu.core_type<tc>, window_params = [{transform_indices = @transform_0, window_bounds = array<i64: 1, 16, 128>}, {transform_indices = @transform_1, window_bounds = array<i64: 1, 16, 256>}, {pipeline_mode = #tpu.pipeline_mode<synchronous>, transform_indices = @transform_2, window_bounds = array<i64: 128, 128>}, {pipeline_mode = #tpu.pipeline_mode<synchronous>, transform_indices = @transform_3, window_bounds = array<i64: 1, 128>}, {transform_indices = @transform_4, window_bounds = array<i64: 1, 16, 128>}, {transform_indices = @transform_5, window_bounds = array<i64: 1, 16, 128>}]} {
    %c0 = arith.constant 0 : index
    %c0_0 = arith.constant 0 : index
    %c0_1 = arith.constant 0 : index
    %0 = vector.load %arg1[%c0, %c0_0, %c0_1] : memref<1x16x128xbf16, #tpu.memory_space<vmem>>, vector<1x16x128xbf16>
    %1 = vector.shape_cast %0 : vector<1x16x128xbf16> to vector<16x128xbf16>
    %c0_2 = arith.constant 0 : index
    %c0_3 = arith.constant 0 : index
    %c0_4 = arith.constant 0 : index
    %2 = vector.load %arg2[%c0_2, %c0_3, %c0_4] : memref<1x16x256xbf16, #tpu.memory_space<vmem>>, vector<1x16x256xbf16>
    %3 = vector.shape_cast %2 : vector<1x16x256xbf16> to vector<16x256xbf16>
    %4 = vector.extract_strided_slice %3 {offsets = [0, 0], sizes = [16, 128], strides = [1, 1]} : vector<16x256xbf16> to vector<16x128xbf16>
    %5 = vector.extract_strided_slice %3 {offsets = [0, 128], sizes = [16, 128], strides = [1, 1]} : vector<16x256xbf16> to vector<16x128xbf16>
    %6 = vector.extract_strided_slice %1 {offsets = [0, 0], sizes = [16, 32], strides = [1, 1]} : vector<16x128xbf16> to vector<16x32xbf16>
    %7 = vector.extract_strided_slice %4 {offsets = [0, 0], sizes = [16, 32], strides = [1, 1]} : vector<16x128xbf16> to vector<16x32xbf16>
    %cst = arith.constant dense<0.000000e+00> : vector<16x16xf32>
    %8 = tpu.matmul %6, %7, %cst {dimension_numbers = #tpu.dot_dimension_numbers<[1], [1], [0], [0], [0, 0, 1, 0], [], []>} : vector<16x32xbf16>, vector<16x32xbf16>, vector<16x16xf32> -> vector<16x16xf32>
    %cst_5 = arith.constant 0.176776692 : f32
    %9 = vector.broadcast %cst_5 : f32 to vector<16x16xf32>
    %10 = arith.mulf %8, %9 : vector<16x16xf32>
    %cst_6 = arith.constant dense<0xFF800000> : vector<16xf32>
    %11 = vector.multi_reduction <maximumf>, %10, %cst_6 [1] : vector<16x16xf32> to vector<16xf32>
    %12 = vector.shape_cast %11 : vector<16xf32> to vector<16x1xf32>
    %13 = vector.broadcast %12 : vector<16x1xf32> to vector<16x16xf32>
    %14 = arith.subf %10, %13 : vector<16x16xf32>
    %15 = math.exp %14 : vector<16x16xf32>
    %cst_7 = arith.constant dense<0.000000e+00> : vector<16xf32>
    %16 = vector.multi_reduction <add>, %15, %cst_7 [1] : vector<16x16xf32> to vector<16xf32>
    %17 = vector.shape_cast %16 : vector<16xf32> to vector<16x1xf32>
    %18 = tpu.reciprocal %17 {approx = true} : vector<16x1xf32> -> vector<16x1xf32>
    %19 = vector.broadcast %18 : vector<16x1xf32> to vector<16x16xf32>
    %20 = arith.mulf %15, %19 : vector<16x16xf32>
    %21 = arith.truncf %20 : vector<16x16xf32> to vector<16x16xbf16>
    %22 = vector.extract_strided_slice %5 {offsets = [0, 0], sizes = [16, 32], strides = [1, 1]} : vector<16x128xbf16> to vector<16x32xbf16>
    %cst_8 = arith.constant dense<0.000000e+00> : vector<16x32xf32>
    %23 = tpu.matmul %21, %22, %cst_8 {dimension_numbers = #tpu.dot_dimension_numbers<[1], [0], [0], [1], [0, 0, 1, 1], [], []>} : vector<16x16xbf16>, vector<16x32xbf16>, vector<16x32xf32> -> vector<16x32xf32>
    %24 = vector.extract_strided_slice %1 {offsets = [0, 32], sizes = [16, 32], strides = [1, 1]} : vector<16x128xbf16> to vector<16x32xbf16>
    %25 = vector.extract_strided_slice %4 {offsets = [0, 32], sizes = [16, 32], strides = [1, 1]} : vector<16x128xbf16> to vector<16x32xbf16>
    %cst_9 = arith.constant dense<0.000000e+00> : vector<16x16xf32>
    %26 = tpu.matmul %24, %25, %cst_9 {dimension_numbers = #tpu.dot_dimension_numbers<[1], [1], [0], [0], [0, 0, 1, 0], [], []>} : vector<16x32xbf16>, vector<16x32xbf16>, vector<16x16xf32> -> vector<16x16xf32>
    %cst_10 = arith.constant 0.176776692 : f32
    %27 = vector.broadcast %cst_10 : f32 to vector<16x16xf32>
    %28 = arith.mulf %26, %27 : vector<16x16xf32>
    %cst_11 = arith.constant dense<0xFF800000> : vector<16xf32>
    %29 = vector.multi_reduction <maximumf>, %28, %cst_11 [1] : vector<16x16xf32> to vector<16xf32>
    %30 = vector.shape_cast %29 : vector<16xf32> to vector<16x1xf32>
    %31 = vector.broadcast %30 : vector<16x1xf32> to vector<16x16xf32>
    %32 = arith.subf %28, %31 : vector<16x16xf32>
    %33 = math.exp %32 : vector<16x16xf32>
    %cst_12 = arith.constant dense<0.000000e+00> : vector<16xf32>
    %34 = vector.multi_reduction <add>, %33, %cst_12 [1] : vector<16x16xf32> to vector<16xf32>
    %35 = vector.shape_cast %34 : vector<16xf32> to vector<16x1xf32>
    %36 = tpu.reciprocal %35 {approx = true} : vector<16x1xf32> -> vector<16x1xf32>
    %37 = vector.broadcast %36 : vector<16x1xf32> to vector<16x16xf32>
    %38 = arith.mulf %33, %37 : vector<16x16xf32>
    %39 = arith.truncf %38 : vector<16x16xf32> to vector<16x16xbf16>
    %40 = vector.extract_strided_slice %5 {offsets = [0, 32], sizes = [16, 32], strides = [1, 1]} : vector<16x128xbf16> to vector<16x32xbf16>
    %cst_13 = arith.constant dense<0.000000e+00> : vector<16x32xf32>
    %41 = tpu.matmul %39, %40, %cst_13 {dimension_numbers = #tpu.dot_dimension_numbers<[1], [0], [0], [1], [0, 0, 1, 1], [], []>} : vector<16x16xbf16>, vector<16x32xbf16>, vector<16x32xf32> -> vector<16x32xf32>
    %42 = vector.extract_strided_slice %1 {offsets = [0, 64], sizes = [16, 32], strides = [1, 1]} : vector<16x128xbf16> to vector<16x32xbf16>
    %43 = vector.extract_strided_slice %4 {offsets = [0, 64], sizes = [16, 32], strides = [1, 1]} : vector<16x128xbf16> to vector<16x32xbf16>
    %cst_14 = arith.constant dense<0.000000e+00> : vector<16x16xf32>
    %44 = tpu.matmul %42, %43, %cst_14 {dimension_numbers = #tpu.dot_dimension_numbers<[1], [1], [0], [0], [0, 0, 1, 0], [], []>} : vector<16x32xbf16>, vector<16x32xbf16>, vector<16x16xf32> -> vector<16x16xf32>
    %cst_15 = arith.constant 0.176776692 : f32
    %45 = vector.broadcast %cst_15 : f32 to vector<16x16xf32>
    %46 = arith.mulf %44, %45 : vector<16x16xf32>
    %cst_16 = arith.constant dense<0xFF800000> : vector<16xf32>
    %47 = vector.multi_reduction <maximumf>, %46, %cst_16 [1] : vector<16x16xf32> to vector<16xf32>
    %48 = vector.shape_cast %47 : vector<16xf32> to vector<16x1xf32>
    %49 = vector.broadcast %48 : vector<16x1xf32> to vector<16x16xf32>
    %50 = arith.subf %46, %49 : vector<16x16xf32>
    %51 = math.exp %50 : vector<16x16xf32>
    %cst_17 = arith.constant dense<0.000000e+00> : vector<16xf32>
    %52 = vector.multi_reduction <add>, %51, %cst_17 [1] : vector<16x16xf32> to vector<16xf32>
    %53 = vector.shape_cast %52 : vector<16xf32> to vector<16x1xf32>
    %54 = tpu.reciprocal %53 {approx = true} : vector<16x1xf32> -> vector<16x1xf32>
    %55 = vector.broadcast %54 : vector<16x1xf32> to vector<16x16xf32>
    %56 = arith.mulf %51, %55 : vector<16x16xf32>
    %57 = arith.truncf %56 : vector<16x16xf32> to vector<16x16xbf16>
    %58 = vector.extract_strided_slice %5 {offsets = [0, 64], sizes = [16, 32], strides = [1, 1]} : vector<16x128xbf16> to vector<16x32xbf16>
    %cst_18 = arith.constant dense<0.000000e+00> : vector<16x32xf32>
    %59 = tpu.matmul %57, %58, %cst_18 {dimension_numbers = #tpu.dot_dimension_numbers<[1], [0], [0], [1], [0, 0, 1, 1], [], []>} : vector<16x16xbf16>, vector<16x32xbf16>, vector<16x32xf32> -> vector<16x32xf32>
    %60 = vector.extract_strided_slice %1 {offsets = [0, 96], sizes = [16, 32], strides = [1, 1]} : vector<16x128xbf16> to vector<16x32xbf16>
    %61 = vector.extract_strided_slice %4 {offsets = [0, 96], sizes = [16, 32], strides = [1, 1]} : vector<16x128xbf16> to vector<16x32xbf16>
    %cst_19 = arith.constant dense<0.000000e+00> : vector<16x16xf32>
    %62 = tpu.matmul %60, %61, %cst_19 {dimension_numbers = #tpu.dot_dimension_numbers<[1], [1], [0], [0], [0, 0, 1, 0], [], []>} : vector<16x32xbf16>, vector<16x32xbf16>, vector<16x16xf32> -> vector<16x16xf32>
    %cst_20 = arith.constant 0.176776692 : f32
    %63 = vector.broadcast %cst_20 : f32 to vector<16x16xf32>
    %64 = arith.mulf %62, %63 : vector<16x16xf32>
    %cst_21 = arith.constant dense<0xFF800000> : vector<16xf32>
    %65 = vector.multi_reduction <maximumf>, %64, %cst_21 [1] : vector<16x16xf32> to vector<16xf32>
    %66 = vector.shape_cast %65 : vector<16xf32> to vector<16x1xf32>
    %67 = vector.broadcast %66 : vector<16x1xf32> to vector<16x16xf32>
    %68 = arith.subf %64, %67 : vector<16x16xf32>
    %69 = math.exp %68 : vector<16x16xf32>
    %cst_22 = arith.constant dense<0.000000e+00> : vector<16xf32>
    %70 = vector.multi_reduction <add>, %69, %cst_22 [1] : vector<16x16xf32> to vector<16xf32>
    %71 = vector.shape_cast %70 : vector<16xf32> to vector<16x1xf32>
    %72 = tpu.reciprocal %71 {approx = true} : vector<16x1xf32> -> vector<16x1xf32>
    %73 = vector.broadcast %72 : vector<16x1xf32> to vector<16x16xf32>
    %74 = arith.mulf %69, %73 : vector<16x16xf32>
    %75 = arith.truncf %74 : vector<16x16xf32> to vector<16x16xbf16>
    %76 = vector.extract_strided_slice %5 {offsets = [0, 96], sizes = [16, 32], strides = [1, 1]} : vector<16x128xbf16> to vector<16x32xbf16>
    %cst_23 = arith.constant dense<0.000000e+00> : vector<16x32xf32>
    %77 = tpu.matmul %75, %76, %cst_23 {dimension_numbers = #tpu.dot_dimension_numbers<[1], [0], [0], [1], [0, 0, 1, 1], [], []>} : vector<16x16xbf16>, vector<16x32xbf16>, vector<16x32xf32> -> vector<16x32xf32>
    %78 = tpu.concatenate %23, %41, %59, %77 in 1 : vector<16x32xf32>, vector<16x32xf32>, vector<16x32xf32>, vector<16x32xf32> -> vector<16x128xf32>
    %79 = arith.truncf %78 : vector<16x128xf32> to vector<16x128xbf16>
    %c0_24 = arith.constant 0 : index
    %c0_25 = arith.constant 0 : index
    %80 = vector.load %arg3[%c0_24, %c0_25] : memref<128x128xbf16, #tpu.memory_space<vmem>>, vector<128x128xbf16>
    %cst_26 = arith.constant dense<0.000000e+00> : vector<16x128xf32>
    %81 = tpu.matmul %79, %80, %cst_26 {dimension_numbers = #tpu.dot_dimension_numbers<[1], [0], [0], [1], [0, 0, 1, 1], [], []>} : vector<16x128xbf16>, vector<128x128xbf16>, vector<16x128xf32> -> vector<16x128xf32>
    %c0_27 = arith.constant 0 : index
    %c0_28 = arith.constant 0 : index
    %82 = vector.load %arg4[%c0_27, %c0_28] : memref<1x128xf32, #tpu.memory_space<vmem>>, vector<1x128xf32>
    %83 = vector.broadcast %82 : vector<1x128xf32> to vector<16x128xf32>
    %84 = arith.addf %81, %83 : vector<16x128xf32>
    %c0_29 = arith.constant 0 : index
    %c0_30 = arith.constant 0 : index
    %c0_31 = arith.constant 0 : index
    %85 = vector.load %arg5[%c0_29, %c0_30, %c0_31] : memref<1x16x128xf32, #tpu.memory_space<vmem>>, vector<1x16x128xf32>
    %86 = vector.shape_cast %85 : vector<1x16x128xf32> to vector<16x128xf32>
    %87 = arith.addf %84, %86 : vector<16x128xf32>
    %c0_32 = arith.constant 0 : index
    %c0_33 = arith.constant 0 : index
    %c0_34 = arith.constant 0 : index
    %88 = vector.load %arg6[%c0_32, %c0_33, %c0_34] : memref<1x16x128xf32, #tpu.memory_space<vmem>>, vector<1x16x128xf32>
    %89 = vector.shape_cast %88 : vector<1x16x128xf32> to vector<16x128xf32>
    %90 = vector.shape_cast %87 : vector<16x128xf32> to vector<1x16x128xf32>
    tpu.vector_store %arg6[%c0_32, %c0_33, %c0_34], %90 {strides = array<i32>} : memref<1x16x128xf32, #tpu.memory_space<vmem>>, vector<1x16x128xf32>,
    return
  }
  func.func @transform_0(%arg0: i32) -> (i32, i32, i32) {
    %c0_i32 = arith.constant 0 : i32
    %c0_i32_0 = arith.constant 0 : i32
    %c0_i32_1 = arith.constant 0 : i32
    return %arg0, %c0_i32, %c0_i32_0 : i32, i32, i32
  }
  func.func @transform_1(%arg0: i32) -> (i32, i32, i32) {
    %c0_i32 = arith.constant 0 : i32
    %c0_i32_0 = arith.constant 0 : i32
    %c0_i32_1 = arith.constant 0 : i32
    return %arg0, %c0_i32, %c0_i32_0 : i32, i32, i32
  }
  func.func @transform_2(%arg0: i32) -> (i32, i32) {
    %c0_i32 = arith.constant 0 : i32
    %c0_i32_0 = arith.constant 0 : i32
    %c0_i32_1 = arith.constant 0 : i32
    return %c0_i32, %c0_i32_0 : i32, i32
  }
  func.func @transform_3(%arg0: i32) -> (i32, i32) {
    %c0_i32 = arith.constant 0 : i32
    %c0_i32_0 = arith.constant 0 : i32
    %c0_i32_1 = arith.constant 0 : i32
    return %c0_i32, %c0_i32_0 : i32, i32
  }
  func.func @transform_4(%arg0: i32) -> (i32, i32, i32) {
    %c0_i32 = arith.constant 0 : i32
    %c0_i32_0 = arith.constant 0 : i32
    %c0_i32_1 = arith.constant 0 : i32
    return %arg0, %c0_i32, %c0_i32_0 : i32, i32, i32
  }
  func.func @transform_5(%arg0: i32) -> (i32, i32, i32) {
    %c0_i32 = arith.constant 0 : i32
    %c0_i32_0 = arith.constant 0 : i32
    %c0_i32_1 = arith.constant 0 : i32
    return %arg0, %c0_i32, %c0_i32_0 : i32, i32, i32
  }
}

module attributes {stable_mosaic.version = 11 : i64} {
  func.func @_matmul_kernel(%arg0: i32, %arg1: i32, %arg2: i32, %arg3: memref<32x128xbf16, #tpu.memory_space<vmem>>, %arg4: memref<128x512xbf16, #tpu.memory_space<vmem>>, %arg5: memref<1x512xf32, #tpu.memory_space<vmem>>, %arg6: memref<32x512xf32, #tpu.memory_space<vmem>>, %arg7: memref<32x512xf32, #tpu.memory_space<vmem>>) attributes {dimension_semantics = [#tpu.dimension_semantics<parallel>, #tpu.dimension_semantics<parallel>, #tpu.dimension_semantics<arbitrary>], iteration_bounds = array<i64: 1, 1, 1>, scalar_prefetch = 0 : i64, scratch_operands = 1 : i64, tpu.core_type = #tpu.core_type<tc>, window_params = [{transform_indices = @transform_0, window_bounds = array<i64: 32, 128>}, {transform_indices = @transform_1, window_bounds = array<i64: 128, 512>}, {transform_indices = @transform_2, window_bounds = array<i64: 1, 512>}, {transform_indices = @transform_3, window_bounds = array<i64: 32, 512>}]} {
    %c0_i32 = arith.constant 0 : i32
    %0 = arith.cmpi eq, %arg2, %c0_i32 : i32
    %1 = arith.extui %0 : i1 to i32
    %c0_i32_0 = arith.constant 0 : i32
    %2 = arith.cmpi ne, %1, %c0_i32_0 : i32
    scf.if %2 {
      %cst_10 = arith.constant 0.000000e+00 : f32
      %12 = vector.broadcast %cst_10 : f32 to vector<32x512xf32>
      %c0_11 = arith.constant 0 : index
      %c0_12 = arith.constant 0 : index
      %13 = vector.load %arg7[%c0_11, %c0_12] : memref<32x512xf32, #tpu.memory_space<vmem>>, vector<32x512xf32>
      tpu.vector_store %arg7[%c0_11, %c0_12], %12 {strides = array<i32>} : memref<32x512xf32, #tpu.memory_space<vmem>>, vector<32x512xf32>,
    } else {
    }
    %c0 = arith.constant 0 : index
    %c0_1 = arith.constant 0 : index
    %3 = vector.load %arg7[%c0, %c0_1] : memref<32x512xf32, #tpu.memory_space<vmem>>, vector<32x512xf32>
    %c0_2 = arith.constant 0 : index
    %c0_3 = arith.constant 0 : index
    %4 = vector.load %arg3[%c0_2, %c0_3] : memref<32x128xbf16, #tpu.memory_space<vmem>>, vector<32x128xbf16>
    %c0_4 = arith.constant 0 : index
    %c0_5 = arith.constant 0 : index
    %5 = vector.load %arg4[%c0_4, %c0_5] : memref<128x512xbf16, #tpu.memory_space<vmem>>, vector<128x512xbf16>
    %cst = arith.constant dense<0.000000e+00> : vector<32x512xf32>
    %6 = tpu.matmul %4, %5, %cst {dimension_numbers = #tpu.dot_dimension_numbers<[1], [0], [0], [1], [0, 0, 1, 1], [], []>} : vector<32x128xbf16>, vector<128x512xbf16>, vector<32x512xf32> -> vector<32x512xf32>
    %7 = arith.addf %3, %6 : vector<32x512xf32>
    %c0_6 = arith.constant 0 : index
    %c0_7 = arith.constant 0 : index
    %8 = vector.load %arg7[%c0_6, %c0_7] : memref<32x512xf32, #tpu.memory_space<vmem>>, vector<32x512xf32>
    tpu.vector_store %arg7[%c0_6, %c0_7], %7 {strides = array<i32>} : memref<32x512xf32, #tpu.memory_space<vmem>>, vector<32x512xf32>,
    %c0_i32_8 = arith.constant 0 : i32
    %9 = arith.cmpi eq, %arg2, %c0_i32_8 : i32
    %10 = arith.extui %9 : i1 to i32
    %c0_i32_9 = arith.constant 0 : i32
    %11 = arith.cmpi ne, %10, %c0_i32_9 : i32
    scf.if %11 {
      %c0_10 = arith.constant 0 : index
      %c0_11 = arith.constant 0 : index
      %12 = vector.load %arg7[%c0_10, %c0_11] : memref<32x512xf32, #tpu.memory_space<vmem>>, vector<32x512xf32>
      %c0_12 = arith.constant 0 : index
      %c0_13 = arith.constant 0 : index
      %13 = vector.load %arg5[%c0_12, %c0_13] : memref<1x512xf32, #tpu.memory_space<vmem>>, vector<1x512xf32>
      %14 = vector.broadcast %13 : vector<1x512xf32> to vector<32x512xf32>
      %15 = arith.addf %12, %14 : vector<32x512xf32>
      %c0_14 = arith.constant 0 : index
      %c0_15 = arith.constant 0 : index
      %16 = vector.load %arg6[%c0_14, %c0_15] : memref<32x512xf32, #tpu.memory_space<vmem>>, vector<32x512xf32>
      tpu.vector_store %arg6[%c0_14, %c0_15], %15 {strides = array<i32>} : memref<32x512xf32, #tpu.memory_space<vmem>>, vector<32x512xf32>,
    } else {
    }
    return
  }
  func.func @transform_0(%arg0: i32, %arg1: i32, %arg2: i32) -> (i32, i32) {
    %c0_i32 = arith.constant 0 : i32
    return %arg0, %arg2 : i32, i32
  }
  func.func @transform_1(%arg0: i32, %arg1: i32, %arg2: i32) -> (i32, i32) {
    %c0_i32 = arith.constant 0 : i32
    return %arg2, %arg1 : i32, i32
  }
  func.func @transform_2(%arg0: i32, %arg1: i32, %arg2: i32) -> (i32, i32) {
    %c0_i32 = arith.constant 0 : i32
    %c0_i32_0 = arith.constant 0 : i32
    return %c0_i32, %arg1 : i32, i32
  }
  func.func @transform_3(%arg0: i32, %arg1: i32, %arg2: i32) -> (i32, i32) {
    %c0_i32 = arith.constant 0 : i32
    return %arg0, %arg1 : i32, i32
  }
}

module attributes {stable_mosaic.version = 11 : i64} {
  func.func @_matmul_kernel(%arg0: i32, %arg1: i32, %arg2: i32, %arg3: memref<32x128xbf16, #tpu.memory_space<vmem>>, %arg4: memref<128x256xbf16, #tpu.memory_space<vmem>>, %arg5: memref<1x256xf32, #tpu.memory_space<vmem>>, %arg6: memref<32x256xbf16, #tpu.memory_space<vmem>>, %arg7: memref<32x256xf32, #tpu.memory_space<vmem>>) attributes {dimension_semantics = [#tpu.dimension_semantics<parallel>, #tpu.dimension_semantics<parallel>, #tpu.dimension_semantics<arbitrary>], iteration_bounds = array<i64: 1, 1, 1>, scalar_prefetch = 0 : i64, scratch_operands = 1 : i64, tpu.core_type = #tpu.core_type<tc>, window_params = [{transform_indices = @transform_0, window_bounds = array<i64: 32, 128>}, {transform_indices = @transform_1, window_bounds = array<i64: 128, 256>}, {transform_indices = @transform_2, window_bounds = array<i64: 1, 256>}, {transform_indices = @transform_3, window_bounds = array<i64: 32, 256>}]} {
    %c0_i32 = arith.constant 0 : i32
    %0 = arith.cmpi eq, %arg2, %c0_i32 : i32
    %1 = arith.extui %0 : i1 to i32
    %c0_i32_0 = arith.constant 0 : i32
    %2 = arith.cmpi ne, %1, %c0_i32_0 : i32
    scf.if %2 {
      %cst_10 = arith.constant 0.000000e+00 : f32
      %12 = vector.broadcast %cst_10 : f32 to vector<32x256xf32>
      %c0_11 = arith.constant 0 : index
      %c0_12 = arith.constant 0 : index
      %13 = vector.load %arg7[%c0_11, %c0_12] : memref<32x256xf32, #tpu.memory_space<vmem>>, vector<32x256xf32>
      tpu.vector_store %arg7[%c0_11, %c0_12], %12 {strides = array<i32>} : memref<32x256xf32, #tpu.memory_space<vmem>>, vector<32x256xf32>,
    } else {
    }
    %c0 = arith.constant 0 : index
    %c0_1 = arith.constant 0 : index
    %3 = vector.load %arg7[%c0, %c0_1] : memref<32x256xf32, #tpu.memory_space<vmem>>, vector<32x256xf32>
    %c0_2 = arith.constant 0 : index
    %c0_3 = arith.constant 0 : index
    %4 = vector.load %arg3[%c0_2, %c0_3] : memref<32x128xbf16, #tpu.memory_space<vmem>>, vector<32x128xbf16>
    %c0_4 = arith.constant 0 : index
    %c0_5 = arith.constant 0 : index
    %5 = vector.load %arg4[%c0_4, %c0_5] : memref<128x256xbf16, #tpu.memory_space<vmem>>, vector<128x256xbf16>
    %cst = arith.constant dense<0.000000e+00> : vector<32x256xf32>
    %6 = tpu.matmul %4, %5, %cst {dimension_numbers = #tpu.dot_dimension_numbers<[1], [0], [0], [1], [0, 0, 1, 1], [], []>} : vector<32x128xbf16>, vector<128x256xbf16>, vector<32x256xf32> -> vector<32x256xf32>
    %7 = arith.addf %3, %6 : vector<32x256xf32>
    %c0_6 = arith.constant 0 : index
    %c0_7 = arith.constant 0 : index
    %8 = vector.load %arg7[%c0_6, %c0_7] : memref<32x256xf32, #tpu.memory_space<vmem>>, vector<32x256xf32>
    tpu.vector_store %arg7[%c0_6, %c0_7], %7 {strides = array<i32>} : memref<32x256xf32, #tpu.memory_space<vmem>>, vector<32x256xf32>,
    %c0_i32_8 = arith.constant 0 : i32
    %9 = arith.cmpi eq, %arg2, %c0_i32_8 : i32
    %10 = arith.extui %9 : i1 to i32
    %c0_i32_9 = arith.constant 0 : i32
    %11 = arith.cmpi ne, %10, %c0_i32_9 : i32
    scf.if %11 {
      %c0_10 = arith.constant 0 : index
      %c0_11 = arith.constant 0 : index
      %12 = vector.load %arg7[%c0_10, %c0_11] : memref<32x256xf32, #tpu.memory_space<vmem>>, vector<32x256xf32>
      %c0_12 = arith.constant 0 : index
      %c0_13 = arith.constant 0 : index
      %13 = vector.load %arg5[%c0_12, %c0_13] : memref<1x256xf32, #tpu.memory_space<vmem>>, vector<1x256xf32>
      %14 = vector.broadcast %13 : vector<1x256xf32> to vector<32x256xf32>
      %15 = arith.addf %12, %14 : vector<32x256xf32>
      %16 = arith.truncf %15 : vector<32x256xf32> to vector<32x256xbf16>
      %c0_14 = arith.constant 0 : index
      %c0_15 = arith.constant 0 : index
      %17 = vector.load %arg6[%c0_14, %c0_15] : memref<32x256xbf16, #tpu.memory_space<vmem>>, vector<32x256xbf16>
      tpu.vector_store %arg6[%c0_14, %c0_15], %16 {strides = array<i32>} : memref<32x256xbf16, #tpu.memory_space<vmem>>, vector<32x256xbf16>,
    } else {
    }
    return
  }
  func.func @transform_0(%arg0: i32, %arg1: i32, %arg2: i32) -> (i32, i32) {
    %c0_i32 = arith.constant 0 : i32
    return %arg0, %arg2 : i32, i32
  }
  func.func @transform_1(%arg0: i32, %arg1: i32, %arg2: i32) -> (i32, i32) {
    %c0_i32 = arith.constant 0 : i32
    return %arg2, %arg1 : i32, i32
  }
  func.func @transform_2(%arg0: i32, %arg1: i32, %arg2: i32) -> (i32, i32) {
    %c0_i32 = arith.constant 0 : i32
    %c0_i32_0 = arith.constant 0 : i32
    return %c0_i32, %arg1 : i32, i32
  }
  func.func @transform_3(%arg0: i32, %arg1: i32, %arg2: i32) -> (i32, i32) {
    %c0_i32 = arith.constant 0 : i32
    return %arg0, %arg1 : i32, i32
  }
}

module attributes {stable_mosaic.version = 11 : i64} {
  func.func @_matmul_kernel(%arg0: i32, %arg1: i32, %arg2: i32, %arg3: memref<32x512xbf16, #tpu.memory_space<vmem>>, %arg4: memref<512x128xbf16, #tpu.memory_space<vmem>>, %arg5: memref<1x128xf32, #tpu.memory_space<vmem>>, %arg6: memref<32x128xf32, #tpu.memory_space<vmem>>, %arg7: memref<32x128xf32, #tpu.memory_space<vmem>>, %arg8: memref<32x128xf32, #tpu.memory_space<vmem>>) attributes {dimension_semantics = [#tpu.dimension_semantics<parallel>, #tpu.dimension_semantics<parallel>, #tpu.dimension_semantics<arbitrary>], iteration_bounds = array<i64: 1, 1, 1>, scalar_prefetch = 0 : i64, scratch_operands = 1 : i64, tpu.core_type = #tpu.core_type<tc>, window_params = [{transform_indices = @transform_0, window_bounds = array<i64: 32, 512>}, {transform_indices = @transform_1, window_bounds = array<i64: 512, 128>}, {transform_indices = @transform_2, window_bounds = array<i64: 1, 128>}, {transform_indices = @transform_3, window_bounds = array<i64: 32, 128>}, {transform_indices = @transform_4, window_bounds = array<i64: 32, 128>}]} {
    %c0_i32 = arith.constant 0 : i32
    %0 = arith.cmpi eq, %arg2, %c0_i32 : i32
    %1 = arith.extui %0 : i1 to i32
    %c0_i32_0 = arith.constant 0 : i32
    %2 = arith.cmpi ne, %1, %c0_i32_0 : i32
    scf.if %2 {
      %cst_10 = arith.constant 0.000000e+00 : f32
      %12 = vector.broadcast %cst_10 : f32 to vector<32x128xf32>
      %c0_11 = arith.constant 0 : index
      %c0_12 = arith.constant 0 : index
      %13 = vector.load %arg8[%c0_11, %c0_12] : memref<32x128xf32, #tpu.memory_space<vmem>>, vector<32x128xf32>
      tpu.vector_store %arg8[%c0_11, %c0_12], %12 {strides = array<i32>} : memref<32x128xf32, #tpu.memory_space<vmem>>, vector<32x128xf32>,
    } else {
    }
    %c0 = arith.constant 0 : index
    %c0_1 = arith.constant 0 : index
    %3 = vector.load %arg8[%c0, %c0_1] : memref<32x128xf32, #tpu.memory_space<vmem>>, vector<32x128xf32>
    %c0_2 = arith.constant 0 : index
    %c0_3 = arith.constant 0 : index
    %4 = vector.load %arg3[%c0_2, %c0_3] : memref<32x512xbf16, #tpu.memory_space<vmem>>, vector<32x512xbf16>
    %c0_4 = arith.constant 0 : index
    %c0_5 = arith.constant 0 : index
    %5 = vector.load %arg4[%c0_4, %c0_5] : memref<512x128xbf16, #tpu.memory_space<vmem>>, vector<512x128xbf16>
    %cst = arith.constant dense<0.000000e+00> : vector<32x128xf32>
    %6 = tpu.matmul %4, %5, %cst {dimension_numbers = #tpu.dot_dimension_numbers<[1], [0], [0], [1], [0, 0, 1, 1], [], []>} : vector<32x512xbf16>, vector<512x128xbf16>, vector<32x128xf32> -> vector<32x128xf32>
    %7 = arith.addf %3, %6 : vector<32x128xf32>
    %c0_6 = arith.constant 0 : index
    %c0_7 = arith.constant 0 : index
    %8 = vector.load %arg8[%c0_6, %c0_7] : memref<32x128xf32, #tpu.memory_space<vmem>>, vector<32x128xf32>
    tpu.vector_store %arg8[%c0_6, %c0_7], %7 {strides = array<i32>} : memref<32x128xf32, #tpu.memory_space<vmem>>, vector<32x128xf32>,
    %c0_i32_8 = arith.constant 0 : i32
    %9 = arith.cmpi eq, %arg2, %c0_i32_8 : i32
    %10 = arith.extui %9 : i1 to i32
    %c0_i32_9 = arith.constant 0 : i32
    %11 = arith.cmpi ne, %10, %c0_i32_9 : i32
    scf.if %11 {
      %c0_10 = arith.constant 0 : index
      %c0_11 = arith.constant 0 : index
      %12 = vector.load %arg8[%c0_10, %c0_11] : memref<32x128xf32, #tpu.memory_space<vmem>>, vector<32x128xf32>
      %c0_12 = arith.constant 0 : index
      %c0_13 = arith.constant 0 : index
      %13 = vector.load %arg5[%c0_12, %c0_13] : memref<1x128xf32, #tpu.memory_space<vmem>>, vector<1x128xf32>
      %14 = vector.broadcast %13 : vector<1x128xf32> to vector<32x128xf32>
      %15 = arith.addf %12, %14 : vector<32x128xf32>
      %c0_14 = arith.constant 0 : index
      %c0_15 = arith.constant 0 : index
      %16 = vector.load %arg6[%c0_14, %c0_15] : memref<32x128xf32, #tpu.memory_space<vmem>>, vector<32x128xf32>
      %17 = arith.addf %15, %16 : vector<32x128xf32>
      %c0_16 = arith.constant 0 : index
      %c0_17 = arith.constant 0 : index
      %18 = vector.load %arg7[%c0_16, %c0_17] : memref<32x128xf32, #tpu.memory_space<vmem>>, vector<32x128xf32>
      tpu.vector_store %arg7[%c0_16, %c0_17], %17 {strides = array<i32>} : memref<32x128xf32, #tpu.memory_space<vmem>>, vector<32x128xf32>,
    } else {
    }
    return
  }
  func.func @transform_0(%arg0: i32, %arg1: i32, %arg2: i32) -> (i32, i32) {
    %c0_i32 = arith.constant 0 : i32
    return %arg0, %arg2 : i32, i32
  }
  func.func @transform_1(%arg0: i32, %arg1: i32, %arg2: i32) -> (i32, i32) {
    %c0_i32 = arith.constant 0 : i32
    return %arg2, %arg1 : i32, i32
  }
  func.func @transform_2(%arg0: i32, %arg1: i32, %arg2: i32) -> (i32, i32) {
    %c0_i32 = arith.constant 0 : i32
    %c0_i32_0 = arith.constant 0 : i32
    return %c0_i32, %arg1 : i32, i32
  }
  func.func @transform_3(%arg0: i32, %arg1: i32, %arg2: i32) -> (i32, i32) {
    %c0_i32 = arith.constant 0 : i32
    return %arg0, %arg1 : i32, i32
  }
  func.func @transform_4(%arg0: i32, %arg1: i32, %arg2: i32) -> (i32, i32) {
    %c0_i32 = arith.constant 0 : i32
    return %arg0, %arg1 : i32, i32
  }
}

module attributes {stable_mosaic.version = 11 : i64} {
  func.func @_matmul_kernel(%arg0: i32, %arg1: i32, %arg2: i32, %arg3: memref<32x128xbf16, #tpu.memory_space<vmem>>, %arg4: memref<128x128xbf16, #tpu.memory_space<vmem>>, %arg5: memref<1x128xf32, #tpu.memory_space<vmem>>, %arg6: memref<32x128xf32, #tpu.memory_space<vmem>>, %arg7: memref<32x128xf32, #tpu.memory_space<vmem>>) attributes {dimension_semantics = [#tpu.dimension_semantics<parallel>, #tpu.dimension_semantics<parallel>, #tpu.dimension_semantics<arbitrary>], iteration_bounds = array<i64: 1, 1, 1>, scalar_prefetch = 0 : i64, scratch_operands = 1 : i64, tpu.core_type = #tpu.core_type<tc>, window_params = [{transform_indices = @transform_0, window_bounds = array<i64: 32, 128>}, {transform_indices = @transform_1, window_bounds = array<i64: 128, 128>}, {transform_indices = @transform_2, window_bounds = array<i64: 1, 128>}, {transform_indices = @transform_3, window_bounds = array<i64: 32, 128>}]} {
    %c0_i32 = arith.constant 0 : i32
    %0 = arith.cmpi eq, %arg2, %c0_i32 : i32
    %1 = arith.extui %0 : i1 to i32
    %c0_i32_0 = arith.constant 0 : i32
    %2 = arith.cmpi ne, %1, %c0_i32_0 : i32
    scf.if %2 {
      %cst_10 = arith.constant 0.000000e+00 : f32
      %12 = vector.broadcast %cst_10 : f32 to vector<32x128xf32>
      %c0_11 = arith.constant 0 : index
      %c0_12 = arith.constant 0 : index
      %13 = vector.load %arg7[%c0_11, %c0_12] : memref<32x128xf32, #tpu.memory_space<vmem>>, vector<32x128xf32>
      tpu.vector_store %arg7[%c0_11, %c0_12], %12 {strides = array<i32>} : memref<32x128xf32, #tpu.memory_space<vmem>>, vector<32x128xf32>,
    } else {
    }
    %c0 = arith.constant 0 : index
    %c0_1 = arith.constant 0 : index
    %3 = vector.load %arg7[%c0, %c0_1] : memref<32x128xf32, #tpu.memory_space<vmem>>, vector<32x128xf32>
    %c0_2 = arith.constant 0 : index
    %c0_3 = arith.constant 0 : index
    %4 = vector.load %arg3[%c0_2, %c0_3] : memref<32x128xbf16, #tpu.memory_space<vmem>>, vector<32x128xbf16>
    %c0_4 = arith.constant 0 : index
    %c0_5 = arith.constant 0 : index
    %5 = vector.load %arg4[%c0_4, %c0_5] : memref<128x128xbf16, #tpu.memory_space<vmem>>, vector<128x128xbf16>
    %cst = arith.constant dense<0.000000e+00> : vector<32x128xf32>
    %6 = tpu.matmul %4, %5, %cst {dimension_numbers = #tpu.dot_dimension_numbers<[1], [0], [0], [1], [0, 0, 1, 1], [], []>} : vector<32x128xbf16>, vector<128x128xbf16>, vector<32x128xf32> -> vector<32x128xf32>
    %7 = arith.addf %3, %6 : vector<32x128xf32>
    %c0_6 = arith.constant 0 : index
    %c0_7 = arith.constant 0 : index
    %8 = vector.load %arg7[%c0_6, %c0_7] : memref<32x128xf32, #tpu.memory_space<vmem>>, vector<32x128xf32>
    tpu.vector_store %arg7[%c0_6, %c0_7], %7 {strides = array<i32>} : memref<32x128xf32, #tpu.memory_space<vmem>>, vector<32x128xf32>,
    %c0_i32_8 = arith.constant 0 : i32
    %9 = arith.cmpi eq, %arg2, %c0_i32_8 : i32
    %10 = arith.extui %9 : i1 to i32
    %c0_i32_9 = arith.constant 0 : i32
    %11 = arith.cmpi ne, %10, %c0_i32_9 : i32
    scf.if %11 {
      %c0_10 = arith.constant 0 : index
      %c0_11 = arith.constant 0 : index
      %12 = vector.load %arg7[%c0_10, %c0_11] : memref<32x128xf32, #tpu.memory_space<vmem>>, vector<32x128xf32>
      %c0_12 = arith.constant 0 : index
      %c0_13 = arith.constant 0 : index
      %13 = vector.load %arg5[%c0_12, %c0_13] : memref<1x128xf32, #tpu.memory_space<vmem>>, vector<1x128xf32>
      %14 = vector.broadcast %13 : vector<1x128xf32> to vector<32x128xf32>
      %15 = arith.addf %12, %14 : vector<32x128xf32>
      %c0_14 = arith.constant 0 : index
      %c0_15 = arith.constant 0 : index
      %16 = vector.load %arg6[%c0_14, %c0_15] : memref<32x128xf32, #tpu.memory_space<vmem>>, vector<32x128xf32>
      tpu.vector_store %arg6[%c0_14, %c0_15], %15 {strides = array<i32>} : memref<32x128xf32, #tpu.memory_space<vmem>>, vector<32x128xf32>,
    } else {
    }
    return
  }
  func.func @transform_0(%arg0: i32, %arg1: i32, %arg2: i32) -> (i32, i32) {
    %c0_i32 = arith.constant 0 : i32
    return %arg0, %arg2 : i32, i32
  }
  func.func @transform_1(%arg0: i32, %arg1: i32, %arg2: i32) -> (i32, i32) {
    %c0_i32 = arith.constant 0 : i32
    return %arg2, %arg1 : i32, i32
  }
  func.func @transform_2(%arg0: i32, %arg1: i32, %arg2: i32) -> (i32, i32) {
    %c0_i32 = arith.constant 0 : i32
    %c0_i32_0 = arith.constant 0 : i32
    return %c0_i32, %arg1 : i32, i32
  }
  func.func @transform_3(%arg0: i32, %arg1: i32, %arg2: i32) -> (i32, i32) {
    %c0_i32 = arith.constant 0 : i32
    return %arg0, %arg1 : i32, i32
  }
}

module attributes {stable_mosaic.version = 11 : i64} {
  func.func @_conv3x3_kernel(%arg0: i32, %arg1: memref<1x6x768xbf16, #tpu.memory_space<vmem>>, %arg2: memref<3x384x128xbf16, #tpu.memory_space<vmem>>, %arg3: memref<1x4x512xf32, #tpu.memory_space<vmem>>) attributes {dimension_semantics = [#tpu.dimension_semantics<parallel>], iteration_bounds = array<i64: 2>, scalar_prefetch = 0 : i64, scratch_operands = 0 : i64, tpu.core_type = #tpu.core_type<tc>, window_params = [{transform_indices = @transform_0, window_bounds = array<i64: 1, 6, 768>}, {pipeline_mode = #tpu.pipeline_mode<synchronous>, transform_indices = @transform_1, window_bounds = array<i64: 3, 384, 128>}, {transform_indices = @transform_2, window_bounds = array<i64: 1, 4, 512>}]} {
    %c0 = arith.constant 0 : index
    %c0_0 = arith.constant 0 : index
    %c0_1 = arith.constant 0 : index
    %0 = vector.load %arg1[%c0, %c0_0, %c0_1] : memref<1x6x768xbf16, #tpu.memory_space<vmem>>, vector<1x6x768xbf16>
    %1 = vector.shape_cast %0 : vector<1x6x768xbf16> to vector<6x768xbf16>
    %cst = arith.constant 0.000000e+00 : f32
    %2 = vector.broadcast %cst : f32 to vector<4x128xf32>
    %3 = vector.extract_strided_slice %1 {offsets = [0, 0], sizes = [4, 384], strides = [1, 1]} : vector<6x768xbf16> to vector<4x384xbf16>
    %c0_2 = arith.constant 0 : index
    %c0_3 = arith.constant 0 : index
    %c0_4 = arith.constant 0 : index
    %4 = vector.load %arg2[%c0_2, %c0_3, %c0_4] : memref<3x384x128xbf16, #tpu.memory_space<vmem>>, vector<1x384x128xbf16>
    %5 = vector.shape_cast %4 : vector<1x384x128xbf16> to vector<384x128xbf16>
    %cst_5 = arith.constant dense<0.000000e+00> : vector<4x128xf32>
    %6 = tpu.matmul %3, %5, %cst_5 {dimension_numbers = #tpu.dot_dimension_numbers<[1], [0], [0], [1], [0, 0, 1, 1], [], []>} : vector<4x384xbf16>, vector<384x128xbf16>, vector<4x128xf32> -> vector<4x128xf32>
    %7 = arith.addf %2, %6 : vector<4x128xf32>
    %8 = vector.extract_strided_slice %1 {offsets = [1, 0], sizes = [4, 384], strides = [1, 1]} : vector<6x768xbf16> to vector<4x384xbf16>
    %c1 = arith.constant 1 : index
    %c0_6 = arith.constant 0 : index
    %c0_7 = arith.constant 0 : index
    %9 = vector.load %arg2[%c1, %c0_6, %c0_7] : memref<3x384x128xbf16, #tpu.memory_space<vmem>>, vector<1x384x128xbf16>
    %10 = vector.shape_cast %9 : vector<1x384x128xbf16> to vector<384x128xbf16>
    %cst_8 = arith.constant dense<0.000000e+00> : vector<4x128xf32>
    %11 = tpu.matmul %8, %10, %cst_8 {dimension_numbers = #tpu.dot_dimension_numbers<[1], [0], [0], [1], [0, 0, 1, 1], [], []>} : vector<4x384xbf16>, vector<384x128xbf16>, vector<4x128xf32> -> vector<4x128xf32>
    %12 = arith.addf %7, %11 : vector<4x128xf32>
    %13 = vector.extract_strided_slice %1 {offsets = [2, 0], sizes = [4, 384], strides = [1, 1]} : vector<6x768xbf16> to vector<4x384xbf16>
    %c2 = arith.constant 2 : index
    %c0_9 = arith.constant 0 : index
    %c0_10 = arith.constant 0 : index
    %14 = vector.load %arg2[%c2, %c0_9, %c0_10] : memref<3x384x128xbf16, #tpu.memory_space<vmem>>, vector<1x384x128xbf16>
    %15 = vector.shape_cast %14 : vector<1x384x128xbf16> to vector<384x128xbf16>
    %cst_11 = arith.constant dense<0.000000e+00> : vector<4x128xf32>
    %16 = tpu.matmul %13, %15, %cst_11 {dimension_numbers = #tpu.dot_dimension_numbers<[1], [0], [0], [1], [0, 0, 1, 1], [], []>} : vector<4x384xbf16>, vector<384x128xbf16>, vector<4x128xf32> -> vector<4x128xf32>
    %17 = arith.addf %12, %16 : vector<4x128xf32>
    %cst_12 = arith.constant 0.000000e+00 : f32
    %18 = vector.broadcast %cst_12 : f32 to vector<4x128xf32>
    %19 = vector.extract_strided_slice %1 {offsets = [0, 128], sizes = [4, 384], strides = [1, 1]} : vector<6x768xbf16> to vector<4x384xbf16>
    %c0_13 = arith.constant 0 : index
    %c0_14 = arith.constant 0 : index
    %c0_15 = arith.constant 0 : index
    %20 = vector.load %arg2[%c0_13, %c0_14, %c0_15] : memref<3x384x128xbf16, #tpu.memory_space<vmem>>, vector<1x384x128xbf16>
    %21 = vector.shape_cast %20 : vector<1x384x128xbf16> to vector<384x128xbf16>
    %cst_16 = arith.constant dense<0.000000e+00> : vector<4x128xf32>
    %22 = tpu.matmul %19, %21, %cst_16 {dimension_numbers = #tpu.dot_dimension_numbers<[1], [0], [0], [1], [0, 0, 1, 1], [], []>} : vector<4x384xbf16>, vector<384x128xbf16>, vector<4x128xf32> -> vector<4x128xf32>
    %23 = arith.addf %18, %22 : vector<4x128xf32>
    %24 = vector.extract_strided_slice %1 {offsets = [1, 128], sizes = [4, 384], strides = [1, 1]} : vector<6x768xbf16> to vector<4x384xbf16>
    %c1_17 = arith.constant 1 : index
    %c0_18 = arith.constant 0 : index
    %c0_19 = arith.constant 0 : index
    %25 = vector.load %arg2[%c1_17, %c0_18, %c0_19] : memref<3x384x128xbf16, #tpu.memory_space<vmem>>, vector<1x384x128xbf16>
    %26 = vector.shape_cast %25 : vector<1x384x128xbf16> to vector<384x128xbf16>
    %cst_20 = arith.constant dense<0.000000e+00> : vector<4x128xf32>
    %27 = tpu.matmul %24, %26, %cst_20 {dimension_numbers = #tpu.dot_dimension_numbers<[1], [0], [0], [1], [0, 0, 1, 1], [], []>} : vector<4x384xbf16>, vector<384x128xbf16>, vector<4x128xf32> -> vector<4x128xf32>
    %28 = arith.addf %23, %27 : vector<4x128xf32>
    %29 = vector.extract_strided_slice %1 {offsets = [2, 128], sizes = [4, 384], strides = [1, 1]} : vector<6x768xbf16> to vector<4x384xbf16>
    %c2_21 = arith.constant 2 : index
    %c0_22 = arith.constant 0 : index
    %c0_23 = arith.constant 0 : index
    %30 = vector.load %arg2[%c2_21, %c0_22, %c0_23] : memref<3x384x128xbf16, #tpu.memory_space<vmem>>, vector<1x384x128xbf16>
    %31 = vector.shape_cast %30 : vector<1x384x128xbf16> to vector<384x128xbf16>
    %cst_24 = arith.constant dense<0.000000e+00> : vector<4x128xf32>
    %32 = tpu.matmul %29, %31, %cst_24 {dimension_numbers = #tpu.dot_dimension_numbers<[1], [0], [0], [1], [0, 0, 1, 1], [], []>} : vector<4x384xbf16>, vector<384x128xbf16>, vector<4x128xf32> -> vector<4x128xf32>
    %33 = arith.addf %28, %32 : vector<4x128xf32>
    %cst_25 = arith.constant 0.000000e+00 : f32
    %34 = vector.broadcast %cst_25 : f32 to vector<4x128xf32>
    %35 = vector.extract_strided_slice %1 {offsets = [0, 256], sizes = [4, 384], strides = [1, 1]} : vector<6x768xbf16> to vector<4x384xbf16>
    %c0_26 = arith.constant 0 : index
    %c0_27 = arith.constant 0 : index
    %c0_28 = arith.constant 0 : index
    %36 = vector.load %arg2[%c0_26, %c0_27, %c0_28] : memref<3x384x128xbf16, #tpu.memory_space<vmem>>, vector<1x384x128xbf16>
    %37 = vector.shape_cast %36 : vector<1x384x128xbf16> to vector<384x128xbf16>
    %cst_29 = arith.constant dense<0.000000e+00> : vector<4x128xf32>
    %38 = tpu.matmul %35, %37, %cst_29 {dimension_numbers = #tpu.dot_dimension_numbers<[1], [0], [0], [1], [0, 0, 1, 1], [], []>} : vector<4x384xbf16>, vector<384x128xbf16>, vector<4x128xf32> -> vector<4x128xf32>
    %39 = arith.addf %34, %38 : vector<4x128xf32>
    %40 = vector.extract_strided_slice %1 {offsets = [1, 256], sizes = [4, 384], strides = [1, 1]} : vector<6x768xbf16> to vector<4x384xbf16>
    %c1_30 = arith.constant 1 : index
    %c0_31 = arith.constant 0 : index
    %c0_32 = arith.constant 0 : index
    %41 = vector.load %arg2[%c1_30, %c0_31, %c0_32] : memref<3x384x128xbf16, #tpu.memory_space<vmem>>, vector<1x384x128xbf16>
    %42 = vector.shape_cast %41 : vector<1x384x128xbf16> to vector<384x128xbf16>
    %cst_33 = arith.constant dense<0.000000e+00> : vector<4x128xf32>
    %43 = tpu.matmul %40, %42, %cst_33 {dimension_numbers = #tpu.dot_dimension_numbers<[1], [0], [0], [1], [0, 0, 1, 1], [], []>} : vector<4x384xbf16>, vector<384x128xbf16>, vector<4x128xf32> -> vector<4x128xf32>
    %44 = arith.addf %39, %43 : vector<4x128xf32>
    %45 = vector.extract_strided_slice %1 {offsets = [2, 256], sizes = [4, 384], strides = [1, 1]} : vector<6x768xbf16> to vector<4x384xbf16>
    %c2_34 = arith.constant 2 : index
    %c0_35 = arith.constant 0 : index
    %c0_36 = arith.constant 0 : index
    %46 = vector.load %arg2[%c2_34, %c0_35, %c0_36] : memref<3x384x128xbf16, #tpu.memory_space<vmem>>, vector<1x384x128xbf16>
    %47 = vector.shape_cast %46 : vector<1x384x128xbf16> to vector<384x128xbf16>
    %cst_37 = arith.constant dense<0.000000e+00> : vector<4x128xf32>
    %48 = tpu.matmul %45, %47, %cst_37 {dimension_numbers = #tpu.dot_dimension_numbers<[1], [0], [0], [1], [0, 0, 1, 1], [], []>} : vector<4x384xbf16>, vector<384x128xbf16>, vector<4x128xf32> -> vector<4x128xf32>
    %49 = arith.addf %44, %48 : vector<4x128xf32>
    %cst_38 = arith.constant 0.000000e+00 : f32
    %50 = vector.broadcast %cst_38 : f32 to vector<4x128xf32>
    %51 = vector.extract_strided_slice %1 {offsets = [0, 384], sizes = [4, 384], strides = [1, 1]} : vector<6x768xbf16> to vector<4x384xbf16>
    %c0_39 = arith.constant 0 : index
    %c0_40 = arith.constant 0 : index
    %c0_41 = arith.constant 0 : index
    %52 = vector.load %arg2[%c0_39, %c0_40, %c0_41] : memref<3x384x128xbf16, #tpu.memory_space<vmem>>, vector<1x384x128xbf16>
    %53 = vector.shape_cast %52 : vector<1x384x128xbf16> to vector<384x128xbf16>
    %cst_42 = arith.constant dense<0.000000e+00> : vector<4x128xf32>
    %54 = tpu.matmul %51, %53, %cst_42 {dimension_numbers = #tpu.dot_dimension_numbers<[1], [0], [0], [1], [0, 0, 1, 1], [], []>} : vector<4x384xbf16>, vector<384x128xbf16>, vector<4x128xf32> -> vector<4x128xf32>
    %55 = arith.addf %50, %54 : vector<4x128xf32>
    %56 = vector.extract_strided_slice %1 {offsets = [1, 384], sizes = [4, 384], strides = [1, 1]} : vector<6x768xbf16> to vector<4x384xbf16>
    %c1_43 = arith.constant 1 : index
    %c0_44 = arith.constant 0 : index
    %c0_45 = arith.constant 0 : index
    %57 = vector.load %arg2[%c1_43, %c0_44, %c0_45] : memref<3x384x128xbf16, #tpu.memory_space<vmem>>, vector<1x384x128xbf16>
    %58 = vector.shape_cast %57 : vector<1x384x128xbf16> to vector<384x128xbf16>
    %cst_46 = arith.constant dense<0.000000e+00> : vector<4x128xf32>
    %59 = tpu.matmul %56, %58, %cst_46 {dimension_numbers = #tpu.dot_dimension_numbers<[1], [0], [0], [1], [0, 0, 1, 1], [], []>} : vector<4x384xbf16>, vector<384x128xbf16>, vector<4x128xf32> -> vector<4x128xf32>
    %60 = arith.addf %55, %59 : vector<4x128xf32>
    %61 = vector.extract_strided_slice %1 {offsets = [2, 384], sizes = [4, 384], strides = [1, 1]} : vector<6x768xbf16> to vector<4x384xbf16>
    %c2_47 = arith.constant 2 : index
    %c0_48 = arith.constant 0 : index
    %c0_49 = arith.constant 0 : index
    %62 = vector.load %arg2[%c2_47, %c0_48, %c0_49] : memref<3x384x128xbf16, #tpu.memory_space<vmem>>, vector<1x384x128xbf16>
    %63 = vector.shape_cast %62 : vector<1x384x128xbf16> to vector<384x128xbf16>
    %cst_50 = arith.constant dense<0.000000e+00> : vector<4x128xf32>
    %64 = tpu.matmul %61, %63, %cst_50 {dimension_numbers = #tpu.dot_dimension_numbers<[1], [0], [0], [1], [0, 0, 1, 1], [], []>} : vector<4x384xbf16>, vector<384x128xbf16>, vector<4x128xf32> -> vector<4x128xf32>
    %65 = arith.addf %60, %64 : vector<4x128xf32>
    %66 = tpu.concatenate %17, %33, %49, %65 in 1 : vector<4x128xf32>, vector<4x128xf32>, vector<4x128xf32>, vector<4x128xf32> -> vector<4x512xf32>
    %c0_51 = arith.constant 0 : index
    %c0_52 = arith.constant 0 : index
    %c0_53 = arith.constant 0 : index
    %67 = vector.load %arg3[%c0_51, %c0_52, %c0_53] : memref<1x4x512xf32, #tpu.memory_space<vmem>>, vector<1x4x512xf32>
    %68 = vector.shape_cast %67 : vector<1x4x512xf32> to vector<4x512xf32>
    %69 = vector.shape_cast %66 : vector<4x512xf32> to vector<1x4x512xf32>
    tpu.vector_store %arg3[%c0_51, %c0_52, %c0_53], %69 {strides = array<i32>} : memref<1x4x512xf32, #tpu.memory_space<vmem>>, vector<1x4x512xf32>,
    return
  }
  func.func @transform_0(%arg0: i32) -> (i32, i32, i32) {
    %c0_i32 = arith.constant 0 : i32
    %c0_i32_0 = arith.constant 0 : i32
    %c0_i32_1 = arith.constant 0 : i32
    return %arg0, %c0_i32, %c0_i32_0 : i32, i32, i32
  }
  func.func @transform_1(%arg0: i32) -> (i32, i32, i32) {
    %c0_i32 = arith.constant 0 : i32
    %c0_i32_0 = arith.constant 0 : i32
    %c0_i32_1 = arith.constant 0 : i32
    %c0_i32_2 = arith.constant 0 : i32
    return %c0_i32, %c0_i32_0, %c0_i32_1 : i32, i32, i32
  }
  func.func @transform_2(%arg0: i32) -> (i32, i32, i32) {
    %c0_i32 = arith.constant 0 : i32
    %c0_i32_0 = arith.constant 0 : i32
    %c0_i32_1 = arith.constant 0 : i32
    return %arg0, %c0_i32, %c0_i32_0 : i32, i32, i32
  }
}

module attributes {stable_mosaic.version = 11 : i64} {
  func.func @_matmul_kernel(%arg0: i32, %arg1: i32, %arg2: i32, %arg3: memref<8x128xbf16, #tpu.memory_space<vmem>>, %arg4: memref<128x128xbf16, #tpu.memory_space<vmem>>, %arg5: memref<1x128xf32, #tpu.memory_space<vmem>>, %arg6: memref<8x128xf32, #tpu.memory_space<vmem>>, %arg7: memref<8x128xf32, #tpu.memory_space<vmem>>) attributes {dimension_semantics = [#tpu.dimension_semantics<parallel>, #tpu.dimension_semantics<parallel>, #tpu.dimension_semantics<arbitrary>], iteration_bounds = array<i64: 1, 1, 1>, scalar_prefetch = 0 : i64, scratch_operands = 1 : i64, tpu.core_type = #tpu.core_type<tc>, window_params = [{transform_indices = @transform_0, window_bounds = array<i64: 8, 128>}, {transform_indices = @transform_1, window_bounds = array<i64: 128, 128>}, {transform_indices = @transform_2, window_bounds = array<i64: 1, 128>}, {transform_indices = @transform_3, window_bounds = array<i64: 8, 128>}]} {
    %c0_i32 = arith.constant 0 : i32
    %0 = arith.cmpi eq, %arg2, %c0_i32 : i32
    %1 = arith.extui %0 : i1 to i32
    %c0_i32_0 = arith.constant 0 : i32
    %2 = arith.cmpi ne, %1, %c0_i32_0 : i32
    scf.if %2 {
      %cst_10 = arith.constant 0.000000e+00 : f32
      %12 = vector.broadcast %cst_10 : f32 to vector<8x128xf32>
      %c0_11 = arith.constant 0 : index
      %c0_12 = arith.constant 0 : index
      %13 = vector.load %arg7[%c0_11, %c0_12] : memref<8x128xf32, #tpu.memory_space<vmem>>, vector<8x128xf32>
      tpu.vector_store %arg7[%c0_11, %c0_12], %12 {strides = array<i32>} : memref<8x128xf32, #tpu.memory_space<vmem>>, vector<8x128xf32>,
    } else {
    }
    %c0 = arith.constant 0 : index
    %c0_1 = arith.constant 0 : index
    %3 = vector.load %arg7[%c0, %c0_1] : memref<8x128xf32, #tpu.memory_space<vmem>>, vector<8x128xf32>
    %c0_2 = arith.constant 0 : index
    %c0_3 = arith.constant 0 : index
    %4 = vector.load %arg3[%c0_2, %c0_3] : memref<8x128xbf16, #tpu.memory_space<vmem>>, vector<8x128xbf16>
    %c0_4 = arith.constant 0 : index
    %c0_5 = arith.constant 0 : index
    %5 = vector.load %arg4[%c0_4, %c0_5] : memref<128x128xbf16, #tpu.memory_space<vmem>>, vector<128x128xbf16>
    %cst = arith.constant dense<0.000000e+00> : vector<8x128xf32>
    %6 = tpu.matmul %4, %5, %cst {dimension_numbers = #tpu.dot_dimension_numbers<[1], [0], [0], [1], [0, 0, 1, 1], [], []>} : vector<8x128xbf16>, vector<128x128xbf16>, vector<8x128xf32> -> vector<8x128xf32>
    %7 = arith.addf %3, %6 : vector<8x128xf32>
    %c0_6 = arith.constant 0 : index
    %c0_7 = arith.constant 0 : index
    %8 = vector.load %arg7[%c0_6, %c0_7] : memref<8x128xf32, #tpu.memory_space<vmem>>, vector<8x128xf32>
    tpu.vector_store %arg7[%c0_6, %c0_7], %7 {strides = array<i32>} : memref<8x128xf32, #tpu.memory_space<vmem>>, vector<8x128xf32>,
    %c0_i32_8 = arith.constant 0 : i32
    %9 = arith.cmpi eq, %arg2, %c0_i32_8 : i32
    %10 = arith.extui %9 : i1 to i32
    %c0_i32_9 = arith.constant 0 : i32
    %11 = arith.cmpi ne, %10, %c0_i32_9 : i32
    scf.if %11 {
      %c0_10 = arith.constant 0 : index
      %c0_11 = arith.constant 0 : index
      %12 = vector.load %arg7[%c0_10, %c0_11] : memref<8x128xf32, #tpu.memory_space<vmem>>, vector<8x128xf32>
      %c0_12 = arith.constant 0 : index
      %c0_13 = arith.constant 0 : index
      %13 = vector.load %arg5[%c0_12, %c0_13] : memref<1x128xf32, #tpu.memory_space<vmem>>, vector<1x128xf32>
      %14 = vector.broadcast %13 : vector<1x128xf32> to vector<8x128xf32>
      %15 = arith.addf %12, %14 : vector<8x128xf32>
      %c0_14 = arith.constant 0 : index
      %c0_15 = arith.constant 0 : index
      %16 = vector.load %arg6[%c0_14, %c0_15] : memref<8x128xf32, #tpu.memory_space<vmem>>, vector<8x128xf32>
      tpu.vector_store %arg6[%c0_14, %c0_15], %15 {strides = array<i32>} : memref<8x128xf32, #tpu.memory_space<vmem>>, vector<8x128xf32>,
    } else {
    }
    return
  }
  func.func @transform_0(%arg0: i32, %arg1: i32, %arg2: i32) -> (i32, i32) {
    %c0_i32 = arith.constant 0 : i32
    return %arg0, %arg2 : i32, i32
  }
  func.func @transform_1(%arg0: i32, %arg1: i32, %arg2: i32) -> (i32, i32) {
    %c0_i32 = arith.constant 0 : i32
    return %arg2, %arg1 : i32, i32
  }
  func.func @transform_2(%arg0: i32, %arg1: i32, %arg2: i32) -> (i32, i32) {
    %c0_i32 = arith.constant 0 : i32
    %c0_i32_0 = arith.constant 0 : i32
    return %c0_i32, %arg1 : i32, i32
  }
  func.func @transform_3(%arg0: i32, %arg1: i32, %arg2: i32) -> (i32, i32) {
    %c0_i32 = arith.constant 0 : i32
    return %arg0, %arg1 : i32, i32
  }
}

module attributes {stable_mosaic.version = 11 : i64} {
  func.func @_layernorm_kernel(%arg0: i32, %arg1: memref<16x128xf32, #tpu.memory_space<vmem>>, %arg2: memref<1x128xf32, #tpu.memory_space<vmem>>, %arg3: memref<1x128xf32, #tpu.memory_space<vmem>>, %arg4: memref<16x128xbf16, #tpu.memory_space<vmem>>) attributes {dimension_semantics = [#tpu.dimension_semantics<parallel>], iteration_bounds = array<i64: 1>, scalar_prefetch = 0 : i64, scratch_operands = 0 : i64, tpu.core_type = #tpu.core_type<tc>, window_params = [{transform_indices = @transform_0, window_bounds = array<i64: 16, 128>}, {pipeline_mode = #tpu.pipeline_mode<synchronous>, transform_indices = @transform_1, window_bounds = array<i64: 1, 128>}, {pipeline_mode = #tpu.pipeline_mode<synchronous>, transform_indices = @transform_2, window_bounds = array<i64: 1, 128>}, {transform_indices = @transform_3, window_bounds = array<i64: 16, 128>}]} {
    %c0 = arith.constant 0 : index
    %c0_0 = arith.constant 0 : index
    %0 = vector.load %arg1[%c0, %c0_0] : memref<16x128xf32, #tpu.memory_space<vmem>>, vector<16x128xf32>
    %cst = arith.constant dense<0.000000e+00> : vector<16xf32>
    %1 = vector.multi_reduction <add>, %0, %cst [1] : vector<16x128xf32> to vector<16xf32>
    %2 = vector.shape_cast %1 : vector<16xf32> to vector<16x1xf32>
    %cst_1 = arith.constant 1.280000e+02 : f32
    %3 = vector.broadcast %cst_1 : f32 to vector<16x1xf32>
    %4 = arith.divf %2, %3 : vector<16x1xf32>
    %5 = vector.broadcast %4 : vector<16x1xf32> to vector<16x128xf32>
    %6 = arith.subf %0, %5 : vector<16x128xf32>
    %7 = arith.mulf %6, %6 : vector<16x128xf32>
    %cst_2 = arith.constant dense<0.000000e+00> : vector<16xf32>
    %8 = vector.multi_reduction <add>, %7, %cst_2 [1] : vector<16x128xf32> to vector<16xf32>
    %9 = vector.shape_cast %8 : vector<16xf32> to vector<16x1xf32>
    %cst_3 = arith.constant 1.280000e+02 : f32
    %10 = vector.broadcast %cst_3 : f32 to vector<16x1xf32>
    %11 = arith.divf %9, %10 : vector<16x1xf32>
    %cst_4 = arith.constant 9.99999974E-6 : f32
    %12 = vector.broadcast %cst_4 : f32 to vector<16x1xf32>
    %13 = arith.addf %11, %12 : vector<16x1xf32>
    %14 = math.rsqrt %13 : vector<16x1xf32>
    %15 = vector.broadcast %14 : vector<16x1xf32> to vector<16x128xf32>
    %16 = arith.mulf %6, %15 : vector<16x128xf32>
    %c0_5 = arith.constant 0 : index
    %c0_6 = arith.constant 0 : index
    %17 = vector.load %arg2[%c0_5, %c0_6] : memref<1x128xf32, #tpu.memory_space<vmem>>, vector<1x128xf32>
    %18 = vector.broadcast %17 : vector<1x128xf32> to vector<16x128xf32>
    %19 = arith.mulf %16, %18 : vector<16x128xf32>
    %c0_7 = arith.constant 0 : index
    %c0_8 = arith.constant 0 : index
    %20 = vector.load %arg3[%c0_7, %c0_8] : memref<1x128xf32, #tpu.memory_space<vmem>>, vector<1x128xf32>
    %21 = vector.broadcast %20 : vector<1x128xf32> to vector<16x128xf32>
    %22 = arith.addf %19, %21 : vector<16x128xf32>
    %23 = arith.truncf %22 : vector<16x128xf32> to vector<16x128xbf16>
    %c0_9 = arith.constant 0 : index
    %c0_10 = arith.constant 0 : index
    %24 = vector.load %arg4[%c0_9, %c0_10] : memref<16x128xbf16, #tpu.memory_space<vmem>>, vector<16x128xbf16>
    tpu.vector_store %arg4[%c0_9, %c0_10], %23 {strides = array<i32>} : memref<16x128xbf16, #tpu.memory_space<vmem>>, vector<16x128xbf16>,
    return
  }
  func.func @transform_0(%arg0: i32) -> (i32, i32) {
    %c0_i32 = arith.constant 0 : i32
    %c0_i32_0 = arith.constant 0 : i32
    return %arg0, %c0_i32 : i32, i32
  }
  func.func @transform_1(%arg0: i32) -> (i32, i32) {
    %c0_i32 = arith.constant 0 : i32
    %c0_i32_0 = arith.constant 0 : i32
    %c0_i32_1 = arith.constant 0 : i32
    return %c0_i32, %c0_i32_0 : i32, i32
  }
  func.func @transform_2(%arg0: i32) -> (i32, i32) {
    %c0_i32 = arith.constant 0 : i32
    %c0_i32_0 = arith.constant 0 : i32
    %c0_i32_1 = arith.constant 0 : i32
    return %c0_i32, %c0_i32_0 : i32, i32
  }
  func.func @transform_3(%arg0: i32) -> (i32, i32) {
    %c0_i32 = arith.constant 0 : i32
    %c0_i32_0 = arith.constant 0 : i32
    return %arg0, %c0_i32 : i32, i32
  }
}

module attributes {stable_mosaic.version = 11 : i64} {
  func.func @_matmul_kernel(%arg0: i32, %arg1: i32, %arg2: i32, %arg3: memref<16x128xbf16, #tpu.memory_space<vmem>>, %arg4: memref<128x256xbf16, #tpu.memory_space<vmem>>, %arg5: memref<1x256xf32, #tpu.memory_space<vmem>>, %arg6: memref<16x256xbf16, #tpu.memory_space<vmem>>, %arg7: memref<16x256xf32, #tpu.memory_space<vmem>>) attributes {dimension_semantics = [#tpu.dimension_semantics<parallel>, #tpu.dimension_semantics<parallel>, #tpu.dimension_semantics<arbitrary>], iteration_bounds = array<i64: 1, 1, 1>, scalar_prefetch = 0 : i64, scratch_operands = 1 : i64, tpu.core_type = #tpu.core_type<tc>, window_params = [{transform_indices = @transform_0, window_bounds = array<i64: 16, 128>}, {transform_indices = @transform_1, window_bounds = array<i64: 128, 256>}, {transform_indices = @transform_2, window_bounds = array<i64: 1, 256>}, {transform_indices = @transform_3, window_bounds = array<i64: 16, 256>}]} {
    %c0_i32 = arith.constant 0 : i32
    %0 = arith.cmpi eq, %arg2, %c0_i32 : i32
    %1 = arith.extui %0 : i1 to i32
    %c0_i32_0 = arith.constant 0 : i32
    %2 = arith.cmpi ne, %1, %c0_i32_0 : i32
    scf.if %2 {
      %cst_10 = arith.constant 0.000000e+00 : f32
      %12 = vector.broadcast %cst_10 : f32 to vector<16x256xf32>
      %c0_11 = arith.constant 0 : index
      %c0_12 = arith.constant 0 : index
      %13 = vector.load %arg7[%c0_11, %c0_12] : memref<16x256xf32, #tpu.memory_space<vmem>>, vector<16x256xf32>
      tpu.vector_store %arg7[%c0_11, %c0_12], %12 {strides = array<i32>} : memref<16x256xf32, #tpu.memory_space<vmem>>, vector<16x256xf32>,
    } else {
    }
    %c0 = arith.constant 0 : index
    %c0_1 = arith.constant 0 : index
    %3 = vector.load %arg7[%c0, %c0_1] : memref<16x256xf32, #tpu.memory_space<vmem>>, vector<16x256xf32>
    %c0_2 = arith.constant 0 : index
    %c0_3 = arith.constant 0 : index
    %4 = vector.load %arg3[%c0_2, %c0_3] : memref<16x128xbf16, #tpu.memory_space<vmem>>, vector<16x128xbf16>
    %c0_4 = arith.constant 0 : index
    %c0_5 = arith.constant 0 : index
    %5 = vector.load %arg4[%c0_4, %c0_5] : memref<128x256xbf16, #tpu.memory_space<vmem>>, vector<128x256xbf16>
    %cst = arith.constant dense<0.000000e+00> : vector<16x256xf32>
    %6 = tpu.matmul %4, %5, %cst {dimension_numbers = #tpu.dot_dimension_numbers<[1], [0], [0], [1], [0, 0, 1, 1], [], []>} : vector<16x128xbf16>, vector<128x256xbf16>, vector<16x256xf32> -> vector<16x256xf32>
    %7 = arith.addf %3, %6 : vector<16x256xf32>
    %c0_6 = arith.constant 0 : index
    %c0_7 = arith.constant 0 : index
    %8 = vector.load %arg7[%c0_6, %c0_7] : memref<16x256xf32, #tpu.memory_space<vmem>>, vector<16x256xf32>
    tpu.vector_store %arg7[%c0_6, %c0_7], %7 {strides = array<i32>} : memref<16x256xf32, #tpu.memory_space<vmem>>, vector<16x256xf32>,
    %c0_i32_8 = arith.constant 0 : i32
    %9 = arith.cmpi eq, %arg2, %c0_i32_8 : i32
    %10 = arith.extui %9 : i1 to i32
    %c0_i32_9 = arith.constant 0 : i32
    %11 = arith.cmpi ne, %10, %c0_i32_9 : i32
    scf.if %11 {
      %c0_10 = arith.constant 0 : index
      %c0_11 = arith.constant 0 : index
      %12 = vector.load %arg7[%c0_10, %c0_11] : memref<16x256xf32, #tpu.memory_space<vmem>>, vector<16x256xf32>
      %c0_12 = arith.constant 0 : index
      %c0_13 = arith.constant 0 : index
      %13 = vector.load %arg5[%c0_12, %c0_13] : memref<1x256xf32, #tpu.memory_space<vmem>>, vector<1x256xf32>
      %14 = vector.broadcast %13 : vector<1x256xf32> to vector<16x256xf32>
      %15 = arith.addf %12, %14 : vector<16x256xf32>
      %16 = arith.truncf %15 : vector<16x256xf32> to vector<16x256xbf16>
      %c0_14 = arith.constant 0 : index
      %c0_15 = arith.constant 0 : index
      %17 = vector.load %arg6[%c0_14, %c0_15] : memref<16x256xbf16, #tpu.memory_space<vmem>>, vector<16x256xbf16>
      tpu.vector_store %arg6[%c0_14, %c0_15], %16 {strides = array<i32>} : memref<16x256xbf16, #tpu.memory_space<vmem>>, vector<16x256xbf16>,
    } else {
    }
    return
  }
  func.func @transform_0(%arg0: i32, %arg1: i32, %arg2: i32) -> (i32, i32) {
    %c0_i32 = arith.constant 0 : i32
    return %arg0, %arg2 : i32, i32
  }
  func.func @transform_1(%arg0: i32, %arg1: i32, %arg2: i32) -> (i32, i32) {
    %c0_i32 = arith.constant 0 : i32
    return %arg2, %arg1 : i32, i32
  }
  func.func @transform_2(%arg0: i32, %arg1: i32, %arg2: i32) -> (i32, i32) {
    %c0_i32 = arith.constant 0 : i32
    %c0_i32_0 = arith.constant 0 : i32
    return %c0_i32, %arg1 : i32, i32
  }
  func.func @transform_3(%arg0: i32, %arg1: i32, %arg2: i32) -> (i32, i32) {
    %c0_i32 = arith.constant 0 : i32
    return %arg0, %arg1 : i32, i32
  }
}

module attributes {stable_mosaic.version = 11 : i64} {
  func.func @_matmul_kernel(%arg0: i32, %arg1: i32, %arg2: i32, %arg3: memref<16x128xbf16, #tpu.memory_space<vmem>>, %arg4: memref<128x128xbf16, #tpu.memory_space<vmem>>, %arg5: memref<1x128xf32, #tpu.memory_space<vmem>>, %arg6: memref<16x128xbf16, #tpu.memory_space<vmem>>, %arg7: memref<16x128xf32, #tpu.memory_space<vmem>>) attributes {dimension_semantics = [#tpu.dimension_semantics<parallel>, #tpu.dimension_semantics<parallel>, #tpu.dimension_semantics<arbitrary>], iteration_bounds = array<i64: 1, 1, 1>, scalar_prefetch = 0 : i64, scratch_operands = 1 : i64, tpu.core_type = #tpu.core_type<tc>, window_params = [{transform_indices = @transform_0, window_bounds = array<i64: 16, 128>}, {transform_indices = @transform_1, window_bounds = array<i64: 128, 128>}, {transform_indices = @transform_2, window_bounds = array<i64: 1, 128>}, {transform_indices = @transform_3, window_bounds = array<i64: 16, 128>}]} {
    %c0_i32 = arith.constant 0 : i32
    %0 = arith.cmpi eq, %arg2, %c0_i32 : i32
    %1 = arith.extui %0 : i1 to i32
    %c0_i32_0 = arith.constant 0 : i32
    %2 = arith.cmpi ne, %1, %c0_i32_0 : i32
    scf.if %2 {
      %cst_10 = arith.constant 0.000000e+00 : f32
      %12 = vector.broadcast %cst_10 : f32 to vector<16x128xf32>
      %c0_11 = arith.constant 0 : index
      %c0_12 = arith.constant 0 : index
      %13 = vector.load %arg7[%c0_11, %c0_12] : memref<16x128xf32, #tpu.memory_space<vmem>>, vector<16x128xf32>
      tpu.vector_store %arg7[%c0_11, %c0_12], %12 {strides = array<i32>} : memref<16x128xf32, #tpu.memory_space<vmem>>, vector<16x128xf32>,
    } else {
    }
    %c0 = arith.constant 0 : index
    %c0_1 = arith.constant 0 : index
    %3 = vector.load %arg7[%c0, %c0_1] : memref<16x128xf32, #tpu.memory_space<vmem>>, vector<16x128xf32>
    %c0_2 = arith.constant 0 : index
    %c0_3 = arith.constant 0 : index
    %4 = vector.load %arg3[%c0_2, %c0_3] : memref<16x128xbf16, #tpu.memory_space<vmem>>, vector<16x128xbf16>
    %c0_4 = arith.constant 0 : index
    %c0_5 = arith.constant 0 : index
    %5 = vector.load %arg4[%c0_4, %c0_5] : memref<128x128xbf16, #tpu.memory_space<vmem>>, vector<128x128xbf16>
    %cst = arith.constant dense<0.000000e+00> : vector<16x128xf32>
    %6 = tpu.matmul %4, %5, %cst {dimension_numbers = #tpu.dot_dimension_numbers<[1], [0], [0], [1], [0, 0, 1, 1], [], []>} : vector<16x128xbf16>, vector<128x128xbf16>, vector<16x128xf32> -> vector<16x128xf32>
    %7 = arith.addf %3, %6 : vector<16x128xf32>
    %c0_6 = arith.constant 0 : index
    %c0_7 = arith.constant 0 : index
    %8 = vector.load %arg7[%c0_6, %c0_7] : memref<16x128xf32, #tpu.memory_space<vmem>>, vector<16x128xf32>
    tpu.vector_store %arg7[%c0_6, %c0_7], %7 {strides = array<i32>} : memref<16x128xf32, #tpu.memory_space<vmem>>, vector<16x128xf32>,
    %c0_i32_8 = arith.constant 0 : i32
    %9 = arith.cmpi eq, %arg2, %c0_i32_8 : i32
    %10 = arith.extui %9 : i1 to i32
    %c0_i32_9 = arith.constant 0 : i32
    %11 = arith.cmpi ne, %10, %c0_i32_9 : i32
    scf.if %11 {
      %c0_10 = arith.constant 0 : index
      %c0_11 = arith.constant 0 : index
      %12 = vector.load %arg7[%c0_10, %c0_11] : memref<16x128xf32, #tpu.memory_space<vmem>>, vector<16x128xf32>
      %c0_12 = arith.constant 0 : index
      %c0_13 = arith.constant 0 : index
      %13 = vector.load %arg5[%c0_12, %c0_13] : memref<1x128xf32, #tpu.memory_space<vmem>>, vector<1x128xf32>
      %14 = vector.broadcast %13 : vector<1x128xf32> to vector<16x128xf32>
      %15 = arith.addf %12, %14 : vector<16x128xf32>
      %16 = arith.truncf %15 : vector<16x128xf32> to vector<16x128xbf16>
      %c0_14 = arith.constant 0 : index
      %c0_15 = arith.constant 0 : index
      %17 = vector.load %arg6[%c0_14, %c0_15] : memref<16x128xbf16, #tpu.memory_space<vmem>>, vector<16x128xbf16>
      tpu.vector_store %arg6[%c0_14, %c0_15], %16 {strides = array<i32>} : memref<16x128xbf16, #tpu.memory_space<vmem>>, vector<16x128xbf16>,
    } else {
    }
    return
  }
  func.func @transform_0(%arg0: i32, %arg1: i32, %arg2: i32) -> (i32, i32) {
    %c0_i32 = arith.constant 0 : i32
    return %arg0, %arg2 : i32, i32
  }
  func.func @transform_1(%arg0: i32, %arg1: i32, %arg2: i32) -> (i32, i32) {
    %c0_i32 = arith.constant 0 : i32
    return %arg2, %arg1 : i32, i32
  }
  func.func @transform_2(%arg0: i32, %arg1: i32, %arg2: i32) -> (i32, i32) {
    %c0_i32 = arith.constant 0 : i32
    %c0_i32_0 = arith.constant 0 : i32
    return %c0_i32, %arg1 : i32, i32
  }
  func.func @transform_3(%arg0: i32, %arg1: i32, %arg2: i32) -> (i32, i32) {
    %c0_i32 = arith.constant 0 : i32
    return %arg0, %arg1 : i32, i32
  }
}

module attributes {stable_mosaic.version = 11 : i64} {
  func.func @_mha_kernel(%arg0: i32, %arg1: memref<1x8x128xbf16, #tpu.memory_space<vmem>>, %arg2: memref<1x8x256xbf16, #tpu.memory_space<vmem>>, %arg3: memref<128x128xbf16, #tpu.memory_space<vmem>>, %arg4: memref<1x128xf32, #tpu.memory_space<vmem>>, %arg5: memref<1x8x128xf32, #tpu.memory_space<vmem>>, %arg6: memref<1x8x128xf32, #tpu.memory_space<vmem>>) attributes {dimension_semantics = [#tpu.dimension_semantics<parallel>], iteration_bounds = array<i64: 2>, scalar_prefetch = 0 : i64, scratch_operands = 0 : i64, tpu.core_type = #tpu.core_type<tc>, window_params = [{transform_indices = @transform_0, window_bounds = array<i64: 1, 8, 128>}, {transform_indices = @transform_1, window_bounds = array<i64: 1, 8, 256>}, {pipeline_mode = #tpu.pipeline_mode<synchronous>, transform_indices = @transform_2, window_bounds = array<i64: 128, 128>}, {pipeline_mode = #tpu.pipeline_mode<synchronous>, transform_indices = @transform_3, window_bounds = array<i64: 1, 128>}, {transform_indices = @transform_4, window_bounds = array<i64: 1, 8, 128>}, {transform_indices = @transform_5, window_bounds = array<i64: 1, 8, 128>}]} {
    %c0 = arith.constant 0 : index
    %c0_0 = arith.constant 0 : index
    %c0_1 = arith.constant 0 : index
    %0 = vector.load %arg1[%c0, %c0_0, %c0_1] : memref<1x8x128xbf16, #tpu.memory_space<vmem>>, vector<1x8x128xbf16>
    %1 = vector.shape_cast %0 : vector<1x8x128xbf16> to vector<8x128xbf16>
    %c0_2 = arith.constant 0 : index
    %c0_3 = arith.constant 0 : index
    %c0_4 = arith.constant 0 : index
    %2 = vector.load %arg2[%c0_2, %c0_3, %c0_4] : memref<1x8x256xbf16, #tpu.memory_space<vmem>>, vector<1x8x256xbf16>
    %3 = vector.shape_cast %2 : vector<1x8x256xbf16> to vector<8x256xbf16>
    %4 = vector.extract_strided_slice %3 {offsets = [0, 0], sizes = [8, 128], strides = [1, 1]} : vector<8x256xbf16> to vector<8x128xbf16>
    %5 = vector.extract_strided_slice %3 {offsets = [0, 128], sizes = [8, 128], strides = [1, 1]} : vector<8x256xbf16> to vector<8x128xbf16>
    %6 = tpu.iota {dimensions = array<i32: 1>} : vector<8x8xi32>
    %c6_i32 = arith.constant 6 : i32
    %7 = vector.broadcast %c6_i32 : i32 to vector<8x8xi32>
    %8 = arith.cmpi slt, %6, %7 : vector<8x8xi32>
    %9 = vector.extract_strided_slice %1 {offsets = [0, 0], sizes = [8, 16], strides = [1, 1]} : vector<8x128xbf16> to vector<8x16xbf16>
    %10 = vector.extract_strided_slice %4 {offsets = [0, 0], sizes = [8, 16], strides = [1, 1]} : vector<8x128xbf16> to vector<8x16xbf16>
    %cst = arith.constant dense<0.000000e+00> : vector<8x8xf32>
    %11 = tpu.matmul %9, %10, %cst {dimension_numbers = #tpu.dot_dimension_numbers<[1], [1], [0], [0], [0, 0, 1, 0], [], []>} : vector<8x16xbf16>, vector<8x16xbf16>, vector<8x8xf32> -> vector<8x8xf32>
    %cst_5 = arith.constant 2.500000e-01 : f32
    %12 = vector.broadcast %cst_5 : f32 to vector<8x8xf32>
    %13 = arith.mulf %11, %12 : vector<8x8xf32>
    %cst_6 = arith.constant -1.000000e+30 : f32
    %14 = vector.broadcast %cst_6 : f32 to vector<8x8xf32>
    %15 = arith.select %8, %13, %14 : vector<8x8xi1>, vector<8x8xf32>
    %cst_7 = arith.constant dense<0xFF800000> : vector<8xf32>
    %16 = vector.multi_reduction <maximumf>, %15, %cst_7 [1] : vector<8x8xf32> to vector<8xf32>
    %17 = vector.shape_cast %16 : vector<8xf32> to vector<8x1xf32>
    %18 = vector.broadcast %17 : vector<8x1xf32> to vector<8x8xf32>
    %19 = arith.subf %15, %18 : vector<8x8xf32>
    %20 = math.exp %19 : vector<8x8xf32>
    %cst_8 = arith.constant dense<0.000000e+00> : vector<8xf32>
    %21 = vector.multi_reduction <add>, %20, %cst_8 [1] : vector<8x8xf32> to vector<8xf32>
    %22 = vector.shape_cast %21 : vector<8xf32> to vector<8x1xf32>
    %23 = tpu.reciprocal %22 {approx = true} : vector<8x1xf32> -> vector<8x1xf32>
    %24 = vector.broadcast %23 : vector<8x1xf32> to vector<8x8xf32>
    %25 = arith.mulf %20, %24 : vector<8x8xf32>
    %26 = arith.truncf %25 : vector<8x8xf32> to vector<8x8xbf16>
    %27 = vector.extract_strided_slice %5 {offsets = [0, 0], sizes = [8, 16], strides = [1, 1]} : vector<8x128xbf16> to vector<8x16xbf16>
    %cst_9 = arith.constant dense<0.000000e+00> : vector<8x16xf32>
    %28 = tpu.matmul %26, %27, %cst_9 {dimension_numbers = #tpu.dot_dimension_numbers<[1], [0], [0], [1], [0, 0, 1, 1], [], []>} : vector<8x8xbf16>, vector<8x16xbf16>, vector<8x16xf32> -> vector<8x16xf32>
    %29 = vector.extract_strided_slice %1 {offsets = [0, 16], sizes = [8, 16], strides = [1, 1]} : vector<8x128xbf16> to vector<8x16xbf16>
    %30 = vector.extract_strided_slice %4 {offsets = [0, 16], sizes = [8, 16], strides = [1, 1]} : vector<8x128xbf16> to vector<8x16xbf16>
    %cst_10 = arith.constant dense<0.000000e+00> : vector<8x8xf32>
    %31 = tpu.matmul %29, %30, %cst_10 {dimension_numbers = #tpu.dot_dimension_numbers<[1], [1], [0], [0], [0, 0, 1, 0], [], []>} : vector<8x16xbf16>, vector<8x16xbf16>, vector<8x8xf32> -> vector<8x8xf32>
    %cst_11 = arith.constant 2.500000e-01 : f32
    %32 = vector.broadcast %cst_11 : f32 to vector<8x8xf32>
    %33 = arith.mulf %31, %32 : vector<8x8xf32>
    %cst_12 = arith.constant -1.000000e+30 : f32
    %34 = vector.broadcast %cst_12 : f32 to vector<8x8xf32>
    %35 = arith.select %8, %33, %34 : vector<8x8xi1>, vector<8x8xf32>
    %cst_13 = arith.constant dense<0xFF800000> : vector<8xf32>
    %36 = vector.multi_reduction <maximumf>, %35, %cst_13 [1] : vector<8x8xf32> to vector<8xf32>
    %37 = vector.shape_cast %36 : vector<8xf32> to vector<8x1xf32>
    %38 = vector.broadcast %37 : vector<8x1xf32> to vector<8x8xf32>
    %39 = arith.subf %35, %38 : vector<8x8xf32>
    %40 = math.exp %39 : vector<8x8xf32>
    %cst_14 = arith.constant dense<0.000000e+00> : vector<8xf32>
    %41 = vector.multi_reduction <add>, %40, %cst_14 [1] : vector<8x8xf32> to vector<8xf32>
    %42 = vector.shape_cast %41 : vector<8xf32> to vector<8x1xf32>
    %43 = tpu.reciprocal %42 {approx = true} : vector<8x1xf32> -> vector<8x1xf32>
    %44 = vector.broadcast %43 : vector<8x1xf32> to vector<8x8xf32>
    %45 = arith.mulf %40, %44 : vector<8x8xf32>
    %46 = arith.truncf %45 : vector<8x8xf32> to vector<8x8xbf16>
    %47 = vector.extract_strided_slice %5 {offsets = [0, 16], sizes = [8, 16], strides = [1, 1]} : vector<8x128xbf16> to vector<8x16xbf16>
    %cst_15 = arith.constant dense<0.000000e+00> : vector<8x16xf32>
    %48 = tpu.matmul %46, %47, %cst_15 {dimension_numbers = #tpu.dot_dimension_numbers<[1], [0], [0], [1], [0, 0, 1, 1], [], []>} : vector<8x8xbf16>, vector<8x16xbf16>, vector<8x16xf32> -> vector<8x16xf32>
    %49 = vector.extract_strided_slice %1 {offsets = [0, 32], sizes = [8, 16], strides = [1, 1]} : vector<8x128xbf16> to vector<8x16xbf16>
    %50 = vector.extract_strided_slice %4 {offsets = [0, 32], sizes = [8, 16], strides = [1, 1]} : vector<8x128xbf16> to vector<8x16xbf16>
    %cst_16 = arith.constant dense<0.000000e+00> : vector<8x8xf32>
    %51 = tpu.matmul %49, %50, %cst_16 {dimension_numbers = #tpu.dot_dimension_numbers<[1], [1], [0], [0], [0, 0, 1, 0], [], []>} : vector<8x16xbf16>, vector<8x16xbf16>, vector<8x8xf32> -> vector<8x8xf32>
    %cst_17 = arith.constant 2.500000e-01 : f32
    %52 = vector.broadcast %cst_17 : f32 to vector<8x8xf32>
    %53 = arith.mulf %51, %52 : vector<8x8xf32>
    %cst_18 = arith.constant -1.000000e+30 : f32
    %54 = vector.broadcast %cst_18 : f32 to vector<8x8xf32>
    %55 = arith.select %8, %53, %54 : vector<8x8xi1>, vector<8x8xf32>
    %cst_19 = arith.constant dense<0xFF800000> : vector<8xf32>
    %56 = vector.multi_reduction <maximumf>, %55, %cst_19 [1] : vector<8x8xf32> to vector<8xf32>
    %57 = vector.shape_cast %56 : vector<8xf32> to vector<8x1xf32>
    %58 = vector.broadcast %57 : vector<8x1xf32> to vector<8x8xf32>
    %59 = arith.subf %55, %58 : vector<8x8xf32>
    %60 = math.exp %59 : vector<8x8xf32>
    %cst_20 = arith.constant dense<0.000000e+00> : vector<8xf32>
    %61 = vector.multi_reduction <add>, %60, %cst_20 [1] : vector<8x8xf32> to vector<8xf32>
    %62 = vector.shape_cast %61 : vector<8xf32> to vector<8x1xf32>
    %63 = tpu.reciprocal %62 {approx = true} : vector<8x1xf32> -> vector<8x1xf32>
    %64 = vector.broadcast %63 : vector<8x1xf32> to vector<8x8xf32>
    %65 = arith.mulf %60, %64 : vector<8x8xf32>
    %66 = arith.truncf %65 : vector<8x8xf32> to vector<8x8xbf16>
    %67 = vector.extract_strided_slice %5 {offsets = [0, 32], sizes = [8, 16], strides = [1, 1]} : vector<8x128xbf16> to vector<8x16xbf16>
    %cst_21 = arith.constant dense<0.000000e+00> : vector<8x16xf32>
    %68 = tpu.matmul %66, %67, %cst_21 {dimension_numbers = #tpu.dot_dimension_numbers<[1], [0], [0], [1], [0, 0, 1, 1], [], []>} : vector<8x8xbf16>, vector<8x16xbf16>, vector<8x16xf32> -> vector<8x16xf32>
    %69 = vector.extract_strided_slice %1 {offsets = [0, 48], sizes = [8, 16], strides = [1, 1]} : vector<8x128xbf16> to vector<8x16xbf16>
    %70 = vector.extract_strided_slice %4 {offsets = [0, 48], sizes = [8, 16], strides = [1, 1]} : vector<8x128xbf16> to vector<8x16xbf16>
    %cst_22 = arith.constant dense<0.000000e+00> : vector<8x8xf32>
    %71 = tpu.matmul %69, %70, %cst_22 {dimension_numbers = #tpu.dot_dimension_numbers<[1], [1], [0], [0], [0, 0, 1, 0], [], []>} : vector<8x16xbf16>, vector<8x16xbf16>, vector<8x8xf32> -> vector<8x8xf32>
    %cst_23 = arith.constant 2.500000e-01 : f32
    %72 = vector.broadcast %cst_23 : f32 to vector<8x8xf32>
    %73 = arith.mulf %71, %72 : vector<8x8xf32>
    %cst_24 = arith.constant -1.000000e+30 : f32
    %74 = vector.broadcast %cst_24 : f32 to vector<8x8xf32>
    %75 = arith.select %8, %73, %74 : vector<8x8xi1>, vector<8x8xf32>
    %cst_25 = arith.constant dense<0xFF800000> : vector<8xf32>
    %76 = vector.multi_reduction <maximumf>, %75, %cst_25 [1] : vector<8x8xf32> to vector<8xf32>
    %77 = vector.shape_cast %76 : vector<8xf32> to vector<8x1xf32>
    %78 = vector.broadcast %77 : vector<8x1xf32> to vector<8x8xf32>
    %79 = arith.subf %75, %78 : vector<8x8xf32>
    %80 = math.exp %79 : vector<8x8xf32>
    %cst_26 = arith.constant dense<0.000000e+00> : vector<8xf32>
    %81 = vector.multi_reduction <add>, %80, %cst_26 [1] : vector<8x8xf32> to vector<8xf32>
    %82 = vector.shape_cast %81 : vector<8xf32> to vector<8x1xf32>
    %83 = tpu.reciprocal %82 {approx = true} : vector<8x1xf32> -> vector<8x1xf32>
    %84 = vector.broadcast %83 : vector<8x1xf32> to vector<8x8xf32>
    %85 = arith.mulf %80, %84 : vector<8x8xf32>
    %86 = arith.truncf %85 : vector<8x8xf32> to vector<8x8xbf16>
    %87 = vector.extract_strided_slice %5 {offsets = [0, 48], sizes = [8, 16], strides = [1, 1]} : vector<8x128xbf16> to vector<8x16xbf16>
    %cst_27 = arith.constant dense<0.000000e+00> : vector<8x16xf32>
    %88 = tpu.matmul %86, %87, %cst_27 {dimension_numbers = #tpu.dot_dimension_numbers<[1], [0], [0], [1], [0, 0, 1, 1], [], []>} : vector<8x8xbf16>, vector<8x16xbf16>, vector<8x16xf32> -> vector<8x16xf32>
    %89 = vector.extract_strided_slice %1 {offsets = [0, 64], sizes = [8, 16], strides = [1, 1]} : vector<8x128xbf16> to vector<8x16xbf16>
    %90 = vector.extract_strided_slice %4 {offsets = [0, 64], sizes = [8, 16], strides = [1, 1]} : vector<8x128xbf16> to vector<8x16xbf16>
    %cst_28 = arith.constant dense<0.000000e+00> : vector<8x8xf32>
    %91 = tpu.matmul %89, %90, %cst_28 {dimension_numbers = #tpu.dot_dimension_numbers<[1], [1], [0], [0], [0, 0, 1, 0], [], []>} : vector<8x16xbf16>, vector<8x16xbf16>, vector<8x8xf32> -> vector<8x8xf32>
    %cst_29 = arith.constant 2.500000e-01 : f32
    %92 = vector.broadcast %cst_29 : f32 to vector<8x8xf32>
    %93 = arith.mulf %91, %92 : vector<8x8xf32>
    %cst_30 = arith.constant -1.000000e+30 : f32
    %94 = vector.broadcast %cst_30 : f32 to vector<8x8xf32>
    %95 = arith.select %8, %93, %94 : vector<8x8xi1>, vector<8x8xf32>
    %cst_31 = arith.constant dense<0xFF800000> : vector<8xf32>
    %96 = vector.multi_reduction <maximumf>, %95, %cst_31 [1] : vector<8x8xf32> to vector<8xf32>
    %97 = vector.shape_cast %96 : vector<8xf32> to vector<8x1xf32>
    %98 = vector.broadcast %97 : vector<8x1xf32> to vector<8x8xf32>
    %99 = arith.subf %95, %98 : vector<8x8xf32>
    %100 = math.exp %99 : vector<8x8xf32>
    %cst_32 = arith.constant dense<0.000000e+00> : vector<8xf32>
    %101 = vector.multi_reduction <add>, %100, %cst_32 [1] : vector<8x8xf32> to vector<8xf32>
    %102 = vector.shape_cast %101 : vector<8xf32> to vector<8x1xf32>
    %103 = tpu.reciprocal %102 {approx = true} : vector<8x1xf32> -> vector<8x1xf32>
    %104 = vector.broadcast %103 : vector<8x1xf32> to vector<8x8xf32>
    %105 = arith.mulf %100, %104 : vector<8x8xf32>
    %106 = arith.truncf %105 : vector<8x8xf32> to vector<8x8xbf16>
    %107 = vector.extract_strided_slice %5 {offsets = [0, 64], sizes = [8, 16], strides = [1, 1]} : vector<8x128xbf16> to vector<8x16xbf16>
    %cst_33 = arith.constant dense<0.000000e+00> : vector<8x16xf32>
    %108 = tpu.matmul %106, %107, %cst_33 {dimension_numbers = #tpu.dot_dimension_numbers<[1], [0], [0], [1], [0, 0, 1, 1], [], []>} : vector<8x8xbf16>, vector<8x16xbf16>, vector<8x16xf32> -> vector<8x16xf32>
    %109 = vector.extract_strided_slice %1 {offsets = [0, 80], sizes = [8, 16], strides = [1, 1]} : vector<8x128xbf16> to vector<8x16xbf16>
    %110 = vector.extract_strided_slice %4 {offsets = [0, 80], sizes = [8, 16], strides = [1, 1]} : vector<8x128xbf16> to vector<8x16xbf16>
    %cst_34 = arith.constant dense<0.000000e+00> : vector<8x8xf32>
    %111 = tpu.matmul %109, %110, %cst_34 {dimension_numbers = #tpu.dot_dimension_numbers<[1], [1], [0], [0], [0, 0, 1, 0], [], []>} : vector<8x16xbf16>, vector<8x16xbf16>, vector<8x8xf32> -> vector<8x8xf32>
    %cst_35 = arith.constant 2.500000e-01 : f32
    %112 = vector.broadcast %cst_35 : f32 to vector<8x8xf32>
    %113 = arith.mulf %111, %112 : vector<8x8xf32>
    %cst_36 = arith.constant -1.000000e+30 : f32
    %114 = vector.broadcast %cst_36 : f32 to vector<8x8xf32>
    %115 = arith.select %8, %113, %114 : vector<8x8xi1>, vector<8x8xf32>
    %cst_37 = arith.constant dense<0xFF800000> : vector<8xf32>
    %116 = vector.multi_reduction <maximumf>, %115, %cst_37 [1] : vector<8x8xf32> to vector<8xf32>
    %117 = vector.shape_cast %116 : vector<8xf32> to vector<8x1xf32>
    %118 = vector.broadcast %117 : vector<8x1xf32> to vector<8x8xf32>
    %119 = arith.subf %115, %118 : vector<8x8xf32>
    %120 = math.exp %119 : vector<8x8xf32>
    %cst_38 = arith.constant dense<0.000000e+00> : vector<8xf32>
    %121 = vector.multi_reduction <add>, %120, %cst_38 [1] : vector<8x8xf32> to vector<8xf32>
    %122 = vector.shape_cast %121 : vector<8xf32> to vector<8x1xf32>
    %123 = tpu.reciprocal %122 {approx = true} : vector<8x1xf32> -> vector<8x1xf32>
    %124 = vector.broadcast %123 : vector<8x1xf32> to vector<8x8xf32>
    %125 = arith.mulf %120, %124 : vector<8x8xf32>
    %126 = arith.truncf %125 : vector<8x8xf32> to vector<8x8xbf16>
    %127 = vector.extract_strided_slice %5 {offsets = [0, 80], sizes = [8, 16], strides = [1, 1]} : vector<8x128xbf16> to vector<8x16xbf16>
    %cst_39 = arith.constant dense<0.000000e+00> : vector<8x16xf32>
    %128 = tpu.matmul %126, %127, %cst_39 {dimension_numbers = #tpu.dot_dimension_numbers<[1], [0], [0], [1], [0, 0, 1, 1], [], []>} : vector<8x8xbf16>, vector<8x16xbf16>, vector<8x16xf32> -> vector<8x16xf32>
    %129 = vector.extract_strided_slice %1 {offsets = [0, 96], sizes = [8, 16], strides = [1, 1]} : vector<8x128xbf16> to vector<8x16xbf16>
    %130 = vector.extract_strided_slice %4 {offsets = [0, 96], sizes = [8, 16], strides = [1, 1]} : vector<8x128xbf16> to vector<8x16xbf16>
    %cst_40 = arith.constant dense<0.000000e+00> : vector<8x8xf32>
    %131 = tpu.matmul %129, %130, %cst_40 {dimension_numbers = #tpu.dot_dimension_numbers<[1], [1], [0], [0], [0, 0, 1, 0], [], []>} : vector<8x16xbf16>, vector<8x16xbf16>, vector<8x8xf32> -> vector<8x8xf32>
    %cst_41 = arith.constant 2.500000e-01 : f32
    %132 = vector.broadcast %cst_41 : f32 to vector<8x8xf32>
    %133 = arith.mulf %131, %132 : vector<8x8xf32>
    %cst_42 = arith.constant -1.000000e+30 : f32
    %134 = vector.broadcast %cst_42 : f32 to vector<8x8xf32>
    %135 = arith.select %8, %133, %134 : vector<8x8xi1>, vector<8x8xf32>
    %cst_43 = arith.constant dense<0xFF800000> : vector<8xf32>
    %136 = vector.multi_reduction <maximumf>, %135, %cst_43 [1] : vector<8x8xf32> to vector<8xf32>
    %137 = vector.shape_cast %136 : vector<8xf32> to vector<8x1xf32>
    %138 = vector.broadcast %137 : vector<8x1xf32> to vector<8x8xf32>
    %139 = arith.subf %135, %138 : vector<8x8xf32>
    %140 = math.exp %139 : vector<8x8xf32>
    %cst_44 = arith.constant dense<0.000000e+00> : vector<8xf32>
    %141 = vector.multi_reduction <add>, %140, %cst_44 [1] : vector<8x8xf32> to vector<8xf32>
    %142 = vector.shape_cast %141 : vector<8xf32> to vector<8x1xf32>
    %143 = tpu.reciprocal %142 {approx = true} : vector<8x1xf32> -> vector<8x1xf32>
    %144 = vector.broadcast %143 : vector<8x1xf32> to vector<8x8xf32>
    %145 = arith.mulf %140, %144 : vector<8x8xf32>
    %146 = arith.truncf %145 : vector<8x8xf32> to vector<8x8xbf16>
    %147 = vector.extract_strided_slice %5 {offsets = [0, 96], sizes = [8, 16], strides = [1, 1]} : vector<8x128xbf16> to vector<8x16xbf16>
    %cst_45 = arith.constant dense<0.000000e+00> : vector<8x16xf32>
    %148 = tpu.matmul %146, %147, %cst_45 {dimension_numbers = #tpu.dot_dimension_numbers<[1], [0], [0], [1], [0, 0, 1, 1], [], []>} : vector<8x8xbf16>, vector<8x16xbf16>, vector<8x16xf32> -> vector<8x16xf32>
    %149 = vector.extract_strided_slice %1 {offsets = [0, 112], sizes = [8, 16], strides = [1, 1]} : vector<8x128xbf16> to vector<8x16xbf16>
    %150 = vector.extract_strided_slice %4 {offsets = [0, 112], sizes = [8, 16], strides = [1, 1]} : vector<8x128xbf16> to vector<8x16xbf16>
    %cst_46 = arith.constant dense<0.000000e+00> : vector<8x8xf32>
    %151 = tpu.matmul %149, %150, %cst_46 {dimension_numbers = #tpu.dot_dimension_numbers<[1], [1], [0], [0], [0, 0, 1, 0], [], []>} : vector<8x16xbf16>, vector<8x16xbf16>, vector<8x8xf32> -> vector<8x8xf32>
    %cst_47 = arith.constant 2.500000e-01 : f32
    %152 = vector.broadcast %cst_47 : f32 to vector<8x8xf32>
    %153 = arith.mulf %151, %152 : vector<8x8xf32>
    %cst_48 = arith.constant -1.000000e+30 : f32
    %154 = vector.broadcast %cst_48 : f32 to vector<8x8xf32>
    %155 = arith.select %8, %153, %154 : vector<8x8xi1>, vector<8x8xf32>
    %cst_49 = arith.constant dense<0xFF800000> : vector<8xf32>
    %156 = vector.multi_reduction <maximumf>, %155, %cst_49 [1] : vector<8x8xf32> to vector<8xf32>
    %157 = vector.shape_cast %156 : vector<8xf32> to vector<8x1xf32>
    %158 = vector.broadcast %157 : vector<8x1xf32> to vector<8x8xf32>
    %159 = arith.subf %155, %158 : vector<8x8xf32>
    %160 = math.exp %159 : vector<8x8xf32>
    %cst_50 = arith.constant dense<0.000000e+00> : vector<8xf32>
    %161 = vector.multi_reduction <add>, %160, %cst_50 [1] : vector<8x8xf32> to vector<8xf32>
    %162 = vector.shape_cast %161 : vector<8xf32> to vector<8x1xf32>
    %163 = tpu.reciprocal %162 {approx = true} : vector<8x1xf32> -> vector<8x1xf32>
    %164 = vector.broadcast %163 : vector<8x1xf32> to vector<8x8xf32>
    %165 = arith.mulf %160, %164 : vector<8x8xf32>
    %166 = arith.truncf %165 : vector<8x8xf32> to vector<8x8xbf16>
    %167 = vector.extract_strided_slice %5 {offsets = [0, 112], sizes = [8, 16], strides = [1, 1]} : vector<8x128xbf16> to vector<8x16xbf16>
    %cst_51 = arith.constant dense<0.000000e+00> : vector<8x16xf32>
    %168 = tpu.matmul %166, %167, %cst_51 {dimension_numbers = #tpu.dot_dimension_numbers<[1], [0], [0], [1], [0, 0, 1, 1], [], []>} : vector<8x8xbf16>, vector<8x16xbf16>, vector<8x16xf32> -> vector<8x16xf32>
    %169 = tpu.concatenate %28, %48, %68, %88, %108, %128, %148, %168 in 1 : vector<8x16xf32>, vector<8x16xf32>, vector<8x16xf32>, vector<8x16xf32>, vector<8x16xf32>, vector<8x16xf32>, vector<8x16xf32>, vector<8x16xf32> -> vector<8x128xf32>
    %170 = arith.truncf %169 : vector<8x128xf32> to vector<8x128xbf16>
    %c0_52 = arith.constant 0 : index
    %c0_53 = arith.constant 0 : index
    %171 = vector.load %arg3[%c0_52, %c0_53] : memref<128x128xbf16, #tpu.memory_space<vmem>>, vector<128x128xbf16>
    %cst_54 = arith.constant dense<0.000000e+00> : vector<8x128xf32>
    %172 = tpu.matmul %170, %171, %cst_54 {dimension_numbers = #tpu.dot_dimension_numbers<[1], [0], [0], [1], [0, 0, 1, 1], [], []>} : vector<8x128xbf16>, vector<128x128xbf16>, vector<8x128xf32> -> vector<8x128xf32>
    %c0_55 = arith.constant 0 : index
    %c0_56 = arith.constant 0 : index
    %173 = vector.load %arg4[%c0_55, %c0_56] : memref<1x128xf32, #tpu.memory_space<vmem>>, vector<1x128xf32>
    %174 = vector.broadcast %173 : vector<1x128xf32> to vector<8x128xf32>
    %175 = arith.addf %172, %174 : vector<8x128xf32>
    %c0_57 = arith.constant 0 : index
    %c0_58 = arith.constant 0 : index
    %c0_59 = arith.constant 0 : index
    %176 = vector.load %arg5[%c0_57, %c0_58, %c0_59] : memref<1x8x128xf32, #tpu.memory_space<vmem>>, vector<1x8x128xf32>
    %177 = vector.shape_cast %176 : vector<1x8x128xf32> to vector<8x128xf32>
    %178 = arith.addf %175, %177 : vector<8x128xf32>
    %c0_60 = arith.constant 0 : index
    %c0_61 = arith.constant 0 : index
    %c0_62 = arith.constant 0 : index
    %179 = vector.load %arg6[%c0_60, %c0_61, %c0_62] : memref<1x8x128xf32, #tpu.memory_space<vmem>>, vector<1x8x128xf32>
    %180 = vector.shape_cast %179 : vector<1x8x128xf32> to vector<8x128xf32>
    %181 = vector.shape_cast %178 : vector<8x128xf32> to vector<1x8x128xf32>
    tpu.vector_store %arg6[%c0_60, %c0_61, %c0_62], %181 {strides = array<i32>} : memref<1x8x128xf32, #tpu.memory_space<vmem>>, vector<1x8x128xf32>,
    return
  }
  func.func @transform_0(%arg0: i32) -> (i32, i32, i32) {
    %c0_i32 = arith.constant 0 : i32
    %c0_i32_0 = arith.constant 0 : i32
    %c0_i32_1 = arith.constant 0 : i32
    return %arg0, %c0_i32, %c0_i32_0 : i32, i32, i32
  }
  func.func @transform_1(%arg0: i32) -> (i32, i32, i32) {
    %c0_i32 = arith.constant 0 : i32
    %c0_i32_0 = arith.constant 0 : i32
    %c0_i32_1 = arith.constant 0 : i32
    return %arg0, %c0_i32, %c0_i32_0 : i32, i32, i32
  }
  func.func @transform_2(%arg0: i32) -> (i32, i32) {
    %c0_i32 = arith.constant 0 : i32
    %c0_i32_0 = arith.constant 0 : i32
    %c0_i32_1 = arith.constant 0 : i32
    return %c0_i32, %c0_i32_0 : i32, i32
  }
  func.func @transform_3(%arg0: i32) -> (i32, i32) {
    %c0_i32 = arith.constant 0 : i32
    %c0_i32_0 = arith.constant 0 : i32
    %c0_i32_1 = arith.constant 0 : i32
    return %c0_i32, %c0_i32_0 : i32, i32
  }
  func.func @transform_4(%arg0: i32) -> (i32, i32, i32) {
    %c0_i32 = arith.constant 0 : i32
    %c0_i32_0 = arith.constant 0 : i32
    %c0_i32_1 = arith.constant 0 : i32
    return %arg0, %c0_i32, %c0_i32_0 : i32, i32, i32
  }
  func.func @transform_5(%arg0: i32) -> (i32, i32, i32) {
    %c0_i32 = arith.constant 0 : i32
    %c0_i32_0 = arith.constant 0 : i32
    %c0_i32_1 = arith.constant 0 : i32
    return %arg0, %c0_i32, %c0_i32_0 : i32, i32, i32
  }
}

module attributes {stable_mosaic.version = 11 : i64} {
  func.func @_mha_kernel(%arg0: i32, %arg1: memref<1x8x128xbf16, #tpu.memory_space<vmem>>, %arg2: memref<1x16x256xbf16, #tpu.memory_space<vmem>>, %arg3: memref<128x128xbf16, #tpu.memory_space<vmem>>, %arg4: memref<1x128xf32, #tpu.memory_space<vmem>>, %arg5: memref<1x8x128xf32, #tpu.memory_space<vmem>>, %arg6: memref<1x8x128xf32, #tpu.memory_space<vmem>>) attributes {dimension_semantics = [#tpu.dimension_semantics<parallel>], iteration_bounds = array<i64: 2>, scalar_prefetch = 0 : i64, scratch_operands = 0 : i64, tpu.core_type = #tpu.core_type<tc>, window_params = [{transform_indices = @transform_0, window_bounds = array<i64: 1, 8, 128>}, {transform_indices = @transform_1, window_bounds = array<i64: 1, 16, 256>}, {pipeline_mode = #tpu.pipeline_mode<synchronous>, transform_indices = @transform_2, window_bounds = array<i64: 128, 128>}, {pipeline_mode = #tpu.pipeline_mode<synchronous>, transform_indices = @transform_3, window_bounds = array<i64: 1, 128>}, {transform_indices = @transform_4, window_bounds = array<i64: 1, 8, 128>}, {transform_indices = @transform_5, window_bounds = array<i64: 1, 8, 128>}]} {
    %c0 = arith.constant 0 : index
    %c0_0 = arith.constant 0 : index
    %c0_1 = arith.constant 0 : index
    %0 = vector.load %arg1[%c0, %c0_0, %c0_1] : memref<1x8x128xbf16, #tpu.memory_space<vmem>>, vector<1x8x128xbf16>
    %1 = vector.shape_cast %0 : vector<1x8x128xbf16> to vector<8x128xbf16>
    %c0_2 = arith.constant 0 : index
    %c0_3 = arith.constant 0 : index
    %c0_4 = arith.constant 0 : index
    %2 = vector.load %arg2[%c0_2, %c0_3, %c0_4] : memref<1x16x256xbf16, #tpu.memory_space<vmem>>, vector<1x16x256xbf16>
    %3 = vector.shape_cast %2 : vector<1x16x256xbf16> to vector<16x256xbf16>
    %4 = vector.extract_strided_slice %3 {offsets = [0, 0], sizes = [16, 128], strides = [1, 1]} : vector<16x256xbf16> to vector<16x128xbf16>
    %5 = vector.extract_strided_slice %3 {offsets = [0, 128], sizes = [16, 128], strides = [1, 1]} : vector<16x256xbf16> to vector<16x128xbf16>
    %6 = vector.extract_strided_slice %1 {offsets = [0, 0], sizes = [8, 16], strides = [1, 1]} : vector<8x128xbf16> to vector<8x16xbf16>
    %7 = vector.extract_strided_slice %4 {offsets = [0, 0], sizes = [16, 16], strides = [1, 1]} : vector<16x128xbf16> to vector<16x16xbf16>
    %cst = arith.constant dense<0.000000e+00> : vector<8x16xf32>
    %8 = tpu.matmul %6, %7, %cst {dimension_numbers = #tpu.dot_dimension_numbers<[1], [1], [0], [0], [0, 0, 1, 0], [], []>} : vector<8x16xbf16>, vector<16x16xbf16>, vector<8x16xf32> -> vector<8x16xf32>
    %cst_5 = arith.constant 2.500000e-01 : f32
    %9 = vector.broadcast %cst_5 : f32 to vector<8x16xf32>
    %10 = arith.mulf %8, %9 : vector<8x16xf32>
    %cst_6 = arith.constant dense<0xFF800000> : vector<8xf32>
    %11 = vector.multi_reduction <maximumf>, %10, %cst_6 [1] : vector<8x16xf32> to vector<8xf32>
    %12 = vector.shape_cast %11 : vector<8xf32> to vector<8x1xf32>
    %13 = vector.broadcast %12 : vector<8x1xf32> to vector<8x16xf32>
    %14 = arith.subf %10, %13 : vector<8x16xf32>
    %15 = math.exp %14 : vector<8x16xf32>
    %cst_7 = arith.constant dense<0.000000e+00> : vector<8xf32>
    %16 = vector.multi_reduction <add>, %15, %cst_7 [1] : vector<8x16xf32> to vector<8xf32>
    %17 = vector.shape_cast %16 : vector<8xf32> to vector<8x1xf32>
    %18 = tpu.reciprocal %17 {approx = true} : vector<8x1xf32> -> vector<8x1xf32>
    %19 = vector.broadcast %18 : vector<8x1xf32> to vector<8x16xf32>
    %20 = arith.mulf %15, %19 : vector<8x16xf32>
    %21 = arith.truncf %20 : vector<8x16xf32> to vector<8x16xbf16>
    %22 = vector.extract_strided_slice %5 {offsets = [0, 0], sizes = [16, 16], strides = [1, 1]} : vector<16x128xbf16> to vector<16x16xbf16>
    %cst_8 = arith.constant dense<0.000000e+00> : vector<8x16xf32>
    %23 = tpu.matmul %21, %22, %cst_8 {dimension_numbers = #tpu.dot_dimension_numbers<[1], [0], [0], [1], [0, 0, 1, 1], [], []>} : vector<8x16xbf16>, vector<16x16xbf16>, vector<8x16xf32> -> vector<8x16xf32>
    %24 = vector.extract_strided_slice %1 {offsets = [0, 16], sizes = [8, 16], strides = [1, 1]} : vector<8x128xbf16> to vector<8x16xbf16>
    %25 = vector.extract_strided_slice %4 {offsets = [0, 16], sizes = [16, 16], strides = [1, 1]} : vector<16x128xbf16> to vector<16x16xbf16>
    %cst_9 = arith.constant dense<0.000000e+00> : vector<8x16xf32>
    %26 = tpu.matmul %24, %25, %cst_9 {dimension_numbers = #tpu.dot_dimension_numbers<[1], [1], [0], [0], [0, 0, 1, 0], [], []>} : vector<8x16xbf16>, vector<16x16xbf16>, vector<8x16xf32> -> vector<8x16xf32>
    %cst_10 = arith.constant 2.500000e-01 : f32
    %27 = vector.broadcast %cst_10 : f32 to vector<8x16xf32>
    %28 = arith.mulf %26, %27 : vector<8x16xf32>
    %cst_11 = arith.constant dense<0xFF800000> : vector<8xf32>
    %29 = vector.multi_reduction <maximumf>, %28, %cst_11 [1] : vector<8x16xf32> to vector<8xf32>
    %30 = vector.shape_cast %29 : vector<8xf32> to vector<8x1xf32>
    %31 = vector.broadcast %30 : vector<8x1xf32> to vector<8x16xf32>
    %32 = arith.subf %28, %31 : vector<8x16xf32>
    %33 = math.exp %32 : vector<8x16xf32>
    %cst_12 = arith.constant dense<0.000000e+00> : vector<8xf32>
    %34 = vector.multi_reduction <add>, %33, %cst_12 [1] : vector<8x16xf32> to vector<8xf32>
    %35 = vector.shape_cast %34 : vector<8xf32> to vector<8x1xf32>
    %36 = tpu.reciprocal %35 {approx = true} : vector<8x1xf32> -> vector<8x1xf32>
    %37 = vector.broadcast %36 : vector<8x1xf32> to vector<8x16xf32>
    %38 = arith.mulf %33, %37 : vector<8x16xf32>
    %39 = arith.truncf %38 : vector<8x16xf32> to vector<8x16xbf16>
    %40 = vector.extract_strided_slice %5 {offsets = [0, 16], sizes = [16, 16], strides = [1, 1]} : vector<16x128xbf16> to vector<16x16xbf16>
    %cst_13 = arith.constant dense<0.000000e+00> : vector<8x16xf32>
    %41 = tpu.matmul %39, %40, %cst_13 {dimension_numbers = #tpu.dot_dimension_numbers<[1], [0], [0], [1], [0, 0, 1, 1], [], []>} : vector<8x16xbf16>, vector<16x16xbf16>, vector<8x16xf32> -> vector<8x16xf32>
    %42 = vector.extract_strided_slice %1 {offsets = [0, 32], sizes = [8, 16], strides = [1, 1]} : vector<8x128xbf16> to vector<8x16xbf16>
    %43 = vector.extract_strided_slice %4 {offsets = [0, 32], sizes = [16, 16], strides = [1, 1]} : vector<16x128xbf16> to vector<16x16xbf16>
    %cst_14 = arith.constant dense<0.000000e+00> : vector<8x16xf32>
    %44 = tpu.matmul %42, %43, %cst_14 {dimension_numbers = #tpu.dot_dimension_numbers<[1], [1], [0], [0], [0, 0, 1, 0], [], []>} : vector<8x16xbf16>, vector<16x16xbf16>, vector<8x16xf32> -> vector<8x16xf32>
    %cst_15 = arith.constant 2.500000e-01 : f32
    %45 = vector.broadcast %cst_15 : f32 to vector<8x16xf32>
    %46 = arith.mulf %44, %45 : vector<8x16xf32>
    %cst_16 = arith.constant dense<0xFF800000> : vector<8xf32>
    %47 = vector.multi_reduction <maximumf>, %46, %cst_16 [1] : vector<8x16xf32> to vector<8xf32>
    %48 = vector.shape_cast %47 : vector<8xf32> to vector<8x1xf32>
    %49 = vector.broadcast %48 : vector<8x1xf32> to vector<8x16xf32>
    %50 = arith.subf %46, %49 : vector<8x16xf32>
    %51 = math.exp %50 : vector<8x16xf32>
    %cst_17 = arith.constant dense<0.000000e+00> : vector<8xf32>
    %52 = vector.multi_reduction <add>, %51, %cst_17 [1] : vector<8x16xf32> to vector<8xf32>
    %53 = vector.shape_cast %52 : vector<8xf32> to vector<8x1xf32>
    %54 = tpu.reciprocal %53 {approx = true} : vector<8x1xf32> -> vector<8x1xf32>
    %55 = vector.broadcast %54 : vector<8x1xf32> to vector<8x16xf32>
    %56 = arith.mulf %51, %55 : vector<8x16xf32>
    %57 = arith.truncf %56 : vector<8x16xf32> to vector<8x16xbf16>
    %58 = vector.extract_strided_slice %5 {offsets = [0, 32], sizes = [16, 16], strides = [1, 1]} : vector<16x128xbf16> to vector<16x16xbf16>
    %cst_18 = arith.constant dense<0.000000e+00> : vector<8x16xf32>
    %59 = tpu.matmul %57, %58, %cst_18 {dimension_numbers = #tpu.dot_dimension_numbers<[1], [0], [0], [1], [0, 0, 1, 1], [], []>} : vector<8x16xbf16>, vector<16x16xbf16>, vector<8x16xf32> -> vector<8x16xf32>
    %60 = vector.extract_strided_slice %1 {offsets = [0, 48], sizes = [8, 16], strides = [1, 1]} : vector<8x128xbf16> to vector<8x16xbf16>
    %61 = vector.extract_strided_slice %4 {offsets = [0, 48], sizes = [16, 16], strides = [1, 1]} : vector<16x128xbf16> to vector<16x16xbf16>
    %cst_19 = arith.constant dense<0.000000e+00> : vector<8x16xf32>
    %62 = tpu.matmul %60, %61, %cst_19 {dimension_numbers = #tpu.dot_dimension_numbers<[1], [1], [0], [0], [0, 0, 1, 0], [], []>} : vector<8x16xbf16>, vector<16x16xbf16>, vector<8x16xf32> -> vector<8x16xf32>
    %cst_20 = arith.constant 2.500000e-01 : f32
    %63 = vector.broadcast %cst_20 : f32 to vector<8x16xf32>
    %64 = arith.mulf %62, %63 : vector<8x16xf32>
    %cst_21 = arith.constant dense<0xFF800000> : vector<8xf32>
    %65 = vector.multi_reduction <maximumf>, %64, %cst_21 [1] : vector<8x16xf32> to vector<8xf32>
    %66 = vector.shape_cast %65 : vector<8xf32> to vector<8x1xf32>
    %67 = vector.broadcast %66 : vector<8x1xf32> to vector<8x16xf32>
    %68 = arith.subf %64, %67 : vector<8x16xf32>
    %69 = math.exp %68 : vector<8x16xf32>
    %cst_22 = arith.constant dense<0.000000e+00> : vector<8xf32>
    %70 = vector.multi_reduction <add>, %69, %cst_22 [1] : vector<8x16xf32> to vector<8xf32>
    %71 = vector.shape_cast %70 : vector<8xf32> to vector<8x1xf32>
    %72 = tpu.reciprocal %71 {approx = true} : vector<8x1xf32> -> vector<8x1xf32>
    %73 = vector.broadcast %72 : vector<8x1xf32> to vector<8x16xf32>
    %74 = arith.mulf %69, %73 : vector<8x16xf32>
    %75 = arith.truncf %74 : vector<8x16xf32> to vector<8x16xbf16>
    %76 = vector.extract_strided_slice %5 {offsets = [0, 48], sizes = [16, 16], strides = [1, 1]} : vector<16x128xbf16> to vector<16x16xbf16>
    %cst_23 = arith.constant dense<0.000000e+00> : vector<8x16xf32>
    %77 = tpu.matmul %75, %76, %cst_23 {dimension_numbers = #tpu.dot_dimension_numbers<[1], [0], [0], [1], [0, 0, 1, 1], [], []>} : vector<8x16xbf16>, vector<16x16xbf16>, vector<8x16xf32> -> vector<8x16xf32>
    %78 = vector.extract_strided_slice %1 {offsets = [0, 64], sizes = [8, 16], strides = [1, 1]} : vector<8x128xbf16> to vector<8x16xbf16>
    %79 = vector.extract_strided_slice %4 {offsets = [0, 64], sizes = [16, 16], strides = [1, 1]} : vector<16x128xbf16> to vector<16x16xbf16>
    %cst_24 = arith.constant dense<0.000000e+00> : vector<8x16xf32>
    %80 = tpu.matmul %78, %79, %cst_24 {dimension_numbers = #tpu.dot_dimension_numbers<[1], [1], [0], [0], [0, 0, 1, 0], [], []>} : vector<8x16xbf16>, vector<16x16xbf16>, vector<8x16xf32> -> vector<8x16xf32>
    %cst_25 = arith.constant 2.500000e-01 : f32
    %81 = vector.broadcast %cst_25 : f32 to vector<8x16xf32>
    %82 = arith.mulf %80, %81 : vector<8x16xf32>
    %cst_26 = arith.constant dense<0xFF800000> : vector<8xf32>
    %83 = vector.multi_reduction <maximumf>, %82, %cst_26 [1] : vector<8x16xf32> to vector<8xf32>
    %84 = vector.shape_cast %83 : vector<8xf32> to vector<8x1xf32>
    %85 = vector.broadcast %84 : vector<8x1xf32> to vector<8x16xf32>
    %86 = arith.subf %82, %85 : vector<8x16xf32>
    %87 = math.exp %86 : vector<8x16xf32>
    %cst_27 = arith.constant dense<0.000000e+00> : vector<8xf32>
    %88 = vector.multi_reduction <add>, %87, %cst_27 [1] : vector<8x16xf32> to vector<8xf32>
    %89 = vector.shape_cast %88 : vector<8xf32> to vector<8x1xf32>
    %90 = tpu.reciprocal %89 {approx = true} : vector<8x1xf32> -> vector<8x1xf32>
    %91 = vector.broadcast %90 : vector<8x1xf32> to vector<8x16xf32>
    %92 = arith.mulf %87, %91 : vector<8x16xf32>
    %93 = arith.truncf %92 : vector<8x16xf32> to vector<8x16xbf16>
    %94 = vector.extract_strided_slice %5 {offsets = [0, 64], sizes = [16, 16], strides = [1, 1]} : vector<16x128xbf16> to vector<16x16xbf16>
    %cst_28 = arith.constant dense<0.000000e+00> : vector<8x16xf32>
    %95 = tpu.matmul %93, %94, %cst_28 {dimension_numbers = #tpu.dot_dimension_numbers<[1], [0], [0], [1], [0, 0, 1, 1], [], []>} : vector<8x16xbf16>, vector<16x16xbf16>, vector<8x16xf32> -> vector<8x16xf32>
    %96 = vector.extract_strided_slice %1 {offsets = [0, 80], sizes = [8, 16], strides = [1, 1]} : vector<8x128xbf16> to vector<8x16xbf16>
    %97 = vector.extract_strided_slice %4 {offsets = [0, 80], sizes = [16, 16], strides = [1, 1]} : vector<16x128xbf16> to vector<16x16xbf16>
    %cst_29 = arith.constant dense<0.000000e+00> : vector<8x16xf32>
    %98 = tpu.matmul %96, %97, %cst_29 {dimension_numbers = #tpu.dot_dimension_numbers<[1], [1], [0], [0], [0, 0, 1, 0], [], []>} : vector<8x16xbf16>, vector<16x16xbf16>, vector<8x16xf32> -> vector<8x16xf32>
    %cst_30 = arith.constant 2.500000e-01 : f32
    %99 = vector.broadcast %cst_30 : f32 to vector<8x16xf32>
    %100 = arith.mulf %98, %99 : vector<8x16xf32>
    %cst_31 = arith.constant dense<0xFF800000> : vector<8xf32>
    %101 = vector.multi_reduction <maximumf>, %100, %cst_31 [1] : vector<8x16xf32> to vector<8xf32>
    %102 = vector.shape_cast %101 : vector<8xf32> to vector<8x1xf32>
    %103 = vector.broadcast %102 : vector<8x1xf32> to vector<8x16xf32>
    %104 = arith.subf %100, %103 : vector<8x16xf32>
    %105 = math.exp %104 : vector<8x16xf32>
    %cst_32 = arith.constant dense<0.000000e+00> : vector<8xf32>
    %106 = vector.multi_reduction <add>, %105, %cst_32 [1] : vector<8x16xf32> to vector<8xf32>
    %107 = vector.shape_cast %106 : vector<8xf32> to vector<8x1xf32>
    %108 = tpu.reciprocal %107 {approx = true} : vector<8x1xf32> -> vector<8x1xf32>
    %109 = vector.broadcast %108 : vector<8x1xf32> to vector<8x16xf32>
    %110 = arith.mulf %105, %109 : vector<8x16xf32>
    %111 = arith.truncf %110 : vector<8x16xf32> to vector<8x16xbf16>
    %112 = vector.extract_strided_slice %5 {offsets = [0, 80], sizes = [16, 16], strides = [1, 1]} : vector<16x128xbf16> to vector<16x16xbf16>
    %cst_33 = arith.constant dense<0.000000e+00> : vector<8x16xf32>
    %113 = tpu.matmul %111, %112, %cst_33 {dimension_numbers = #tpu.dot_dimension_numbers<[1], [0], [0], [1], [0, 0, 1, 1], [], []>} : vector<8x16xbf16>, vector<16x16xbf16>, vector<8x16xf32> -> vector<8x16xf32>
    %114 = vector.extract_strided_slice %1 {offsets = [0, 96], sizes = [8, 16], strides = [1, 1]} : vector<8x128xbf16> to vector<8x16xbf16>
    %115 = vector.extract_strided_slice %4 {offsets = [0, 96], sizes = [16, 16], strides = [1, 1]} : vector<16x128xbf16> to vector<16x16xbf16>
    %cst_34 = arith.constant dense<0.000000e+00> : vector<8x16xf32>
    %116 = tpu.matmul %114, %115, %cst_34 {dimension_numbers = #tpu.dot_dimension_numbers<[1], [1], [0], [0], [0, 0, 1, 0], [], []>} : vector<8x16xbf16>, vector<16x16xbf16>, vector<8x16xf32> -> vector<8x16xf32>
    %cst_35 = arith.constant 2.500000e-01 : f32
    %117 = vector.broadcast %cst_35 : f32 to vector<8x16xf32>
    %118 = arith.mulf %116, %117 : vector<8x16xf32>
    %cst_36 = arith.constant dense<0xFF800000> : vector<8xf32>
    %119 = vector.multi_reduction <maximumf>, %118, %cst_36 [1] : vector<8x16xf32> to vector<8xf32>
    %120 = vector.shape_cast %119 : vector<8xf32> to vector<8x1xf32>
    %121 = vector.broadcast %120 : vector<8x1xf32> to vector<8x16xf32>
    %122 = arith.subf %118, %121 : vector<8x16xf32>
    %123 = math.exp %122 : vector<8x16xf32>
    %cst_37 = arith.constant dense<0.000000e+00> : vector<8xf32>
    %124 = vector.multi_reduction <add>, %123, %cst_37 [1] : vector<8x16xf32> to vector<8xf32>
    %125 = vector.shape_cast %124 : vector<8xf32> to vector<8x1xf32>
    %126 = tpu.reciprocal %125 {approx = true} : vector<8x1xf32> -> vector<8x1xf32>
    %127 = vector.broadcast %126 : vector<8x1xf32> to vector<8x16xf32>
    %128 = arith.mulf %123, %127 : vector<8x16xf32>
    %129 = arith.truncf %128 : vector<8x16xf32> to vector<8x16xbf16>
    %130 = vector.extract_strided_slice %5 {offsets = [0, 96], sizes = [16, 16], strides = [1, 1]} : vector<16x128xbf16> to vector<16x16xbf16>
    %cst_38 = arith.constant dense<0.000000e+00> : vector<8x16xf32>
    %131 = tpu.matmul %129, %130, %cst_38 {dimension_numbers = #tpu.dot_dimension_numbers<[1], [0], [0], [1], [0, 0, 1, 1], [], []>} : vector<8x16xbf16>, vector<16x16xbf16>, vector<8x16xf32> -> vector<8x16xf32>
    %132 = vector.extract_strided_slice %1 {offsets = [0, 112], sizes = [8, 16], strides = [1, 1]} : vector<8x128xbf16> to vector<8x16xbf16>
    %133 = vector.extract_strided_slice %4 {offsets = [0, 112], sizes = [16, 16], strides = [1, 1]} : vector<16x128xbf16> to vector<16x16xbf16>
    %cst_39 = arith.constant dense<0.000000e+00> : vector<8x16xf32>
    %134 = tpu.matmul %132, %133, %cst_39 {dimension_numbers = #tpu.dot_dimension_numbers<[1], [1], [0], [0], [0, 0, 1, 0], [], []>} : vector<8x16xbf16>, vector<16x16xbf16>, vector<8x16xf32> -> vector<8x16xf32>
    %cst_40 = arith.constant 2.500000e-01 : f32
    %135 = vector.broadcast %cst_40 : f32 to vector<8x16xf32>
    %136 = arith.mulf %134, %135 : vector<8x16xf32>
    %cst_41 = arith.constant dense<0xFF800000> : vector<8xf32>
    %137 = vector.multi_reduction <maximumf>, %136, %cst_41 [1] : vector<8x16xf32> to vector<8xf32>
    %138 = vector.shape_cast %137 : vector<8xf32> to vector<8x1xf32>
    %139 = vector.broadcast %138 : vector<8x1xf32> to vector<8x16xf32>
    %140 = arith.subf %136, %139 : vector<8x16xf32>
    %141 = math.exp %140 : vector<8x16xf32>
    %cst_42 = arith.constant dense<0.000000e+00> : vector<8xf32>
    %142 = vector.multi_reduction <add>, %141, %cst_42 [1] : vector<8x16xf32> to vector<8xf32>
    %143 = vector.shape_cast %142 : vector<8xf32> to vector<8x1xf32>
    %144 = tpu.reciprocal %143 {approx = true} : vector<8x1xf32> -> vector<8x1xf32>
    %145 = vector.broadcast %144 : vector<8x1xf32> to vector<8x16xf32>
    %146 = arith.mulf %141, %145 : vector<8x16xf32>
    %147 = arith.truncf %146 : vector<8x16xf32> to vector<8x16xbf16>
    %148 = vector.extract_strided_slice %5 {offsets = [0, 112], sizes = [16, 16], strides = [1, 1]} : vector<16x128xbf16> to vector<16x16xbf16>
    %cst_43 = arith.constant dense<0.000000e+00> : vector<8x16xf32>
    %149 = tpu.matmul %147, %148, %cst_43 {dimension_numbers = #tpu.dot_dimension_numbers<[1], [0], [0], [1], [0, 0, 1, 1], [], []>} : vector<8x16xbf16>, vector<16x16xbf16>, vector<8x16xf32> -> vector<8x16xf32>
    %150 = tpu.concatenate %23, %41, %59, %77, %95, %113, %131, %149 in 1 : vector<8x16xf32>, vector<8x16xf32>, vector<8x16xf32>, vector<8x16xf32>, vector<8x16xf32>, vector<8x16xf32>, vector<8x16xf32>, vector<8x16xf32> -> vector<8x128xf32>
    %151 = arith.truncf %150 : vector<8x128xf32> to vector<8x128xbf16>
    %c0_44 = arith.constant 0 : index
    %c0_45 = arith.constant 0 : index
    %152 = vector.load %arg3[%c0_44, %c0_45] : memref<128x128xbf16, #tpu.memory_space<vmem>>, vector<128x128xbf16>
    %cst_46 = arith.constant dense<0.000000e+00> : vector<8x128xf32>
    %153 = tpu.matmul %151, %152, %cst_46 {dimension_numbers = #tpu.dot_dimension_numbers<[1], [0], [0], [1], [0, 0, 1, 1], [], []>} : vector<8x128xbf16>, vector<128x128xbf16>, vector<8x128xf32> -> vector<8x128xf32>
    %c0_47 = arith.constant 0 : index
    %c0_48 = arith.constant 0 : index
    %154 = vector.load %arg4[%c0_47, %c0_48] : memref<1x128xf32, #tpu.memory_space<vmem>>, vector<1x128xf32>
    %155 = vector.broadcast %154 : vector<1x128xf32> to vector<8x128xf32>
    %156 = arith.addf %153, %155 : vector<8x128xf32>
    %c0_49 = arith.constant 0 : index
    %c0_50 = arith.constant 0 : index
    %c0_51 = arith.constant 0 : index
    %157 = vector.load %arg5[%c0_49, %c0_50, %c0_51] : memref<1x8x128xf32, #tpu.memory_space<vmem>>, vector<1x8x128xf32>
    %158 = vector.shape_cast %157 : vector<1x8x128xf32> to vector<8x128xf32>
    %159 = arith.addf %156, %158 : vector<8x128xf32>
    %c0_52 = arith.constant 0 : index
    %c0_53 = arith.constant 0 : index
    %c0_54 = arith.constant 0 : index
    %160 = vector.load %arg6[%c0_52, %c0_53, %c0_54] : memref<1x8x128xf32, #tpu.memory_space<vmem>>, vector<1x8x128xf32>
    %161 = vector.shape_cast %160 : vector<1x8x128xf32> to vector<8x128xf32>
    %162 = vector.shape_cast %159 : vector<8x128xf32> to vector<1x8x128xf32>
    tpu.vector_store %arg6[%c0_52, %c0_53, %c0_54], %162 {strides = array<i32>} : memref<1x8x128xf32, #tpu.memory_space<vmem>>, vector<1x8x128xf32>,
    return
  }
  func.func @transform_0(%arg0: i32) -> (i32, i32, i32) {
    %c0_i32 = arith.constant 0 : i32
    %c0_i32_0 = arith.constant 0 : i32
    %c0_i32_1 = arith.constant 0 : i32
    return %arg0, %c0_i32, %c0_i32_0 : i32, i32, i32
  }
  func.func @transform_1(%arg0: i32) -> (i32, i32, i32) {
    %c0_i32 = arith.constant 0 : i32
    %c0_i32_0 = arith.constant 0 : i32
    %c0_i32_1 = arith.constant 0 : i32
    return %arg0, %c0_i32, %c0_i32_0 : i32, i32, i32
  }
  func.func @transform_2(%arg0: i32) -> (i32, i32) {
    %c0_i32 = arith.constant 0 : i32
    %c0_i32_0 = arith.constant 0 : i32
    %c0_i32_1 = arith.constant 0 : i32
    return %c0_i32, %c0_i32_0 : i32, i32
  }
  func.func @transform_3(%arg0: i32) -> (i32, i32) {
    %c0_i32 = arith.constant 0 : i32
    %c0_i32_0 = arith.constant 0 : i32
    %c0_i32_1 = arith.constant 0 : i32
    return %c0_i32, %c0_i32_0 : i32, i32
  }
  func.func @transform_4(%arg0: i32) -> (i32, i32, i32) {
    %c0_i32 = arith.constant 0 : i32
    %c0_i32_0 = arith.constant 0 : i32
    %c0_i32_1 = arith.constant 0 : i32
    return %arg0, %c0_i32, %c0_i32_0 : i32, i32, i32
  }
  func.func @transform_5(%arg0: i32) -> (i32, i32, i32) {
    %c0_i32 = arith.constant 0 : i32
    %c0_i32_0 = arith.constant 0 : i32
    %c0_i32_1 = arith.constant 0 : i32
    return %arg0, %c0_i32, %c0_i32_0 : i32, i32, i32
  }
}

module attributes {stable_mosaic.version = 11 : i64} {
  func.func @_matmul_kernel(%arg0: i32, %arg1: i32, %arg2: i32, %arg3: memref<16x128xbf16, #tpu.memory_space<vmem>>, %arg4: memref<128x256xbf16, #tpu.memory_space<vmem>>, %arg5: memref<1x256xf32, #tpu.memory_space<vmem>>, %arg6: memref<16x256xbf16, #tpu.memory_space<vmem>>, %arg7: memref<16x256xf32, #tpu.memory_space<vmem>>) attributes {dimension_semantics = [#tpu.dimension_semantics<parallel>, #tpu.dimension_semantics<parallel>, #tpu.dimension_semantics<arbitrary>], iteration_bounds = array<i64: 1, 1, 1>, scalar_prefetch = 0 : i64, scratch_operands = 1 : i64, tpu.core_type = #tpu.core_type<tc>, window_params = [{transform_indices = @transform_0, window_bounds = array<i64: 16, 128>}, {transform_indices = @transform_1, window_bounds = array<i64: 128, 256>}, {transform_indices = @transform_2, window_bounds = array<i64: 1, 256>}, {transform_indices = @transform_3, window_bounds = array<i64: 16, 256>}]} {
    %c0_i32 = arith.constant 0 : i32
    %0 = arith.cmpi eq, %arg2, %c0_i32 : i32
    %1 = arith.extui %0 : i1 to i32
    %c0_i32_0 = arith.constant 0 : i32
    %2 = arith.cmpi ne, %1, %c0_i32_0 : i32
    scf.if %2 {
      %cst_10 = arith.constant 0.000000e+00 : f32
      %12 = vector.broadcast %cst_10 : f32 to vector<16x256xf32>
      %c0_11 = arith.constant 0 : index
      %c0_12 = arith.constant 0 : index
      %13 = vector.load %arg7[%c0_11, %c0_12] : memref<16x256xf32, #tpu.memory_space<vmem>>, vector<16x256xf32>
      tpu.vector_store %arg7[%c0_11, %c0_12], %12 {strides = array<i32>} : memref<16x256xf32, #tpu.memory_space<vmem>>, vector<16x256xf32>,
    } else {
    }
    %c0 = arith.constant 0 : index
    %c0_1 = arith.constant 0 : index
    %3 = vector.load %arg7[%c0, %c0_1] : memref<16x256xf32, #tpu.memory_space<vmem>>, vector<16x256xf32>
    %c0_2 = arith.constant 0 : index
    %c0_3 = arith.constant 0 : index
    %4 = vector.load %arg3[%c0_2, %c0_3] : memref<16x128xbf16, #tpu.memory_space<vmem>>, vector<16x128xbf16>
    %c0_4 = arith.constant 0 : index
    %c0_5 = arith.constant 0 : index
    %5 = vector.load %arg4[%c0_4, %c0_5] : memref<128x256xbf16, #tpu.memory_space<vmem>>, vector<128x256xbf16>
    %cst = arith.constant dense<0.000000e+00> : vector<16x256xf32>
    %6 = tpu.matmul %4, %5, %cst {dimension_numbers = #tpu.dot_dimension_numbers<[1], [0], [0], [1], [0, 0, 1, 1], [], []>} : vector<16x128xbf16>, vector<128x256xbf16>, vector<16x256xf32> -> vector<16x256xf32>
    %7 = arith.addf %3, %6 : vector<16x256xf32>
    %c0_6 = arith.constant 0 : index
    %c0_7 = arith.constant 0 : index
    %8 = vector.load %arg7[%c0_6, %c0_7] : memref<16x256xf32, #tpu.memory_space<vmem>>, vector<16x256xf32>
    tpu.vector_store %arg7[%c0_6, %c0_7], %7 {strides = array<i32>} : memref<16x256xf32, #tpu.memory_space<vmem>>, vector<16x256xf32>,
    %c0_i32_8 = arith.constant 0 : i32
    %9 = arith.cmpi eq, %arg2, %c0_i32_8 : i32
    %10 = arith.extui %9 : i1 to i32
    %c0_i32_9 = arith.constant 0 : i32
    %11 = arith.cmpi ne, %10, %c0_i32_9 : i32
    scf.if %11 {
      %c0_10 = arith.constant 0 : index
      %c0_11 = arith.constant 0 : index
      %12 = vector.load %arg7[%c0_10, %c0_11] : memref<16x256xf32, #tpu.memory_space<vmem>>, vector<16x256xf32>
      %c0_12 = arith.constant 0 : index
      %c0_13 = arith.constant 0 : index
      %13 = vector.load %arg5[%c0_12, %c0_13] : memref<1x256xf32, #tpu.memory_space<vmem>>, vector<1x256xf32>
      %14 = vector.broadcast %13 : vector<1x256xf32> to vector<16x256xf32>
      %15 = arith.addf %12, %14 : vector<16x256xf32>
      %cst_14 = arith.constant 0.000000e+00 : f32
      %16 = vector.broadcast %cst_14 : f32 to vector<16x256xf32>
      %17 = arith.maximumf %15, %16 : vector<16x256xf32>
      %18 = arith.truncf %17 : vector<16x256xf32> to vector<16x256xbf16>
      %c0_15 = arith.constant 0 : index
      %c0_16 = arith.constant 0 : index
      %19 = vector.load %arg6[%c0_15, %c0_16] : memref<16x256xbf16, #tpu.memory_space<vmem>>, vector<16x256xbf16>
      tpu.vector_store %arg6[%c0_15, %c0_16], %18 {strides = array<i32>} : memref<16x256xbf16, #tpu.memory_space<vmem>>, vector<16x256xbf16>,
    } else {
    }
    return
  }
  func.func @transform_0(%arg0: i32, %arg1: i32, %arg2: i32) -> (i32, i32) {
    %c0_i32 = arith.constant 0 : i32
    return %arg0, %arg2 : i32, i32
  }
  func.func @transform_1(%arg0: i32, %arg1: i32, %arg2: i32) -> (i32, i32) {
    %c0_i32 = arith.constant 0 : i32
    return %arg2, %arg1 : i32, i32
  }
  func.func @transform_2(%arg0: i32, %arg1: i32, %arg2: i32) -> (i32, i32) {
    %c0_i32 = arith.constant 0 : i32
    %c0_i32_0 = arith.constant 0 : i32
    return %c0_i32, %arg1 : i32, i32
  }
  func.func @transform_3(%arg0: i32, %arg1: i32, %arg2: i32) -> (i32, i32) {
    %c0_i32 = arith.constant 0 : i32
    return %arg0, %arg1 : i32, i32
  }
}

module attributes {stable_mosaic.version = 11 : i64} {
  func.func @_matmul_kernel(%arg0: i32, %arg1: i32, %arg2: i32, %arg3: memref<16x256xbf16, #tpu.memory_space<vmem>>, %arg4: memref<256x256xbf16, #tpu.memory_space<vmem>>, %arg5: memref<1x256xf32, #tpu.memory_space<vmem>>, %arg6: memref<16x256xbf16, #tpu.memory_space<vmem>>, %arg7: memref<16x256xf32, #tpu.memory_space<vmem>>) attributes {dimension_semantics = [#tpu.dimension_semantics<parallel>, #tpu.dimension_semantics<parallel>, #tpu.dimension_semantics<arbitrary>], iteration_bounds = array<i64: 1, 1, 1>, scalar_prefetch = 0 : i64, scratch_operands = 1 : i64, tpu.core_type = #tpu.core_type<tc>, window_params = [{transform_indices = @transform_0, window_bounds = array<i64: 16, 256>}, {transform_indices = @transform_1, window_bounds = array<i64: 256, 256>}, {transform_indices = @transform_2, window_bounds = array<i64: 1, 256>}, {transform_indices = @transform_3, window_bounds = array<i64: 16, 256>}]} {
    %c0_i32 = arith.constant 0 : i32
    %0 = arith.cmpi eq, %arg2, %c0_i32 : i32
    %1 = arith.extui %0 : i1 to i32
    %c0_i32_0 = arith.constant 0 : i32
    %2 = arith.cmpi ne, %1, %c0_i32_0 : i32
    scf.if %2 {
      %cst_10 = arith.constant 0.000000e+00 : f32
      %12 = vector.broadcast %cst_10 : f32 to vector<16x256xf32>
      %c0_11 = arith.constant 0 : index
      %c0_12 = arith.constant 0 : index
      %13 = vector.load %arg7[%c0_11, %c0_12] : memref<16x256xf32, #tpu.memory_space<vmem>>, vector<16x256xf32>
      tpu.vector_store %arg7[%c0_11, %c0_12], %12 {strides = array<i32>} : memref<16x256xf32, #tpu.memory_space<vmem>>, vector<16x256xf32>,
    } else {
    }
    %c0 = arith.constant 0 : index
    %c0_1 = arith.constant 0 : index
    %3 = vector.load %arg7[%c0, %c0_1] : memref<16x256xf32, #tpu.memory_space<vmem>>, vector<16x256xf32>
    %c0_2 = arith.constant 0 : index
    %c0_3 = arith.constant 0 : index
    %4 = vector.load %arg3[%c0_2, %c0_3] : memref<16x256xbf16, #tpu.memory_space<vmem>>, vector<16x256xbf16>
    %c0_4 = arith.constant 0 : index
    %c0_5 = arith.constant 0 : index
    %5 = vector.load %arg4[%c0_4, %c0_5] : memref<256x256xbf16, #tpu.memory_space<vmem>>, vector<256x256xbf16>
    %cst = arith.constant dense<0.000000e+00> : vector<16x256xf32>
    %6 = tpu.matmul %4, %5, %cst {dimension_numbers = #tpu.dot_dimension_numbers<[1], [0], [0], [1], [0, 0, 1, 1], [], []>} : vector<16x256xbf16>, vector<256x256xbf16>, vector<16x256xf32> -> vector<16x256xf32>
    %7 = arith.addf %3, %6 : vector<16x256xf32>
    %c0_6 = arith.constant 0 : index
    %c0_7 = arith.constant 0 : index
    %8 = vector.load %arg7[%c0_6, %c0_7] : memref<16x256xf32, #tpu.memory_space<vmem>>, vector<16x256xf32>
    tpu.vector_store %arg7[%c0_6, %c0_7], %7 {strides = array<i32>} : memref<16x256xf32, #tpu.memory_space<vmem>>, vector<16x256xf32>,
    %c0_i32_8 = arith.constant 0 : i32
    %9 = arith.cmpi eq, %arg2, %c0_i32_8 : i32
    %10 = arith.extui %9 : i1 to i32
    %c0_i32_9 = arith.constant 0 : i32
    %11 = arith.cmpi ne, %10, %c0_i32_9 : i32
    scf.if %11 {
      %c0_10 = arith.constant 0 : index
      %c0_11 = arith.constant 0 : index
      %12 = vector.load %arg7[%c0_10, %c0_11] : memref<16x256xf32, #tpu.memory_space<vmem>>, vector<16x256xf32>
      %c0_12 = arith.constant 0 : index
      %c0_13 = arith.constant 0 : index
      %13 = vector.load %arg5[%c0_12, %c0_13] : memref<1x256xf32, #tpu.memory_space<vmem>>, vector<1x256xf32>
      %14 = vector.broadcast %13 : vector<1x256xf32> to vector<16x256xf32>
      %15 = arith.addf %12, %14 : vector<16x256xf32>
      %cst_14 = arith.constant 0.000000e+00 : f32
      %16 = vector.broadcast %cst_14 : f32 to vector<16x256xf32>
      %17 = arith.maximumf %15, %16 : vector<16x256xf32>
      %18 = arith.truncf %17 : vector<16x256xf32> to vector<16x256xbf16>
      %c0_15 = arith.constant 0 : index
      %c0_16 = arith.constant 0 : index
      %19 = vector.load %arg6[%c0_15, %c0_16] : memref<16x256xbf16, #tpu.memory_space<vmem>>, vector<16x256xbf16>
      tpu.vector_store %arg6[%c0_15, %c0_16], %18 {strides = array<i32>} : memref<16x256xbf16, #tpu.memory_space<vmem>>, vector<16x256xbf16>,
    } else {
    }
    return
  }
  func.func @transform_0(%arg0: i32, %arg1: i32, %arg2: i32) -> (i32, i32) {
    %c0_i32 = arith.constant 0 : i32
    return %arg0, %arg2 : i32, i32
  }
  func.func @transform_1(%arg0: i32, %arg1: i32, %arg2: i32) -> (i32, i32) {
    %c0_i32 = arith.constant 0 : i32
    return %arg2, %arg1 : i32, i32
  }
  func.func @transform_2(%arg0: i32, %arg1: i32, %arg2: i32) -> (i32, i32) {
    %c0_i32 = arith.constant 0 : i32
    %c0_i32_0 = arith.constant 0 : i32
    return %c0_i32, %arg1 : i32, i32
  }
  func.func @transform_3(%arg0: i32, %arg1: i32, %arg2: i32) -> (i32, i32) {
    %c0_i32 = arith.constant 0 : i32
    return %arg0, %arg1 : i32, i32
  }
}

module attributes {stable_mosaic.version = 11 : i64} {
  func.func @_matmul_kernel(%arg0: i32, %arg1: i32, %arg2: i32, %arg3: memref<16x256xbf16, #tpu.memory_space<vmem>>, %arg4: memref<256x128xbf16, #tpu.memory_space<vmem>>, %arg5: memref<1x128xf32, #tpu.memory_space<vmem>>, %arg6: memref<16x128xf32, #tpu.memory_space<vmem>>, %arg7: memref<16x128xf32, #tpu.memory_space<vmem>>, %arg8: memref<16x128xf32, #tpu.memory_space<vmem>>) attributes {dimension_semantics = [#tpu.dimension_semantics<parallel>, #tpu.dimension_semantics<parallel>, #tpu.dimension_semantics<arbitrary>], iteration_bounds = array<i64: 1, 1, 1>, scalar_prefetch = 0 : i64, scratch_operands = 1 : i64, tpu.core_type = #tpu.core_type<tc>, window_params = [{transform_indices = @transform_0, window_bounds = array<i64: 16, 256>}, {transform_indices = @transform_1, window_bounds = array<i64: 256, 128>}, {transform_indices = @transform_2, window_bounds = array<i64: 1, 128>}, {transform_indices = @transform_3, window_bounds = array<i64: 16, 128>}, {transform_indices = @transform_4, window_bounds = array<i64: 16, 128>}]} {
    %c0_i32 = arith.constant 0 : i32
    %0 = arith.cmpi eq, %arg2, %c0_i32 : i32
    %1 = arith.extui %0 : i1 to i32
    %c0_i32_0 = arith.constant 0 : i32
    %2 = arith.cmpi ne, %1, %c0_i32_0 : i32
    scf.if %2 {
      %cst_10 = arith.constant 0.000000e+00 : f32
      %12 = vector.broadcast %cst_10 : f32 to vector<16x128xf32>
      %c0_11 = arith.constant 0 : index
      %c0_12 = arith.constant 0 : index
      %13 = vector.load %arg8[%c0_11, %c0_12] : memref<16x128xf32, #tpu.memory_space<vmem>>, vector<16x128xf32>
      tpu.vector_store %arg8[%c0_11, %c0_12], %12 {strides = array<i32>} : memref<16x128xf32, #tpu.memory_space<vmem>>, vector<16x128xf32>,
    } else {
    }
    %c0 = arith.constant 0 : index
    %c0_1 = arith.constant 0 : index
    %3 = vector.load %arg8[%c0, %c0_1] : memref<16x128xf32, #tpu.memory_space<vmem>>, vector<16x128xf32>
    %c0_2 = arith.constant 0 : index
    %c0_3 = arith.constant 0 : index
    %4 = vector.load %arg3[%c0_2, %c0_3] : memref<16x256xbf16, #tpu.memory_space<vmem>>, vector<16x256xbf16>
    %c0_4 = arith.constant 0 : index
    %c0_5 = arith.constant 0 : index
    %5 = vector.load %arg4[%c0_4, %c0_5] : memref<256x128xbf16, #tpu.memory_space<vmem>>, vector<256x128xbf16>
    %cst = arith.constant dense<0.000000e+00> : vector<16x128xf32>
    %6 = tpu.matmul %4, %5, %cst {dimension_numbers = #tpu.dot_dimension_numbers<[1], [0], [0], [1], [0, 0, 1, 1], [], []>} : vector<16x256xbf16>, vector<256x128xbf16>, vector<16x128xf32> -> vector<16x128xf32>
    %7 = arith.addf %3, %6 : vector<16x128xf32>
    %c0_6 = arith.constant 0 : index
    %c0_7 = arith.constant 0 : index
    %8 = vector.load %arg8[%c0_6, %c0_7] : memref<16x128xf32, #tpu.memory_space<vmem>>, vector<16x128xf32>
    tpu.vector_store %arg8[%c0_6, %c0_7], %7 {strides = array<i32>} : memref<16x128xf32, #tpu.memory_space<vmem>>, vector<16x128xf32>,
    %c0_i32_8 = arith.constant 0 : i32
    %9 = arith.cmpi eq, %arg2, %c0_i32_8 : i32
    %10 = arith.extui %9 : i1 to i32
    %c0_i32_9 = arith.constant 0 : i32
    %11 = arith.cmpi ne, %10, %c0_i32_9 : i32
    scf.if %11 {
      %c0_10 = arith.constant 0 : index
      %c0_11 = arith.constant 0 : index
      %12 = vector.load %arg8[%c0_10, %c0_11] : memref<16x128xf32, #tpu.memory_space<vmem>>, vector<16x128xf32>
      %c0_12 = arith.constant 0 : index
      %c0_13 = arith.constant 0 : index
      %13 = vector.load %arg5[%c0_12, %c0_13] : memref<1x128xf32, #tpu.memory_space<vmem>>, vector<1x128xf32>
      %14 = vector.broadcast %13 : vector<1x128xf32> to vector<16x128xf32>
      %15 = arith.addf %12, %14 : vector<16x128xf32>
      %c0_14 = arith.constant 0 : index
      %c0_15 = arith.constant 0 : index
      %16 = vector.load %arg6[%c0_14, %c0_15] : memref<16x128xf32, #tpu.memory_space<vmem>>, vector<16x128xf32>
      %17 = arith.addf %15, %16 : vector<16x128xf32>
      %c0_16 = arith.constant 0 : index
      %c0_17 = arith.constant 0 : index
      %18 = vector.load %arg7[%c0_16, %c0_17] : memref<16x128xf32, #tpu.memory_space<vmem>>, vector<16x128xf32>
      tpu.vector_store %arg7[%c0_16, %c0_17], %17 {strides = array<i32>} : memref<16x128xf32, #tpu.memory_space<vmem>>, vector<16x128xf32>,
    } else {
    }
    return
  }
  func.func @transform_0(%arg0: i32, %arg1: i32, %arg2: i32) -> (i32, i32) {
    %c0_i32 = arith.constant 0 : i32
    return %arg0, %arg2 : i32, i32
  }
  func.func @transform_1(%arg0: i32, %arg1: i32, %arg2: i32) -> (i32, i32) {
    %c0_i32 = arith.constant 0 : i32
    return %arg2, %arg1 : i32, i32
  }
  func.func @transform_2(%arg0: i32, %arg1: i32, %arg2: i32) -> (i32, i32) {
    %c0_i32 = arith.constant 0 : i32
    %c0_i32_0 = arith.constant 0 : i32
    return %c0_i32, %arg1 : i32, i32
  }
  func.func @transform_3(%arg0: i32, %arg1: i32, %arg2: i32) -> (i32, i32) {
    %c0_i32 = arith.constant 0 : i32
    return %arg0, %arg1 : i32, i32
  }
  func.func @transform_4(%arg0: i32, %arg1: i32, %arg2: i32) -> (i32, i32) {
    %c0_i32 = arith.constant 0 : i32
    return %arg0, %arg1 : i32, i32
  }
}

module attributes {stable_mosaic.version = 11 : i64} {
  func.func @_mha_kernel(%arg0: i32, %arg1: memref<1x16x128xbf16, #tpu.memory_space<vmem>>, %arg2: memref<1x8x256xbf16, #tpu.memory_space<vmem>>, %arg3: memref<128x128xbf16, #tpu.memory_space<vmem>>, %arg4: memref<1x128xf32, #tpu.memory_space<vmem>>, %arg5: memref<1x16x128xf32, #tpu.memory_space<vmem>>, %arg6: memref<1x16x128xf32, #tpu.memory_space<vmem>>) attributes {dimension_semantics = [#tpu.dimension_semantics<parallel>], iteration_bounds = array<i64: 2>, scalar_prefetch = 0 : i64, scratch_operands = 0 : i64, tpu.core_type = #tpu.core_type<tc>, window_params = [{transform_indices = @transform_0, window_bounds = array<i64: 1, 16, 128>}, {transform_indices = @transform_1, window_bounds = array<i64: 1, 8, 256>}, {pipeline_mode = #tpu.pipeline_mode<synchronous>, transform_indices = @transform_2, window_bounds = array<i64: 128, 128>}, {pipeline_mode = #tpu.pipeline_mode<synchronous>, transform_indices = @transform_3, window_bounds = array<i64: 1, 128>}, {transform_indices = @transform_4, window_bounds = array<i64: 1, 16, 128>}, {transform_indices = @transform_5, window_bounds = array<i64: 1, 16, 128>}]} {
    %c0 = arith.constant 0 : index
    %c0_0 = arith.constant 0 : index
    %c0_1 = arith.constant 0 : index
    %0 = vector.load %arg1[%c0, %c0_0, %c0_1] : memref<1x16x128xbf16, #tpu.memory_space<vmem>>, vector<1x16x128xbf16>
    %1 = vector.shape_cast %0 : vector<1x16x128xbf16> to vector<16x128xbf16>
    %c0_2 = arith.constant 0 : index
    %c0_3 = arith.constant 0 : index
    %c0_4 = arith.constant 0 : index
    %2 = vector.load %arg2[%c0_2, %c0_3, %c0_4] : memref<1x8x256xbf16, #tpu.memory_space<vmem>>, vector<1x8x256xbf16>
    %3 = vector.shape_cast %2 : vector<1x8x256xbf16> to vector<8x256xbf16>
    %4 = vector.extract_strided_slice %3 {offsets = [0, 0], sizes = [8, 128], strides = [1, 1]} : vector<8x256xbf16> to vector<8x128xbf16>
    %5 = vector.extract_strided_slice %3 {offsets = [0, 128], sizes = [8, 128], strides = [1, 1]} : vector<8x256xbf16> to vector<8x128xbf16>
    %6 = tpu.iota {dimensions = array<i32: 1>} : vector<16x8xi32>
    %c6_i32 = arith.constant 6 : i32
    %7 = vector.broadcast %c6_i32 : i32 to vector<16x8xi32>
    %8 = arith.cmpi slt, %6, %7 : vector<16x8xi32>
    %9 = vector.extract_strided_slice %1 {offsets = [0, 0], sizes = [16, 16], strides = [1, 1]} : vector<16x128xbf16> to vector<16x16xbf16>
    %10 = vector.extract_strided_slice %4 {offsets = [0, 0], sizes = [8, 16], strides = [1, 1]} : vector<8x128xbf16> to vector<8x16xbf16>
    %cst = arith.constant dense<0.000000e+00> : vector<16x8xf32>
    %11 = tpu.matmul %9, %10, %cst {dimension_numbers = #tpu.dot_dimension_numbers<[1], [1], [0], [0], [0, 0, 1, 0], [], []>} : vector<16x16xbf16>, vector<8x16xbf16>, vector<16x8xf32> -> vector<16x8xf32>
    %cst_5 = arith.constant 2.500000e-01 : f32
    %12 = vector.broadcast %cst_5 : f32 to vector<16x8xf32>
    %13 = arith.mulf %11, %12 : vector<16x8xf32>
    %cst_6 = arith.constant -1.000000e+30 : f32
    %14 = vector.broadcast %cst_6 : f32 to vector<16x8xf32>
    %15 = arith.select %8, %13, %14 : vector<16x8xi1>, vector<16x8xf32>
    %cst_7 = arith.constant dense<0xFF800000> : vector<16xf32>
    %16 = vector.multi_reduction <maximumf>, %15, %cst_7 [1] : vector<16x8xf32> to vector<16xf32>
    %17 = vector.shape_cast %16 : vector<16xf32> to vector<16x1xf32>
    %18 = vector.broadcast %17 : vector<16x1xf32> to vector<16x8xf32>
    %19 = arith.subf %15, %18 : vector<16x8xf32>
    %20 = math.exp %19 : vector<16x8xf32>
    %cst_8 = arith.constant dense<0.000000e+00> : vector<16xf32>
    %21 = vector.multi_reduction <add>, %20, %cst_8 [1] : vector<16x8xf32> to vector<16xf32>
    %22 = vector.shape_cast %21 : vector<16xf32> to vector<16x1xf32>
    %23 = tpu.reciprocal %22 {approx = true} : vector<16x1xf32> -> vector<16x1xf32>
    %24 = vector.broadcast %23 : vector<16x1xf32> to vector<16x8xf32>
    %25 = arith.mulf %20, %24 : vector<16x8xf32>
    %26 = arith.truncf %25 : vector<16x8xf32> to vector<16x8xbf16>
    %27 = vector.extract_strided_slice %5 {offsets = [0, 0], sizes = [8, 16], strides = [1, 1]} : vector<8x128xbf16> to vector<8x16xbf16>
    %cst_9 = arith.constant dense<0.000000e+00> : vector<16x16xf32>
    %28 = tpu.matmul %26, %27, %cst_9 {dimension_numbers = #tpu.dot_dimension_numbers<[1], [0], [0], [1], [0, 0, 1, 1], [], []>} : vector<16x8xbf16>, vector<8x16xbf16>, vector<16x16xf32> -> vector<16x16xf32>
    %29 = vector.extract_strided_slice %1 {offsets = [0, 16], sizes = [16, 16], strides = [1, 1]} : vector<16x128xbf16> to vector<16x16xbf16>
    %30 = vector.extract_strided_slice %4 {offsets = [0, 16], sizes = [8, 16], strides = [1, 1]} : vector<8x128xbf16> to vector<8x16xbf16>
    %cst_10 = arith.constant dense<0.000000e+00> : vector<16x8xf32>
    %31 = tpu.matmul %29, %30, %cst_10 {dimension_numbers = #tpu.dot_dimension_numbers<[1], [1], [0], [0], [0, 0, 1, 0], [], []>} : vector<16x16xbf16>, vector<8x16xbf16>, vector<16x8xf32> -> vector<16x8xf32>
    %cst_11 = arith.constant 2.500000e-01 : f32
    %32 = vector.broadcast %cst_11 : f32 to vector<16x8xf32>
    %33 = arith.mulf %31, %32 : vector<16x8xf32>
    %cst_12 = arith.constant -1.000000e+30 : f32
    %34 = vector.broadcast %cst_12 : f32 to vector<16x8xf32>
    %35 = arith.select %8, %33, %34 : vector<16x8xi1>, vector<16x8xf32>
    %cst_13 = arith.constant dense<0xFF800000> : vector<16xf32>
    %36 = vector.multi_reduction <maximumf>, %35, %cst_13 [1] : vector<16x8xf32> to vector<16xf32>
    %37 = vector.shape_cast %36 : vector<16xf32> to vector<16x1xf32>
    %38 = vector.broadcast %37 : vector<16x1xf32> to vector<16x8xf32>
    %39 = arith.subf %35, %38 : vector<16x8xf32>
    %40 = math.exp %39 : vector<16x8xf32>
    %cst_14 = arith.constant dense<0.000000e+00> : vector<16xf32>
    %41 = vector.multi_reduction <add>, %40, %cst_14 [1] : vector<16x8xf32> to vector<16xf32>
    %42 = vector.shape_cast %41 : vector<16xf32> to vector<16x1xf32>
    %43 = tpu.reciprocal %42 {approx = true} : vector<16x1xf32> -> vector<16x1xf32>
    %44 = vector.broadcast %43 : vector<16x1xf32> to vector<16x8xf32>
    %45 = arith.mulf %40, %44 : vector<16x8xf32>
    %46 = arith.truncf %45 : vector<16x8xf32> to vector<16x8xbf16>
    %47 = vector.extract_strided_slice %5 {offsets = [0, 16], sizes = [8, 16], strides = [1, 1]} : vector<8x128xbf16> to vector<8x16xbf16>
    %cst_15 = arith.constant dense<0.000000e+00> : vector<16x16xf32>
    %48 = tpu.matmul %46, %47, %cst_15 {dimension_numbers = #tpu.dot_dimension_numbers<[1], [0], [0], [1], [0, 0, 1, 1], [], []>} : vector<16x8xbf16>, vector<8x16xbf16>, vector<16x16xf32> -> vector<16x16xf32>
    %49 = vector.extract_strided_slice %1 {offsets = [0, 32], sizes = [16, 16], strides = [1, 1]} : vector<16x128xbf16> to vector<16x16xbf16>
    %50 = vector.extract_strided_slice %4 {offsets = [0, 32], sizes = [8, 16], strides = [1, 1]} : vector<8x128xbf16> to vector<8x16xbf16>
    %cst_16 = arith.constant dense<0.000000e+00> : vector<16x8xf32>
    %51 = tpu.matmul %49, %50, %cst_16 {dimension_numbers = #tpu.dot_dimension_numbers<[1], [1], [0], [0], [0, 0, 1, 0], [], []>} : vector<16x16xbf16>, vector<8x16xbf16>, vector<16x8xf32> -> vector<16x8xf32>
    %cst_17 = arith.constant 2.500000e-01 : f32
    %52 = vector.broadcast %cst_17 : f32 to vector<16x8xf32>
    %53 = arith.mulf %51, %52 : vector<16x8xf32>
    %cst_18 = arith.constant -1.000000e+30 : f32
    %54 = vector.broadcast %cst_18 : f32 to vector<16x8xf32>
    %55 = arith.select %8, %53, %54 : vector<16x8xi1>, vector<16x8xf32>
    %cst_19 = arith.constant dense<0xFF800000> : vector<16xf32>
    %56 = vector.multi_reduction <maximumf>, %55, %cst_19 [1] : vector<16x8xf32> to vector<16xf32>
    %57 = vector.shape_cast %56 : vector<16xf32> to vector<16x1xf32>
    %58 = vector.broadcast %57 : vector<16x1xf32> to vector<16x8xf32>
    %59 = arith.subf %55, %58 : vector<16x8xf32>
    %60 = math.exp %59 : vector<16x8xf32>
    %cst_20 = arith.constant dense<0.000000e+00> : vector<16xf32>
    %61 = vector.multi_reduction <add>, %60, %cst_20 [1] : vector<16x8xf32> to vector<16xf32>
    %62 = vector.shape_cast %61 : vector<16xf32> to vector<16x1xf32>
    %63 = tpu.reciprocal %62 {approx = true} : vector<16x1xf32> -> vector<16x1xf32>
    %64 = vector.broadcast %63 : vector<16x1xf32> to vector<16x8xf32>
    %65 = arith.mulf %60, %64 : vector<16x8xf32>
    %66 = arith.truncf %65 : vector<16x8xf32> to vector<16x8xbf16>
    %67 = vector.extract_strided_slice %5 {offsets = [0, 32], sizes = [8, 16], strides = [1, 1]} : vector<8x128xbf16> to vector<8x16xbf16>
    %cst_21 = arith.constant dense<0.000000e+00> : vector<16x16xf32>
    %68 = tpu.matmul %66, %67, %cst_21 {dimension_numbers = #tpu.dot_dimension_numbers<[1], [0], [0], [1], [0, 0, 1, 1], [], []>} : vector<16x8xbf16>, vector<8x16xbf16>, vector<16x16xf32> -> vector<16x16xf32>
    %69 = vector.extract_strided_slice %1 {offsets = [0, 48], sizes = [16, 16], strides = [1, 1]} : vector<16x128xbf16> to vector<16x16xbf16>
    %70 = vector.extract_strided_slice %4 {offsets = [0, 48], sizes = [8, 16], strides = [1, 1]} : vector<8x128xbf16> to vector<8x16xbf16>
    %cst_22 = arith.constant dense<0.000000e+00> : vector<16x8xf32>
    %71 = tpu.matmul %69, %70, %cst_22 {dimension_numbers = #tpu.dot_dimension_numbers<[1], [1], [0], [0], [0, 0, 1, 0], [], []>} : vector<16x16xbf16>, vector<8x16xbf16>, vector<16x8xf32> -> vector<16x8xf32>
    %cst_23 = arith.constant 2.500000e-01 : f32
    %72 = vector.broadcast %cst_23 : f32 to vector<16x8xf32>
    %73 = arith.mulf %71, %72 : vector<16x8xf32>
    %cst_24 = arith.constant -1.000000e+30 : f32
    %74 = vector.broadcast %cst_24 : f32 to vector<16x8xf32>
    %75 = arith.select %8, %73, %74 : vector<16x8xi1>, vector<16x8xf32>
    %cst_25 = arith.constant dense<0xFF800000> : vector<16xf32>
    %76 = vector.multi_reduction <maximumf>, %75, %cst_25 [1] : vector<16x8xf32> to vector<16xf32>
    %77 = vector.shape_cast %76 : vector<16xf32> to vector<16x1xf32>
    %78 = vector.broadcast %77 : vector<16x1xf32> to vector<16x8xf32>
    %79 = arith.subf %75, %78 : vector<16x8xf32>
    %80 = math.exp %79 : vector<16x8xf32>
    %cst_26 = arith.constant dense<0.000000e+00> : vector<16xf32>
    %81 = vector.multi_reduction <add>, %80, %cst_26 [1] : vector<16x8xf32> to vector<16xf32>
    %82 = vector.shape_cast %81 : vector<16xf32> to vector<16x1xf32>
    %83 = tpu.reciprocal %82 {approx = true} : vector<16x1xf32> -> vector<16x1xf32>
    %84 = vector.broadcast %83 : vector<16x1xf32> to vector<16x8xf32>
    %85 = arith.mulf %80, %84 : vector<16x8xf32>
    %86 = arith.truncf %85 : vector<16x8xf32> to vector<16x8xbf16>
    %87 = vector.extract_strided_slice %5 {offsets = [0, 48], sizes = [8, 16], strides = [1, 1]} : vector<8x128xbf16> to vector<8x16xbf16>
    %cst_27 = arith.constant dense<0.000000e+00> : vector<16x16xf32>
    %88 = tpu.matmul %86, %87, %cst_27 {dimension_numbers = #tpu.dot_dimension_numbers<[1], [0], [0], [1], [0, 0, 1, 1], [], []>} : vector<16x8xbf16>, vector<8x16xbf16>, vector<16x16xf32> -> vector<16x16xf32>
    %89 = vector.extract_strided_slice %1 {offsets = [0, 64], sizes = [16, 16], strides = [1, 1]} : vector<16x128xbf16> to vector<16x16xbf16>
    %90 = vector.extract_strided_slice %4 {offsets = [0, 64], sizes = [8, 16], strides = [1, 1]} : vector<8x128xbf16> to vector<8x16xbf16>
    %cst_28 = arith.constant dense<0.000000e+00> : vector<16x8xf32>
    %91 = tpu.matmul %89, %90, %cst_28 {dimension_numbers = #tpu.dot_dimension_numbers<[1], [1], [0], [0], [0, 0, 1, 0], [], []>} : vector<16x16xbf16>, vector<8x16xbf16>, vector<16x8xf32> -> vector<16x8xf32>
    %cst_29 = arith.constant 2.500000e-01 : f32
    %92 = vector.broadcast %cst_29 : f32 to vector<16x8xf32>
    %93 = arith.mulf %91, %92 : vector<16x8xf32>
    %cst_30 = arith.constant -1.000000e+30 : f32
    %94 = vector.broadcast %cst_30 : f32 to vector<16x8xf32>
    %95 = arith.select %8, %93, %94 : vector<16x8xi1>, vector<16x8xf32>
    %cst_31 = arith.constant dense<0xFF800000> : vector<16xf32>
    %96 = vector.multi_reduction <maximumf>, %95, %cst_31 [1] : vector<16x8xf32> to vector<16xf32>
    %97 = vector.shape_cast %96 : vector<16xf32> to vector<16x1xf32>
    %98 = vector.broadcast %97 : vector<16x1xf32> to vector<16x8xf32>
    %99 = arith.subf %95, %98 : vector<16x8xf32>
    %100 = math.exp %99 : vector<16x8xf32>
    %cst_32 = arith.constant dense<0.000000e+00> : vector<16xf32>
    %101 = vector.multi_reduction <add>, %100, %cst_32 [1] : vector<16x8xf32> to vector<16xf32>
    %102 = vector.shape_cast %101 : vector<16xf32> to vector<16x1xf32>
    %103 = tpu.reciprocal %102 {approx = true} : vector<16x1xf32> -> vector<16x1xf32>
    %104 = vector.broadcast %103 : vector<16x1xf32> to vector<16x8xf32>
    %105 = arith.mulf %100, %104 : vector<16x8xf32>
    %106 = arith.truncf %105 : vector<16x8xf32> to vector<16x8xbf16>
    %107 = vector.extract_strided_slice %5 {offsets = [0, 64], sizes = [8, 16], strides = [1, 1]} : vector<8x128xbf16> to vector<8x16xbf16>
    %cst_33 = arith.constant dense<0.000000e+00> : vector<16x16xf32>
    %108 = tpu.matmul %106, %107, %cst_33 {dimension_numbers = #tpu.dot_dimension_numbers<[1], [0], [0], [1], [0, 0, 1, 1], [], []>} : vector<16x8xbf16>, vector<8x16xbf16>, vector<16x16xf32> -> vector<16x16xf32>
    %109 = vector.extract_strided_slice %1 {offsets = [0, 80], sizes = [16, 16], strides = [1, 1]} : vector<16x128xbf16> to vector<16x16xbf16>
    %110 = vector.extract_strided_slice %4 {offsets = [0, 80], sizes = [8, 16], strides = [1, 1]} : vector<8x128xbf16> to vector<8x16xbf16>
    %cst_34 = arith.constant dense<0.000000e+00> : vector<16x8xf32>
    %111 = tpu.matmul %109, %110, %cst_34 {dimension_numbers = #tpu.dot_dimension_numbers<[1], [1], [0], [0], [0, 0, 1, 0], [], []>} : vector<16x16xbf16>, vector<8x16xbf16>, vector<16x8xf32> -> vector<16x8xf32>
    %cst_35 = arith.constant 2.500000e-01 : f32
    %112 = vector.broadcast %cst_35 : f32 to vector<16x8xf32>
    %113 = arith.mulf %111, %112 : vector<16x8xf32>
    %cst_36 = arith.constant -1.000000e+30 : f32
    %114 = vector.broadcast %cst_36 : f32 to vector<16x8xf32>
    %115 = arith.select %8, %113, %114 : vector<16x8xi1>, vector<16x8xf32>
    %cst_37 = arith.constant dense<0xFF800000> : vector<16xf32>
    %116 = vector.multi_reduction <maximumf>, %115, %cst_37 [1] : vector<16x8xf32> to vector<16xf32>
    %117 = vector.shape_cast %116 : vector<16xf32> to vector<16x1xf32>
    %118 = vector.broadcast %117 : vector<16x1xf32> to vector<16x8xf32>
    %119 = arith.subf %115, %118 : vector<16x8xf32>
    %120 = math.exp %119 : vector<16x8xf32>
    %cst_38 = arith.constant dense<0.000000e+00> : vector<16xf32>
    %121 = vector.multi_reduction <add>, %120, %cst_38 [1] : vector<16x8xf32> to vector<16xf32>
    %122 = vector.shape_cast %121 : vector<16xf32> to vector<16x1xf32>
    %123 = tpu.reciprocal %122 {approx = true} : vector<16x1xf32> -> vector<16x1xf32>
    %124 = vector.broadcast %123 : vector<16x1xf32> to vector<16x8xf32>
    %125 = arith.mulf %120, %124 : vector<16x8xf32>
    %126 = arith.truncf %125 : vector<16x8xf32> to vector<16x8xbf16>
    %127 = vector.extract_strided_slice %5 {offsets = [0, 80], sizes = [8, 16], strides = [1, 1]} : vector<8x128xbf16> to vector<8x16xbf16>
    %cst_39 = arith.constant dense<0.000000e+00> : vector<16x16xf32>
    %128 = tpu.matmul %126, %127, %cst_39 {dimension_numbers = #tpu.dot_dimension_numbers<[1], [0], [0], [1], [0, 0, 1, 1], [], []>} : vector<16x8xbf16>, vector<8x16xbf16>, vector<16x16xf32> -> vector<16x16xf32>
    %129 = vector.extract_strided_slice %1 {offsets = [0, 96], sizes = [16, 16], strides = [1, 1]} : vector<16x128xbf16> to vector<16x16xbf16>
    %130 = vector.extract_strided_slice %4 {offsets = [0, 96], sizes = [8, 16], strides = [1, 1]} : vector<8x128xbf16> to vector<8x16xbf16>
    %cst_40 = arith.constant dense<0.000000e+00> : vector<16x8xf32>
    %131 = tpu.matmul %129, %130, %cst_40 {dimension_numbers = #tpu.dot_dimension_numbers<[1], [1], [0], [0], [0, 0, 1, 0], [], []>} : vector<16x16xbf16>, vector<8x16xbf16>, vector<16x8xf32> -> vector<16x8xf32>
    %cst_41 = arith.constant 2.500000e-01 : f32
    %132 = vector.broadcast %cst_41 : f32 to vector<16x8xf32>
    %133 = arith.mulf %131, %132 : vector<16x8xf32>
    %cst_42 = arith.constant -1.000000e+30 : f32
    %134 = vector.broadcast %cst_42 : f32 to vector<16x8xf32>
    %135 = arith.select %8, %133, %134 : vector<16x8xi1>, vector<16x8xf32>
    %cst_43 = arith.constant dense<0xFF800000> : vector<16xf32>
    %136 = vector.multi_reduction <maximumf>, %135, %cst_43 [1] : vector<16x8xf32> to vector<16xf32>
    %137 = vector.shape_cast %136 : vector<16xf32> to vector<16x1xf32>
    %138 = vector.broadcast %137 : vector<16x1xf32> to vector<16x8xf32>
    %139 = arith.subf %135, %138 : vector<16x8xf32>
    %140 = math.exp %139 : vector<16x8xf32>
    %cst_44 = arith.constant dense<0.000000e+00> : vector<16xf32>
    %141 = vector.multi_reduction <add>, %140, %cst_44 [1] : vector<16x8xf32> to vector<16xf32>
    %142 = vector.shape_cast %141 : vector<16xf32> to vector<16x1xf32>
    %143 = tpu.reciprocal %142 {approx = true} : vector<16x1xf32> -> vector<16x1xf32>
    %144 = vector.broadcast %143 : vector<16x1xf32> to vector<16x8xf32>
    %145 = arith.mulf %140, %144 : vector<16x8xf32>
    %146 = arith.truncf %145 : vector<16x8xf32> to vector<16x8xbf16>
    %147 = vector.extract_strided_slice %5 {offsets = [0, 96], sizes = [8, 16], strides = [1, 1]} : vector<8x128xbf16> to vector<8x16xbf16>
    %cst_45 = arith.constant dense<0.000000e+00> : vector<16x16xf32>
    %148 = tpu.matmul %146, %147, %cst_45 {dimension_numbers = #tpu.dot_dimension_numbers<[1], [0], [0], [1], [0, 0, 1, 1], [], []>} : vector<16x8xbf16>, vector<8x16xbf16>, vector<16x16xf32> -> vector<16x16xf32>
    %149 = vector.extract_strided_slice %1 {offsets = [0, 112], sizes = [16, 16], strides = [1, 1]} : vector<16x128xbf16> to vector<16x16xbf16>
    %150 = vector.extract_strided_slice %4 {offsets = [0, 112], sizes = [8, 16], strides = [1, 1]} : vector<8x128xbf16> to vector<8x16xbf16>
    %cst_46 = arith.constant dense<0.000000e+00> : vector<16x8xf32>
    %151 = tpu.matmul %149, %150, %cst_46 {dimension_numbers = #tpu.dot_dimension_numbers<[1], [1], [0], [0], [0, 0, 1, 0], [], []>} : vector<16x16xbf16>, vector<8x16xbf16>, vector<16x8xf32> -> vector<16x8xf32>
    %cst_47 = arith.constant 2.500000e-01 : f32
    %152 = vector.broadcast %cst_47 : f32 to vector<16x8xf32>
    %153 = arith.mulf %151, %152 : vector<16x8xf32>
    %cst_48 = arith.constant -1.000000e+30 : f32
    %154 = vector.broadcast %cst_48 : f32 to vector<16x8xf32>
    %155 = arith.select %8, %153, %154 : vector<16x8xi1>, vector<16x8xf32>
    %cst_49 = arith.constant dense<0xFF800000> : vector<16xf32>
    %156 = vector.multi_reduction <maximumf>, %155, %cst_49 [1] : vector<16x8xf32> to vector<16xf32>
    %157 = vector.shape_cast %156 : vector<16xf32> to vector<16x1xf32>
    %158 = vector.broadcast %157 : vector<16x1xf32> to vector<16x8xf32>
    %159 = arith.subf %155, %158 : vector<16x8xf32>
    %160 = math.exp %159 : vector<16x8xf32>
    %cst_50 = arith.constant dense<0.000000e+00> : vector<16xf32>
    %161 = vector.multi_reduction <add>, %160, %cst_50 [1] : vector<16x8xf32> to vector<16xf32>
    %162 = vector.shape_cast %161 : vector<16xf32> to vector<16x1xf32>
    %163 = tpu.reciprocal %162 {approx = true} : vector<16x1xf32> -> vector<16x1xf32>
    %164 = vector.broadcast %163 : vector<16x1xf32> to vector<16x8xf32>
    %165 = arith.mulf %160, %164 : vector<16x8xf32>
    %166 = arith.truncf %165 : vector<16x8xf32> to vector<16x8xbf16>
    %167 = vector.extract_strided_slice %5 {offsets = [0, 112], sizes = [8, 16], strides = [1, 1]} : vector<8x128xbf16> to vector<8x16xbf16>
    %cst_51 = arith.constant dense<0.000000e+00> : vector<16x16xf32>
    %168 = tpu.matmul %166, %167, %cst_51 {dimension_numbers = #tpu.dot_dimension_numbers<[1], [0], [0], [1], [0, 0, 1, 1], [], []>} : vector<16x8xbf16>, vector<8x16xbf16>, vector<16x16xf32> -> vector<16x16xf32>
    %169 = tpu.concatenate %28, %48, %68, %88, %108, %128, %148, %168 in 1 : vector<16x16xf32>, vector<16x16xf32>, vector<16x16xf32>, vector<16x16xf32>, vector<16x16xf32>, vector<16x16xf32>, vector<16x16xf32>, vector<16x16xf32> -> vector<16x128xf32>
    %170 = arith.truncf %169 : vector<16x128xf32> to vector<16x128xbf16>
    %c0_52 = arith.constant 0 : index
    %c0_53 = arith.constant 0 : index
    %171 = vector.load %arg3[%c0_52, %c0_53] : memref<128x128xbf16, #tpu.memory_space<vmem>>, vector<128x128xbf16>
    %cst_54 = arith.constant dense<0.000000e+00> : vector<16x128xf32>
    %172 = tpu.matmul %170, %171, %cst_54 {dimension_numbers = #tpu.dot_dimension_numbers<[1], [0], [0], [1], [0, 0, 1, 1], [], []>} : vector<16x128xbf16>, vector<128x128xbf16>, vector<16x128xf32> -> vector<16x128xf32>
    %c0_55 = arith.constant 0 : index
    %c0_56 = arith.constant 0 : index
    %173 = vector.load %arg4[%c0_55, %c0_56] : memref<1x128xf32, #tpu.memory_space<vmem>>, vector<1x128xf32>
    %174 = vector.broadcast %173 : vector<1x128xf32> to vector<16x128xf32>
    %175 = arith.addf %172, %174 : vector<16x128xf32>
    %c0_57 = arith.constant 0 : index
    %c0_58 = arith.constant 0 : index
    %c0_59 = arith.constant 0 : index
    %176 = vector.load %arg5[%c0_57, %c0_58, %c0_59] : memref<1x16x128xf32, #tpu.memory_space<vmem>>, vector<1x16x128xf32>
    %177 = vector.shape_cast %176 : vector<1x16x128xf32> to vector<16x128xf32>
    %178 = arith.addf %175, %177 : vector<16x128xf32>
    %c0_60 = arith.constant 0 : index
    %c0_61 = arith.constant 0 : index
    %c0_62 = arith.constant 0 : index
    %179 = vector.load %arg6[%c0_60, %c0_61, %c0_62] : memref<1x16x128xf32, #tpu.memory_space<vmem>>, vector<1x16x128xf32>
    %180 = vector.shape_cast %179 : vector<1x16x128xf32> to vector<16x128xf32>
    %181 = vector.shape_cast %178 : vector<16x128xf32> to vector<1x16x128xf32>
    tpu.vector_store %arg6[%c0_60, %c0_61, %c0_62], %181 {strides = array<i32>} : memref<1x16x128xf32, #tpu.memory_space<vmem>>, vector<1x16x128xf32>,
    return
  }
  func.func @transform_0(%arg0: i32) -> (i32, i32, i32) {
    %c0_i32 = arith.constant 0 : i32
    %c0_i32_0 = arith.constant 0 : i32
    %c0_i32_1 = arith.constant 0 : i32
    return %arg0, %c0_i32, %c0_i32_0 : i32, i32, i32
  }
  func.func @transform_1(%arg0: i32) -> (i32, i32, i32) {
    %c0_i32 = arith.constant 0 : i32
    %c0_i32_0 = arith.constant 0 : i32
    %c0_i32_1 = arith.constant 0 : i32
    return %arg0, %c0_i32, %c0_i32_0 : i32, i32, i32
  }
  func.func @transform_2(%arg0: i32) -> (i32, i32) {
    %c0_i32 = arith.constant 0 : i32
    %c0_i32_0 = arith.constant 0 : i32
    %c0_i32_1 = arith.constant 0 : i32
    return %c0_i32, %c0_i32_0 : i32, i32
  }
  func.func @transform_3(%arg0: i32) -> (i32, i32) {
    %c0_i32 = arith.constant 0 : i32
    %c0_i32_0 = arith.constant 0 : i32
    %c0_i32_1 = arith.constant 0 : i32
    return %c0_i32, %c0_i32_0 : i32, i32
  }
  func.func @transform_4(%arg0: i32) -> (i32, i32, i32) {
    %c0_i32 = arith.constant 0 : i32
    %c0_i32_0 = arith.constant 0 : i32
    %c0_i32_1 = arith.constant 0 : i32
    return %arg0, %c0_i32, %c0_i32_0 : i32, i32, i32
  }
  func.func @transform_5(%arg0: i32) -> (i32, i32, i32) {
    %c0_i32 = arith.constant 0 : i32
    %c0_i32_0 = arith.constant 0 : i32
    %c0_i32_1 = arith.constant 0 : i32
    return %arg0, %c0_i32, %c0_i32_0 : i32, i32, i32
  }
}

module attributes {stable_mosaic.version = 11 : i64} {
  func.func @_matmul_kernel(%arg0: i32, %arg1: i32, %arg2: i32, %arg3: memref<128x128xbf16, #tpu.memory_space<vmem>>, %arg4: memref<128x128xbf16, #tpu.memory_space<vmem>>, %arg5: memref<1x128xf32, #tpu.memory_space<vmem>>, %arg6: memref<128x128xf32, #tpu.memory_space<vmem>>, %arg7: memref<128x128xf32, #tpu.memory_space<vmem>>) attributes {dimension_semantics = [#tpu.dimension_semantics<parallel>, #tpu.dimension_semantics<parallel>, #tpu.dimension_semantics<arbitrary>], iteration_bounds = array<i64: 1, 1, 1>, scalar_prefetch = 0 : i64, scratch_operands = 1 : i64, tpu.core_type = #tpu.core_type<tc>, window_params = [{transform_indices = @transform_0, window_bounds = array<i64: 128, 128>}, {transform_indices = @transform_1, window_bounds = array<i64: 128, 128>}, {transform_indices = @transform_2, window_bounds = array<i64: 1, 128>}, {transform_indices = @transform_3, window_bounds = array<i64: 128, 128>}]} {
    %c0_i32 = arith.constant 0 : i32
    %0 = arith.cmpi eq, %arg2, %c0_i32 : i32
    %1 = arith.extui %0 : i1 to i32
    %c0_i32_0 = arith.constant 0 : i32
    %2 = arith.cmpi ne, %1, %c0_i32_0 : i32
    scf.if %2 {
      %cst_10 = arith.constant 0.000000e+00 : f32
      %12 = vector.broadcast %cst_10 : f32 to vector<128x128xf32>
      %c0_11 = arith.constant 0 : index
      %c0_12 = arith.constant 0 : index
      %13 = vector.load %arg7[%c0_11, %c0_12] : memref<128x128xf32, #tpu.memory_space<vmem>>, vector<128x128xf32>
      tpu.vector_store %arg7[%c0_11, %c0_12], %12 {strides = array<i32>} : memref<128x128xf32, #tpu.memory_space<vmem>>, vector<128x128xf32>,
    } else {
    }
    %c0 = arith.constant 0 : index
    %c0_1 = arith.constant 0 : index
    %3 = vector.load %arg7[%c0, %c0_1] : memref<128x128xf32, #tpu.memory_space<vmem>>, vector<128x128xf32>
    %c0_2 = arith.constant 0 : index
    %c0_3 = arith.constant 0 : index
    %4 = vector.load %arg3[%c0_2, %c0_3] : memref<128x128xbf16, #tpu.memory_space<vmem>>, vector<128x128xbf16>
    %c0_4 = arith.constant 0 : index
    %c0_5 = arith.constant 0 : index
    %5 = vector.load %arg4[%c0_4, %c0_5] : memref<128x128xbf16, #tpu.memory_space<vmem>>, vector<128x128xbf16>
    %cst = arith.constant dense<0.000000e+00> : vector<128x128xf32>
    %6 = tpu.matmul %4, %5, %cst {dimension_numbers = #tpu.dot_dimension_numbers<[1], [0], [0], [1], [0, 0, 1, 1], [], []>} : vector<128x128xbf16>, vector<128x128xbf16>, vector<128x128xf32> -> vector<128x128xf32>
    %7 = arith.addf %3, %6 : vector<128x128xf32>
    %c0_6 = arith.constant 0 : index
    %c0_7 = arith.constant 0 : index
    %8 = vector.load %arg7[%c0_6, %c0_7] : memref<128x128xf32, #tpu.memory_space<vmem>>, vector<128x128xf32>
    tpu.vector_store %arg7[%c0_6, %c0_7], %7 {strides = array<i32>} : memref<128x128xf32, #tpu.memory_space<vmem>>, vector<128x128xf32>,
    %c0_i32_8 = arith.constant 0 : i32
    %9 = arith.cmpi eq, %arg2, %c0_i32_8 : i32
    %10 = arith.extui %9 : i1 to i32
    %c0_i32_9 = arith.constant 0 : i32
    %11 = arith.cmpi ne, %10, %c0_i32_9 : i32
    scf.if %11 {
      %c0_10 = arith.constant 0 : index
      %c0_11 = arith.constant 0 : index
      %12 = vector.load %arg7[%c0_10, %c0_11] : memref<128x128xf32, #tpu.memory_space<vmem>>, vector<128x128xf32>
      %c0_12 = arith.constant 0 : index
      %c0_13 = arith.constant 0 : index
      %13 = vector.load %arg5[%c0_12, %c0_13] : memref<1x128xf32, #tpu.memory_space<vmem>>, vector<1x128xf32>
      %14 = vector.broadcast %13 : vector<1x128xf32> to vector<128x128xf32>
      %15 = arith.addf %12, %14 : vector<128x128xf32>
      %c0_14 = arith.constant 0 : index
      %c0_15 = arith.constant 0 : index
      %16 = vector.load %arg6[%c0_14, %c0_15] : memref<128x128xf32, #tpu.memory_space<vmem>>, vector<128x128xf32>
      tpu.vector_store %arg6[%c0_14, %c0_15], %15 {strides = array<i32>} : memref<128x128xf32, #tpu.memory_space<vmem>>, vector<128x128xf32>,
    } else {
    }
    return
  }
  func.func @transform_0(%arg0: i32, %arg1: i32, %arg2: i32) -> (i32, i32) {
    %c0_i32 = arith.constant 0 : i32
    return %arg0, %arg2 : i32, i32
  }
  func.func @transform_1(%arg0: i32, %arg1: i32, %arg2: i32) -> (i32, i32) {
    %c0_i32 = arith.constant 0 : i32
    return %arg2, %arg1 : i32, i32
  }
  func.func @transform_2(%arg0: i32, %arg1: i32, %arg2: i32) -> (i32, i32) {
    %c0_i32 = arith.constant 0 : i32
    %c0_i32_0 = arith.constant 0 : i32
    return %c0_i32, %arg1 : i32, i32
  }
  func.func @transform_3(%arg0: i32, %arg1: i32, %arg2: i32) -> (i32, i32) {
    %c0_i32 = arith.constant 0 : i32
    return %arg0, %arg1 : i32, i32
  }
}

module attributes {stable_mosaic.version = 11 : i64} {
  func.func @_matmul_kernel(%arg0: i32, %arg1: i32, %arg2: i32, %arg3: memref<16x128xbf16, #tpu.memory_space<vmem>>, %arg4: memref<128x128xbf16, #tpu.memory_space<vmem>>, %arg5: memref<1x128xf32, #tpu.memory_space<vmem>>, %arg6: memref<16x128xbf16, #tpu.memory_space<vmem>>, %arg7: memref<16x128xf32, #tpu.memory_space<vmem>>) attributes {dimension_semantics = [#tpu.dimension_semantics<parallel>, #tpu.dimension_semantics<parallel>, #tpu.dimension_semantics<arbitrary>], iteration_bounds = array<i64: 1, 1, 1>, scalar_prefetch = 0 : i64, scratch_operands = 1 : i64, tpu.core_type = #tpu.core_type<tc>, window_params = [{transform_indices = @transform_0, window_bounds = array<i64: 16, 128>}, {transform_indices = @transform_1, window_bounds = array<i64: 128, 128>}, {transform_indices = @transform_2, window_bounds = array<i64: 1, 128>}, {transform_indices = @transform_3, window_bounds = array<i64: 16, 128>}]} {
    %c0_i32 = arith.constant 0 : i32
    %0 = arith.cmpi eq, %arg2, %c0_i32 : i32
    %1 = arith.extui %0 : i1 to i32
    %c0_i32_0 = arith.constant 0 : i32
    %2 = arith.cmpi ne, %1, %c0_i32_0 : i32
    scf.if %2 {
      %cst_10 = arith.constant 0.000000e+00 : f32
      %12 = vector.broadcast %cst_10 : f32 to vector<16x128xf32>
      %c0_11 = arith.constant 0 : index
      %c0_12 = arith.constant 0 : index
      %13 = vector.load %arg7[%c0_11, %c0_12] : memref<16x128xf32, #tpu.memory_space<vmem>>, vector<16x128xf32>
      tpu.vector_store %arg7[%c0_11, %c0_12], %12 {strides = array<i32>} : memref<16x128xf32, #tpu.memory_space<vmem>>, vector<16x128xf32>,
    } else {
    }
    %c0 = arith.constant 0 : index
    %c0_1 = arith.constant 0 : index
    %3 = vector.load %arg7[%c0, %c0_1] : memref<16x128xf32, #tpu.memory_space<vmem>>, vector<16x128xf32>
    %c0_2 = arith.constant 0 : index
    %c0_3 = arith.constant 0 : index
    %4 = vector.load %arg3[%c0_2, %c0_3] : memref<16x128xbf16, #tpu.memory_space<vmem>>, vector<16x128xbf16>
    %c0_4 = arith.constant 0 : index
    %c0_5 = arith.constant 0 : index
    %5 = vector.load %arg4[%c0_4, %c0_5] : memref<128x128xbf16, #tpu.memory_space<vmem>>, vector<128x128xbf16>
    %cst = arith.constant dense<0.000000e+00> : vector<16x128xf32>
    %6 = tpu.matmul %4, %5, %cst {dimension_numbers = #tpu.dot_dimension_numbers<[1], [0], [0], [1], [0, 0, 1, 1], [], []>} : vector<16x128xbf16>, vector<128x128xbf16>, vector<16x128xf32> -> vector<16x128xf32>
    %7 = arith.addf %3, %6 : vector<16x128xf32>
    %c0_6 = arith.constant 0 : index
    %c0_7 = arith.constant 0 : index
    %8 = vector.load %arg7[%c0_6, %c0_7] : memref<16x128xf32, #tpu.memory_space<vmem>>, vector<16x128xf32>
    tpu.vector_store %arg7[%c0_6, %c0_7], %7 {strides = array<i32>} : memref<16x128xf32, #tpu.memory_space<vmem>>, vector<16x128xf32>,
    %c0_i32_8 = arith.constant 0 : i32
    %9 = arith.cmpi eq, %arg2, %c0_i32_8 : i32
    %10 = arith.extui %9 : i1 to i32
    %c0_i32_9 = arith.constant 0 : i32
    %11 = arith.cmpi ne, %10, %c0_i32_9 : i32
    scf.if %11 {
      %c0_10 = arith.constant 0 : index
      %c0_11 = arith.constant 0 : index
      %12 = vector.load %arg7[%c0_10, %c0_11] : memref<16x128xf32, #tpu.memory_space<vmem>>, vector<16x128xf32>
      %c0_12 = arith.constant 0 : index
      %c0_13 = arith.constant 0 : index
      %13 = vector.load %arg5[%c0_12, %c0_13] : memref<1x128xf32, #tpu.memory_space<vmem>>, vector<1x128xf32>
      %14 = vector.broadcast %13 : vector<1x128xf32> to vector<16x128xf32>
      %15 = arith.addf %12, %14 : vector<16x128xf32>
      %cst_14 = arith.constant 0.000000e+00 : f32
      %16 = vector.broadcast %cst_14 : f32 to vector<16x128xf32>
      %17 = arith.maximumf %15, %16 : vector<16x128xf32>
      %18 = arith.truncf %17 : vector<16x128xf32> to vector<16x128xbf16>
      %c0_15 = arith.constant 0 : index
      %c0_16 = arith.constant 0 : index
      %19 = vector.load %arg6[%c0_15, %c0_16] : memref<16x128xbf16, #tpu.memory_space<vmem>>, vector<16x128xbf16>
      tpu.vector_store %arg6[%c0_15, %c0_16], %18 {strides = array<i32>} : memref<16x128xbf16, #tpu.memory_space<vmem>>, vector<16x128xbf16>,
    } else {
    }
    return
  }
  func.func @transform_0(%arg0: i32, %arg1: i32, %arg2: i32) -> (i32, i32) {
    %c0_i32 = arith.constant 0 : i32
    return %arg0, %arg2 : i32, i32
  }
  func.func @transform_1(%arg0: i32, %arg1: i32, %arg2: i32) -> (i32, i32) {
    %c0_i32 = arith.constant 0 : i32
    return %arg2, %arg1 : i32, i32
  }
  func.func @transform_2(%arg0: i32, %arg1: i32, %arg2: i32) -> (i32, i32) {
    %c0_i32 = arith.constant 0 : i32
    %c0_i32_0 = arith.constant 0 : i32
    return %c0_i32, %arg1 : i32, i32
  }
  func.func @transform_3(%arg0: i32, %arg1: i32, %arg2: i32) -> (i32, i32) {
    %c0_i32 = arith.constant 0 : i32
    return %arg0, %arg1 : i32, i32
  }
}

module attributes {stable_mosaic.version = 11 : i64} {
  func.func @_matmul_kernel(%arg0: i32, %arg1: i32, %arg2: i32, %arg3: memref<8x256xbf16, #tpu.memory_space<vmem>>, %arg4: memref<256x128xbf16, #tpu.memory_space<vmem>>, %arg5: memref<1x128xf32, #tpu.memory_space<vmem>>, %arg6: memref<8x128xf32, #tpu.memory_space<vmem>>, %arg7: memref<8x128xf32, #tpu.memory_space<vmem>>) attributes {dimension_semantics = [#tpu.dimension_semantics<parallel>, #tpu.dimension_semantics<parallel>, #tpu.dimension_semantics<arbitrary>], iteration_bounds = array<i64: 1, 1, 1>, scalar_prefetch = 0 : i64, scratch_operands = 1 : i64, tpu.core_type = #tpu.core_type<tc>, window_params = [{transform_indices = @transform_0, window_bounds = array<i64: 8, 256>}, {transform_indices = @transform_1, window_bounds = array<i64: 256, 128>}, {transform_indices = @transform_2, window_bounds = array<i64: 1, 128>}, {transform_indices = @transform_3, window_bounds = array<i64: 8, 128>}]} {
    %c0_i32 = arith.constant 0 : i32
    %0 = arith.cmpi eq, %arg2, %c0_i32 : i32
    %1 = arith.extui %0 : i1 to i32
    %c0_i32_0 = arith.constant 0 : i32
    %2 = arith.cmpi ne, %1, %c0_i32_0 : i32
    scf.if %2 {
      %cst_10 = arith.constant 0.000000e+00 : f32
      %12 = vector.broadcast %cst_10 : f32 to vector<8x128xf32>
      %c0_11 = arith.constant 0 : index
      %c0_12 = arith.constant 0 : index
      %13 = vector.load %arg7[%c0_11, %c0_12] : memref<8x128xf32, #tpu.memory_space<vmem>>, vector<8x128xf32>
      tpu.vector_store %arg7[%c0_11, %c0_12], %12 {strides = array<i32>} : memref<8x128xf32, #tpu.memory_space<vmem>>, vector<8x128xf32>,
    } else {
    }
    %c0 = arith.constant 0 : index
    %c0_1 = arith.constant 0 : index
    %3 = vector.load %arg7[%c0, %c0_1] : memref<8x128xf32, #tpu.memory_space<vmem>>, vector<8x128xf32>
    %c0_2 = arith.constant 0 : index
    %c0_3 = arith.constant 0 : index
    %4 = vector.load %arg3[%c0_2, %c0_3] : memref<8x256xbf16, #tpu.memory_space<vmem>>, vector<8x256xbf16>
    %c0_4 = arith.constant 0 : index
    %c0_5 = arith.constant 0 : index
    %5 = vector.load %arg4[%c0_4, %c0_5] : memref<256x128xbf16, #tpu.memory_space<vmem>>, vector<256x128xbf16>
    %cst = arith.constant dense<0.000000e+00> : vector<8x128xf32>
    %6 = tpu.matmul %4, %5, %cst {dimension_numbers = #tpu.dot_dimension_numbers<[1], [0], [0], [1], [0, 0, 1, 1], [], []>} : vector<8x256xbf16>, vector<256x128xbf16>, vector<8x128xf32> -> vector<8x128xf32>
    %7 = arith.addf %3, %6 : vector<8x128xf32>
    %c0_6 = arith.constant 0 : index
    %c0_7 = arith.constant 0 : index
    %8 = vector.load %arg7[%c0_6, %c0_7] : memref<8x128xf32, #tpu.memory_space<vmem>>, vector<8x128xf32>
    tpu.vector_store %arg7[%c0_6, %c0_7], %7 {strides = array<i32>} : memref<8x128xf32, #tpu.memory_space<vmem>>, vector<8x128xf32>,
    %c0_i32_8 = arith.constant 0 : i32
    %9 = arith.cmpi eq, %arg2, %c0_i32_8 : i32
    %10 = arith.extui %9 : i1 to i32
    %c0_i32_9 = arith.constant 0 : i32
    %11 = arith.cmpi ne, %10, %c0_i32_9 : i32
    scf.if %11 {
      %c0_10 = arith.constant 0 : index
      %c0_11 = arith.constant 0 : index
      %12 = vector.load %arg7[%c0_10, %c0_11] : memref<8x128xf32, #tpu.memory_space<vmem>>, vector<8x128xf32>
      %c0_12 = arith.constant 0 : index
      %c0_13 = arith.constant 0 : index
      %13 = vector.load %arg5[%c0_12, %c0_13] : memref<1x128xf32, #tpu.memory_space<vmem>>, vector<1x128xf32>
      %14 = vector.broadcast %13 : vector<1x128xf32> to vector<8x128xf32>
      %15 = arith.addf %12, %14 : vector<8x128xf32>
      %c0_14 = arith.constant 0 : index
      %c0_15 = arith.constant 0 : index
      %16 = vector.load %arg6[%c0_14, %c0_15] : memref<8x128xf32, #tpu.memory_space<vmem>>, vector<8x128xf32>
      tpu.vector_store %arg6[%c0_14, %c0_15], %15 {strides = array<i32>} : memref<8x128xf32, #tpu.memory_space<vmem>>, vector<8x128xf32>,
    } else {
    }
    return
  }
  func.func @transform_0(%arg0: i32, %arg1: i32, %arg2: i32) -> (i32, i32) {
    %c0_i32 = arith.constant 0 : i32
    return %arg0, %arg2 : i32, i32
  }
  func.func @transform_1(%arg0: i32, %arg1: i32, %arg2: i32) -> (i32, i32) {
    %c0_i32 = arith.constant 0 : i32
    return %arg2, %arg1 : i32, i32
  }
  func.func @transform_2(%arg0: i32, %arg1: i32, %arg2: i32) -> (i32, i32) {
    %c0_i32 = arith.constant 0 : i32
    %c0_i32_0 = arith.constant 0 : i32
    return %c0_i32, %arg1 : i32, i32
  }
  func.func @transform_3(%arg0: i32, %arg1: i32, %arg2: i32) -> (i32, i32) {
    %c0_i32 = arith.constant 0 : i32
    return %arg0, %arg1 : i32, i32
  }
}

module attributes {stable_mosaic.version = 11 : i64} {
  func.func @_bmm_kernel(%arg0: i32, %arg1: memref<1x3x16xbf16, #tpu.memory_space<vmem>>, %arg2: memref<1x16x256xbf16, #tpu.memory_space<vmem>>, %arg3: memref<1x3x256xf32, #tpu.memory_space<vmem>>) attributes {dimension_semantics = [#tpu.dimension_semantics<parallel>], iteration_bounds = array<i64: 2>, scalar_prefetch = 0 : i64, scratch_operands = 0 : i64, tpu.core_type = #tpu.core_type<tc>, window_params = [{transform_indices = @transform_0, window_bounds = array<i64: 1, 3, 16>}, {transform_indices = @transform_1, window_bounds = array<i64: 1, 16, 256>}, {transform_indices = @transform_2, window_bounds = array<i64: 1, 3, 256>}]} {
    %c0 = arith.constant 0 : index
    %c0_0 = arith.constant 0 : index
    %c0_1 = arith.constant 0 : index
    %0 = vector.load %arg1[%c0, %c0_0, %c0_1] : memref<1x3x16xbf16, #tpu.memory_space<vmem>>, vector<1x3x16xbf16>
    %1 = vector.shape_cast %0 : vector<1x3x16xbf16> to vector<3x16xbf16>
    %c0_2 = arith.constant 0 : index
    %c0_3 = arith.constant 0 : index
    %c0_4 = arith.constant 0 : index
    %2 = vector.load %arg2[%c0_2, %c0_3, %c0_4] : memref<1x16x256xbf16, #tpu.memory_space<vmem>>, vector<1x16x256xbf16>
    %3 = vector.shape_cast %2 : vector<1x16x256xbf16> to vector<16x256xbf16>
    %cst = arith.constant dense<0.000000e+00> : vector<3x256xf32>
    %4 = tpu.matmul %1, %3, %cst {dimension_numbers = #tpu.dot_dimension_numbers<[1], [0], [0], [1], [0, 0, 1, 1], [], []>} : vector<3x16xbf16>, vector<16x256xbf16>, vector<3x256xf32> -> vector<3x256xf32>
    %c0_5 = arith.constant 0 : index
    %c0_6 = arith.constant 0 : index
    %c0_7 = arith.constant 0 : index
    %5 = vector.load %arg3[%c0_5, %c0_6, %c0_7] : memref<1x3x256xf32, #tpu.memory_space<vmem>>, vector<1x3x256xf32>
    %6 = vector.shape_cast %5 : vector<1x3x256xf32> to vector<3x256xf32>
    %7 = vector.shape_cast %4 : vector<3x256xf32> to vector<1x3x256xf32>
    tpu.vector_store %arg3[%c0_5, %c0_6, %c0_7], %7 {strides = array<i32>} : memref<1x3x256xf32, #tpu.memory_space<vmem>>, vector<1x3x256xf32>,
    return
  }
  func.func @transform_0(%arg0: i32) -> (i32, i32, i32) {
    %c0_i32 = arith.constant 0 : i32
    %c0_i32_0 = arith.constant 0 : i32
    %c0_i32_1 = arith.constant 0 : i32
    return %arg0, %c0_i32, %c0_i32_0 : i32, i32, i32
  }
  func.func @transform_1(%arg0: i32) -> (i32, i32, i32) {
    %c0_i32 = arith.constant 0 : i32
    %c0_i32_0 = arith.constant 0 : i32
    %c0_i32_1 = arith.constant 0 : i32
    return %arg0, %c0_i32, %c0_i32_0 : i32, i32, i32
  }
  func.func @transform_2(%arg0: i32) -> (i32, i32, i32) {
    %c0_i32 = arith.constant 0 : i32
    %c0_i32_0 = arith.constant 0 : i32
    %c0_i32_1 = arith.constant 0 : i32
    return %arg0, %c0_i32, %c0_i32_0 : i32, i32, i32
  }
}

</mosaic_0001>

<bundles_post_ra>
// kernel: tpu_custom_call.1
= control target key start
LH: loop header
LB: loop body
LE: loop exit
PB: predicated region body
PF: predicated region fallthrough
CT: control target
= control target key end

     0   :  { %8 = vsyncpa [#allocation4], 0  ;;  %s389_s0 = inlined_call_operand.hbm [shape: bf16[8,128], index: 0, kind: input, shape index: {}]   ;;  %s390_s1 = inlined_call_operand.hbm [shape: bf16[128,128], index: 1, kind: input, shape index: {}]   ;;  %s391_s2 = inlined_call_operand.vmem [shape: f32[1,128], index: 2, kind: input, shape index: {}]   ;;  %s392_s3 = inlined_call_operand.hbm [shape: f32[8,128], index: 3, kind: output, shape index: {}]  }
   0x1   :  { %9 = vsyncpa [#allocation7], 0 }
   0x2   :  { %10 = vsyncpa [#allocation5], 0  ;;  %s316_s12 = smov [#allocation3]   ;;  %s317_s14 = smov [#allocation6]  }
   0x3   :  { %s17_s13 = sshll.u32 %s316_s12, 4  ;;  %s26_s15 = sshll.u32 %s317_s14, 4  ;;  %s18_s13 = int_to_ptr.vmem [resolvable:$true] %s17_s13  ;;  %s343_s15 = int_to_ptr.vmem [resolvable:$true] %s26_s15 }
   0x4   :  { %s244_s18 = scalar_lea.hbm %s389_s0, 64 }
   0x5   :  { %p245_p0 = scmp.ne.s32.totalorder %s389_s0, %s244_s18  ;;  %p248_p1 = scmp.lt.u32.totalorder %s244_s18, %s389_s0 }
   0x7   :  { %p250_p2 = pnand %p248_p1, %p245_p0 }
   0x9   :  { %253 = shalt.err (!%p250_p2)
}
   0xa   :  { %s254_s23 = scalar_lea.vmem %s18_s13, 64  ;;  %p259_p4 = scmp.lt.s32.totalorder %s18_s13, %s18_s13 }
   0xb   :  { %p255_p3 = scmp.ne.s32.totalorder %s18_s13, %s254_s23  ;;  %p260_p5 = scmp.lt.s32.totalorder %s254_s23, %s254_s23 }
   0xd   :  { %p261_p6 = por %p260_p5, %p259_p4 }
   0xf   :  { %p262_p7 = pnand %p261_p6, %p255_p3 }
  0x11   :  { %265 = shalt.err (!%p262_p7)
}
  0x12   :  { %20 = dma.hbm_to_vmem [thread:$0]  %s389_s0, 64, %s18_s13, [#allocation4]  }
  0x13   :  { %s266_s28 = scalar_lea.hbm %s390_s1, 1024 }
  0x14   :  { %p267_p8 = scmp.ne.s32.totalorder %s390_s1, %s266_s28  ;;  %p270_p9 = scmp.lt.u32.totalorder %s266_s28, %s390_s1 }
  0x16   :  { %p272_p10 = pnand %p270_p9, %p267_p8 }
  0x18   :  { %275 = shalt.err (!%p272_p10)
}
  0x19   :  { %s276_s6 = scalar_lea.vmem %s343_s15, 1024  ;;  %p281_p12 = scmp.lt.s32.totalorder %s343_s15, %s343_s15 }
  0x1a   :  { %p277_p11 = scmp.ne.s32.totalorder %s343_s15, %s276_s6  ;;  %p282_p13 = scmp.lt.s32.totalorder %s276_s6, %s276_s6 }
  0x1c   :  { %p283_p0 = por %p282_p13, %p281_p12 }
  0x1e   :  { %p284_p1 = pnand %p283_p0, %p277_p11 }
  0x20   :  { %287 = shalt.err (!%p284_p1)
}
  0x21   :  { %s318_s0 = smov 64   ;;  %s319_s7 = smov 4  }
  0x22   :  { %32 = dma.hbm_to_vmem [thread:$0]  %s390_s1, 1024, %s343_s15, [#allocation7], %s318_s0, %s318_s0, %s319_s7  }
  0x23   :  { %310 = dma.done.wait [#allocation4], 64  }
  0x24   :  { %311 = vsyncadd [#allocation4], 4294967232 }
  0x25   :  { %312 = dma.done.wait [#allocation7], 1024  }
  0x26   :  { %313 = vsyncadd [#allocation7], 4294966272  ;;  %v320_v0 = vmov 0.0   ;;  %vm321_vm0 = vmmov 0   ;;  %v234_v1 = vld [vmem:[#allocation6] sm:$0xff]   ;;  %v235_v2 = vld [vmem:[#allocation6 + $0x8] sm:$0xff]  }
  0x27   :  { %207 = vmatprep.subr.bf16.mxu0 %v320_v0  ;;  %223 = vmatprep.mubr.msk.bf16.mxu0 %vm321_vm0, %v320_v0  ;;  %v236_v3 = vld [vmem:[#allocation6 + $0x10] sm:$0xff]   ;;  %v237_v4 = vld [vmem:[#allocation6 + $0x18] sm:$0xff]   ;;  %v238_v5 = vld [vmem:[#allocation6 + $0x20] sm:$0xff]   ;;  %s322_s11 = smov [#allocation8]  }
  0x28   :  { %208 = vmatpush3.bf16.msra.mxu0 %v234_v1  ;;  %v239_v6 = vld [vmem:[#allocation6 + $0x28] sm:$0xff]   ;;  %v240_v7 = vld [vmem:[#allocation6 + $0x30] sm:$0xff]   ;;  %v241_v8 = vld [vmem:[#allocation6 + $0x38] sm:$0xff]   ;;  %s179_s12 = sshll.u32 %s322_s11, 4  ;;  %s180_s12 = int_to_ptr.vmem [resolvable:$true] %s179_s12 }
  0x29   :  { %209 = vmatprep.subr.bf16.mxu0 %v320_v0  ;;  %v48_v9 = vld [vmem:[#allocation3] sm:$0xf]  ;;  %s288_s13 = scalar_lea.vmem %s180_s12, 128  ;;  %p293_p3 = scmp.lt.s32.totalorder %s180_s12, %s180_s12 }
  0x2a   :  { %v197_v10 = vld [vmem:[%s391_s2] ss:$0 sm:$0xff]  ;;  %p289_p2 = scmp.ne.s32.totalorder %s180_s12, %s288_s13  ;;  %p294_p4 = scmp.lt.s32.totalorder %s288_s13, %s288_s13 }
  0x2c   :  { %210 = vmatpush3.bf16.msra.mxu0 %v235_v2  ;;  %p295_p5 = por %p294_p4, %p293_p3 }
  0x2d   :  { %211 = vmatprep.subr.bf16.mxu0 %v320_v0 }
  0x2e   :  { %p296_p6 = pnand %p295_p5, %p289_p2 }
  0x30   :  { %212 = vmatpush3.bf16.msra.mxu0 %v236_v3 }
  0x31   :  { %213 = vmatprep.subr.bf16.mxu0 %v320_v0 }
  0x34   :  { %214 = vmatpush3.bf16.msra.mxu0 %v237_v4 }
  0x35   :  { %215 = vmatprep.subr.bf16.mxu0 %v320_v0 }
  0x38   :  { %216 = vmatpush3.bf16.msra.mxu0 %v238_v5 }
  0x39   :  { %217 = vmatprep.subr.bf16.mxu0 %v320_v0 }
  0x3c   :  { %218 = vmatpush3.bf16.msra.mxu0 %v239_v6 }
  0x3d   :  { %219 = vmatprep.subr.bf16.mxu0 %v320_v0 }
  0x40   :  { %220 = vmatpush3.bf16.msra.mxu0 %v240_v7 }
  0x41   :  { %221 = vmatprep.subr.bf16.mxu0 %v320_v0 }
  0x44   :  { %222 = vmatpush3.bf16.msra.mxu0 %v241_v8 }
  0x47   :  { %224 = vmatmul.mubr.bf16.vlgmr.msra.gmra.mrb[0].mxu0 %v48_v9 }
 0x11a   :  { %v147_v11 = vpop.f32.mrb[0].mxu0 }
 0x11b   :  { %v166_v12 = vadd.f32 %v197_v10, %v147_v11  ;;  %v225_v13 = vpop.f32.mrb[1].mxu0 }
 0x11c   :  { %v150_v14 = vpop.f32.mrb[2].mxu0 }
 0x11d   :  { %v168_v15 = vmul.f32 0.70710677, %v166_v12  ;;  %v226_v16 = vpop.f32.mrb[3].mxu0  ;;  %v167_v18 = vmul.f32 0.5, %v166_v12 }
 0x11f   :  { %242 = verf.f32 %v168_v15 }
 0x129   :  { %v243_v17 = vpop.eup %242 }
 0x12a   :  { %v170_v19 = vadd.f32 1.0, %v243_v17 }
 0x12c   :  { %v171_v20 = vmul.f32 %v170_v19, %v167_v18 }
 0x12e   :  { %172 = vst [vmem:[#allocation8] sm:$0xff] %v171_v20 }
 0x12f   :  { %299 = shalt.err (!%p296_p6)
}
 0x130   :  { %s300_s15 = scalar_lea.hbm %s392_s3, 128 }
 0x131   :  { %p301_p7 = scmp.ne.s32.totalorder %s392_s3, %s300_s15  ;;  %p304_p8 = scmp.lt.u32.totalorder %s300_s15, %s392_s3 }
 0x133   :  { %p306_p9 = pnand %p304_p8, %p301_p7 }
 0x135   :  { %309 = shalt.err (!%p306_p9)
}
 0x136   :  { %182 = dma.vmem_to_hbm [thread:$0]  %s180_s12, 128, %s392_s3, [#allocation5]  }
 0x137   :  { %314 = dma.done.wait [#allocation5], 128  }
 0x138   :  { %315 = vsyncadd [#allocation5], 4294967168 }
 0x139   :  { %186 = vsyncpa [#allocation4], 1 }
 0x13a   :  { %187 = vsyncpa [#allocation7], 1 }
 0x13b   :  { %188 = vsyncpa [#allocation5], 1 }

// kernel: sam_forward.61
= control target key start
LH: loop header
LB: loop body
LE: loop exit
PB: predicated region body
PF: predicated region fallthrough
CT: control target
= control target key end

     0   :  { %s182_s0 = inlined_call_operand.vmem [shape: f32[32,128], index: 0, kind: input, shape index: {}]   ;;  %s183_s1 = inlined_call_operand.vmem [shape: f32[1,128], index: 1, kind: input, shape index: {}]   ;;  %s184_s2 = inlined_call_operand.vmem [shape: f32[1,128], index: 2, kind: input, shape index: {}]   ;;  %s185_s3 = inlined_call_operand.vmem [shape: bf16[32,128], index: 3, kind: output, shape index: {}]  }
   0x1   :  { %v14_v0 = vld [vmem:[%s182_s0] sm:$0xff]  ;;  %v16_v1 = vld [vmem:[%s182_s0 + $0x10] sm:$0xff]  ;;  %v15_v2 = vld [vmem:[%s182_s0 + $0x8] sm:$0xff] }
   0x2   :  { %18 = vadd.xlane.f32.xlu0 %v14_v0  ;;  %22 = vadd.xlane.f32.xlu1 %v16_v1  ;;  %v17_v3 = vld [vmem:[%s182_s0 + $0x18] sm:$0xff]  ;;  %v109_v34 = vld [vmem:[%s183_s1] ss:$0 sm:$0xff] }
   0x3   :  { %v110_v39 = vld [vmem:[%s184_s2] ss:$0 sm:$0xff] }
   0x6   :  { %20 = vadd.xlane.f32.xlu0 %v15_v2  ;;  %24 = vadd.xlane.f32.xlu1 %v17_v3 }
  0x8f   :  { %v19_v4 = vpop.xlane.xlu0 %18  ;;  %v23_v5 = vpop.xlane.xlu1 %22 }
  0x90   :  { %v27_v6 = vmul.f32 0.0078125, %v19_v4  ;;  %v29_v7 = vmul.f32 0.0078125, %v23_v5 }
  0x92   :  { %v31_v8 = vsub.f32 %v14_v0, %v27_v6  ;;  %v33_v9 = vsub.f32 %v16_v1, %v29_v7 }
  0x93   :  { %v21_v10 = vpop.xlane.xlu0 %20  ;;  %v25_v11 = vpop.xlane.xlu1 %24 }
  0x94   :  { %v28_v12 = vmul.f32 0.0078125, %v21_v10  ;;  %v35_v13 = vmul.f32 %v31_v8, %v31_v8  ;;  %v30_v14 = vmul.f32 0.0078125, %v25_v11  ;;  %v37_v17 = vmul.f32 %v33_v9, %v33_v9 }
  0x96   :  { %v32_v15 = vsub.f32 %v15_v2, %v28_v12  ;;  %39 = vadd.xlane.f32.xlu0 %v35_v13  ;;  %v34_v16 = vsub.f32 %v17_v3, %v30_v14 }
  0x98   :  { %v36_v18 = vmul.f32 %v32_v15, %v32_v15  ;;  %v38_v19 = vmul.f32 %v34_v16, %v34_v16 }
  0x9a   :  { %43 = vadd.xlane.f32.xlu0 %v37_v17  ;;  %41 = vadd.xlane.f32.xlu1 %v36_v18 }
  0x9e   :  { %45 = vadd.xlane.f32.xlu1 %v38_v19 }
 0x123   :  { %v40_v20 = vpop.xlane.xlu0 %39 }
 0x124   :  { %v47_v21 = vmul.f32 0.0078125, %v40_v20 }
 0x126   :  { %v51_v22 = vadd.f32 1e-05, %v47_v21 }
 0x127   :  { %v42_v23 = vpop.xlane.xlu1 %41  ;;  %v44_v24 = vpop.xlane.xlu0 %43 }
 0x128   :  { %130 = vrsqrt.f32 %v51_v22  ;;  %v48_v25 = vmul.f32 0.0078125, %v42_v23  ;;  %v49_v26 = vmul.f32 0.0078125, %v44_v24 }
 0x12a   :  { %v52_v27 = vadd.f32 1e-05, %v48_v25  ;;  %v53_v28 = vadd.f32 1e-05, %v49_v26 }
 0x12b   :  { %v46_v29 = vpop.xlane.xlu1 %45 }
 0x12c   :  { %132 = vrsqrt.f32 %v52_v27  ;;  %v50_v30 = vmul.f32 0.0078125, %v46_v29 }
 0x12d   :  { %134 = vrsqrt.f32 %v53_v28 }
 0x12e   :  { %v54_v31 = vadd.f32 1e-05, %v50_v30 }
 0x130   :  { %136 = vrsqrt.f32 %v54_v31 }
 0x132   :  { %v131_v32 = vpop.eup %130 }
 0x133   :  { %v59_v33 = vmul.f32 %v131_v32, %v31_v8 }
 0x135   :  { %v70_v37 = vmul.f32 %v109_v34, %v59_v33 }
 0x136   :  { %v133_v35 = vpop.eup %132 }
 0x137   :  { %v135_v36 = vpop.eup %134  ;;  %v60_v38 = vmul.f32 %v133_v35, %v32_v15  ;;  %v81_v43 = vadd.f32 %v110_v39, %v70_v37 }
 0x138   :  { %v61_v40 = vmul.f32 %v135_v36, %v33_v9 }
 0x139   :  { %v71_v41 = vmul.f32 %v109_v34, %v60_v38 }
 0x13a   :  { %v137_v42 = vpop.eup %136  ;;  %v72_v45 = vmul.f32 %v109_v34, %v61_v40 }
 0x13b   :  { %v82_v44 = vadd.f32 %v110_v39, %v71_v41  ;;  %v62_v46 = vmul.f32 %v137_v42, %v34_v16 }
 0x13c   :  { %v83_v49 = vadd.f32 %v110_v39, %v72_v45 }
 0x13d   :  { %v122_v47 = vpack.c.bf16 %v82_v44, %v81_v43  ;;  %v73_v48 = vmul.f32 %v109_v34, %v62_v46 }
 0x13f   :  { %123 = vst [vmem:[%s185_s3] sm:$0xff] %v122_v47   ;;  %v84_v50 = vadd.f32 %v110_v39, %v73_v48 }
 0x141   :  { %v127_v51 = vpack.c.bf16 %v84_v50, %v83_v49 }
 0x143   :  { %129 = vst [vmem:[%s185_s3 + $0x8] sm:$0xff] %v127_v51  }

// kernel: sam_forward.60
= control target key start
LH: loop header
LB: loop body
LE: loop exit
PB: predicated region body
PF: predicated region fallthrough
CT: control target
= control target key end

     0   :  { %s1032_s12 = smov 0   ;;  %s1034_s13 = smov 0   ;;  %s1148_s0 = inlined_call_operand.vmem [shape: bf16[32,768], index: 0, kind: input, shape index: {}]   ;;  %s1149_s1 = inlined_call_operand.vmem [shape: bf16[768,128], index: 1, kind: input, shape index: {}]   ;;  %s1150_s2 = inlined_call_operand.vmem [shape: f32[1,128], index: 2, kind: input, shape index: {}]   ;;  %s1151_s3 = inlined_call_operand.vmem [shape: f32[32,128], index: 3, kind: output, shape index: {}]  }
   0x1   :  { %s1036_s14 = smov 0   ;;  %s1038_s15 = smov 0  }
   0x2   :  { %s1040_s16 = smov 0  }
   0x3 LB: > { %s25_s17 = sadd.s32 1, %s1005_s15  ;;  %p48_p1 = scmp.ne.s32.totalorder %s997_s13, %s993_s12  ;;  %s1009_s16 = sphi %s1040_s16, %s13_s16   ;;  %s1005_s15 = sphi %s1038_s15, %s1155_s15   ;;  %s1001_s14 = sphi %s1036_s14, %s1154_s14   ;;  %s997_s13 = sphi %s1034_s13, %s1153_s13   ;;  %s993_s12 = sphi %s1032_s12, %s1152_s12  }
   0x4   : > { %p26_p0 = scmp.ge.s32.totalorder %s25_s17, 2  ;;  %p49_p2 = scmp.eq.s32.totalorder %s1009_s16, 0 }
   0x5   : > { %s41_s19 = sadd.s32 1, %s997_s13  ;;  %p788_p5 = scmp.ge.s32.totalorder %s1009_s16, 2 }
   0x6   : > { %s1157_s17 = smov (%p26_p0, %s25_s17), 0  ;;  %p50_p3 = por %p49_p2, %p48_p1 }
   0x7   : > { %s37_s18 = ssub.s32 %s1005_s15, %s1157_s17  ;;  %162 = sbr.rel (%p788_p5) target bundleno = 23 (0x17), region = 20 }
   0x8   : > { %p39_p4 = scmp.eq.s32.totalorder %s37_s18, 0 }
   0xa   : > { %s1067_s20 = scalar_select %p39_p4, %s997_s13, %s41_s19  }
   0xe   : > { %165 = sbr.rel (!%p50_p3) target bundleno = 23 (0x17), region = 24  ;;  %s167_s21 = sand.u32 (%p50_p3), 1, %s997_s13  }
   0xf   : > { %s837_s22 = smul.u32 (%p50_p3), 12, %s1005_s15 }
  0x10   : > { %s896_s23 = smul.u32 (%p50_p3), 48, %s167_s21 }
  0x11   : > { %s175_s26 = scalar_lea.vmem (%p50_p3), %s1148_s0, %s837_s22 }
  0x12   : > { %v190_v0 = vld [vmem:[%s175_s26] sm:$0xff] (%p50_p3)  ;;  %v192_v1 = vld [vmem:[%s175_s26 + $0x18] sm:$0xff] (%p50_p3)  ;;  %v194_v2 = vld [vmem:[%s175_s26 + $0x30] sm:$0xff] (%p50_p3)  ;;  %s169_s27 = scalar_lea.vmem (%p50_p3), [#allocation3], %s896_s23 }
  0x13   : > { %191 = vst [vmem:[%s169_s27] sm:$0xff] (%p50_p3), %v190_v0  ;;  %193 = vst [vmem:[%s169_s27 + $0xc] sm:$0xff] (%p50_p3), %v192_v1  ;;  %v196_v3 = vld [vmem:[%s175_s26 + $0x48] sm:$0xff] (%p50_p3)  ;;  %v792_v5 = vld [vmem:[%s175_s26 + $0x20] sm:$0xf] (%p50_p3) }
  0x14   : > { %195 = vst [vmem:[%s169_s27 + $0x18] sm:$0xff] (%p50_p3), %v194_v2  ;;  %v790_v4 = vld [vmem:[%s175_s26 + $0x8] sm:$0xf] (%p50_p3)  ;;  %197 = vst [vmem:[%s169_s27 + $0x24] sm:$0xff] (%p50_p3), %v196_v3  ;;  %v794_v6 = vld [vmem:[%s175_s26 + $0x38] sm:$0xf] (%p50_p3) }
  0x15   : > { %791 = vst [vmem:[%s169_s27 + $0x8] sm:$0xf] %v790_v4  ;;  %793 = vst [vmem:[%s169_s27 + $0x14] sm:$0xf] %v792_v5  ;;  %v796_v7 = vld [vmem:[%s175_s26 + $0x50] sm:$0xf] }
  0x16   : > { %795 = vst [vmem:[%s169_s27 + $0x20] sm:$0xf] %v794_v6  ;;  %797 = vst [vmem:[%s169_s27 + $0x2c] sm:$0xf] %v796_v7 }
  0x17 PF: > { %p798_p6 = scmp.ge.s32.totalorder %s1009_s16, 1  ;;  %p229_p7 = scmp.lt.s32.totalorder %s1009_s16, 3 }
  0x19   : > { %p230_p8 = pnand %p798_p6, %p229_p7 }
  0x1a   : > { %s236_s28 = sand.u32 (!%p230_p8), 1, %s993_s12   ;;  %s275_s29 = smul.u32 (!%p230_p8), 48, %s1001_s14 }
  0x1b   : > { %233 = sbr.rel (%p230_p8) target bundleno = 314 (0x13a), region = 54  ;;  %p800_p10 = scmp.ne.s32.totalorder (!%p230_p8), %s1001_s14, 0 }
  0x1c   : > { %s897_s30 = smul.u32 (!%p230_p8), 48, %s236_s28  ;;  %p276_p9 = scmp.lt.s32.totalorder (!%p230_p8), %s275_s29, 95 }
  0x1e   : > { %s1084_s8 = scalar_lea.vmem (!%p230_p8), [#allocation3], %s897_s30 }
  0x22   : > { %s1159_s29 = smov (!%p276_p9, %s275_s29), 95  ;;  %300 = sbr.rel (%p800_p10) target bundleno = 41 (0x29), region = 62 }
  0x23   : > { %s799_s4 = sshll.u32 %s1159_s29, 2  ;;  %v1011_v8 = vmov (!%p800_p10), 0.0  }
  0x24   : > { %s1082_s7 = scalar_lea.vmem %s1149_s1, %s799_s4  ;;  %301 = vst [vmem:[#allocation2] sm:$0xff] (!%p800_p10), %v1011_v8  ;;  %302 = vst [vmem:[#allocation2 + $0x8] sm:$0xff] (!%p800_p10), %v1011_v8 }
  0x25   : > { %303 = vst [vmem:[#allocation2 + $0x10] sm:$0xff] (!%p800_p10), %v1011_v8  ;;  %304 = vst [vmem:[#allocation2 + $0x18] sm:$0xff] (!%p800_p10), %v1011_v8 }
  0x29 PF: > { %v939_v9 = vld [vmem:[%s1082_s7 + $0x40] sm:$0xff]   ;;  %v942_v12 = vld [vmem:[%s1082_s7 + $0x48] sm:$0xff]   ;;  %v945_v15 = vld [vmem:[%s1082_s7 + $0x50] sm:$0xff]   ;;  %p831_p11 = scmp.ne.s32.totalorder %s1001_s14, 1 }
  0x2a   : > { %v940_v10 = vld [vmem:[%s1082_s7] sm:$0xff]   ;;  %838 = vmatprep.subr.bf16.mxu0 %v939_v9  ;;  %v943_v13 = vld [vmem:[%s1082_s7 + $0x8] sm:$0xff]   ;;  %v946_v16 = vld [vmem:[%s1082_s7 + $0x10] sm:$0xff]  }
  0x2b   : > { %v941_v11 = vld [vmem:[%s1082_s7 + $0x80] sm:$0xff]   ;;  %839 = vmatpush3.bf16.msra.mxu0 %v940_v10  ;;  %v944_v14 = vld [vmem:[%s1082_s7 + $0x88] sm:$0xff]   ;;  %v947_v17 = vld [vmem:[%s1082_s7 + $0x90] sm:$0xff]  }
  0x2c   : > { %876 = vmatprep.subr.bf16.mxu1 %v941_v11  ;;  %840 = vmatprep.subr.bf16.mxu0 %v942_v12  ;;  %v948_v18 = vld [vmem:[%s1082_s7 + $0x58] sm:$0xff]   ;;  %v951_v21 = vld [vmem:[%s1082_s7 + $0x60] sm:$0xff]   ;;  %v954_v24 = vld [vmem:[%s1082_s7 + $0x68] sm:$0xff]  }
  0x2d   : > { %877 = vmatpush3.bf16.msra.mxu1 %v941_v11  ;;  %v949_v19 = vld [vmem:[%s1082_s7 + $0x18] sm:$0xff]   ;;  %v953_v22 = vld [vmem:[%s1082_s7 + $0xa0] sm:$0xff]   ;;  %v956_v25 = vld [vmem:[%s1082_s7 + $0xa8] sm:$0xff]  }
  0x2e   : > { %878 = vmatprep.subr.bf16.mxu1 %v944_v14  ;;  %v950_v20 = vld [vmem:[%s1082_s7 + $0x98] sm:$0xff]   ;;  %v952_v23 = vld [vmem:[%s1082_s7 + $0x20] sm:$0xff]   ;;  %v955_v26 = vld [vmem:[%s1082_s7 + $0x28] sm:$0xff]  }
  0x2f   : > { %841 = vmatpush3.bf16.msra.mxu0 %v943_v13  ;;  %v957_v27 = vld [vmem:[%s1082_s7 + $0x70] sm:$0xff]   ;;  %v960_v30 = vld [vmem:[%s1082_s7 + $0x78] sm:$0xff]   ;;  %v305_v45 = vld [vmem:[#allocation2] sm:$0xff] }
  0x30   : > { %842 = vmatprep.subr.bf16.mxu0 %v945_v15  ;;  %v958_v28 = vld [vmem:[%s1082_s7 + $0x30] sm:$0xff]   ;;  %v962_v31 = vld [vmem:[%s1082_s7 + $0xb8] sm:$0xff]   ;;  %v306_v50 = vld [vmem:[#allocation2 + $0x8] sm:$0xff] }
  0x31   : > { %879 = vmatpush3.bf16.msra.mxu1 %v944_v14  ;;  %v959_v29 = vld [vmem:[%s1082_s7 + $0xb0] sm:$0xff]   ;;  %v961_v34 = vld [vmem:[%s1082_s7 + $0x38] sm:$0xff]   ;;  %v832_v4 = vld [vmem:[%s1150_s2] ss:$0 sm:$0xff] (!%p831_p11) }
  0x32   : > { %880 = vmatprep.subr.bf16.mxu1 %v947_v17  ;;  %v965_v32 = vld [vmem:[%s1084_s8 + $0x4] ss:$12 sps:$4 sm:$0xff]   ;;  %v966_v33 = vld [vmem:[%s1084_s8 + $0x8] ss:$12 sps:$4 sm:$0xff]   ;;  %v963_v35 = vld [vmem:[%s1084_s8] ss:$12 sps:$4 sm:$0xff]  }
  0x33   : > { %843 = vmatpush3.bf16.msra.mxu0 %v946_v16  ;;  %573 = vmatprep.mubr.bf16.mxu0 %v965_v32  ;;  %v968_v36 = vld [vmem:[%s1084_s8 + $0x1c] ss:$12 sps:$4 sm:$0xff]   ;;  %v967_v37 = vld [vmem:[%s1084_s8 + $0x20] ss:$12 sps:$4 sm:$0xff]   ;;  %v970_v38 = vld [vmem:[%s1084_s8 + $0x18] ss:$12 sps:$4 sm:$0xff]  }
  0x34   : > { %844 = vmatprep.subr.bf16.mxu0 %v948_v18  ;;  %892 = vmatprep.mubr.bf16.mxu1 %v966_v33  ;;  %v307_v59 = vld [vmem:[#allocation2 + $0x10] sm:$0xff]  ;;  %v308_v63 = vld [vmem:[#allocation2 + $0x18] sm:$0xff] }
  0x35   : > { %881 = vmatpush3.bf16.msra.mxu1 %v947_v17 }
  0x36   : > { %882 = vmatprep.subr.bf16.mxu1 %v950_v20 }
  0x37   : > { %845 = vmatpush3.bf16.msra.mxu0 %v949_v19 }
  0x38   : > { %846 = vmatprep.subr.bf16.mxu0 %v951_v21 }
  0x39   : > { %883 = vmatpush3.bf16.msra.mxu1 %v950_v20 }
  0x3a   : > { %884 = vmatprep.subr.bf16.mxu1 %v953_v22 }
  0x3b   : > { %847 = vmatpush3.bf16.msra.mxu0 %v952_v23 }
  0x3c   : > { %848 = vmatprep.subr.bf16.mxu0 %v954_v24 }
  0x3d   : > { %885 = vmatpush3.bf16.msra.mxu1 %v953_v22 }
  0x3e   : > { %886 = vmatprep.subr.bf16.mxu1 %v956_v25 }
  0x3f   : > { %849 = vmatpush3.bf16.msra.mxu0 %v955_v26 }
  0x40   : > { %850 = vmatprep.subr.bf16.mxu0 %v957_v27 }
  0x41   : > { %887 = vmatpush3.bf16.msra.mxu1 %v956_v25 }
  0x42   : > { %888 = vmatprep.subr.bf16.mxu1 %v959_v29 }
  0x43   : > { %851 = vmatpush3.bf16.msra.mxu0 %v958_v28 }
  0x44   : > { %852 = vmatprep.subr.bf16.mxu0 %v960_v30 }
  0x45   : > { %889 = vmatpush3.bf16.msra.mxu1 %v959_v29 }
  0x46   : > { %890 = vmatprep.subr.bf16.mxu1 %v962_v31 }
  0x47   : > { %853 = vmatpush3.bf16.msra.mxu0 %v961_v34 }
  0x49   : > { %891 = vmatpush3.bf16.msra.mxu1 %v962_v31 }
  0x4a   : > { %574 = vmatmul.mubr.bf16.vlgmr.msra.gmra.mrb[0].mxu0 %v963_v35 }
  0x4b   : > { %581 = vmatprep.mubr.bf16.mxu0 %v968_v36 }
  0x4c   : > { %893 = vmatmul.mubr.bf16.vlgmr.msra.gmra.mrb[0].mxu1 %v967_v37 }
  0x52   : > { %582 = vmatmul.mubr.bf16.gmra.mrb[4].mxu0 %v970_v38 }
 0x11d   : > { %v854_v39 = vpop.f32.mrb[0].mxu0 }
 0x11e   : > { %v855_v40 = vpop.f32.mrb[1].mxu0 }
 0x11f   : > { %v856_v41 = vadd.f32 %v855_v40, %v854_v39  ;;  %v857_v42 = vpop.f32.mrb[2].mxu0  ;;  %v894_v43 = vpop.f32.mrb[0].mxu1 }
 0x120   : > { %v858_v44 = vpop.f32.mrb[3].mxu0  ;;  %v624_v46 = vpop.f32.mrb[1].mxu1 }
 0x121   : > { %v859_v47 = vadd.f32 %v858_v44, %v857_v42  ;;  %v625_v48 = vadd.f32 %v856_v41, %v624_v46  ;;  %v895_v49 = vpop.f32.mrb[2].mxu1 }
 0x122   : > { %v627_v51 = vpop.f32.mrb[3].mxu1 }
 0x123   : > { %v639_v52 = vadd.f32 %v625_v48, %v305_v45  ;;  %v628_v53 = vadd.f32 %v859_v47, %v627_v51 }
 0x125   : > { %643 = vst [vmem:[#allocation2] sm:$0xff] %v639_v52  ;;  %v640_v54 = vadd.f32 %v628_v53, %v306_v50  ;;  %v860_v55 = vpop.f32.mrb[4].mxu0 }
 0x126   : > { %v861_v56 = vpop.f32.mrb[5].mxu0 }
 0x127   : > { %644 = vst [vmem:[#allocation2 + $0x8] sm:$0xff] %v640_v54  ;;  %v862_v57 = vadd.f32 %v861_v56, %v860_v55  ;;  %v863_v58 = vpop.f32.mrb[6].mxu0 }
 0x128   : > { %v864_v60 = vpop.f32.mrb[7].mxu0 }
 0x129   : > { %v633_v61 = vadd.f32 %v894_v43, %v862_v57  ;;  %v865_v62 = vadd.f32 %v864_v60, %v863_v58  ;;  %650 = sbr.rel (%p831_p11) target bundleno = 314 (0x13a), region = 66 }
 0x12b   : > { %v641_v0 = vadd.f32 %v633_v61, %v307_v59  ;;  %v636_v1 = vadd.f32 %v895_v49, %v865_v62 }
 0x12c   : > { %v651_v3 = vld [vmem:[#allocation2] sm:$0xff] (!%p831_p11) }
 0x12d   : > { %645 = vst [vmem:[#allocation2 + $0x10] sm:$0xff] %v641_v0  ;;  %v642_v2 = vadd.f32 %v636_v1, %v308_v63  ;;  %v662_v6 = vadd.f32 (!%p831_p11), %v832_v4, %v651_v3 }
 0x12e   : > { %v652_v5 = vld [vmem:[#allocation2 + $0x8] sm:$0xff] (!%p831_p11) }
 0x12f   : > { %646 = vst [vmem:[#allocation2 + $0x18] sm:$0xff] %v642_v2  ;;  %v663_v7 = vadd.f32 (!%p831_p11), %v832_v4, %v652_v5  ;;  %666 = vst [vmem:[%s1151_s3] sm:$0xff] (!%p831_p11), %v662_v6 }
 0x131   : > { %667 = vst [vmem:[%s1151_s3 + $0x8] sm:$0xff] %v663_v7 }
 0x134   : > { %v653_v8 = vld [vmem:[#allocation2 + $0x10] sm:$0xff] }
 0x135   : > { %v664_v10 = vadd.f32 %v832_v4, %v653_v8 }
 0x136   : > { %v654_v9 = vld [vmem:[#allocation2 + $0x18] sm:$0xff] }
 0x137   : > { %v665_v11 = vadd.f32 %v832_v4, %v654_v9  ;;  %668 = vst [vmem:[%s1151_s3 + $0x10] sm:$0xff] %v664_v10 }
 0x139   : > { %669 = vst [vmem:[%s1151_s3 + $0x18] sm:$0xff] %v665_v11 }
 0x13a PF: > { %s13_s16 = sadd.s32 1, %s1009_s16   ;;  %s1152_s12 = smov %s997_s13 }
 0x13b   : > { %p10_p12 = scmp.ge.s32.totalorder %s13_s16, 4   ;;  %s1153_s13 = smov %s1067_s20 }
 0x13c   : > { %s1154_s14 = smov %s1005_s15  ;;  %s1155_s15 = smov %s1157_s17 }
 0x13d   :  { %12 = sbr.rel (!%p10_p12) target bundleno = 3 (0x3), region = 113 }

// kernel: sam_forward.62
= control target key start
LH: loop header
LB: loop body
LE: loop exit
PB: predicated region body
PF: predicated region fallthrough
CT: control target
= control target key end

     0   :  { %s335_s1 = inlined_call_operand.vmem [shape: bf16[128,128], index: 1, kind: input, shape index: {}]   ;;  %s336_s0 = inlined_call_operand.vmem [shape: bf16[32,128], index: 0, kind: input, shape index: {}]   ;;  %s337_s2 = inlined_call_operand.vmem [shape: f32[1,128], index: 2, kind: input, shape index: {}]   ;;  %s338_s3 = inlined_call_operand.vmem [shape: bf16[32,128], index: 3, kind: output, shape index: {}]  }
   0x1   :  { %v266_v0 = vld [vmem:[%s335_s1] sm:$0xff]   ;;  %v267_v1 = vld [vmem:[%s335_s1 + $0x8] sm:$0xff]   ;;  %v268_v2 = vld [vmem:[%s335_s1 + $0x10] sm:$0xff]  }
   0x2   :  { %246 = vmatprep.subr.bf16.mxu0 %v266_v0  ;;  %v269_v3 = vld [vmem:[%s335_s1 + $0x18] sm:$0xff]   ;;  %v274_v4 = vld [vmem:[%s336_s0] sm:$0xff]   ;;  %v271_v6 = vld [vmem:[%s335_s1 + $0x28] sm:$0xff]  }
   0x3   :  { %247 = vmatpush3.bf16.msra.mxu0 %v266_v0  ;;  %262 = vmatprep.mubr.bf16.mxu0 %v274_v4  ;;  %v270_v5 = vld [vmem:[%s335_s1 + $0x20] sm:$0xff]   ;;  %v272_v7 = vld [vmem:[%s335_s1 + $0x30] sm:$0xff]   ;;  %v273_v8 = vld [vmem:[%s335_s1 + $0x38] sm:$0xff]  }
   0x4   :  { %248 = vmatprep.subr.bf16.mxu0 %v267_v1  ;;  %v275_v9 = vld [vmem:[%s336_s0 + $0x8] sm:$0xff]   ;;  %v216_v11 = vld [vmem:[%s337_s2] ss:$0 sm:$0xff] }
   0x7   :  { %249 = vmatpush3.bf16.msra.mxu0 %v267_v1 }
   0x8   :  { %250 = vmatprep.subr.bf16.mxu0 %v268_v2 }
   0xb   :  { %251 = vmatpush3.bf16.msra.mxu0 %v268_v2 }
   0xc   :  { %252 = vmatprep.subr.bf16.mxu0 %v269_v3 }
   0xf   :  { %253 = vmatpush3.bf16.msra.mxu0 %v269_v3 }
  0x10   :  { %254 = vmatprep.subr.bf16.mxu0 %v270_v5 }
  0x13   :  { %255 = vmatpush3.bf16.msra.mxu0 %v270_v5 }
  0x14   :  { %256 = vmatprep.subr.bf16.mxu0 %v271_v6 }
  0x17   :  { %257 = vmatpush3.bf16.msra.mxu0 %v271_v6 }
  0x18   :  { %258 = vmatprep.subr.bf16.mxu0 %v272_v7 }
  0x1b   :  { %259 = vmatpush3.bf16.msra.mxu0 %v272_v7 }
  0x1c   :  { %260 = vmatprep.subr.bf16.mxu0 %v273_v8 }
  0x1f   :  { %261 = vmatpush3.bf16.msra.mxu0 %v273_v8 }
  0x22   :  { %263 = vmatmul.mubr.bf16.vlgmr.msra.gmra.mrb[0].mxu0 %v275_v9 }
  0xf5   :  { %v264_v10 = vpop.f32.mrb[0].mxu0 }
  0xf6   :  { %v141_v12 = vpop.f32.mrb[1].mxu0  ;;  %v180_v14 = vadd.f32 %v264_v10, %v216_v11 }
  0xf7   :  { %v265_v13 = vpop.f32.mrb[2].mxu0  ;;  %v178_v17 = vadd.f32 %v216_v11, %v141_v12 }
  0xf8   :  { %v181_v15 = vadd.f32 %v265_v13, %v216_v11  ;;  %v144_v16 = vpop.f32.mrb[3].mxu0 }
  0xf9   :  { %v179_v18 = vadd.f32 %v216_v11, %v144_v16 }
  0xfa   :  { %v233_v19 = vpack.c.bf16 %v181_v15, %v180_v14 }
  0xfb   :  { %v228_v20 = vpack.c.bf16 %v179_v18, %v178_v17 }
  0xfc   :  { %235 = vst [vmem:[%s338_s3 + $0x8] sm:$0xff] %v233_v19  }
  0xfd   :  { %229 = vst [vmem:[%s338_s3] sm:$0xff] %v228_v20  }

// kernel: sam_forward.64
= control target key start
LH: loop header
LB: loop body
LE: loop exit
PB: predicated region body
PF: predicated region fallthrough
CT: control target
= control target key end

     0   :  { %s1248_s18 = smov 0   ;;  %s1395_s0 = inlined_call_operand.vmem [shape: bf16[2,16,128], index: 0, kind: input, shape index: {}]   ;;  %s1396_s1 = inlined_call_operand.vmem [shape: bf16[2,16,256], index: 1, kind: input, shape index: {}]   ;;  %s1397_s2 = inlined_call_operand.vmem [shape: bf16[128,128], index: 2, kind: input, shape index: {}]   ;;  %s1398_s3 = inlined_call_operand.vmem [shape: f32[1,128], index: 3, kind: input, shape index: {}]   ;;  %s1399_s4 = inlined_call_operand.vmem [shape: f32[2,16,128], index: 4, kind: input, shape index: {}]   ;;  %s1400_s5 = inlined_call_operand.vmem [shape: f32[2,16,128], index: 5, kind: output, shape index: {}]  }
   0x1 LB: > { %s1001_s19 = sadd.s32 4294967295, %s1211_s18   ;;  %p1005_p0 = scmp.ge.s32.totalorder %s1211_s18, 1  ;;  %s1211_s18 = sphi %s1248_s18, %s15_s18  }
   0x2   : > { %p207_p1 = scmp.lt.s32.totalorder %s1211_s18, 3 }
   0x4   : > { %p208_p2 = pnand %p1005_p0, %p207_p1 }
   0x5   : > { %p245_p3 = scmp.lt.s32.totalorder (!%p208_p2), %s1001_s19, 1  ;;  %v1213_v0 = vmov (!%p208_p2), 0.0   ;;  %vm1214_vm0 = vmmov (!%p208_p2), 0   ;;  %vm280_vm1 = vcmask (!%p208_p2), 261120   ;;  %vm330_vm2 = vcmask (!%p208_p2), 130048   ;;  %s1215_s28 = smov (!%p208_p2), 96  }
   0x6   : > { %211 = sbr.rel (%p208_p2) target bundleno = 1685 (0x695), region = 40  ;;  %1065 = vmatprep.subr.bf16.mxu0 (!%p208_p2), %v1213_v0  ;;  %1067 = vmatprep.mubr.msk.bf16.mxu0 (!%p208_p2), %vm1214_vm0, %v1213_v0  ;;  %s1216_s29 = smov (!%p208_p2), 32   ;;  %vm797_vm3 = vcmask (!%p208_p2), 523264   ;;  %vm800_vm4 = vcmask (!%p208_p2), 785408  }
   0x7   : > { %1089 = vmatprep.subr.bf16.mxu1 (!%p208_p2), %v1213_v0  ;;  %1091 = vmatprep.mubr.msk.bf16.mxu1 (!%p208_p2), %vm1214_vm0, %v1213_v0  ;;  %s1217_s30 = smov (!%p208_p2), 64  }
   0xd   : > { %s1402_s19 = smov (!%p245_p3, %s1001_s19), 1 }
   0xe   : > { %s1262_s20 = sshll.u32 %s1402_s19, 4  ;;  %s1036_s21 = sshll.u32 %s1402_s19, 3 }
   0xf   : > { %s1268_s24 = scalar_lea.vmem %s1396_s1, %s1262_s20  ;;  %s249_s27 = scalar_lea.vmem %s1395_s0, %s1036_s21 }
  0x10   : > { %v1161_v1 = vld [vmem:[%s1268_s24] ss:$8 sps:$4 sm:$0xff]   ;;  %v1287_v22 = vld [vmem:[%s1268_s24 + $0x4] ss:$8 sps:$4 sm:$0xff]   ;;  %s259_s26 = scalar_lea.vmem %s1399_s4, %s1262_s20  ;;  %s264_s6 = scalar_lea.vmem %s1400_s5, %s1262_s20 }
  0x11   : > { %v285_v2 = vsel %vm280_vm1, %v1161_v1, 0  ;;  %v1163_v3 = vld [vmem:[%s249_s27] sm:$0xff]  }
  0x12   : > { %1066 = vmatpush3.bf16.xpose.msra.mxu0 %v285_v2 }
  0x13   : > { %1071 = vmatprep.subr.bf16.mxu0 %v1213_v0 }
  0x19   : > { %1068 = vmatmul.mubr.msk.bf16.vlgmr.msra.gmra.mrb[0].mxu0 %vm280_vm1, %v1163_v3 }
  0x1a   : > { %1073 = vmatprep.mubr.msk.bf16.mxu0 %vm1214_vm0, %v1213_v0  ;;  %1072 = vmatpush3.bf16.msra.mxu0 %v1287_v22 }
  0x1b   : > { %1077 = vmatprep.subr.bf16.mxu0 %v1213_v0 }
  0xec   : > { %v321_v4 = vpop.f32.mrb[0].mxu0 }
  0xed   : > { %v328_v5 = vmul.f32 0.17677669, %v321_v4  ;;  %v1069_v6 = vpop.f32.mrb[1].mxu0 }
  0xee   : > { %v324_v7 = vpop.f32.mrb[2].mxu0 }
  0xef   : > { %v329_v8 = vmul.f32 0.17677669, %v324_v7  ;;  %v1070_v9 = vpop.f32.mrb[3].mxu0  ;;  %v331_v10 = vsel %vm330_vm2, %v328_v5, -inf }
  0xf0   : > { %332 = vmax.xlane.f32.xlu0 %v331_v10 }
  0xf1   : > { %v334_v11 = vsel %vm330_vm2, %v329_v8, -inf }
  0xf4   : > { %335 = vmax.xlane.f32.xlu0 %v334_v11 }
 0x10a   : > { %404 = vrot.lane.b32.xlu0 %v1161_v1, %s1215_s28 }
 0x10e   : > { %650 = vrot.lane.b32.xlu0 %v1161_v1, %s1216_s29 }
 0x17d   : > { %v333_v12 = vpop.xlane.xlu0 %332 }
 0x17e   : > { %v337_v13 = vsub.f32 %v328_v5, %v333_v12 }
 0x180   : > { %v339_v14 = vmul.f32 1.442695, %v337_v13 }
 0x181   : > { %v336_v15 = vpop.xlane.xlu0 %335 }
 0x182   : > { %1173 = vpow2.f32 %v339_v14  ;;  %v338_v16 = vsub.f32 %v329_v8, %v336_v15 }
 0x184   : > { %v341_v17 = vmul.f32 1.442695, %v338_v16 }
 0x185   : > { %v405_v26 = vpop.permute.xlu0 %404 }
 0x186   : > { %1175 = vpow2.f32 %v341_v17  ;;  %v410_v34 = vsel %vm280_vm1, %v405_v26, 0 }
 0x189   : > { %v651_v33 = vpop.permute.xlu0 %650 }
 0x18a   : > { %v656_v37 = vsel %vm280_vm1, %v651_v33, 0 }
 0x18c   : > { %v1174_v18 = vpop.eup %1173 }
 0x18d   : > { %v343_v19 = vsel %vm330_vm2, %v1174_v18, 0.0 }
 0x18e   : > { %344 = vadd.xlane.f32.xlu1 %v343_v19 }
 0x190   : > { %v1176_v20 = vpop.eup %1175 }
 0x191   : > { %v346_v21 = vsel %vm330_vm2, %v1176_v20, 0.0 }
 0x192   : > { %347 = vadd.xlane.f32.xlu1 %v346_v21 }
 0x1a3   : > { %402 = vrot.lane.b32.xlu1 %v1163_v3, %s1215_s28 }
 0x1a7   : > { %527 = vrot.lane.b32.xlu1 %v1161_v1, %s1217_s30 }
 0x1ab   : > { %525 = vrot.lane.b32.xlu1 %v1163_v3, %s1217_s30 }
 0x1af   : > { %648 = vrot.lane.b32.xlu1 %v1163_v3, %s1216_s29 }
 0x21b   : > { %v345_v23 = vpop.xlane.xlu1 %344 }
 0x21c   : > { %1177 = vrcp.f32 %v345_v23 }
 0x21f   : > { %v348_v24 = vpop.xlane.xlu1 %347 }
 0x220   : > { %1179 = vrcp.f32 %v348_v24 }
 0x223   : > { %v403_v25 = vpop.permute.xlu1 %402 }
 0x226   : > { %v1178_v28 = vpop.eup %1177 }
 0x227   : > { %v528_v27 = vpop.permute.xlu1 %527  ;;  %v351_v31 = vmul.f32 %v1178_v28, %v1174_v18 }
 0x228   : > { %v533_v29 = vsel %vm280_vm1, %v528_v27, 0 }
 0x229   : > { %1090 = vmatpush3.bf16.xpose.msra.mxu1 %v533_v29 }
 0x22a   : > { %v1180_v30 = vpop.eup %1179  ;;  %1101 = vmatprep.subr.bf16.mxu1 %v1213_v0 }
 0x22b   : > { %v352_v32 = vmul.f32 %v1180_v30, %v1176_v20  ;;  %v526_v36 = vpop.permute.xlu1 %525 }
 0x22d   : > { %v353_v35 = vpack.c.bf16 %v352_v32, %v351_v31 }
 0x22f   : > { %1074 = vmatmul.mubr.msk.bf16.vlgmr.msra.gmra.mrb[4].mxu0 %vm330_vm2, %v353_v35  ;;  %v649_v38 = vpop.permute.xlu1 %648 }
 0x230   : > { %1078 = vmatpush3.bf16.xpose.msra.mxu0 %v410_v34  ;;  %1092 = vmatmul.mubr.msk.bf16.vlgmr.msra.gmra.mrb[0].mxu1 %vm280_vm1, %v526_v36 }
 0x231   : > { %1102 = vmatpush3.bf16.xpose.msra.mxu1 %v656_v37  ;;  %1079 = vmatprep.mubr.msk.bf16.mxu0 %vm1214_vm0, %v1213_v0 }
 0x232   : > { %1103 = vmatprep.mubr.msk.bf16.mxu1 %vm1214_vm0, %v1213_v0  ;;  %1083 = vmatprep.subr.bf16.mxu0 %v1213_v0 }
 0x233   : > { %1113 = vmatprep.subr.bf16.mxu1 %v1213_v0 }
 0x237   : > { %1080 = vmatmul.mubr.msk.bf16.vlgmr.msra.gmra.mrb[8].mxu0 %vm280_vm1, %v403_v25 }
 0x238   : > { %1104 = vmatmul.mubr.msk.bf16.vlgmr.msra.gmra.mrb[4].mxu1 %vm280_vm1, %v649_v38  ;;  %1085 = vmatprep.mubr.msk.bf16.mxu0 %vm1214_vm0, %v1213_v0 }
 0x239   : > { %1129 = vmatprep.mubr.msk.bf16.mxu1 %vm1214_vm0, %v1213_v0 }
 0x302   : > { %v1312_v39 = vpop.f32.mrb[4].mxu0 }
 0x303   : > { %v1075_v40 = vpop.f32.mrb[5].mxu0  ;;  %v569_v41 = vpop.f32.mrb[0].mxu1 }
 0x304   : > { %v1314_v42 = vpop.f32.mrb[6].mxu0  ;;  %v1093_v43 = vpop.f32.mrb[1].mxu1  ;;  %v576_v51 = vmul.f32 0.17677669, %v569_v41 }
 0x305   : > { %v1076_v44 = vpop.f32.mrb[7].mxu0  ;;  %v572_v45 = vpop.f32.mrb[2].mxu1 }
 0x306   : > { %v1094_v46 = vpop.f32.mrb[3].mxu1  ;;  %v577_v61 = vmul.f32 0.17677669, %v572_v45  ;;  %v578_v62 = vsel %vm330_vm2, %v576_v51, -inf }
 0x308   : > { %v581_v2 = vsel %vm330_vm2, %v577_v61, -inf }
 0x30a   : > { %v446_v47 = vpop.f32.mrb[8].mxu0 }
 0x30b   : > { %v453_v48 = vmul.f32 0.17677669, %v446_v47  ;;  %v1081_v49 = vpop.f32.mrb[9].mxu0  ;;  %v692_v50 = vpop.f32.mrb[4].mxu1 }
 0x30c   : > { %v449_v52 = vpop.f32.mrb[10].mxu0  ;;  %v1105_v53 = vpop.f32.mrb[5].mxu1  ;;  %v699_v1 = vmul.f32 0.17677669, %v692_v50 }
 0x30d   : > { %v454_v54 = vmul.f32 0.17677669, %v449_v52  ;;  %v1082_v55 = vpop.f32.mrb[11].mxu0  ;;  %v455_v56 = vsel %vm330_vm2, %v453_v48, -inf  ;;  %v695_v57 = vpop.f32.mrb[6].mxu1 }
 0x30e   : > { %456 = vmax.xlane.f32.xlu0 %v455_v56  ;;  %v700_v58 = vmul.f32 0.17677669, %v695_v57  ;;  %v1106_v59 = vpop.f32.mrb[7].mxu1  ;;  %v701_v3 = vsel %vm330_vm2, %v699_v1, -inf }
 0x30f   : > { %v458_v60 = vsel %vm330_vm2, %v454_v54, -inf }
 0x310   : > { %459 = vmax.xlane.f32.xlu1 %v458_v60  ;;  %v704_v63 = vsel %vm330_vm2, %v700_v58, -inf  ;;  %v1165_v60 = vld [vmem:[%s1397_s2] sm:$0xff]  }
 0x311   : > { %1114 = vmatpush3.bf16.msra.mxu1 %v1165_v60 }
 0x312   : > { %579 = vmax.xlane.f32.xlu0 %v578_v62  ;;  %1115 = vmatprep.subr.bf16.mxu1 %v1213_v0  ;;  %v1167_v62 = vld [vmem:[%s1397_s2 + $0x10] sm:$0xff]  }
 0x314   : > { %705 = vmax.xlane.f32.xlu1 %v704_v63  ;;  %v1168_v63 = vld [vmem:[%s1397_s2 + $0x18] sm:$0xff]  }
 0x316   : > { %582 = vmax.xlane.f32.xlu0 %v581_v2 }
 0x31a   : > { %702 = vmax.xlane.f32.xlu0 %v701_v3  ;;  %v1170_v3 = vld [vmem:[%s1397_s2 + $0x28] sm:$0xff]  }
 0x39b   : > { %v457_v4 = vpop.xlane.xlu0 %456 }
 0x39c   : > { %v461_v13 = vsub.f32 %v453_v48, %v457_v4 }
 0x39d   : > { %v460_v5 = vpop.xlane.xlu1 %459 }
 0x39e   : > { %v462_v14 = vsub.f32 %v454_v54, %v460_v5  ;;  %v463_v19 = vmul.f32 1.442695, %v461_v13 }
 0x39f   : > { %v580_v6 = vpop.xlane.xlu0 %579 }
 0x3a0   : > { %v584_v7 = vsub.f32 %v576_v51, %v580_v6  ;;  %v465_v20 = vmul.f32 1.442695, %v462_v14  ;;  %v1171_v6 = vld [vmem:[%s1397_s2 + $0x30] sm:$0xff]  }
 0x3a1   : > { %v706_v8 = vpop.xlane.xlu1 %705 }
 0x3a2   : > { %v586_v9 = vmul.f32 1.442695, %v584_v7  ;;  %v708_v10 = vsub.f32 %v700_v58, %v706_v8 }
 0x3a3   : > { %v583_v11 = vpop.xlane.xlu0 %582 }
 0x3a4   : > { %1181 = vpow2.f32 %v586_v9  ;;  %v585_v12 = vsub.f32 %v577_v61, %v583_v11  ;;  %v711_v15 = vmul.f32 1.442695, %v708_v10  ;;  %v1166_v61 = vld [vmem:[%s1397_s2 + $0x8] sm:$0xff]   ;;  %v1172_v10 = vld [vmem:[%s1397_s2 + $0x38] sm:$0xff]  }
 0x3a5   : > { %1116 = vmatpush3.bf16.msra.mxu1 %v1166_v61 }
 0x3a6   : > { %v588_v16 = vmul.f32 1.442695, %v585_v12  ;;  %1117 = vmatprep.subr.bf16.mxu1 %v1213_v0 }
 0x3a7   : > { %v703_v17 = vpop.xlane.xlu0 %702 }
 0x3a8   : > { %1183 = vpow2.f32 %v588_v16  ;;  %v707_v18 = vsub.f32 %v699_v1, %v703_v17  ;;  %v1169_v1 = vld [vmem:[%s1397_s2 + $0x20] sm:$0xff]  }
 0x3a9   : > { %1185 = vpow2.f32 %v711_v15  ;;  %1118 = vmatpush3.bf16.msra.mxu1 %v1167_v62 }
 0x3aa   : > { %v709_v21 = vmul.f32 1.442695, %v707_v18  ;;  %1119 = vmatprep.subr.bf16.mxu1 %v1213_v0 }
 0x3ac   : > { %1187 = vpow2.f32 %v709_v21 }
 0x3ad   : > { %1189 = vpow2.f32 %v463_v19  ;;  %1120 = vmatpush3.bf16.msra.mxu1 %v1168_v63 }
 0x3ae   : > { %v1182_v23 = vpop.eup %1181  ;;  %1191 = vpow2.f32 %v465_v20  ;;  %1121 = vmatprep.subr.bf16.mxu1 %v1213_v0 }
 0x3af   : > { %v590_v24 = vsel %vm330_vm2, %v1182_v23, 0.0 }
 0x3b0   : > { %591 = vadd.xlane.f32.xlu0 %v590_v24 }
 0x3b1   : > { %1122 = vmatpush3.bf16.msra.mxu1 %v1169_v1 }
 0x3b2   : > { %v1184_v25 = vpop.eup %1183  ;;  %1123 = vmatprep.subr.bf16.mxu1 %v1213_v0 }
 0x3b3   : > { %v593_v26 = vsel %vm330_vm2, %v1184_v25, 0.0  ;;  %v1186_v27 = vpop.eup %1185 }
 0x3b4   : > { %594 = vadd.xlane.f32.xlu1 %v593_v26  ;;  %v716_v31 = vsel %vm330_vm2, %v1186_v27, 0.0 }
 0x3b5   : > { %1124 = vmatpush3.bf16.msra.mxu1 %v1170_v3 }
 0x3b6   : > { %v1188_v28 = vpop.eup %1187  ;;  %1125 = vmatprep.subr.bf16.mxu1 %v1213_v0 }
 0x3b7   : > { %v1190_v29 = vpop.eup %1189  ;;  %v713_v30 = vsel %vm330_vm2, %v1188_v28, 0.0 }
 0x3b8   : > { %v1192_v32 = vpop.eup %1191  ;;  %714 = vadd.xlane.f32.xlu0 %v713_v30  ;;  %717 = vadd.xlane.f32.xlu1 %v716_v31  ;;  %v467_v33 = vsel %vm330_vm2, %v1190_v29, 0.0 }
 0x3b9   : > { %v470_v34 = vsel %vm330_vm2, %v1192_v32, 0.0  ;;  %1126 = vmatpush3.bf16.msra.mxu1 %v1171_v6 }
 0x3ba   : > { %1127 = vmatprep.subr.bf16.mxu1 %v1213_v0 }
 0x3bc   : > { %468 = vadd.xlane.f32.xlu0 %v467_v33  ;;  %471 = vadd.xlane.f32.xlu1 %v470_v34 }
 0x3bd   : > { %1128 = vmatpush3.bf16.msra.mxu1 %v1172_v10 }
 0x3cd   : > { %601 = vrot.lane.b32.xlu1 %v1287_v22, %s1217_s30 }
 0x3d1   : > { %724 = vrot.lane.b32.xlu1 %v1287_v22, %s1216_s29 }
 0x3d2   : > { %478 = vrot.lane.b32.xlu0 %v1287_v22, %s1215_s28 }
 0x43d   : > { %v592_v35 = vpop.xlane.xlu0 %591 }
 0x441   : > { %v595_v36 = vpop.xlane.xlu1 %594 }
 0x445   : > { %v715_v37 = vpop.xlane.xlu0 %714  ;;  %v718_v38 = vpop.xlane.xlu1 %717 }
 0x449   : > { %v469_v40 = vpop.xlane.xlu0 %468  ;;  %v472_v41 = vpop.xlane.xlu1 %471 }
 0x44a   : > { %1193 = vrcp.f32 %v469_v40 }
 0x44b   : > { %1195 = vrcp.f32 %v472_v41  ;;  %v917_v41 = vld [vmem:[%s259_s26 + $0x8] sm:$0xff] }
 0x44c   : > { %1197 = vrcp.f32 %v595_v36 }
 0x44d   : > { %v479_v43 = vpop.permute.xlu0 %478  ;;  %1199 = vrcp.f32 %v592_v35  ;;  %v602_v22 = vpop.permute.xlu1 %601 }
 0x44e   : > { %1084 = vmatpush3.bf16.msra.mxu0 %v479_v43  ;;  %1201 = vrcp.f32 %v715_v37  ;;  %v916_v37 = vld [vmem:[%s259_s26] sm:$0xff] }
 0x44f   : > { %1095 = vmatprep.subr.bf16.mxu0 %v1213_v0  ;;  %1203 = vrcp.f32 %v718_v38 }
 0x451   : > { %v725_v54 = vpop.permute.xlu1 %724 }
 0x454   : > { %v1194_v44 = vpop.eup %1193 }
 0x455   : > { %v1196_v45 = vpop.eup %1195  ;;  %v475_v46 = vmul.f32 %v1194_v44, %v1190_v29 }
 0x456   : > { %v476_v47 = vmul.f32 %v1196_v45, %v1192_v32  ;;  %v1198_v49 = vpop.eup %1197 }
 0x457   : > { %v1200_v50 = vpop.eup %1199  ;;  %v599_v51 = vmul.f32 %v1198_v49, %v1184_v25 }
 0x458   : > { %v477_v48 = vpack.c.bf16 %v476_v47, %v475_v46  ;;  %v598_v52 = vmul.f32 %v1200_v50, %v1182_v23  ;;  %v1202_v53 = vpop.eup %1201 }
 0x459   : > { %v1204_v56 = vpop.eup %1203  ;;  %v721_v57 = vmul.f32 %v1202_v53, %v1188_v28 }
 0x45a   : > { %1086 = vmatmul.mubr.msk.bf16.vlgmr.msra.gmra.mrb[12].mxu0 %vm330_vm2, %v477_v48  ;;  %v600_v55 = vpack.c.bf16 %v599_v51, %v598_v52  ;;  %v722_v58 = vmul.f32 %v1204_v56, %v1186_v27 }
 0x45b   : > { %1096 = vmatpush3.bf16.msra.mxu0 %v602_v22  ;;  %1097 = vmatprep.mubr.msk.bf16.mxu0 %vm1214_vm0, %v1213_v0 }
 0x45c   : > { %1107 = vmatprep.subr.bf16.mxu0 %v1213_v0  ;;  %v723_v59 = vpack.c.bf16 %v722_v58, %v721_v57 }
 0x462   : > { %1098 = vmatmul.mubr.msk.bf16.vlgmr.msra.gmra.mrb[16].mxu0 %vm330_vm2, %v600_v55 }
 0x463   : > { %1108 = vmatpush3.bf16.msra.mxu0 %v725_v54  ;;  %1109 = vmatprep.mubr.msk.bf16.mxu0 %vm1214_vm0, %v1213_v0 }
 0x46a   : > { %1110 = vmatmul.mubr.msk.bf16.vlgmr.msra.gmra.mrb[20].mxu0 %vm330_vm2, %v723_v59 }
 0x52d   : > { %v518_v2 = vpop.f32.mrb[12].mxu0 }
 0x52e   : > { %v1087_v4 = vpop.f32.mrb[13].mxu0 }
 0x52f   : > { %v521_v5 = vpop.f32.mrb[14].mxu0 }
 0x530   : > { %v1146_v7 = vpack.i.bf16 %v521_v5, %v518_v2  ;;  %v1088_v8 = vpop.f32.mrb[15].mxu0 }
 0x532   : > { %1147 = vrot.lane.b32.xlu1 %v1146_v7, %s1216_s29 }
 0x535   : > { %v641_v9 = vpop.f32.mrb[16].mxu0 }
 0x536   : > { %v1099_v11 = vpop.f32.mrb[17].mxu0 }
 0x537   : > { %v644_v12 = vpop.f32.mrb[18].mxu0 }
 0x538   : > { %v1151_v13 = vpack.i.bf16 %v644_v12, %v641_v9  ;;  %v1100_v14 = vpop.f32.mrb[19].mxu0 }
 0x53a   : > { %1152 = vrot.lane.b32.xlu0 %v1151_v13, %s1217_s30 }
 0x53d   : > { %v764_v15 = vpop.f32.mrb[20].mxu0 }
 0x53e   : > { %v1111_v16 = vpop.f32.mrb[21].mxu0 }
 0x53f   : > { %v767_v17 = vpop.f32.mrb[22].mxu0 }
 0x540   : > { %v1156_v18 = vpack.i.bf16 %v767_v17, %v764_v15  ;;  %v1112_v19 = vpop.f32.mrb[23].mxu0 }
 0x542   : > { %1157 = vrot.lane.b32.xlu1 %v1156_v18, %s1215_s28 }
 0x5a4   : > { %v1148_v0 = vpop.permute.xlu1 %1147 }
 0x5a5   : > { %v1150_v21 = vunpack.i.h.bf16 %v1148_v0  ;;  %v1149_v23 = vunpack.i.l.bf16 %v1148_v0 }
 0x5a7   : > { %v796_v27 = vsel %vm280_vm1, %v1314_v42, %v1150_v21  ;;  %v795_v28 = vsel %vm280_vm1, %v1312_v39, %v1149_v23  ;;  %v1025_v42 = vld [vmem:[%s1398_s3] ss:$0 sm:$0xff] }
 0x5ac   : > { %v1153_v20 = vpop.permute.xlu0 %1152 }
 0x5ad   : > { %v1155_v24 = vunpack.i.h.bf16 %v1153_v20  ;;  %v1154_v25 = vunpack.i.l.bf16 %v1153_v20 }
 0x5af   : > { %v799_v31 = vsel %vm797_vm3, %v796_v27, %v1155_v24  ;;  %v798_v32 = vsel %vm797_vm3, %v795_v28, %v1154_v25 }
 0x5b4   : > { %v1158_v26 = vpop.permute.xlu1 %1157 }
 0x5b5   : > { %v1160_v29 = vunpack.i.h.bf16 %v1158_v26  ;;  %v1159_v30 = vunpack.i.l.bf16 %v1158_v26 }
 0x5b7   : > { %v802_v33 = vsel %vm800_vm4, %v799_v31, %v1160_v29  ;;  %v801_v34 = vsel %vm800_vm4, %v798_v32, %v1159_v30 }
 0x5b8   : > { %v803_v35 = vpack.c.bf16 %v802_v33, %v801_v34 }
 0x5ba   : > { %1130 = vmatmul.mubr.bf16.vlgmr.msra.gmra.mrb[8].mxu1 %v803_v35 }
 0x68d   : > { %v909_v36 = vpop.f32.mrb[8].mxu1 }
 0x68e   : > { %v910_v38 = vadd.f32 %v1025_v42, %v909_v36  ;;  %v1131_v39 = vpop.f32.mrb[9].mxu1 }
 0x68f   : > { %v912_v40 = vpop.f32.mrb[10].mxu1 }
 0x690   : > { %v918_v43 = vadd.f32 %v916_v37, %v910_v38  ;;  %v913_v44 = vadd.f32 %v1025_v42, %v912_v40  ;;  %v1132_v45 = vpop.f32.mrb[11].mxu1 }
 0x692   : > { %920 = vst [vmem:[%s264_s6] sm:$0xff] %v918_v43  ;;  %v919_v46 = vadd.f32 %v917_v41, %v913_v44 }
 0x694   : > { %921 = vst [vmem:[%s264_s6 + $0x8] sm:$0xff] %v919_v46 }
 0x695 PF: > { %s15_s18 = sadd.s32 1, %s1211_s18  }
 0x696   : > { %p12_p4 = scmp.ge.s32.totalorder %s15_s18, 4  }
 0x698   :  { %14 = sbr.rel (!%p12_p4) target bundleno = 1 (0x1), region = 76 }

// kernel: sam_forward.63
= control target key start
LH: loop header
LB: loop body
LE: loop exit
PB: predicated region body
PF: predicated region fallthrough
CT: control target
= control target key end

     0   :  { %v348_v1 = vmov 0   ;;  %v229_v19 = vlaneseq  ;;  %s438_s1 = inlined_call_operand.vmem [shape: bf16[128,256], index: 1, kind: input, shape index: {}]   ;;  %s439_s0 = inlined_call_operand.vmem [shape: bf16[32,128], index: 0, kind: input, shape index: {}]   ;;  %s440_s2 = inlined_call_operand.vmem [shape: f32[1,256], index: 2, kind: input, shape index: {}]   ;;  %s441_s3 = inlined_call_operand.vmem [shape: bf16[32,256], index: 3, kind: output, shape index: {}]  }
   0x1   :  { %v322_v0 = vld [vmem:[%s438_s1 + $0x4] ss:$8 sps:$4 sm:$0xff]   ;;  %179 = vmatprep.mubr.bf16.mxu0 %v348_v1  ;;  %189 = vmatprep.mubr.bf16.mxu1 %v348_v1  ;;  %v324_v2 = vld [vmem:[%s438_s1] ss:$8 sps:$4 sm:$0xff]   ;;  %v325_v3 = vld [vmem:[%s438_s1 + $0x14] ss:$8 sps:$4 sm:$0xff]  }
   0x2   :  { %147 = vmatprep.subr.bf16.mxu0 %v322_v0  ;;  %305 = vmatprep.subr.bf16.mxu1 %v322_v0  ;;  %v327_v4 = vld [vmem:[%s438_s1 + $0x10] ss:$8 sps:$4 sm:$0xff]   ;;  %v328_v5 = vld [vmem:[%s438_s1 + $0x24] ss:$8 sps:$4 sm:$0xff]   ;;  %v330_v6 = vld [vmem:[%s438_s1 + $0x20] ss:$8 sps:$4 sm:$0xff]  }
   0x3   :  { %148 = vmatpush1.bf16.msra.mxu0 %v324_v2  ;;  %313 = vmatpush1.bf16.msra.mxu1 %v324_v2  ;;  %v331_v7 = vld [vmem:[%s438_s1 + $0x34] ss:$8 sps:$4 sm:$0xff]   ;;  %v333_v8 = vld [vmem:[%s438_s1 + $0x30] ss:$8 sps:$4 sm:$0xff]   ;;  %v334_v9 = vld [vmem:[%s438_s1 + $0x44] ss:$8 sps:$4 sm:$0xff]  }
   0x4   :  { %149 = vmatprep.subr.bf16.mxu0 %v325_v3  ;;  %306 = vmatprep.subr.bf16.mxu1 %v325_v3  ;;  %v336_v10 = vld [vmem:[%s438_s1 + $0x40] ss:$8 sps:$4 sm:$0xff]   ;;  %v337_v11 = vld [vmem:[%s438_s1 + $0x54] ss:$8 sps:$4 sm:$0xff]   ;;  %v339_v12 = vld [vmem:[%s438_s1 + $0x50] ss:$8 sps:$4 sm:$0xff]  }
   0x5   :  { %v340_v13 = vld [vmem:[%s438_s1 + $0x64] ss:$8 sps:$4 sm:$0xff]   ;;  %v342_v14 = vld [vmem:[%s438_s1 + $0x60] ss:$8 sps:$4 sm:$0xff]   ;;  %v343_v15 = vld [vmem:[%s438_s1 + $0x74] ss:$8 sps:$4 sm:$0xff]  }
   0x6   :  { %v345_v16 = vld [vmem:[%s438_s1 + $0x70] ss:$8 sps:$4 sm:$0xff]   ;;  %v346_v17 = vld [vmem:[%s439_s0] sm:$0xff]   ;;  %v347_v18 = vld [vmem:[%s439_s0 + $0x8] sm:$0xff]   ;;  %v230_v20 = vshrl.u32 %v229_v19, 7 }
   0x7   :  { %150 = vmatpush1.bf16.msra.mxu0 %v327_v4  ;;  %314 = vmatpush1.bf16.msra.mxu1 %v327_v4  ;;  %v227_v22 = vld [vmem:[%s440_s2] sm:$0x3] }
   0x8   :  { %151 = vmatprep.subr.bf16.mxu0 %v328_v5  ;;  %307 = vmatprep.subr.bf16.mxu1 %v328_v5  ;;  %v231_v21 = vsub.s32 0, %v230_v20  ;;  %v235_v23 = vsub.s32 1, %v230_v20 }
   0xa   :  { %v232_v24 = vrot.slane %v227_v22, %v231_v21  ;;  %v236_v25 = vrot.slane %v227_v22, %v235_v23 }
   0xb   :  { %152 = vmatpush1.bf16.msra.mxu0 %v330_v6  ;;  %315 = vmatpush1.bf16.msra.mxu1 %v330_v6 }
   0xc   :  { %153 = vmatprep.subr.bf16.mxu0 %v331_v7  ;;  %308 = vmatprep.subr.bf16.mxu1 %v331_v7 }
   0xf   :  { %154 = vmatpush1.bf16.msra.mxu0 %v333_v8  ;;  %316 = vmatpush1.bf16.msra.mxu1 %v333_v8 }
  0x10   :  { %155 = vmatprep.subr.bf16.mxu0 %v334_v9  ;;  %309 = vmatprep.subr.bf16.mxu1 %v334_v9 }
  0x13   :  { %156 = vmatpush1.bf16.msra.mxu0 %v336_v10  ;;  %317 = vmatpush1.bf16.msra.mxu1 %v336_v10 }
  0x14   :  { %157 = vmatprep.subr.bf16.mxu0 %v337_v11  ;;  %310 = vmatprep.subr.bf16.mxu1 %v337_v11 }
  0x17   :  { %158 = vmatpush1.bf16.msra.mxu0 %v339_v12  ;;  %318 = vmatpush1.bf16.msra.mxu1 %v339_v12 }
  0x18   :  { %159 = vmatprep.subr.bf16.mxu0 %v340_v13  ;;  %311 = vmatprep.subr.bf16.mxu1 %v340_v13 }
  0x1b   :  { %160 = vmatpush1.bf16.msra.mxu0 %v342_v14  ;;  %319 = vmatpush1.bf16.msra.mxu1 %v342_v14 }
  0x1c   :  { %161 = vmatprep.subr.bf16.mxu0 %v343_v15  ;;  %312 = vmatprep.subr.bf16.mxu1 %v343_v15 }
  0x1f   :  { %162 = vmatpush1.bf16.msra.mxu0 %v345_v16  ;;  %320 = vmatpush1.bf16.msra.mxu1 %v345_v16 }
  0x22   :  { %180 = vmatmul.mubr.bf16.vlgmr.msra.gmra.mrb[0].mxu0 %v346_v17  ;;  %190 = vmatmul.mubr.bf16.vlgmr.msra.gmra.mrb[0].mxu1 %v347_v18 }
  0xf5   :  { %v181_v26 = vpop.f32.mrb[0].mxu0  ;;  %v191_v27 = vpop.f32.mrb[0].mxu1 }
  0xf6   :  { %v239_v28 = vadd.f32 %v232_v24, %v181_v26  ;;  %v243_v29 = vadd.f32 %v232_v24, %v191_v27  ;;  %v183_v30 = vpop.f32.mrb[1].mxu0  ;;  %v193_v31 = vpop.f32.mrb[1].mxu1 }
  0xf7   :  { %v240_v32 = vadd.f32 %v236_v25, %v183_v30  ;;  %v244_v33 = vadd.f32 %v236_v25, %v193_v31  ;;  %v185_v34 = vpop.f32.mrb[2].mxu0  ;;  %v195_v35 = vpop.f32.mrb[2].mxu1 }
  0xf8   :  { %v241_v36 = vadd.f32 %v232_v24, %v185_v34  ;;  %v245_v37 = vadd.f32 %v232_v24, %v195_v35  ;;  %v187_v38 = vpop.f32.mrb[3].mxu0  ;;  %v197_v39 = vpop.f32.mrb[3].mxu1 }
  0xf9   :  { %v301_v40 = vpack.c.bf16 %v240_v32, %v239_v28  ;;  %v303_v41 = vpack.c.bf16 %v244_v33, %v243_v29  ;;  %v242_v42 = vadd.f32 %v236_v25, %v187_v38  ;;  %v246_v43 = vadd.f32 %v236_v25, %v197_v39 }
  0xfb   :  { %271 = vst [vmem:[%s441_s3] sm:$0xff] %v301_v40  ;;  %273 = vst [vmem:[%s441_s3 + $0x10] sm:$0xff] %v303_v41  ;;  %v302_v44 = vpack.c.bf16 %v242_v42, %v241_v36  ;;  %v304_v45 = vpack.c.bf16 %v246_v43, %v245_v37 }
  0xfd   :  { %272 = vst [vmem:[%s441_s3 + $0x8] sm:$0xff] %v302_v44  ;;  %274 = vst [vmem:[%s441_s3 + $0x18] sm:$0xff] %v304_v45 }

// kernel: sam_forward.66
= control target key start
LH: loop header
LB: loop body
LE: loop exit
PB: predicated region body
PF: predicated region fallthrough
CT: control target
= control target key end

     0   :  { %v559_v1 = vmov 0   ;;  %v418_v35 = vlaneseq  ;;  %s737_s1 = inlined_call_operand.vmem [shape: bf16[128,512], index: 1, kind: input, shape index: {}]   ;;  %s738_s0 = inlined_call_operand.vmem [shape: bf16[32,128], index: 0, kind: input, shape index: {}]   ;;  %s739_s2 = inlined_call_operand.vmem [shape: f32[1,512], index: 2, kind: input, shape index: {}]   ;;  %s740_s3 = inlined_call_operand.vmem [shape: f32[32,512], index: 3, kind: output, shape index: {}]  }
   0x1   :  { %v509_v0 = vld [vmem:[%s737_s1 + $0x4] ss:$16 sps:$4 sm:$0xff]   ;;  %291 = vmatprep.mubr.bf16.mxu0 %v559_v1  ;;  %344 = vmatprep.mubr.bf16.mxu1 %v559_v1  ;;  %v511_v2 = vld [vmem:[%s737_s1 + $0xc] ss:$16 sps:$4 sm:$0xff]   ;;  %v513_v3 = vld [vmem:[%s737_s1] ss:$16 sps:$4 sm:$0xff]  }
   0x2   :  { %259 = vmatprep.subr.bf16.mxu0 %v509_v0  ;;  %v514_v4 = vld [vmem:[%s737_s1 + $0x8] ss:$16 sps:$4 sm:$0xff]   ;;  %312 = vmatprep.subr.bf16.mxu1 %v511_v2  ;;  %v515_v5 = vld [vmem:[%s737_s1 + $0x24] ss:$16 sps:$4 sm:$0xff]   ;;  %v517_v6 = vld [vmem:[%s737_s1 + $0x2c] ss:$16 sps:$4 sm:$0xff]  }
   0x3   :  { %260 = vmatpush1.bf16.msra.mxu0 %v513_v3  ;;  %313 = vmatpush1.bf16.msra.mxu1 %v514_v4  ;;  %v519_v7 = vld [vmem:[%s737_s1 + $0x20] ss:$16 sps:$4 sm:$0xff]   ;;  %v520_v8 = vld [vmem:[%s737_s1 + $0x28] ss:$16 sps:$4 sm:$0xff]   ;;  %v521_v9 = vld [vmem:[%s737_s1 + $0x44] ss:$16 sps:$4 sm:$0xff]  }
   0x4   :  { %261 = vmatprep.subr.bf16.mxu0 %v515_v5  ;;  %314 = vmatprep.subr.bf16.mxu1 %v517_v6  ;;  %v523_v10 = vld [vmem:[%s737_s1 + $0x4c] ss:$16 sps:$4 sm:$0xff]   ;;  %v525_v11 = vld [vmem:[%s737_s1 + $0x40] ss:$16 sps:$4 sm:$0xff]   ;;  %v526_v12 = vld [vmem:[%s737_s1 + $0x48] ss:$16 sps:$4 sm:$0xff]  }
   0x5   :  { %v527_v13 = vld [vmem:[%s737_s1 + $0x64] ss:$16 sps:$4 sm:$0xff]   ;;  %v529_v14 = vld [vmem:[%s737_s1 + $0x6c] ss:$16 sps:$4 sm:$0xff]   ;;  %v531_v15 = vld [vmem:[%s737_s1 + $0x60] ss:$16 sps:$4 sm:$0xff]  }
   0x6   :  { %v532_v16 = vld [vmem:[%s737_s1 + $0x68] ss:$16 sps:$4 sm:$0xff]   ;;  %v533_v17 = vld [vmem:[%s737_s1 + $0x84] ss:$16 sps:$4 sm:$0xff]   ;;  %v535_v18 = vld [vmem:[%s737_s1 + $0x8c] ss:$16 sps:$4 sm:$0xff]  }
   0x7   :  { %262 = vmatpush1.bf16.msra.mxu0 %v519_v7  ;;  %315 = vmatpush1.bf16.msra.mxu1 %v520_v8  ;;  %v537_v19 = vld [vmem:[%s737_s1 + $0x80] ss:$16 sps:$4 sm:$0xff]   ;;  %v538_v20 = vld [vmem:[%s737_s1 + $0x88] ss:$16 sps:$4 sm:$0xff]   ;;  %v539_v21 = vld [vmem:[%s737_s1 + $0xa4] ss:$16 sps:$4 sm:$0xff]  }
   0x8   :  { %263 = vmatprep.subr.bf16.mxu0 %v521_v9  ;;  %316 = vmatprep.subr.bf16.mxu1 %v523_v10  ;;  %v541_v22 = vld [vmem:[%s737_s1 + $0xac] ss:$16 sps:$4 sm:$0xff]   ;;  %v543_v23 = vld [vmem:[%s737_s1 + $0xa0] ss:$16 sps:$4 sm:$0xff]   ;;  %v544_v24 = vld [vmem:[%s737_s1 + $0xa8] ss:$16 sps:$4 sm:$0xff]  }
   0x9   :  { %v545_v25 = vld [vmem:[%s737_s1 + $0xc4] ss:$16 sps:$4 sm:$0xff]   ;;  %v547_v26 = vld [vmem:[%s737_s1 + $0xcc] ss:$16 sps:$4 sm:$0xff]   ;;  %v549_v27 = vld [vmem:[%s737_s1 + $0xc0] ss:$16 sps:$4 sm:$0xff]  }
   0xa   :  { %v550_v28 = vld [vmem:[%s737_s1 + $0xc8] ss:$16 sps:$4 sm:$0xff]   ;;  %v551_v29 = vld [vmem:[%s737_s1 + $0xe4] ss:$16 sps:$4 sm:$0xff]   ;;  %v553_v30 = vld [vmem:[%s737_s1 + $0xec] ss:$16 sps:$4 sm:$0xff]  }
   0xb   :  { %264 = vmatpush1.bf16.msra.mxu0 %v525_v11  ;;  %317 = vmatpush1.bf16.msra.mxu1 %v526_v12  ;;  %v555_v31 = vld [vmem:[%s737_s1 + $0xe0] ss:$16 sps:$4 sm:$0xff]   ;;  %v556_v32 = vld [vmem:[%s737_s1 + $0xe8] ss:$16 sps:$4 sm:$0xff]   ;;  %v419_v36 = vshrl.u32 %v418_v35, 7 }
   0xc   :  { %265 = vmatprep.subr.bf16.mxu0 %v527_v13  ;;  %318 = vmatprep.subr.bf16.mxu1 %v529_v14  ;;  %v557_v33 = vld [vmem:[%s738_s0] sm:$0xff]   ;;  %v558_v34 = vld [vmem:[%s738_s0 + $0x8] sm:$0xff]  }
   0xd   :  { %v420_v37 = vsub.s32 0, %v419_v36  ;;  %v428_v38 = vsub.s32 2, %v419_v36  ;;  %v416_v39 = vld [vmem:[%s739_s2] sm:$0xf]  ;;  %v424_v40 = vsub.s32 1, %v419_v36  ;;  %v432_v41 = vsub.s32 3, %v419_v36 }
   0xf   :  { %266 = vmatpush1.bf16.msra.mxu0 %v531_v15  ;;  %319 = vmatpush1.bf16.msra.mxu1 %v532_v16  ;;  %v421_v42 = vrot.slane %v416_v39, %v420_v37  ;;  %v429_v43 = vrot.slane %v416_v39, %v428_v38  ;;  %v425_v44 = vrot.slane %v416_v39, %v424_v40 }
  0x10   :  { %267 = vmatprep.subr.bf16.mxu0 %v533_v17  ;;  %320 = vmatprep.subr.bf16.mxu1 %v535_v18  ;;  %v433_v45 = vrot.slane %v416_v39, %v432_v41 }
  0x13   :  { %268 = vmatpush1.bf16.msra.mxu0 %v537_v19  ;;  %321 = vmatpush1.bf16.msra.mxu1 %v538_v20 }
  0x14   :  { %269 = vmatprep.subr.bf16.mxu0 %v539_v21  ;;  %322 = vmatprep.subr.bf16.mxu1 %v541_v22 }
  0x17   :  { %270 = vmatpush1.bf16.msra.mxu0 %v543_v23  ;;  %323 = vmatpush1.bf16.msra.mxu1 %v544_v24 }
  0x18   :  { %271 = vmatprep.subr.bf16.mxu0 %v545_v25  ;;  %324 = vmatprep.subr.bf16.mxu1 %v547_v26 }
  0x1b   :  { %272 = vmatpush1.bf16.msra.mxu0 %v549_v27  ;;  %325 = vmatpush1.bf16.msra.mxu1 %v550_v28 }
  0x1c   :  { %273 = vmatprep.subr.bf16.mxu0 %v551_v29  ;;  %326 = vmatprep.subr.bf16.mxu1 %v553_v30 }
  0x1f   :  { %274 = vmatpush1.bf16.msra.mxu0 %v555_v31  ;;  %327 = vmatpush1.bf16.msra.mxu1 %v556_v32 }
  0x22   :  { %292 = vmatmul.mubr.bf16.vlgmr.msra.gmra.mrb[0].mxu0 %v557_v33  ;;  %345 = vmatmul.mubr.bf16.vlgmr.msra.gmra.mrb[0].mxu1 %v557_v33 }
  0x23   :  { %301 = vmatprep.mubr.bf16.mxu0 %v559_v1  ;;  %354 = vmatprep.mubr.bf16.mxu1 %v559_v1 }
  0x2a   :  { %302 = vmatmul.mubr.bf16.gmra.mrb[4].mxu0 %v558_v34  ;;  %355 = vmatmul.mubr.bf16.gmra.mrb[4].mxu1 %v558_v34 }
  0xf5   :  { %v293_v46 = vpop.f32.mrb[0].mxu0  ;;  %v346_v47 = vpop.f32.mrb[0].mxu1 }
  0xf6   :  { %v438_v48 = vadd.f32 %v421_v42, %v293_v46  ;;  %v440_v49 = vadd.f32 %v429_v43, %v346_v47  ;;  %v295_v50 = vpop.f32.mrb[1].mxu0  ;;  %v348_v51 = vpop.f32.mrb[1].mxu1 }
  0xf7   :  { %v439_v52 = vadd.f32 %v425_v44, %v295_v50  ;;  %v441_v53 = vadd.f32 %v433_v45, %v348_v51  ;;  %v297_v54 = vpop.f32.mrb[2].mxu0  ;;  %v350_v55 = vpop.f32.mrb[2].mxu1 }
  0xf8   :  { %454 = vst [vmem:[%s740_s3] sm:$0xff] %v438_v48  ;;  %456 = vst [vmem:[%s740_s3 + $0x10] sm:$0xff] %v440_v49  ;;  %v442_v56 = vadd.f32 %v421_v42, %v297_v54  ;;  %v444_v57 = vadd.f32 %v429_v43, %v350_v55  ;;  %v299_v58 = vpop.f32.mrb[3].mxu0  ;;  %v352_v59 = vpop.f32.mrb[3].mxu1 }
  0xf9   :  { %455 = vst [vmem:[%s740_s3 + $0x8] sm:$0xff] %v439_v52  ;;  %457 = vst [vmem:[%s740_s3 + $0x18] sm:$0xff] %v441_v53  ;;  %v443_v60 = vadd.f32 %v425_v44, %v299_v58  ;;  %v445_v61 = vadd.f32 %v433_v45, %v352_v59 }
  0xfa   :  { %458 = vst [vmem:[%s740_s3 + $0x20] sm:$0xff] %v442_v56  ;;  %460 = vst [vmem:[%s740_s3 + $0x30] sm:$0xff] %v444_v57 }
  0xfb   :  { %459 = vst [vmem:[%s740_s3 + $0x28] sm:$0xff] %v443_v60  ;;  %461 = vst [vmem:[%s740_s3 + $0x38] sm:$0xff] %v445_v61 }
  0xfd   :  { %v303_v62 = vpop.f32.mrb[4].mxu0  ;;  %v356_v63 = vpop.f32.mrb[4].mxu1 }
  0xfe   :  { %v446_v0 = vadd.f32 %v421_v42, %v303_v62  ;;  %v448_v1 = vadd.f32 %v429_v43, %v356_v63  ;;  %v305_v2 = vpop.f32.mrb[5].mxu0  ;;  %v358_v3 = vpop.f32.mrb[5].mxu1 }
  0xff   :  { %v447_v4 = vadd.f32 %v425_v44, %v305_v2  ;;  %v449_v5 = vadd.f32 %v433_v45, %v358_v3  ;;  %v307_v6 = vpop.f32.mrb[6].mxu0  ;;  %v360_v7 = vpop.f32.mrb[6].mxu1 }
 0x100   :  { %462 = vst [vmem:[%s740_s3 + $0x40] sm:$0xff] %v446_v0  ;;  %464 = vst [vmem:[%s740_s3 + $0x50] sm:$0xff] %v448_v1  ;;  %v450_v8 = vadd.f32 %v421_v42, %v307_v6  ;;  %v452_v9 = vadd.f32 %v429_v43, %v360_v7  ;;  %v309_v10 = vpop.f32.mrb[7].mxu0  ;;  %v362_v11 = vpop.f32.mrb[7].mxu1 }
 0x101   :  { %463 = vst [vmem:[%s740_s3 + $0x48] sm:$0xff] %v447_v4  ;;  %465 = vst [vmem:[%s740_s3 + $0x58] sm:$0xff] %v449_v5  ;;  %v451_v12 = vadd.f32 %v425_v44, %v309_v10  ;;  %v453_v13 = vadd.f32 %v433_v45, %v362_v11 }
 0x102   :  { %466 = vst [vmem:[%s740_s3 + $0x60] sm:$0xff] %v450_v8  ;;  %468 = vst [vmem:[%s740_s3 + $0x70] sm:$0xff] %v452_v9 }
 0x103   :  { %467 = vst [vmem:[%s740_s3 + $0x68] sm:$0xff] %v451_v12  ;;  %469 = vst [vmem:[%s740_s3 + $0x78] sm:$0xff] %v453_v13 }

// kernel: sam_forward.67
= control target key start
LH: loop header
LB: loop body
LE: loop exit
PB: predicated region body
PF: predicated region fallthrough
CT: control target
= control target key end

     0   :  { %s787_s1 = inlined_call_operand.vmem [shape: bf16[512,128], index: 1, kind: input, shape index: {}]   ;;  %s788_s0 = inlined_call_operand.vmem [shape: bf16[32,512], index: 0, kind: input, shape index: {}]   ;;  %s789_s2 = inlined_call_operand.vmem [shape: f32[1,128], index: 2, kind: input, shape index: {}]   ;;  %s790_s3 = inlined_call_operand.vmem [shape: f32[32,128], index: 3, kind: input, shape index: {}]   ;;  %s791_s4 = inlined_call_operand.vmem [shape: f32[32,128], index: 4, kind: output, shape index: {}]  }
   0x1   :  { %v571_v0 = vld [vmem:[%s787_s1 + $0x40] sm:$0xff]   ;;  %v575_v4 = vld [vmem:[%s787_s1 + $0x48] sm:$0xff]   ;;  %v579_v8 = vld [vmem:[%s787_s1 + $0x50] sm:$0xff]  }
   0x2   :  { %v572_v1 = vld [vmem:[%s787_s1 + $0xc0] sm:$0xff]   ;;  %515 = vmatprep.subr.bf16.mxu0 %v571_v0  ;;  %v576_v5 = vld [vmem:[%s787_s1 + $0xc8] sm:$0xff]   ;;  %v580_v9 = vld [vmem:[%s787_s1 + $0xd0] sm:$0xff]  }
   0x3   :  { %v573_v2 = vld [vmem:[%s787_s1] sm:$0xff]   ;;  %543 = vmatprep.subr.bf16.mxu1 %v572_v1  ;;  %v577_v6 = vld [vmem:[%s787_s1 + $0x8] sm:$0xff]   ;;  %v581_v10 = vld [vmem:[%s787_s1 + $0x10] sm:$0xff]  }
   0x4   :  { %v574_v3 = vld [vmem:[%s787_s1 + $0x80] sm:$0xff]   ;;  %516 = vmatpush3.bf16.msra.mxu0 %v573_v2  ;;  %v578_v7 = vld [vmem:[%s787_s1 + $0x88] sm:$0xff]   ;;  %v582_v11 = vld [vmem:[%s787_s1 + $0x90] sm:$0xff]  }
   0x5   :  { %544 = vmatpush3.bf16.msra.mxu1 %v574_v3  ;;  %517 = vmatprep.subr.bf16.mxu0 %v575_v4  ;;  %v583_v12 = vld [vmem:[%s787_s1 + $0x58] sm:$0xff]   ;;  %v587_v16 = vld [vmem:[%s787_s1 + $0x60] sm:$0xff]   ;;  %v591_v20 = vld [vmem:[%s787_s1 + $0x68] sm:$0xff]  }
   0x6   :  { %545 = vmatprep.subr.bf16.mxu1 %v576_v5  ;;  %v584_v13 = vld [vmem:[%s787_s1 + $0xd8] sm:$0xff]   ;;  %v588_v17 = vld [vmem:[%s787_s1 + $0xe0] sm:$0xff]   ;;  %v592_v21 = vld [vmem:[%s787_s1 + $0xe8] sm:$0xff]  }
   0x7   :  { %v585_v14 = vld [vmem:[%s787_s1 + $0x18] sm:$0xff]   ;;  %v589_v18 = vld [vmem:[%s787_s1 + $0x20] sm:$0xff]   ;;  %v593_v22 = vld [vmem:[%s787_s1 + $0x28] sm:$0xff]  }
   0x8   :  { %518 = vmatpush3.bf16.msra.mxu0 %v577_v6  ;;  %v586_v15 = vld [vmem:[%s787_s1 + $0x98] sm:$0xff]   ;;  %v590_v19 = vld [vmem:[%s787_s1 + $0xa0] sm:$0xff]   ;;  %v594_v23 = vld [vmem:[%s787_s1 + $0xa8] sm:$0xff]  }
   0x9   :  { %546 = vmatpush3.bf16.msra.mxu1 %v578_v7  ;;  %519 = vmatprep.subr.bf16.mxu0 %v579_v8  ;;  %v595_v24 = vld [vmem:[%s787_s1 + $0x70] sm:$0xff]   ;;  %v599_v28 = vld [vmem:[%s787_s1 + $0x78] sm:$0xff]   ;;  %v514_v49 = vld [vmem:[%s789_s2] ss:$0 sm:$0xff] }
   0xa   :  { %547 = vmatprep.subr.bf16.mxu1 %v580_v9  ;;  %v596_v25 = vld [vmem:[%s787_s1 + $0xf0] sm:$0xff]   ;;  %v600_v29 = vld [vmem:[%s787_s1 + $0xf8] sm:$0xff]   ;;  %v458_v54 = vld [vmem:[%s790_s3] sm:$0xff] }
   0xb   :  { %v597_v26 = vld [vmem:[%s787_s1 + $0x30] sm:$0xff]   ;;  %v601_v30 = vld [vmem:[%s787_s1 + $0x38] sm:$0xff]   ;;  %v459_v57 = vld [vmem:[%s790_s3 + $0x8] sm:$0xff] }
   0xc   :  { %520 = vmatpush3.bf16.msra.mxu0 %v581_v10  ;;  %v598_v27 = vld [vmem:[%s787_s1 + $0xb0] sm:$0xff]   ;;  %v602_v31 = vld [vmem:[%s787_s1 + $0xb8] sm:$0xff]  }
   0xd   :  { %548 = vmatpush3.bf16.msra.mxu1 %v582_v11  ;;  %521 = vmatprep.subr.bf16.mxu0 %v583_v12  ;;  %v603_v32 = vld [vmem:[%s788_s0] ss:$16 sps:$4 sm:$0xff]   ;;  %v605_v33 = vld [vmem:[%s788_s0 + $0x4] ss:$16 sps:$4 sm:$0xff]   ;;  %v606_v34 = vld [vmem:[%s788_s0 + $0x8] ss:$16 sps:$4 sm:$0xff]  }
   0xe   :  { %549 = vmatprep.subr.bf16.mxu1 %v584_v13  ;;  %v608_v35 = vld [vmem:[%s788_s0 + $0xc] ss:$16 sps:$4 sm:$0xff]   ;;  %366 = vmatprep.mubr.bf16.mxu0 %v605_v33  ;;  %v609_v36 = vld [vmem:[%s788_s0 + $0x24] ss:$16 sps:$4 sm:$0xff]   ;;  %v613_v38 = vld [vmem:[%s788_s0 + $0x20] ss:$16 sps:$4 sm:$0xff]  }
   0xf   :  { %415 = vmatprep.mubr.bf16.mxu1 %v608_v35  ;;  %v611_v37 = vld [vmem:[%s788_s0 + $0x2c] ss:$16 sps:$4 sm:$0xff]   ;;  %v614_v39 = vld [vmem:[%s788_s0 + $0x28] ss:$16 sps:$4 sm:$0xff]   ;;  %v460_v10 = vld [vmem:[%s790_s3 + $0x10] sm:$0xff] }
  0x10   :  { %522 = vmatpush3.bf16.msra.mxu0 %v585_v14  ;;  %v461_v13 = vld [vmem:[%s790_s3 + $0x18] sm:$0xff] }
  0x11   :  { %550 = vmatpush3.bf16.msra.mxu1 %v586_v15  ;;  %523 = vmatprep.subr.bf16.mxu0 %v587_v16 }
  0x12   :  { %551 = vmatprep.subr.bf16.mxu1 %v588_v17 }
  0x14   :  { %524 = vmatpush3.bf16.msra.mxu0 %v589_v18 }
  0x15   :  { %552 = vmatpush3.bf16.msra.mxu1 %v590_v19  ;;  %525 = vmatprep.subr.bf16.mxu0 %v591_v20 }
  0x16   :  { %553 = vmatprep.subr.bf16.mxu1 %v592_v21 }
  0x18   :  { %526 = vmatpush3.bf16.msra.mxu0 %v593_v22 }
  0x19   :  { %554 = vmatpush3.bf16.msra.mxu1 %v594_v23  ;;  %527 = vmatprep.subr.bf16.mxu0 %v595_v24 }
  0x1a   :  { %555 = vmatprep.subr.bf16.mxu1 %v596_v25 }
  0x1c   :  { %528 = vmatpush3.bf16.msra.mxu0 %v597_v26 }
  0x1d   :  { %556 = vmatpush3.bf16.msra.mxu1 %v598_v27  ;;  %529 = vmatprep.subr.bf16.mxu0 %v599_v28 }
  0x1e   :  { %557 = vmatprep.subr.bf16.mxu1 %v600_v29 }
  0x20   :  { %530 = vmatpush3.bf16.msra.mxu0 %v601_v30 }
  0x21   :  { %558 = vmatpush3.bf16.msra.mxu1 %v602_v31 }
  0x23   :  { %367 = vmatmul.mubr.bf16.vlgmr.msra.gmra.mrb[0].mxu0 %v603_v32 }
  0x24   :  { %416 = vmatmul.mubr.bf16.vlgmr.msra.gmra.mrb[0].mxu1 %v606_v34  ;;  %374 = vmatprep.mubr.bf16.mxu0 %v609_v36 }
  0x25   :  { %423 = vmatprep.mubr.bf16.mxu1 %v611_v37 }
  0x2b   :  { %375 = vmatmul.mubr.bf16.gmra.mrb[4].mxu0 %v613_v38 }
  0x2c   :  { %424 = vmatmul.mubr.bf16.gmra.mrb[4].mxu1 %v614_v39 }
  0xf6   :  { %v531_v40 = vpop.f32.mrb[0].mxu0 }
  0xf7   :  { %v559_v41 = vpop.f32.mrb[0].mxu1  ;;  %v532_v42 = vpop.f32.mrb[1].mxu0 }
  0xf8   :  { %v533_v43 = vadd.f32 %v532_v42, %v531_v40  ;;  %v560_v44 = vpop.f32.mrb[1].mxu1  ;;  %v534_v45 = vpop.f32.mrb[2].mxu0 }
  0xf9   :  { %v561_v46 = vadd.f32 %v560_v44, %v559_v41  ;;  %v562_v47 = vpop.f32.mrb[2].mxu1  ;;  %v535_v48 = vpop.f32.mrb[3].mxu0 }
  0xfa   :  { %v536_v50 = vadd.f32 %v535_v48, %v534_v45  ;;  %v563_v51 = vpop.f32.mrb[3].mxu1 }
  0xfb   :  { %v418_v52 = vadd.f32 %v561_v46, %v533_v43  ;;  %v564_v53 = vadd.f32 %v563_v51, %v562_v47 }
  0xfd   :  { %v454_v55 = vadd.f32 %v514_v49, %v418_v52  ;;  %v421_v56 = vadd.f32 %v564_v53, %v536_v50 }
  0xfe   :  { %v537_v58 = vpop.f32.mrb[4].mxu0 }
  0xff   :  { %v462_v59 = vadd.f32 %v458_v54, %v454_v55  ;;  %v455_v60 = vadd.f32 %v514_v49, %v421_v56  ;;  %v565_v61 = vpop.f32.mrb[4].mxu1  ;;  %v538_v62 = vpop.f32.mrb[5].mxu0 }
 0x100   :  { %v539_v63 = vadd.f32 %v538_v62, %v537_v58  ;;  %v566_v0 = vpop.f32.mrb[5].mxu1  ;;  %v540_v1 = vpop.f32.mrb[6].mxu0 }
 0x101   :  { %466 = vst [vmem:[%s791_s4] sm:$0xff] %v462_v59  ;;  %v463_v2 = vadd.f32 %v459_v57, %v455_v60  ;;  %v567_v3 = vadd.f32 %v566_v0, %v565_v61  ;;  %v568_v4 = vpop.f32.mrb[6].mxu1  ;;  %v541_v5 = vpop.f32.mrb[7].mxu0 }
 0x102   :  { %v542_v6 = vadd.f32 %v541_v5, %v540_v1  ;;  %v569_v7 = vpop.f32.mrb[7].mxu1 }
 0x103   :  { %467 = vst [vmem:[%s791_s4 + $0x8] sm:$0xff] %v463_v2  ;;  %v426_v8 = vadd.f32 %v567_v3, %v539_v63  ;;  %v570_v9 = vadd.f32 %v569_v7, %v568_v4 }
 0x105   :  { %v456_v11 = vadd.f32 %v514_v49, %v426_v8  ;;  %v429_v12 = vadd.f32 %v570_v9, %v542_v6 }
 0x107   :  { %v464_v14 = vadd.f32 %v460_v10, %v456_v11  ;;  %v457_v15 = vadd.f32 %v514_v49, %v429_v12 }
 0x109   :  { %468 = vst [vmem:[%s791_s4 + $0x10] sm:$0xff] %v464_v14  ;;  %v465_v16 = vadd.f32 %v461_v13, %v457_v15 }
 0x10b   :  { %469 = vst [vmem:[%s791_s4 + $0x18] sm:$0xff] %v465_v16 }

// kernel: sam_forward.76
= control target key start
LH: loop header
LB: loop body
LE: loop exit
PB: predicated region body
PF: predicated region fallthrough
CT: control target
= control target key end

     0   :  { %s306_s1 = inlined_call_operand.vmem [shape: bf16[128,128], index: 1, kind: input, shape index: {}]   ;;  %s307_s0 = inlined_call_operand.vmem [shape: bf16[32,128], index: 0, kind: input, shape index: {}]   ;;  %s308_s2 = inlined_call_operand.vmem [shape: f32[1,128], index: 2, kind: input, shape index: {}]   ;;  %s309_s3 = inlined_call_operand.vmem [shape: f32[32,128], index: 3, kind: output, shape index: {}]  }
   0x1   :  { %v231_v0 = vld [vmem:[%s306_s1] sm:$0xff]   ;;  %v232_v1 = vld [vmem:[%s306_s1 + $0x8] sm:$0xff]   ;;  %v233_v2 = vld [vmem:[%s306_s1 + $0x10] sm:$0xff]  }
   0x2   :  { %211 = vmatprep.subr.bf16.mxu0 %v231_v0  ;;  %v234_v3 = vld [vmem:[%s306_s1 + $0x18] sm:$0xff]   ;;  %v239_v4 = vld [vmem:[%s307_s0] sm:$0xff]   ;;  %v236_v6 = vld [vmem:[%s306_s1 + $0x28] sm:$0xff]  }
   0x3   :  { %212 = vmatpush3.bf16.msra.mxu0 %v231_v0  ;;  %227 = vmatprep.mubr.bf16.mxu0 %v239_v4  ;;  %v235_v5 = vld [vmem:[%s306_s1 + $0x20] sm:$0xff]   ;;  %v237_v7 = vld [vmem:[%s306_s1 + $0x30] sm:$0xff]   ;;  %v238_v8 = vld [vmem:[%s306_s1 + $0x38] sm:$0xff]  }
   0x4   :  { %213 = vmatprep.subr.bf16.mxu0 %v232_v1  ;;  %v240_v9 = vld [vmem:[%s307_s0 + $0x8] sm:$0xff]   ;;  %v200_v10 = vld [vmem:[%s308_s2] ss:$0 sm:$0xff] }
   0x7   :  { %214 = vmatpush3.bf16.msra.mxu0 %v232_v1 }
   0x8   :  { %215 = vmatprep.subr.bf16.mxu0 %v233_v2 }
   0xb   :  { %216 = vmatpush3.bf16.msra.mxu0 %v233_v2 }
   0xc   :  { %217 = vmatprep.subr.bf16.mxu0 %v234_v3 }
   0xf   :  { %218 = vmatpush3.bf16.msra.mxu0 %v234_v3 }
  0x10   :  { %219 = vmatprep.subr.bf16.mxu0 %v235_v5 }
  0x13   :  { %220 = vmatpush3.bf16.msra.mxu0 %v235_v5 }
  0x14   :  { %221 = vmatprep.subr.bf16.mxu0 %v236_v6 }
  0x17   :  { %222 = vmatpush3.bf16.msra.mxu0 %v236_v6 }
  0x18   :  { %223 = vmatprep.subr.bf16.mxu0 %v237_v7 }
  0x1b   :  { %224 = vmatpush3.bf16.msra.mxu0 %v237_v7 }
  0x1c   :  { %225 = vmatprep.subr.bf16.mxu0 %v238_v8 }
  0x1f   :  { %226 = vmatpush3.bf16.msra.mxu0 %v238_v8 }
  0x22   :  { %228 = vmatmul.mubr.bf16.vlgmr.msra.gmra.mrb[0].mxu0 %v240_v9 }
  0xf5   :  { %v229_v11 = vpop.f32.mrb[0].mxu0 }
  0xf6   :  { %v180_v12 = vadd.f32 %v229_v11, %v200_v10  ;;  %v141_v13 = vpop.f32.mrb[1].mxu0 }
  0xf7   :  { %v178_v14 = vadd.f32 %v200_v10, %v141_v13  ;;  %v230_v15 = vpop.f32.mrb[2].mxu0 }
  0xf8   :  { %184 = vst [vmem:[%s309_s3 + $0x10] sm:$0xff] %v180_v12  ;;  %v181_v16 = vadd.f32 %v230_v15, %v200_v10  ;;  %v144_v17 = vpop.f32.mrb[3].mxu0 }
  0xf9   :  { %182 = vst [vmem:[%s309_s3] sm:$0xff] %v178_v14  ;;  %v179_v18 = vadd.f32 %v200_v10, %v144_v17 }
  0xfa   :  { %185 = vst [vmem:[%s309_s3 + $0x18] sm:$0xff] %v181_v16 }
  0xfb   :  { %183 = vst [vmem:[%s309_s3 + $0x8] sm:$0xff] %v179_v18 }

// kernel: sam_forward.78
= control target key start
LH: loop header
LB: loop body
LE: loop exit
PB: predicated region body
PF: predicated region fallthrough
CT: control target
= control target key end

     0   :  { %v193_v0 = vmov 0.0   ;;  %vm194_vm0 = vmmov 0   ;;  %s248_s1 = inlined_call_operand.vmem [shape: bf16[128,128], index: 1, kind: input, shape index: {}]   ;;  %s249_s0 = inlined_call_operand.vmem [shape: bf16[8,128], index: 0, kind: input, shape index: {}]   ;;  %s250_s2 = inlined_call_operand.vmem [shape: f32[1,128], index: 2, kind: input, shape index: {}]   ;;  %s251_s3 = inlined_call_operand.vmem [shape: f32[8,128], index: 3, kind: output, shape index: {}]  }
   0x1   :  { %163 = vmatprep.subr.bf16.mxu0 %v193_v0  ;;  %v185_v1 = vld [vmem:[%s248_s1] sm:$0xff]   ;;  %179 = vmatprep.mubr.msk.bf16.mxu0 %vm194_vm0, %v193_v0  ;;  %v186_v2 = vld [vmem:[%s248_s1 + $0x8] sm:$0xff]   ;;  %v187_v3 = vld [vmem:[%s248_s1 + $0x10] sm:$0xff]  }
   0x2   :  { %164 = vmatpush3.bf16.msra.mxu0 %v185_v1  ;;  %v188_v4 = vld [vmem:[%s248_s1 + $0x18] sm:$0xff]   ;;  %v189_v5 = vld [vmem:[%s248_s1 + $0x20] sm:$0xff]   ;;  %v190_v6 = vld [vmem:[%s248_s1 + $0x28] sm:$0xff]  }
   0x3   :  { %165 = vmatprep.subr.bf16.mxu0 %v193_v0  ;;  %v191_v7 = vld [vmem:[%s248_s1 + $0x30] sm:$0xff]   ;;  %v192_v8 = vld [vmem:[%s248_s1 + $0x38] sm:$0xff]   ;;  %v21_v9 = vld [vmem:[%s249_s0] sm:$0xf] }
   0x4   :  { %v153_v10 = vld [vmem:[%s250_s2] ss:$0 sm:$0xff] }
   0x6   :  { %166 = vmatpush3.bf16.msra.mxu0 %v186_v2 }
   0x7   :  { %167 = vmatprep.subr.bf16.mxu0 %v193_v0 }
   0xa   :  { %168 = vmatpush3.bf16.msra.mxu0 %v187_v3 }
   0xb   :  { %169 = vmatprep.subr.bf16.mxu0 %v193_v0 }
   0xe   :  { %170 = vmatpush3.bf16.msra.mxu0 %v188_v4 }
   0xf   :  { %171 = vmatprep.subr.bf16.mxu0 %v193_v0 }
  0x12   :  { %172 = vmatpush3.bf16.msra.mxu0 %v189_v5 }
  0x13   :  { %173 = vmatprep.subr.bf16.mxu0 %v193_v0 }
  0x16   :  { %174 = vmatpush3.bf16.msra.mxu0 %v190_v6 }
  0x17   :  { %175 = vmatprep.subr.bf16.mxu0 %v193_v0 }
  0x1a   :  { %176 = vmatpush3.bf16.msra.mxu0 %v191_v7 }
  0x1b   :  { %177 = vmatprep.subr.bf16.mxu0 %v193_v0 }
  0x1e   :  { %178 = vmatpush3.bf16.msra.mxu0 %v192_v8 }
  0x21   :  { %180 = vmatmul.mubr.bf16.vlgmr.msra.gmra.mrb[0].mxu0 %v21_v9 }
  0xf4   :  { %v120_v11 = vpop.f32.mrb[0].mxu0 }
  0xf5   :  { %v139_v12 = vadd.f32 %v153_v10, %v120_v11  ;;  %v181_v13 = vpop.f32.mrb[1].mxu0 }
  0xf6   :  { %v123_v14 = vpop.f32.mrb[2].mxu0 }
  0xf7   :  { %140 = vst [vmem:[%s251_s3] sm:$0xff] %v139_v12  ;;  %v182_v15 = vpop.f32.mrb[3].mxu0 }

// kernel: sam_forward.79
= control target key start
LH: loop header
LB: loop body
LE: loop exit
PB: predicated region body
PF: predicated region fallthrough
CT: control target
= control target key end

     0   :  { %s121_s0 = inlined_call_operand.vmem [shape: f32[16,128], index: 0, kind: input, shape index: {}]   ;;  %s122_s1 = inlined_call_operand.vmem [shape: f32[1,128], index: 1, kind: input, shape index: {}]   ;;  %s123_s2 = inlined_call_operand.vmem [shape: f32[1,128], index: 2, kind: input, shape index: {}]   ;;  %s124_s3 = inlined_call_operand.vmem [shape: bf16[16,128], index: 3, kind: output, shape index: {}]  }
   0x1   :  { %v14_v0 = vld [vmem:[%s121_s0] sm:$0xff]  ;;  %v15_v1 = vld [vmem:[%s121_s0 + $0x8] sm:$0xff] }
   0x2   :  { %16 = vadd.xlane.f32.xlu0 %v14_v0  ;;  %v71_v18 = vld [vmem:[%s122_s1] ss:$0 sm:$0xff] }
   0x3   :  { %v72_v22 = vld [vmem:[%s123_s2] ss:$0 sm:$0xff] }
   0x6   :  { %18 = vadd.xlane.f32.xlu0 %v15_v1 }
  0x8f   :  { %v17_v2 = vpop.xlane.xlu0 %16 }
  0x90   :  { %v21_v3 = vmul.f32 0.0078125, %v17_v2 }
  0x92   :  { %v23_v4 = vsub.f32 %v14_v0, %v21_v3 }
  0x93   :  { %v19_v5 = vpop.xlane.xlu0 %18 }
  0x94   :  { %v22_v6 = vmul.f32 0.0078125, %v19_v5  ;;  %v25_v7 = vmul.f32 %v23_v4, %v23_v4 }
  0x96   :  { %v24_v8 = vsub.f32 %v15_v1, %v22_v6  ;;  %27 = vadd.xlane.f32.xlu1 %v25_v7 }
  0x98   :  { %v26_v9 = vmul.f32 %v24_v8, %v24_v8 }
  0x9a   :  { %29 = vadd.xlane.f32.xlu1 %v26_v9 }
 0x123   :  { %v28_v10 = vpop.xlane.xlu1 %27 }
 0x124   :  { %v31_v11 = vmul.f32 0.0078125, %v28_v10 }
 0x126   :  { %v33_v12 = vadd.f32 1e-05, %v31_v11 }
 0x127   :  { %v30_v13 = vpop.xlane.xlu1 %29 }
 0x128   :  { %82 = vrsqrt.f32 %v33_v12  ;;  %v32_v14 = vmul.f32 0.0078125, %v30_v13 }
 0x12a   :  { %v34_v15 = vadd.f32 1e-05, %v32_v14 }
 0x12c   :  { %84 = vrsqrt.f32 %v34_v15 }
 0x132   :  { %v83_v16 = vpop.eup %82 }
 0x133   :  { %v37_v17 = vmul.f32 %v83_v16, %v23_v4 }
 0x135   :  { %v46_v20 = vmul.f32 %v71_v18, %v37_v17 }
 0x136   :  { %v85_v19 = vpop.eup %84 }
 0x137   :  { %v38_v21 = vmul.f32 %v85_v19, %v24_v8  ;;  %v55_v24 = vadd.f32 %v72_v22, %v46_v20 }
 0x139   :  { %v47_v23 = vmul.f32 %v71_v18, %v38_v21 }
 0x13b   :  { %v56_v25 = vadd.f32 %v72_v22, %v47_v23 }
 0x13d   :  { %v80_v26 = vpack.c.bf16 %v56_v25, %v55_v24 }
 0x13f   :  { %81 = vst [vmem:[%s124_s3] sm:$0xff] %v80_v26  }

// kernel: sam_forward.81
= control target key start
LH: loop header
LB: loop body
LE: loop exit
PB: predicated region body
PF: predicated region fallthrough
CT: control target
= control target key end

     0   :  { %v270_v1 = vmov 0   ;;  %v191_v18 = vlaneseq  ;;  %s351_s1 = inlined_call_operand.vmem [shape: bf16[128,256], index: 1, kind: input, shape index: {}]   ;;  %s352_s0 = inlined_call_operand.vmem [shape: bf16[16,128], index: 0, kind: input, shape index: {}]   ;;  %s353_s2 = inlined_call_operand.vmem [shape: f32[1,256], index: 2, kind: input, shape index: {}]   ;;  %s354_s3 = inlined_call_operand.vmem [shape: bf16[16,256], index: 3, kind: output, shape index: {}]  }
   0x1   :  { %v245_v0 = vld [vmem:[%s351_s1 + $0x4] ss:$8 sps:$4 sm:$0xff]   ;;  %163 = vmatprep.mubr.bf16.mxu0 %v270_v1  ;;  %v247_v2 = vld [vmem:[%s351_s1] ss:$8 sps:$4 sm:$0xff]   ;;  %v248_v3 = vld [vmem:[%s351_s1 + $0x14] ss:$8 sps:$4 sm:$0xff]  }
   0x2   :  { %131 = vmatprep.subr.bf16.mxu0 %v245_v0  ;;  %v250_v4 = vld [vmem:[%s351_s1 + $0x10] ss:$8 sps:$4 sm:$0xff]   ;;  %v251_v5 = vld [vmem:[%s351_s1 + $0x24] ss:$8 sps:$4 sm:$0xff]   ;;  %v253_v6 = vld [vmem:[%s351_s1 + $0x20] ss:$8 sps:$4 sm:$0xff]  }
   0x3   :  { %132 = vmatpush1.bf16.msra.mxu0 %v247_v2  ;;  %v254_v7 = vld [vmem:[%s351_s1 + $0x34] ss:$8 sps:$4 sm:$0xff]   ;;  %v256_v8 = vld [vmem:[%s351_s1 + $0x30] ss:$8 sps:$4 sm:$0xff]   ;;  %v257_v9 = vld [vmem:[%s351_s1 + $0x44] ss:$8 sps:$4 sm:$0xff]  }
   0x4   :  { %133 = vmatprep.subr.bf16.mxu0 %v248_v3  ;;  %v259_v10 = vld [vmem:[%s351_s1 + $0x40] ss:$8 sps:$4 sm:$0xff]   ;;  %v260_v11 = vld [vmem:[%s351_s1 + $0x54] ss:$8 sps:$4 sm:$0xff]   ;;  %v262_v12 = vld [vmem:[%s351_s1 + $0x50] ss:$8 sps:$4 sm:$0xff]  }
   0x5   :  { %v263_v13 = vld [vmem:[%s351_s1 + $0x64] ss:$8 sps:$4 sm:$0xff]   ;;  %v265_v14 = vld [vmem:[%s351_s1 + $0x60] ss:$8 sps:$4 sm:$0xff]   ;;  %v266_v15 = vld [vmem:[%s351_s1 + $0x74] ss:$8 sps:$4 sm:$0xff]  }
   0x6   :  { %v268_v16 = vld [vmem:[%s351_s1 + $0x70] ss:$8 sps:$4 sm:$0xff]   ;;  %v269_v17 = vld [vmem:[%s352_s0] sm:$0xff]   ;;  %v192_v19 = vshrl.u32 %v191_v18, 7 }
   0x7   :  { %134 = vmatpush1.bf16.msra.mxu0 %v250_v4  ;;  %v189_v21 = vld [vmem:[%s353_s2] sm:$0x3] }
   0x8   :  { %135 = vmatprep.subr.bf16.mxu0 %v251_v5  ;;  %v193_v20 = vsub.s32 0, %v192_v19  ;;  %v197_v22 = vsub.s32 1, %v192_v19 }
   0xa   :  { %v194_v23 = vrot.slane %v189_v21, %v193_v20  ;;  %v198_v24 = vrot.slane %v189_v21, %v197_v22 }
   0xb   :  { %136 = vmatpush1.bf16.msra.mxu0 %v253_v6 }
   0xc   :  { %137 = vmatprep.subr.bf16.mxu0 %v254_v7 }
   0xf   :  { %138 = vmatpush1.bf16.msra.mxu0 %v256_v8 }
  0x10   :  { %139 = vmatprep.subr.bf16.mxu0 %v257_v9 }
  0x13   :  { %140 = vmatpush1.bf16.msra.mxu0 %v259_v10 }
  0x14   :  { %141 = vmatprep.subr.bf16.mxu0 %v260_v11 }
  0x17   :  { %142 = vmatpush1.bf16.msra.mxu0 %v262_v12 }
  0x18   :  { %143 = vmatprep.subr.bf16.mxu0 %v263_v13 }
  0x1b   :  { %144 = vmatpush1.bf16.msra.mxu0 %v265_v14 }
  0x1c   :  { %145 = vmatprep.subr.bf16.mxu0 %v266_v15 }
  0x1f   :  { %146 = vmatpush1.bf16.msra.mxu0 %v268_v16 }
  0x22   :  { %164 = vmatmul.mubr.bf16.vlgmr.msra.gmra.mrb[0].mxu0 %v269_v17 }
  0xf5   :  { %v165_v25 = vpop.f32.mrb[0].mxu0 }
  0xf6   :  { %v201_v26 = vadd.f32 %v194_v23, %v165_v25  ;;  %v167_v27 = vpop.f32.mrb[1].mxu0 }
  0xf7   :  { %v202_v28 = vadd.f32 %v198_v24, %v167_v27  ;;  %v169_v29 = vpop.f32.mrb[2].mxu0 }
  0xf8   :  { %v203_v30 = vadd.f32 %v194_v23, %v169_v29  ;;  %v171_v31 = vpop.f32.mrb[3].mxu0 }
  0xf9   :  { %v242_v32 = vpack.c.bf16 %v202_v28, %v201_v26  ;;  %v204_v33 = vadd.f32 %v198_v24, %v171_v31 }
  0xfb   :  { %217 = vst [vmem:[%s354_s3] sm:$0xff] %v242_v32  ;;  %v243_v34 = vpack.c.bf16 %v204_v33, %v203_v30 }
  0xfd   :  { %218 = vst [vmem:[%s354_s3 + $0x8] sm:$0xff] %v243_v34 }

// kernel: sam_forward.77
= control target key start
LH: loop header
LB: loop body
LE: loop exit
PB: predicated region body
PF: predicated region fallthrough
CT: control target
= control target key end

     0   :  { %s2816_s9 = smov 0   ;;  %s3764_s0 = inlined_call_operand.vmem [shape: bf16[2,6,768], index: 0, kind: input, shape index: {}]   ;;  %s3765_s1 = inlined_call_operand.vmem [shape: bf16[3,384,128], index: 1, kind: input, shape index: {}]   ;;  %s3766_s2 = inlined_call_operand.vmem [shape: f32[2,4,512], index: 2, kind: output, shape index: {}]  }
   0x1 LB: > { %s1836_s10 = sadd.s32 4294967295, %s2797_s9   ;;  %p1840_p0 = scmp.ge.s32.totalorder %s2797_s9, 1  ;;  %s2797_s9 = sphi %s2816_s9, %s12_s9  }
   0x2   : > { %p112_p1 = scmp.lt.s32.totalorder %s2797_s9, 3 }
   0x4   : > { %p113_p2 = pnand %p1840_p0, %p112_p1 }
   0x6   : > { %116 = sbr.rel (%p113_p2) target bundleno = 621 (0x26d), region = 28 }
   0xd   : > { %v2827_v0 = vld [vmem:[%s3765_s1 + $0x100] sm:$0xff]   ;;  %v3813_v1 = vmov 0.0   ;;  %v2845_v4 = vld [vmem:[%s3765_s1 + $0x108] sm:$0xff]   ;;  %vm2800_vm0 = vmmov 0   ;;  %v2865_v7 = vld [vmem:[%s3765_s1 + $0x110] sm:$0xff]   ;;  %p134_p3 = scmp.lt.s32.totalorder %s1836_s10, 1 }
   0xe   : > { %2393 = vmatprep.subr.bf16.mxu1 %v3813_v1  ;;  %v2833_v2 = vld [vmem:[%s3765_s1 + $0x140] sm:$0xff]   ;;  %2021 = vmatprep.subr.bf16.mxu0 %v2827_v0  ;;  %v2854_v5 = vld [vmem:[%s3765_s1 + $0x148] sm:$0xff]   ;;  %v2871_v8 = vld [vmem:[%s3765_s1 + $0x150] sm:$0xff]  }
   0xf   : > { %v2839_v3 = vld [vmem:[%s3765_s1 + $0xc0] sm:$0xff]   ;;  %2394 = vmatpush3.bf16.msra.mxu1 %v2833_v2  ;;  %2409 = vmatprep.mubr.msk.bf16.mxu1 %vm2800_vm0, %v3813_v1  ;;  %v2860_v6 = vld [vmem:[%s3765_s1 + $0xc8] sm:$0xff]   ;;  %v2878_v9 = vld [vmem:[%s3765_s1 + $0xd0] sm:$0xff]   ;;  %s3883_s10 = smov (!%p134_p3, %s1836_s10), 1 }
  0x10   : > { %2022 = vmatpush3.bf16.msra.mxu0 %v2839_v3  ;;  %2395 = vmatprep.subr.bf16.mxu1 %v3813_v1  ;;  %v2884_v10 = vld [vmem:[%s3765_s1 + $0x118] sm:$0xff]   ;;  %v2905_v13 = vld [vmem:[%s3765_s1 + $0x120] sm:$0xff]   ;;  %v2928_v16 = vld [vmem:[%s3765_s1 + $0x128] sm:$0xff]   ;;  %s2677_s17 = smul.u32 24, %s3883_s10  ;;  %s2020_s3 = sshll.u32 %s3883_s10, 4 }
  0x11   : > { %2023 = vmatprep.subr.bf16.mxu0 %v2845_v4  ;;  %v2892_v11 = vld [vmem:[%s3765_s1 + $0x158] sm:$0xff]   ;;  %v2915_v14 = vld [vmem:[%s3765_s1 + $0x160] sm:$0xff]   ;;  %3817 = vst [vmem:[#allocation2_spill] sm:$0xff] %v2928_v16  ;;  %v2935_v17 = vld [vmem:[%s3765_s1 + $0x168] sm:$0xff]   ;;  %s3756_s5 = scalar_lea.vmem %s3766_s2, %s2020_s3 }
  0x12   : > { %v2899_v12 = vld [vmem:[%s3765_s1 + $0xd8] sm:$0xff]   ;;  %v2922_v15 = vld [vmem:[%s3765_s1 + $0xe0] sm:$0xff]   ;;  %v2942_v18 = vld [vmem:[%s3765_s1 + $0xe8] sm:$0xff]   ;;  %s2953_s26 = scalar_lea.vmem %s3764_s0, %s2677_s17 }
  0x13   : > { %2396 = vmatpush3.bf16.msra.mxu1 %v2854_v5  ;;  %v2948_v19 = vld [vmem:[%s3765_s1 + $0x130] sm:$0xff]   ;;  %v145_v22 = vld [vmem:[%s2953_s26] sm:$0x77]  ;;  %v2970_v23 = vld [vmem:[%s2953_s26 + $0x8] sm:$0x77] }
  0x14   : > { %2024 = vmatpush3.bf16.msra.mxu0 %v2860_v6  ;;  %2397 = vmatprep.subr.bf16.mxu1 %v3813_v1  ;;  %v2959_v20 = vld [vmem:[%s3765_s1 + $0x170] sm:$0xff]   ;;  %v2976_v24 = vld [vmem:[%s3765_s1 + $0x138] sm:$0xff]   ;;  %v2978_v25 = vcombine.high %v145_v22, %v145_v22  ;;  %v2982_v26 = vcombine.low %v2970_v23, %v2970_v23  ;;  %v2984_v27 = vcombine.low %v145_v22, %v145_v22  ;;  %v3008_v36 = vld [vmem:[%s3765_s1 + $0x40] sm:$0xff]  }
  0x15   : > { %2025 = vmatprep.subr.bf16.mxu0 %v2865_v7  ;;  %v2966_v21 = vld [vmem:[%s3765_s1 + $0xf0] sm:$0xff]   ;;  %v2989_v28 = vld [vmem:[%s3765_s1 + $0x178] sm:$0xff]   ;;  %v3017_v42 = vld [vmem:[%s3765_s1 + $0x80] sm:$0xff]  }
  0x16   : > { %3818 = vst [vmem:[#allocation3_spill] sm:$0xff] %v2982_v26  ;;  %v261_v29 = vshrl.u32 %v2978_v25, 16  ;;  %v263_v30 = vshll.u32 %v2978_v25, 16  ;;  %v254_v31 = vshrl.u32 %v2984_v27, 16  ;;  %v256_v32 = vshll.u32 %v2984_v27, 16  ;;  %v3001_v33 = vld [vmem:[%s3765_s1 + $0xf8] sm:$0xff]  }
  0x17   : > { %2398 = vmatpush3.bf16.msra.mxu1 %v2871_v8  ;;  %v268_v34 = vshrl.u32 %v2982_v26, 16  ;;  %v270_v35 = vshll.u32 %v2982_v26, 16  ;;  %v3026_v44 = vld [vmem:[%s3765_s1] sm:$0xff]   ;;  %v3033_v45 = vld [vmem:[%s3765_s1 + $0x48] sm:$0xff]   ;;  %v3053_v48 = vld [vmem:[%s3765_s1 + $0x50] sm:$0xff]  }
  0x18   : > { %2026 = vmatpush3.bf16.msra.mxu0 %v2878_v9  ;;  %2399 = vmatprep.subr.bf16.mxu1 %v3813_v1  ;;  %v265_v37 = vrot.slane %v263_v30, 1  ;;  %v258_v38 = vrot.slane %v256_v32, 1  ;;  %v3040_v46 = vld [vmem:[%s3765_s1 + $0x88] sm:$0xff]   ;;  %v3062_v49 = vld [vmem:[%s3765_s1 + $0x90] sm:$0xff]   ;;  %v3075_v51 = vld [vmem:[%s3765_s1 + $0x58] sm:$0xff]  }
  0x19   : > { %2027 = vmatprep.subr.bf16.mxu0 %v2884_v10  ;;  %v272_v39 = vrot.slane %v270_v35, 1  ;;  %v3047_v47 = vld [vmem:[%s3765_s1 + $0x8] sm:$0xff]   ;;  %v3069_v50 = vld [vmem:[%s3765_s1 + $0x10] sm:$0xff]   ;;  %v3081_v52 = vld [vmem:[%s3765_s1 + $0x98] sm:$0xff]   ;;  %v3769_v35 = vrot.slane %v2978_v25, 1 }
  0x1a   : > { %v3012_v40 = vor.u32 %v265_v37, %v261_v29  ;;  %v259_v41 = vor.u32 %v258_v38, %v254_v31  ;;  %v3088_v53 = vld [vmem:[%s3765_s1 + $0x18] sm:$0xff]   ;;  %v3094_v54 = vld [vmem:[%s3765_s1 + $0x60] sm:$0xff]   ;;  %v3113_v57 = vld [vmem:[%s3765_s1 + $0x68] sm:$0xff]  }
  0x1b   : > { %2400 = vmatpush3.bf16.msra.mxu1 %v2892_v11  ;;  %v3021_v43 = vor.u32 %v272_v39, %v268_v34  ;;  %v3100_v55 = vld [vmem:[%s3765_s1 + $0xa0] sm:$0xff]   ;;  %v3119_v58 = vld [vmem:[%s3765_s1 + $0xa8] sm:$0xff]   ;;  %v3132_v60 = vld [vmem:[%s3765_s1 + $0x70] sm:$0xff]  }
  0x1c   : > { %2028 = vmatpush3.bf16.msra.mxu0 %v2899_v12  ;;  %2401 = vmatprep.subr.bf16.mxu1 %v3813_v1  ;;  %v3107_v56 = vld [vmem:[%s3765_s1 + $0x20] sm:$0xff]   ;;  %v3126_v59 = vld [vmem:[%s3765_s1 + $0x28] sm:$0xff]   ;;  %v3138_v61 = vld [vmem:[%s3765_s1 + $0xb0] sm:$0xff]  }
  0x1d   : > { %2029 = vmatprep.subr.bf16.mxu0 %v2905_v13  ;;  %3819 = vst [vmem:[#allocation4_spill] sm:$0xff] %v3021_v43  ;;  %453 = vmatprep.mubr.bf16.mxu0 %v3012_v40  ;;  %v3145_v62 = vld [vmem:[%s3765_s1 + $0x30] sm:$0xff]   ;;  %v3151_v63 = vld [vmem:[%s3765_s1 + $0x78] sm:$0xff]   ;;  %v3170_v30 = vld [vmem:[%s3765_s1 + $0x1c0] sm:$0xff]  }
  0x1e   : > { %v3157_v22 = vld [vmem:[%s3765_s1 + $0xb8] sm:$0xff]   ;;  %3820 = vst [vmem:[#allocation5_spill] sm:$0xff] %v3170_v30  ;;  %v3176_v31 = vld [vmem:[%s3765_s1 + $0x200] sm:$0xff]   ;;  %v3189_v34 = vld [vmem:[%s3765_s1 + $0x1c8] sm:$0xff]  }
  0x1f   : > { %2402 = vmatpush3.bf16.msra.mxu1 %v2915_v14  ;;  %v3164_v29 = vld [vmem:[%s3765_s1 + $0x38] sm:$0xff]   ;;  %3821 = vst [vmem:[#allocation6_spill] sm:$0xff] %v3176_v31  ;;  %v3183_v32 = vld [vmem:[%s3765_s1 + $0x180] sm:$0xff]   ;;  %3823 = vst [vmem:[#allocation8_spill] sm:$0xff] %v3189_v34 }
  0x20   : > { %2030 = vmatpush3.bf16.msra.mxu0 %v2922_v15  ;;  %2403 = vmatprep.subr.bf16.mxu1 %v3813_v1  ;;  %3822 = vst [vmem:[#allocation7_spill] sm:$0xff] %v3183_v32  ;;  %v3198_v37 = vld [vmem:[%s3765_s1 + $0x208] sm:$0xff]   ;;  %v3211_v39 = vld [vmem:[%s3765_s1 + $0x1d0] sm:$0xff]  }
  0x21   : > { %2031 = vmatprep.subr.bf16.mxu0 %v2928_v16  ;;  %3824 = vst [vmem:[#allocation9_spill] sm:$0xff] %v3198_v37  ;;  %v3205_v38 = vld [vmem:[%s3765_s1 + $0x188] sm:$0xff]   ;;  %3826 = vst [vmem:[#allocation11_spill] sm:$0xff] %v3211_v39 }
  0x22   : > { %3825 = vst [vmem:[#allocation10_spill] sm:$0xff] %v3205_v38 }
  0x23   : > { %2404 = vmatpush3.bf16.msra.mxu1 %v2935_v17 }
  0x24   : > { %2032 = vmatpush3.bf16.msra.mxu0 %v2942_v18  ;;  %2405 = vmatprep.subr.bf16.mxu1 %v3813_v1 }
  0x25   : > { %2033 = vmatprep.subr.bf16.mxu0 %v2948_v19 }
  0x27   : > { %2406 = vmatpush3.bf16.msra.mxu1 %v2959_v20 }
  0x28   : > { %2034 = vmatpush3.bf16.msra.mxu0 %v2966_v21  ;;  %2407 = vmatprep.subr.bf16.mxu1 %v3813_v1 }
  0x29   : > { %2035 = vmatprep.subr.bf16.mxu0 %v2976_v24 }
  0x2b   : > { %2408 = vmatpush3.bf16.msra.mxu1 %v2989_v28 }
  0x2c   : > { %2036 = vmatpush3.bf16.msra.mxu0 %v3001_v33  ;;  %2413 = vmatprep.subr.bf16.mxu1 %v3813_v1 }
  0x2d   : > { %2052 = vmatprep.subr.bf16.mxu0 %v3008_v36 }
  0x2e   : > { %2410 = vmatmul.mubr.bf16.vlgmr.msra.gmra.mrb[0].mxu1 %v3021_v43 }
  0x2f   : > { %454 = vmatmul.mubr.bf16.vlgmr.msra.gmra.mrb[0].mxu0 %v259_v41  ;;  %2414 = vmatpush3.bf16.msra.mxu1 %v3017_v42  ;;  %v3221_v41 = vld [vmem:[%s3765_s1 + $0x210] sm:$0xff]  }
  0x30   : > { %2053 = vmatpush3.bf16.msra.mxu0 %v3026_v44  ;;  %2415 = vmatprep.subr.bf16.mxu1 %v3813_v1  ;;  %3827 = vst [vmem:[#allocation12_spill] sm:$0xff] %v3221_v41 }
  0x31   : > { %2054 = vmatprep.subr.bf16.mxu0 %v3033_v45  ;;  %680 = vmatprep.mubr.bf16.mxu0 %v2978_v25 }
  0x32   : > { %2429 = vmatprep.mubr.msk.bf16.mxu1 %vm2800_vm0, %v3813_v1 }
  0x33   : > { %2416 = vmatpush3.bf16.msra.mxu1 %v3040_v46 }
  0x34   : > { %2055 = vmatpush3.bf16.msra.mxu0 %v3047_v47  ;;  %2417 = vmatprep.subr.bf16.mxu1 %v3813_v1 }
  0x35   : > { %2056 = vmatprep.subr.bf16.mxu0 %v3053_v48 }
  0x37   : > { %2418 = vmatpush3.bf16.msra.mxu1 %v3062_v49 }
  0x38   : > { %2057 = vmatpush3.bf16.msra.mxu0 %v3069_v50  ;;  %2419 = vmatprep.subr.bf16.mxu1 %v3813_v1 }
  0x39   : > { %2058 = vmatprep.subr.bf16.mxu0 %v3075_v51 }
  0x3b   : > { %2420 = vmatpush3.bf16.msra.mxu1 %v3081_v52 }
  0x3c   : > { %2059 = vmatpush3.bf16.msra.mxu0 %v3088_v53  ;;  %2421 = vmatprep.subr.bf16.mxu1 %v3813_v1 }
  0x3d   : > { %2060 = vmatprep.subr.bf16.mxu0 %v3094_v54 }
  0x3f   : > { %2422 = vmatpush3.bf16.msra.mxu1 %v3100_v55 }
  0x40   : > { %2061 = vmatpush3.bf16.msra.mxu0 %v3107_v56  ;;  %2423 = vmatprep.subr.bf16.mxu1 %v3813_v1 }
  0x41   : > { %2062 = vmatprep.subr.bf16.mxu0 %v3113_v57 }
  0x43   : > { %2424 = vmatpush3.bf16.msra.mxu1 %v3119_v58 }
  0x44   : > { %2063 = vmatpush3.bf16.msra.mxu0 %v3126_v59  ;;  %2425 = vmatprep.subr.bf16.mxu1 %v3813_v1 }
  0x45   : > { %2064 = vmatprep.subr.bf16.mxu0 %v3132_v60 }
  0x47   : > { %2426 = vmatpush3.bf16.msra.mxu1 %v3138_v61 }
  0x48   : > { %2065 = vmatpush3.bf16.msra.mxu0 %v3145_v62  ;;  %2427 = vmatprep.subr.bf16.mxu1 %v3813_v1 }
  0x49   : > { %2066 = vmatprep.subr.bf16.mxu0 %v3151_v63 }
  0x4b   : > { %2428 = vmatpush3.bf16.msra.mxu1 %v3157_v22 }
  0x4c   : > { %2067 = vmatpush3.bf16.msra.mxu0 %v3164_v29  ;;  %2433 = vmatprep.subr.bf16.mxu1 %v3813_v1 }
  0x4d   : > { %2083 = vmatprep.subr.bf16.mxu0 %v3170_v30 }
  0x4e   : > { %2430 = vmatmul.mubr.bf16.vlgmr.msra.gmra.mrb[0].mxu1 %v2982_v26 }
  0x4f   : > { %681 = vmatmul.mubr.bf16.vlgmr.msra.gmra.mrb[4].mxu0 %v2984_v27  ;;  %2434 = vmatpush3.bf16.msra.mxu1 %v3176_v31 }
  0x50   : > { %2084 = vmatpush3.bf16.msra.mxu0 %v3183_v32  ;;  %2435 = vmatprep.subr.bf16.mxu1 %v3813_v1 }
  0x51   : > { %2085 = vmatprep.subr.bf16.mxu0 %v3189_v34  ;;  %2449 = vmatprep.mubr.msk.bf16.mxu1 %vm2800_vm0, %v3813_v1  ;;  %v3228_v34 = vld [vmem:[%s3765_s1 + $0x190] sm:$0xff]  }
  0x52   : > { %959 = vmatprep.mubr.bf16.mxu0 %v3769_v35  ;;  %3828 = vst [vmem:[#allocation13_spill] sm:$0xff] %v3228_v34  ;;  %v3234_v35 = vld [vmem:[%s3765_s1 + $0x1d8] sm:$0xff]  }
  0x53   : > { %2436 = vmatpush3.bf16.msra.mxu1 %v3198_v37  ;;  %3829 = vst [vmem:[#allocation14_spill] sm:$0xff] %v3234_v35  ;;  %v3327_v37 = vrot.slane %v2982_v26, 1 }
  0x54   : > { %2086 = vmatpush3.bf16.msra.mxu0 %v3205_v38  ;;  %2437 = vmatprep.subr.bf16.mxu1 %v3813_v1  ;;  %v3240_v38 = vld [vmem:[%s3765_s1 + $0x218] sm:$0xff]  }
  0x55   : > { %2087 = vmatprep.subr.bf16.mxu0 %v3211_v39  ;;  %3830 = vst [vmem:[#allocation15_spill] sm:$0xff] %v3240_v38  ;;  %v3247_v39 = vld [vmem:[%s3765_s1 + $0x198] sm:$0xff]   ;;  %3841 = vst [vmem:[#allocation26_spill] sm:$0xff] %v3327_v37 }
  0x56   : > { %3831 = vst [vmem:[#allocation16_spill] sm:$0xff] %v3247_v39 }
  0x57   : > { %2438 = vmatpush3.bf16.msra.mxu1 %v3221_v41  ;;  %v3253_v41 = vld [vmem:[%s3765_s1 + $0x1e0] sm:$0xff]  }
  0x58   : > { %2088 = vmatpush3.bf16.msra.mxu0 %v3228_v34  ;;  %2439 = vmatprep.subr.bf16.mxu1 %v3813_v1  ;;  %3832 = vst [vmem:[#allocation17_spill] sm:$0xff] %v3253_v41  ;;  %v3259_v34 = vld [vmem:[%s3765_s1 + $0x220] sm:$0xff]  }
  0x59   : > { %2089 = vmatprep.subr.bf16.mxu0 %v3234_v35  ;;  %3833 = vst [vmem:[#allocation18_spill] sm:$0xff] %v3259_v34  ;;  %v3266_v35 = vld [vmem:[%s3765_s1 + $0x1a0] sm:$0xff]  }
  0x5a   : > { %3834 = vst [vmem:[#allocation19_spill] sm:$0xff] %v3266_v35 }
  0x5b   : > { %2440 = vmatpush3.bf16.msra.mxu1 %v3240_v38  ;;  %v3272_v38 = vld [vmem:[%s3765_s1 + $0x1e8] sm:$0xff]  }
  0x5c   : > { %2090 = vmatpush3.bf16.msra.mxu0 %v3247_v39  ;;  %2441 = vmatprep.subr.bf16.mxu1 %v3813_v1  ;;  %3835 = vst [vmem:[#allocation20_spill] sm:$0xff] %v3272_v38  ;;  %v3278_v39 = vld [vmem:[%s3765_s1 + $0x228] sm:$0xff]  }
  0x5d   : > { %2091 = vmatprep.subr.bf16.mxu0 %v3253_v41  ;;  %3836 = vst [vmem:[#allocation21_spill] sm:$0xff] %v3278_v39  ;;  %v3285_v41 = vld [vmem:[%s3765_s1 + $0x1a8] sm:$0xff]  }
  0x5e   : > { %3837 = vst [vmem:[#allocation22_spill] sm:$0xff] %v3285_v41 }
  0x5f   : > { %2442 = vmatpush3.bf16.msra.mxu1 %v3259_v34  ;;  %v3291_v34 = vld [vmem:[%s3765_s1 + $0x1f0] sm:$0xff]  }
  0x60   : > { %2092 = vmatpush3.bf16.msra.mxu0 %v3266_v35  ;;  %2443 = vmatprep.subr.bf16.mxu1 %v3813_v1  ;;  %3838 = vst [vmem:[#allocation23_spill] sm:$0xff] %v3291_v34  ;;  %v3297_v35 = vld [vmem:[%s3765_s1 + $0x230] sm:$0xff]  }
  0x61   : > { %2093 = vmatprep.subr.bf16.mxu0 %v3272_v38  ;;  %3839 = vst [vmem:[#allocation24_spill] sm:$0xff] %v3297_v35  ;;  %v3304_v38 = vld [vmem:[%s3765_s1 + $0x1b0] sm:$0xff]  }
  0x63   : > { %2444 = vmatpush3.bf16.msra.mxu1 %v3278_v39  ;;  %v3310_v39 = vld [vmem:[%s3765_s1 + $0x1f8] sm:$0xff]  }
  0x64   : > { %2094 = vmatpush3.bf16.msra.mxu0 %v3285_v41  ;;  %2445 = vmatprep.subr.bf16.mxu1 %v3813_v1  ;;  %v3316_v41 = vld [vmem:[%s3765_s1 + $0x238] sm:$0xff]  }
  0x65   : > { %2095 = vmatprep.subr.bf16.mxu0 %v3291_v34  ;;  %v3323_v34 = vld [vmem:[%s3765_s1 + $0x1b8] sm:$0xff]  }
  0x66   : > { %3840 = vst [vmem:[#allocation25_spill] sm:$0xff] %v3323_v34 }
  0x67   : > { %2446 = vmatpush3.bf16.msra.mxu1 %v3297_v35  ;;  %v777_v35 = vrot.slane %v2984_v27, 1  ;;  %v3356_v27 = vcombine.high %v2970_v23, %v2970_v23 }
  0x68   : > { %2096 = vmatpush3.bf16.msra.mxu0 %v3304_v38  ;;  %2447 = vmatprep.subr.bf16.mxu1 %v3813_v1 }
  0x69   : > { %2097 = vmatprep.subr.bf16.mxu0 %v3310_v39  ;;  %v1011_v23 = vshrl.u32 %v3356_v27, 16 }
  0x6b   : > { %2448 = vmatpush3.bf16.msra.mxu1 %v3316_v41 }
  0x6c   : > { %2098 = vmatpush3.bf16.msra.mxu0 %v3323_v34  ;;  %2453 = vmatprep.subr.bf16.mxu1 %v3813_v1 }
  0x6d   : > { %2114 = vmatprep.subr.bf16.mxu0 %v2827_v0 }
  0x6e   : > { %2450 = vmatmul.mubr.bf16.vlgmr.msra.gmra.mrb[0].mxu1 %v3327_v37 }
  0x6f   : > { %960 = vmatmul.mubr.bf16.vlgmr.msra.gmra.mrb[8].mxu0 %v777_v35  ;;  %2454 = vmatpush3.bf16.msra.mxu1 %v2833_v2  ;;  %v1013_v35 = vshll.u32 %v3356_v27, 16 }
  0x70   : > { %2115 = vmatpush3.bf16.msra.mxu0 %v2839_v3  ;;  %2455 = vmatprep.subr.bf16.mxu1 %v3813_v1 }
  0x71   : > { %2116 = vmatprep.subr.bf16.mxu0 %v2845_v4  ;;  %1050 = vmatprep.mubr.bf16.mxu0 %v3021_v43  ;;  %v1015_v43 = vrot.slane %v1013_v35, 1  ;;  %v3844_v35 = vld [vmem:[#allocation10_spill] sm:$0xff] }
  0x72   : > { %2469 = vmatprep.mubr.msk.bf16.mxu1 %vm2800_vm0, %v3813_v1 }
  0x73   : > { %2456 = vmatpush3.bf16.msra.mxu1 %v2854_v5 }
  0x74   : > { %2117 = vmatpush3.bf16.msra.mxu0 %v2860_v6  ;;  %2457 = vmatprep.subr.bf16.mxu1 %v3813_v1 }
  0x75   : > { %2118 = vmatprep.subr.bf16.mxu0 %v2865_v7 }
  0x77   : > { %2458 = vmatpush3.bf16.msra.mxu1 %v2871_v8 }
  0x78   : > { %2119 = vmatpush3.bf16.msra.mxu0 %v2878_v9  ;;  %2459 = vmatprep.subr.bf16.mxu1 %v3813_v1 }
  0x79   : > { %2120 = vmatprep.subr.bf16.mxu0 %v2884_v10 }
  0x7b   : > { %2460 = vmatpush3.bf16.msra.mxu1 %v2892_v11 }
  0x7c   : > { %2121 = vmatpush3.bf16.msra.mxu0 %v2899_v12  ;;  %2461 = vmatprep.subr.bf16.mxu1 %v3813_v1 }
  0x7d   : > { %2122 = vmatprep.subr.bf16.mxu0 %v2905_v13 }
  0x7f   : > { %2462 = vmatpush3.bf16.msra.mxu1 %v2915_v14 }
  0x80   : > { %2123 = vmatpush3.bf16.msra.mxu0 %v2922_v15  ;;  %2463 = vmatprep.subr.bf16.mxu1 %v3813_v1 }
  0x81   : > { %2124 = vmatprep.subr.bf16.mxu0 %v2928_v16  ;;  %v3372_v16 = vor.u32 %v1015_v43, %v1011_v23  ;;  %v3843_v43 = vld [vmem:[#allocation9_spill] sm:$0xff]  ;;  %v3845_v23 = vld [vmem:[#allocation11_spill] sm:$0xff] }
  0x83   : > { %2464 = vmatpush3.bf16.msra.mxu1 %v2935_v17 }
  0x84   : > { %2125 = vmatpush3.bf16.msra.mxu0 %v2942_v18  ;;  %2465 = vmatprep.subr.bf16.mxu1 %v3813_v1 }
  0x85   : > { %2126 = vmatprep.subr.bf16.mxu0 %v2948_v19 }
  0x87   : > { %2466 = vmatpush3.bf16.msra.mxu1 %v2959_v20 }
  0x88   : > { %2127 = vmatpush3.bf16.msra.mxu0 %v2966_v21  ;;  %2467 = vmatprep.subr.bf16.mxu1 %v3813_v1 }
  0x89   : > { %2128 = vmatprep.subr.bf16.mxu0 %v2976_v24 }
  0x8b   : > { %2468 = vmatpush3.bf16.msra.mxu1 %v2989_v28 }
  0x8c   : > { %2129 = vmatpush3.bf16.msra.mxu0 %v3001_v33  ;;  %2473 = vmatprep.subr.bf16.mxu1 %v3813_v1 }
  0x8d   : > { %2145 = vmatprep.subr.bf16.mxu0 %v3008_v36 }
  0x8e   : > { %2470 = vmatmul.mubr.bf16.vlgmr.msra.gmra.mrb[4].mxu1 %v3372_v16 }
  0x8f   : > { %1051 = vmatmul.mubr.bf16.vlgmr.msra.gmra.mrb[12].mxu0 %v3012_v40  ;;  %2474 = vmatpush3.bf16.msra.mxu1 %v3017_v42  ;;  %v3842_v40 = vld [vmem:[#allocation8_spill] sm:$0xff] }
  0x90   : > { %2146 = vmatpush3.bf16.msra.mxu0 %v3026_v44  ;;  %2475 = vmatprep.subr.bf16.mxu1 %v3813_v1 }
  0x91   : > { %2147 = vmatprep.subr.bf16.mxu0 %v3033_v45  ;;  %1131 = vmatprep.mubr.bf16.mxu0 %v2982_v26  ;;  %v3849_v26 = vld [vmem:[#allocation15_spill] sm:$0xff] }
  0x92   : > { %2489 = vmatprep.mubr.msk.bf16.mxu1 %vm2800_vm0, %v3813_v1 }
  0x93   : > { %2476 = vmatpush3.bf16.msra.mxu1 %v3040_v46 }
  0x94   : > { %2148 = vmatpush3.bf16.msra.mxu0 %v3047_v47  ;;  %2477 = vmatprep.subr.bf16.mxu1 %v3813_v1 }
  0x95   : > { %2149 = vmatprep.subr.bf16.mxu0 %v3053_v48 }
  0x97   : > { %2478 = vmatpush3.bf16.msra.mxu1 %v3062_v49 }
  0x98   : > { %2150 = vmatpush3.bf16.msra.mxu0 %v3069_v50  ;;  %2479 = vmatprep.subr.bf16.mxu1 %v3813_v1 }
  0x99   : > { %2151 = vmatprep.subr.bf16.mxu0 %v3075_v51 }
  0x9b   : > { %2480 = vmatpush3.bf16.msra.mxu1 %v3081_v52 }
  0x9c   : > { %2152 = vmatpush3.bf16.msra.mxu0 %v3088_v53  ;;  %2481 = vmatprep.subr.bf16.mxu1 %v3813_v1 }
  0x9d   : > { %2153 = vmatprep.subr.bf16.mxu0 %v3094_v54 }
  0x9f   : > { %2482 = vmatpush3.bf16.msra.mxu1 %v3100_v55 }
  0xa0   : > { %2154 = vmatpush3.bf16.msra.mxu0 %v3107_v56  ;;  %2483 = vmatprep.subr.bf16.mxu1 %v3813_v1 }
  0xa1   : > { %2155 = vmatprep.subr.bf16.mxu0 %v3113_v57 }
  0xa3   : > { %2484 = vmatpush3.bf16.msra.mxu1 %v3119_v58 }
  0xa4   : > { %2156 = vmatpush3.bf16.msra.mxu0 %v3126_v59  ;;  %2485 = vmatprep.subr.bf16.mxu1 %v3813_v1 }
  0xa5   : > { %2157 = vmatprep.subr.bf16.mxu0 %v3132_v60 }
  0xa7   : > { %2486 = vmatpush3.bf16.msra.mxu1 %v3138_v61 }
  0xa8   : > { %2158 = vmatpush3.bf16.msra.mxu0 %v3145_v62  ;;  %2487 = vmatprep.subr.bf16.mxu1 %v3813_v1 }
  0xa9   : > { %2159 = vmatprep.subr.bf16.mxu0 %v3151_v63 }
  0xab   : > { %2488 = vmatpush3.bf16.msra.mxu1 %v3157_v22 }
  0xac   : > { %2160 = vmatpush3.bf16.msra.mxu0 %v3164_v29  ;;  %2493 = vmatprep.subr.bf16.mxu1 %v3813_v1 }
  0xad   : > { %2176 = vmatprep.subr.bf16.mxu0 %v3170_v30  ;;  %v3850_v30 = vld [vmem:[#allocation16_spill] sm:$0xff] }
  0xae   : > { %2490 = vmatmul.mubr.bf16.vlgmr.msra.gmra.mrb[4].mxu1 %v3356_v27 }
  0xaf   : > { %1132 = vmatmul.mubr.bf16.vlgmr.msra.gmra.mrb[16].mxu0 %v2978_v25  ;;  %2494 = vmatpush3.bf16.msra.mxu1 %v3176_v31  ;;  %v3846_v31 = vld [vmem:[#allocation12_spill] sm:$0xff] }
  0xb0   : > { %2177 = vmatpush3.bf16.msra.mxu0 %v3183_v32  ;;  %2495 = vmatprep.subr.bf16.mxu1 %v3813_v1  ;;  %v3847_v32 = vld [vmem:[#allocation13_spill] sm:$0xff] }
  0xb1   : > { %2178 = vmatprep.subr.bf16.mxu0 %v3842_v40  ;;  %2509 = vmatprep.mubr.msk.bf16.mxu1 %vm2800_vm0, %v3813_v1  ;;  %v3848_v40 = vld [vmem:[#allocation14_spill] sm:$0xff] }
  0xb2   : > { %1213 = vmatprep.mubr.bf16.mxu0 %v3327_v37  ;;  %v3851_v37 = vld [vmem:[#allocation17_spill] sm:$0xff] }
  0xb3   : > { %2496 = vmatpush3.bf16.msra.mxu1 %v3843_v43  ;;  %v3853_v43 = vld [vmem:[#allocation19_spill] sm:$0xff] }
  0xb4   : > { %2179 = vmatpush3.bf16.msra.mxu0 %v3844_v35  ;;  %2497 = vmatprep.subr.bf16.mxu1 %v3813_v1  ;;  %v3852_v35 = vld [vmem:[#allocation18_spill] sm:$0xff] }
  0xb5   : > { %2180 = vmatprep.subr.bf16.mxu0 %v3845_v23  ;;  %v3856_v23 = vld [vmem:[#allocation22_spill] sm:$0xff] }
  0xb7   : > { %2498 = vmatpush3.bf16.msra.mxu1 %v3846_v31  ;;  %v3854_v31 = vld [vmem:[#allocation20_spill] sm:$0xff] }
  0xb8   : > { %2181 = vmatpush3.bf16.msra.mxu0 %v3847_v32  ;;  %2499 = vmatprep.subr.bf16.mxu1 %v3813_v1  ;;  %v3855_v32 = vld [vmem:[#allocation21_spill] sm:$0xff] }
  0xb9   : > { %2182 = vmatprep.subr.bf16.mxu0 %v3848_v40 }
  0xbb   : > { %2500 = vmatpush3.bf16.msra.mxu1 %v3849_v26  ;;  %v3857_v26 = vld [vmem:[#allocation23_spill] sm:$0xff] }
  0xbc   : > { %2183 = vmatpush3.bf16.msra.mxu0 %v3850_v30  ;;  %2501 = vmatprep.subr.bf16.mxu1 %v3813_v1  ;;  %v3858_v30 = vld [vmem:[#allocation24_spill] sm:$0xff] }
  0xbd   : > { %2184 = vmatprep.subr.bf16.mxu0 %v3851_v37 }
  0xbf   : > { %2502 = vmatpush3.bf16.msra.mxu1 %v3852_v35 }
  0xc0   : > { %2185 = vmatpush3.bf16.msra.mxu0 %v3853_v43  ;;  %2503 = vmatprep.subr.bf16.mxu1 %v3813_v1  ;;  %v3449_v43 = vrot.slane %v3356_v27, 1 }
  0xc1   : > { %2186 = vmatprep.subr.bf16.mxu0 %v3854_v31 }
  0xc2   : > { %3859 = vst [vmem:[#allocation14_spill] sm:$0xff] %v3449_v43 }
  0xc3   : > { %2504 = vmatpush3.bf16.msra.mxu1 %v3855_v32 }
  0xc4   : > { %2187 = vmatpush3.bf16.msra.mxu0 %v3856_v23  ;;  %2505 = vmatprep.subr.bf16.mxu1 %v3813_v1 }
  0xc5   : > { %2188 = vmatprep.subr.bf16.mxu0 %v3857_v26 }
  0xc7   : > { %2506 = vmatpush3.bf16.msra.mxu1 %v3858_v30  ;;  %v3860_v30 = vrot.slane %v2978_v25, 1  ;;  %v3871_v25 = vld [vmem:[#allocation12_spill] sm:$0xff] }
  0xc8   : > { %2189 = vmatpush3.bf16.msra.mxu0 %v3304_v38  ;;  %2507 = vmatprep.subr.bf16.mxu1 %v3813_v1 }
  0xc9   : > { %2190 = vmatprep.subr.bf16.mxu0 %v3310_v39 }
  0xcb   : > { %2508 = vmatpush3.bf16.msra.mxu1 %v3316_v41 }
  0xcc   : > { %2191 = vmatpush3.bf16.msra.mxu0 %v3323_v34  ;;  %2513 = vmatprep.subr.bf16.mxu1 %v3813_v1 }
  0xcd   : > { %2207 = vmatprep.subr.bf16.mxu0 %v2827_v0  ;;  %v3474_v0 = vld [vmem:[%s2953_s26 + $0x10] sm:$0x77] }
  0xce   : > { %2510 = vmatmul.mubr.bf16.vlgmr.msra.gmra.mrb[4].mxu1 %v3449_v43 }
  0xcf   : > { %1214 = vmatmul.mubr.bf16.vlgmr.msra.gmra.mrb[20].mxu0 %v3860_v30  ;;  %2514 = vmatpush3.bf16.msra.mxu1 %v2833_v2  ;;  %v3482_v2 = vcombine.low %v3474_v0, %v3474_v0  ;;  %v3875_v30 = vld [vmem:[#allocation19_spill] sm:$0xff] }
  0xd0   : > { %2208 = vmatpush3.bf16.msra.mxu0 %v2839_v3  ;;  %2515 = vmatprep.subr.bf16.mxu1 %v3813_v1  ;;  %v3861_v3 = vld [vmem:[#allocation2_spill] sm:$0xff] }
  0xd1   : > { %2209 = vmatprep.subr.bf16.mxu0 %v2845_v4  ;;  %1305 = vmatprep.mubr.bf16.mxu0 %v3372_v16  ;;  %v1268_v4 = vshll.u32 %v3482_v2, 16 }
  0xd2   : > { %2529 = vmatprep.mubr.msk.bf16.mxu1 %vm2800_vm0, %v3813_v1 }
  0xd3   : > { %2516 = vmatpush3.bf16.msra.mxu1 %v2854_v5  ;;  %v1266_v5 = vshrl.u32 %v3482_v2, 16 }
  0xd4   : > { %2210 = vmatpush3.bf16.msra.mxu0 %v2860_v6  ;;  %2517 = vmatprep.subr.bf16.mxu1 %v3813_v1  ;;  %v1270_v6 = vrot.slane %v1268_v4, 1 }
  0xd5   : > { %2211 = vmatprep.subr.bf16.mxu0 %v2865_v7 }
  0xd6   : > { %v3498_v7 = vor.u32 %v1270_v6, %v1266_v5 }
  0xd7   : > { %2518 = vmatpush3.bf16.msra.mxu1 %v2871_v8  ;;  %v3862_v8 = vld [vmem:[#allocation4_spill] sm:$0xff] }
  0xd8   : > { %2212 = vmatpush3.bf16.msra.mxu0 %v2878_v9  ;;  %2519 = vmatprep.subr.bf16.mxu1 %v3813_v1 }
  0xd9   : > { %2213 = vmatprep.subr.bf16.mxu0 %v2884_v10 }
  0xdb   : > { %2520 = vmatpush3.bf16.msra.mxu1 %v2892_v11 }
  0xdc   : > { %2214 = vmatpush3.bf16.msra.mxu0 %v2899_v12  ;;  %2521 = vmatprep.subr.bf16.mxu1 %v3813_v1 }
  0xdd   : > { %2215 = vmatprep.subr.bf16.mxu0 %v2905_v13 }
  0xdf   : > { %2522 = vmatpush3.bf16.msra.mxu1 %v2915_v14  ;;  %v3863_v14 = vld [vmem:[#allocation5_spill] sm:$0xff] }
  0xe0   : > { %2216 = vmatpush3.bf16.msra.mxu0 %v2922_v15  ;;  %2523 = vmatprep.subr.bf16.mxu1 %v3813_v1  ;;  %v3864_v15 = vld [vmem:[#allocation3_spill] sm:$0xff] }
  0xe1   : > { %2217 = vmatprep.subr.bf16.mxu0 %v3861_v3 }
  0xe3   : > { %2524 = vmatpush3.bf16.msra.mxu1 %v2935_v17  ;;  %v3865_v17 = vld [vmem:[#allocation6_spill] sm:$0xff] }
  0xe4   : > { %2218 = vmatpush3.bf16.msra.mxu0 %v2942_v18  ;;  %2525 = vmatprep.subr.bf16.mxu1 %v3813_v1  ;;  %v3866_v18 = vld [vmem:[#allocation7_spill] sm:$0xff] }
  0xe5   : > { %2219 = vmatprep.subr.bf16.mxu0 %v2948_v19  ;;  %v3867_v19 = vld [vmem:[#allocation8_spill] sm:$0xff] }
  0xe7   : > { %2526 = vmatpush3.bf16.msra.mxu1 %v2959_v20  ;;  %v3868_v20 = vld [vmem:[#allocation9_spill] sm:$0xff] }
  0xe8   : > { %2220 = vmatpush3.bf16.msra.mxu0 %v2966_v21  ;;  %2527 = vmatprep.subr.bf16.mxu1 %v3813_v1  ;;  %v3869_v21 = vld [vmem:[#allocation10_spill] sm:$0xff] }
  0xe9   : > { %2221 = vmatprep.subr.bf16.mxu0 %v2976_v24  ;;  %v3870_v24 = vld [vmem:[#allocation11_spill] sm:$0xff] }
  0xeb   : > { %2528 = vmatpush3.bf16.msra.mxu1 %v2989_v28  ;;  %v3872_v28 = vld [vmem:[#allocation13_spill] sm:$0xff] }
  0xec   : > { %2222 = vmatpush3.bf16.msra.mxu0 %v3001_v33  ;;  %2533 = vmatprep.subr.bf16.mxu1 %v3813_v1  ;;  %v3873_v33 = vld [vmem:[#allocation15_spill] sm:$0xff] }
  0xed   : > { %2238 = vmatprep.subr.bf16.mxu0 %v3008_v36  ;;  %v3874_v36 = vld [vmem:[#allocation16_spill] sm:$0xff] }
  0xee   : > { %2530 = vmatmul.mubr.bf16.vlgmr.msra.gmra.mrb[8].mxu1 %v3498_v7 }
  0xef   : > { %1306 = vmatmul.mubr.bf16.vlgmr.msra.gmra.mrb[24].mxu0 %v3862_v8  ;;  %2534 = vmatpush3.bf16.msra.mxu1 %v3017_v42 }
  0xf0   : > { %2239 = vmatpush3.bf16.msra.mxu0 %v3026_v44  ;;  %2535 = vmatprep.subr.bf16.mxu1 %v3813_v1 }
  0xf1   : > { %2240 = vmatprep.subr.bf16.mxu0 %v3033_v45  ;;  %1386 = vmatprep.mubr.bf16.mxu0 %v3356_v27 }
  0xf2   : > { %2549 = vmatprep.mubr.msk.bf16.mxu1 %vm2800_vm0, %v3813_v1 }
  0xf3   : > { %2536 = vmatpush3.bf16.msra.mxu1 %v3040_v46 }
  0xf4   : > { %2241 = vmatpush3.bf16.msra.mxu0 %v3047_v47  ;;  %2537 = vmatprep.subr.bf16.mxu1 %v3813_v1 }
  0xf5   : > { %2242 = vmatprep.subr.bf16.mxu0 %v3053_v48 }
  0xf7   : > { %2538 = vmatpush3.bf16.msra.mxu1 %v3062_v49 }
  0xf8   : > { %2243 = vmatpush3.bf16.msra.mxu0 %v3069_v50  ;;  %2539 = vmatprep.subr.bf16.mxu1 %v3813_v1 }
  0xf9   : > { %2244 = vmatprep.subr.bf16.mxu0 %v3075_v51 }
  0xfb   : > { %2540 = vmatpush3.bf16.msra.mxu1 %v3081_v52 }
  0xfc   : > { %2245 = vmatpush3.bf16.msra.mxu0 %v3088_v53  ;;  %2541 = vmatprep.subr.bf16.mxu1 %v3813_v1 }
  0xfd   : > { %2246 = vmatprep.subr.bf16.mxu0 %v3094_v54 }
  0xff   : > { %2542 = vmatpush3.bf16.msra.mxu1 %v3100_v55 }
 0x100   : > { %2247 = vmatpush3.bf16.msra.mxu0 %v3107_v56  ;;  %2543 = vmatprep.subr.bf16.mxu1 %v3813_v1 }
 0x101   : > { %2248 = vmatprep.subr.bf16.mxu0 %v3113_v57 }
 0x102   : > { %v2037_v9 = vpop.f32.mrb[0].mxu0 }
 0x103   : > { %v2038_v10 = vpop.f32.mrb[1].mxu0  ;;  %2544 = vmatpush3.bf16.msra.mxu1 %v3119_v58 }
 0x104   : > { %v2039_v11 = vadd.f32 %v2038_v10, %v2037_v9  ;;  %v2040_v12 = vpop.f32.mrb[2].mxu0  ;;  %2249 = vmatpush3.bf16.msra.mxu0 %v3126_v59  ;;  %2545 = vmatprep.subr.bf16.mxu1 %v3813_v1  ;;  %v3876_v10 = vld [vmem:[#allocation24_spill] sm:$0xff] }
 0x105   : > { %v2041_v13 = vpop.f32.mrb[3].mxu0  ;;  %2250 = vmatprep.subr.bf16.mxu0 %v3132_v60  ;;  %v3812_v12 = vrot.slane %v3482_v2, 1 }
 0x106   : > { %v3877_v13 = vld [vmem:[#allocation26_spill] sm:$0xff] }
 0x107   : > { %2546 = vmatpush3.bf16.msra.mxu1 %v3138_v61 }
 0x108   : > { %2251 = vmatpush3.bf16.msra.mxu0 %v3145_v62  ;;  %2547 = vmatprep.subr.bf16.mxu1 %v3813_v1 }
 0x109   : > { %2252 = vmatprep.subr.bf16.mxu0 %v3151_v63 }
 0x10b   : > { %2548 = vmatpush3.bf16.msra.mxu1 %v3157_v22 }
 0x10c   : > { %2253 = vmatpush3.bf16.msra.mxu0 %v3164_v29  ;;  %2553 = vmatprep.subr.bf16.mxu1 %v3813_v1 }
 0x10d   : > { %2269 = vmatprep.subr.bf16.mxu0 %v3863_v14 }
 0x10e   : > { %2550 = vmatmul.mubr.bf16.vlgmr.msra.gmra.mrb[8].mxu1 %v3482_v2 }
 0x10f   : > { %1387 = vmatmul.mubr.bf16.vlgmr.msra.gmra.mrb[28].mxu0 %v3864_v15  ;;  %2554 = vmatpush3.bf16.msra.mxu1 %v3865_v17  ;;  %v2767_v15 = vld [vmem:[%s3765_s1 + $0x140] sm:$0xff]  }
 0x110   : > { %2270 = vmatpush3.bf16.msra.mxu0 %v3866_v18  ;;  %2555 = vmatprep.subr.bf16.mxu1 %v3813_v1 }
 0x111   : > { %2271 = vmatprep.subr.bf16.mxu0 %v3867_v19  ;;  %2569 = vmatprep.mubr.msk.bf16.mxu1 %vm2800_vm0, %v3813_v1 }
 0x112   : > { %1468 = vmatprep.mubr.bf16.mxu0 %v3449_v43  ;;  %v2783_v43 = vld [vmem:[%s3765_s1 + $0xe8] sm:$0xff]  }
 0x113   : > { %2556 = vmatpush3.bf16.msra.mxu1 %v3868_v20 }
 0x114   : > { %2272 = vmatpush3.bf16.msra.mxu0 %v3869_v21  ;;  %2557 = vmatprep.subr.bf16.mxu1 %v3813_v1 }
 0x115   : > { %2273 = vmatprep.subr.bf16.mxu0 %v3870_v24 }
 0x117   : > { %2558 = vmatpush3.bf16.msra.mxu1 %v3871_v25 }
 0x118   : > { %2274 = vmatpush3.bf16.msra.mxu0 %v3872_v28  ;;  %2559 = vmatprep.subr.bf16.mxu1 %v3813_v1 }
 0x119   : > { %2275 = vmatprep.subr.bf16.mxu0 %v3848_v40 }
 0x11b   : > { %2560 = vmatpush3.bf16.msra.mxu1 %v3873_v33 }
 0x11c   : > { %2276 = vmatpush3.bf16.msra.mxu0 %v3874_v36  ;;  %2561 = vmatprep.subr.bf16.mxu1 %v3813_v1 }
 0x11d   : > { %2277 = vmatprep.subr.bf16.mxu0 %v3851_v37 }
 0x11f   : > { %2562 = vmatpush3.bf16.msra.mxu1 %v3852_v35 }
 0x120   : > { %2278 = vmatpush3.bf16.msra.mxu0 %v3875_v30  ;;  %2563 = vmatprep.subr.bf16.mxu1 %v3813_v1 }
 0x121   : > { %2279 = vmatprep.subr.bf16.mxu0 %v3854_v31 }
 0x122   : > { %v2068_v3 = vpop.f32.mrb[4].mxu0 }
 0x123   : > { %v2069_v4 = vpop.f32.mrb[5].mxu0  ;;  %2564 = vmatpush3.bf16.msra.mxu1 %v3855_v32 }
 0x124   : > { %v2070_v5 = vadd.f32 %v2069_v4, %v2068_v3  ;;  %v2071_v6 = vpop.f32.mrb[6].mxu0  ;;  %2280 = vmatpush3.bf16.msra.mxu0 %v3856_v23  ;;  %2565 = vmatprep.subr.bf16.mxu1 %v3813_v1  ;;  %v2768_v3 = vld [vmem:[%s3765_s1 + $0xc0] sm:$0xff]   ;;  %v2769_v4 = vld [vmem:[%s3765_s1 + $0x108] sm:$0xff]  }
 0x125   : > { %v2072_v8 = vpop.f32.mrb[7].mxu0  ;;  %2281 = vmatprep.subr.bf16.mxu0 %v3857_v26  ;;  %v2771_v6 = vld [vmem:[%s3765_s1 + $0xc8] sm:$0xff]  }
 0x126   : > { %v3570_v9 = vadd.f32 %v2070_v5, %v2039_v11  ;;  %v2766_v11 = vld [vmem:[%s3765_s1 + $0x100] sm:$0xff]   ;;  %v2770_v5 = vld [vmem:[%s3765_s1 + $0x148] sm:$0xff]   ;;  %v2772_v8 = vld [vmem:[%s3765_s1 + $0x110] sm:$0xff]  }
 0x127   : > { %2566 = vmatpush3.bf16.msra.mxu1 %v3876_v10 }
 0x128   : > { %2282 = vmatpush3.bf16.msra.mxu0 %v3304_v38  ;;  %2567 = vmatprep.subr.bf16.mxu1 %v3813_v1 }
 0x129   : > { %2283 = vmatprep.subr.bf16.mxu0 %v3310_v39 }
 0x12b   : > { %2568 = vmatpush3.bf16.msra.mxu1 %v3316_v41 }
 0x12c   : > { %2284 = vmatpush3.bf16.msra.mxu0 %v3323_v34  ;;  %2573 = vmatprep.subr.bf16.mxu1 %v3813_v1 }
 0x12d   : > { %2300 = vmatprep.subr.bf16.mxu0 %v2766_v11  ;;  %v2774_v11 = vld [vmem:[%s3765_s1 + $0xd0] sm:$0xff]  }
 0x12e   : > { %2570 = vmatmul.mubr.bf16.vlgmr.msra.gmra.mrb[8].mxu1 %v3812_v12 }
 0x12f   : > { %1469 = vmatmul.mubr.bf16.vlgmr.msra.gmra.mrb[32].mxu0 %v3877_v13  ;;  %2574 = vmatpush3.bf16.msra.mxu1 %v2767_v15  ;;  %v2775_v13 = vld [vmem:[%s3765_s1 + $0x118] sm:$0xff]  }
 0x130   : > { %2301 = vmatpush3.bf16.msra.mxu0 %v2768_v3  ;;  %2575 = vmatprep.subr.bf16.mxu1 %v3813_v1  ;;  %v2776_v15 = vld [vmem:[%s3765_s1 + $0x158] sm:$0xff]  }
 0x131   : > { %2302 = vmatprep.subr.bf16.mxu0 %v2769_v4  ;;  %1559 = vmatprep.mubr.bf16.mxu0 %v3498_v7  ;;  %v2773_v7 = vld [vmem:[%s3765_s1 + $0x150] sm:$0xff]   ;;  %v2777_v3 = vld [vmem:[%s3765_s1 + $0xd8] sm:$0xff]   ;;  %v2778_v4 = vld [vmem:[%s3765_s1 + $0x120] sm:$0xff]  }
 0x132   : > { %2589 = vmatprep.mubr.msk.bf16.mxu1 %vm2800_vm0, %v3813_v1 }
 0x133   : > { %2576 = vmatpush3.bf16.msra.mxu1 %v2770_v5  ;;  %v3631_v5 = vcombine.high %v3474_v0, %v3474_v0 }
 0x134   : > { %2303 = vmatpush3.bf16.msra.mxu0 %v2771_v6  ;;  %2577 = vmatprep.subr.bf16.mxu1 %v3813_v1  ;;  %v2779_v6 = vld [vmem:[%s3765_s1 + $0x160] sm:$0xff]  }
 0x135   : > { %2304 = vmatprep.subr.bf16.mxu0 %v2772_v8  ;;  %v2780_v8 = vld [vmem:[%s3765_s1 + $0xe0] sm:$0xff]  }
 0x137   : > { %2578 = vmatpush3.bf16.msra.mxu1 %v2773_v7 }
 0x138   : > { %2305 = vmatpush3.bf16.msra.mxu0 %v2774_v11  ;;  %2579 = vmatprep.subr.bf16.mxu1 %v3813_v1  ;;  %v2781_v11 = vld [vmem:[%s3765_s1 + $0x128] sm:$0xff]  }
 0x139   : > { %2306 = vmatprep.subr.bf16.mxu0 %v2775_v13 }
 0x13b   : > { %2580 = vmatpush3.bf16.msra.mxu1 %v2776_v15  ;;  %v1522_v15 = vshll.u32 %v3631_v5, 16 }
 0x13c   : > { %2307 = vmatpush3.bf16.msra.mxu0 %v2777_v3  ;;  %2581 = vmatprep.subr.bf16.mxu1 %v3813_v1 }
 0x13d   : > { %2308 = vmatprep.subr.bf16.mxu0 %v2778_v4 }
 0x13f   : > { %2582 = vmatpush3.bf16.msra.mxu1 %v2779_v6  ;;  %v2782_v6 = vld [vmem:[%s3765_s1 + $0x168] sm:$0xff]  }
 0x140   : > { %2309 = vmatpush3.bf16.msra.mxu0 %v2780_v8  ;;  %2583 = vmatprep.subr.bf16.mxu1 %v3813_v1 }
 0x141   : > { %v1001_v7 = vpop.f32.mrb[0].mxu1  ;;  %2310 = vmatprep.subr.bf16.mxu0 %v2781_v11  ;;  %v3878_v11 = vmov 0.0  }
 0x142   : > { %v2099_v0 = vpop.f32.mrb[8].mxu0  ;;  %v2451_v13 = vpop.f32.mrb[1].mxu1 }
 0x143   : > { %v2100_v3 = vpop.f32.mrb[9].mxu0  ;;  %v1004_v4 = vpop.f32.mrb[2].mxu1  ;;  %2584 = vmatpush3.bf16.msra.mxu1 %v2782_v6  ;;  %v1520_v6 = vshrl.u32 %v3631_v5, 16 }
 0x144   : > { %v2101_v8 = vadd.f32 %v2100_v3, %v2099_v0  ;;  %v2102_v12 = vpop.f32.mrb[10].mxu0  ;;  %v2452_v1 = vpop.f32.mrb[3].mxu1  ;;  %2311 = vmatpush3.bf16.msra.mxu0 %v2783_v43  ;;  %2585 = vmatprep.subr.bf16.mxu1 %v3878_v11  ;;  %v2784_v4 = vld [vmem:[%s3765_s1 + $0x130] sm:$0xff]   ;;  %v1524_v0 = vrot.slane %v1522_v15, 1  ;;  %v2788_v3 = vld [vmem:[%s3765_s1 + $0x178] sm:$0xff]  }
 0x145   : > { %v2103_v13 = vpop.f32.mrb[11].mxu0  ;;  %2312 = vmatprep.subr.bf16.mxu0 %v2784_v4  ;;  %v2785_v1 = vld [vmem:[%s3765_s1 + $0x170] sm:$0xff]  }
 0x146   : > { %v2634_v34 = vadd.f32 %v3570_v9, %v2101_v8  ;;  %v2786_v43 = vld [vmem:[%s3765_s1 + $0xf0] sm:$0xff]   ;;  %v2787_v9 = vld [vmem:[%s3765_s1 + $0x138] sm:$0xff]   ;;  %v1525_v15 = vor.u32 %v1524_v0, %v1520_v6 }
 0x147   : > { %2586 = vmatpush3.bf16.msra.mxu1 %v2785_v1 }
 0x148   : > { %v3659_v12 = vadd.f32 %v2634_v34, %v1001_v7  ;;  %2313 = vmatpush3.bf16.msra.mxu0 %v2786_v43  ;;  %2587 = vmatprep.subr.bf16.mxu1 %v3878_v11  ;;  %v2789_v34 = vld [vmem:[%s3765_s1 + $0xf8] sm:$0xff]   ;;  %v2790_v7 = vld [vmem:[%s3765_s1 + $0x40] sm:$0xff]  }
 0x149   : > { %2314 = vmatprep.subr.bf16.mxu0 %v2787_v9 }
 0x14b   : > { %2588 = vmatpush3.bf16.msra.mxu1 %v2788_v3 }
 0x14c   : > { %2315 = vmatpush3.bf16.msra.mxu0 %v2789_v34  ;;  %2593 = vmatprep.subr.bf16.mxu1 %v3878_v11 }
 0x14d   : > { %2331 = vmatprep.subr.bf16.mxu0 %v2790_v7 }
 0x14e   : > { %2590 = vmatmul.mubr.bf16.vlgmr.msra.gmra.mrb[12].mxu1 %v1525_v15 }
 0x14f   : > { %1560 = vmatmul.mubr.bf16.vlgmr.msra.gmra.mrb[36].mxu0 %v3372_v16  ;;  %2594 = vmatpush3.bf16.msra.mxu1 %v3017_v42 }
 0x150   : > { %2332 = vmatpush3.bf16.msra.mxu0 %v3026_v44  ;;  %2595 = vmatprep.subr.bf16.mxu1 %v3878_v11 }
 0x151   : > { %2333 = vmatprep.subr.bf16.mxu0 %v3033_v45  ;;  %1640 = vmatprep.mubr.bf16.mxu0 %v3482_v2 }
 0x152   : > { %2609 = vmatprep.mubr.msk.bf16.mxu1 %vm2800_vm0, %v3878_v11 }
 0x153   : > { %2596 = vmatpush3.bf16.msra.mxu1 %v3040_v46 }
 0x154   : > { %2334 = vmatpush3.bf16.msra.mxu0 %v3047_v47  ;;  %2597 = vmatprep.subr.bf16.mxu1 %v3878_v11  ;;  %v3879_v47 = vrot.slane %v3482_v2, 1 }
 0x155   : > { %2335 = vmatprep.subr.bf16.mxu0 %v3053_v48 }
 0x157   : > { %2598 = vmatpush3.bf16.msra.mxu1 %v3062_v49 }
 0x158   : > { %2336 = vmatpush3.bf16.msra.mxu0 %v3069_v50  ;;  %2599 = vmatprep.subr.bf16.mxu1 %v3878_v11 }
 0x159   : > { %2337 = vmatprep.subr.bf16.mxu0 %v3075_v51 }
 0x15b   : > { %2600 = vmatpush3.bf16.msra.mxu1 %v3081_v52 }
 0x15c   : > { %2338 = vmatpush3.bf16.msra.mxu0 %v3088_v53  ;;  %2601 = vmatprep.subr.bf16.mxu1 %v3878_v11 }
 0x15d   : > { %2339 = vmatprep.subr.bf16.mxu0 %v3094_v54  ;;  %v1688_v54 = vrot.slane %v3631_v5, 1 }
 0x15f   : > { %2602 = vmatpush3.bf16.msra.mxu1 %v3100_v55  ;;  %v3880_v55 = vld [vmem:[#allocation25_spill] sm:$0xff] }
 0x160   : > { %2340 = vmatpush3.bf16.msra.mxu0 %v3107_v56  ;;  %2603 = vmatprep.subr.bf16.mxu1 %v3878_v11  ;;  %v3881_v56 = vld [vmem:[#allocation14_spill] sm:$0xff] }
 0x161   : > { %2341 = vmatprep.subr.bf16.mxu0 %v3113_v57 }
 0x162   : > { %v2130_v16 = vpop.f32.mrb[12].mxu0 }
 0x163   : > { %v2131_v42 = vpop.f32.mrb[13].mxu0  ;;  %2604 = vmatpush3.bf16.msra.mxu1 %v3119_v58 }
 0x164   : > { %v2132_v44 = vadd.f32 %v2131_v42, %v2130_v16  ;;  %v2133_v45 = vpop.f32.mrb[14].mxu0  ;;  %2342 = vmatpush3.bf16.msra.mxu0 %v3126_v59  ;;  %2605 = vmatprep.subr.bf16.mxu1 %v3878_v11 }
 0x165   : > { %v2134_v46 = vpop.f32.mrb[15].mxu0  ;;  %2343 = vmatprep.subr.bf16.mxu0 %v3132_v60 }
 0x167   : > { %2606 = vmatpush3.bf16.msra.mxu1 %v3138_v61 }
 0x168   : > { %2344 = vmatpush3.bf16.msra.mxu0 %v3145_v62  ;;  %2607 = vmatprep.subr.bf16.mxu1 %v3878_v11 }
 0x169   : > { %2345 = vmatprep.subr.bf16.mxu0 %v3151_v63 }
 0x16b   : > { %2608 = vmatpush3.bf16.msra.mxu1 %v3157_v22 }
 0x16c   : > { %2346 = vmatpush3.bf16.msra.mxu0 %v3164_v29  ;;  %2613 = vmatprep.subr.bf16.mxu1 %v3878_v11 }
 0x16d   : > { %2362 = vmatprep.subr.bf16.mxu0 %v3863_v14 }
 0x16e   : > { %2610 = vmatmul.mubr.bf16.vlgmr.msra.gmra.mrb[12].mxu1 %v3631_v5 }
 0x16f   : > { %1641 = vmatmul.mubr.bf16.vlgmr.msra.gmra.mrb[40].mxu0 %v3356_v27  ;;  %2614 = vmatpush3.bf16.msra.mxu1 %v3865_v17 }
 0x170   : > { %2363 = vmatpush3.bf16.msra.mxu0 %v3866_v18  ;;  %2615 = vmatprep.subr.bf16.mxu1 %v3878_v11 }
 0x171   : > { %2364 = vmatprep.subr.bf16.mxu0 %v3867_v19  ;;  %2629 = vmatprep.mubr.msk.bf16.mxu1 %vm2800_vm0, %v3878_v11 }
 0x172   : > { %1722 = vmatprep.mubr.bf16.mxu0 %v3879_v47 }
 0x173   : > { %2616 = vmatpush3.bf16.msra.mxu1 %v3868_v20 }
 0x174   : > { %2365 = vmatpush3.bf16.msra.mxu0 %v3869_v21  ;;  %2617 = vmatprep.subr.bf16.mxu1 %v3878_v11 }
 0x175   : > { %2366 = vmatprep.subr.bf16.mxu0 %v3870_v24 }
 0x177   : > { %2618 = vmatpush3.bf16.msra.mxu1 %v3871_v25 }
 0x178   : > { %2367 = vmatpush3.bf16.msra.mxu0 %v3872_v28  ;;  %2619 = vmatprep.subr.bf16.mxu1 %v3878_v11 }
 0x179   : > { %2368 = vmatprep.subr.bf16.mxu0 %v3848_v40 }
 0x17b   : > { %2620 = vmatpush3.bf16.msra.mxu1 %v3873_v33 }
 0x17c   : > { %2369 = vmatpush3.bf16.msra.mxu0 %v3874_v36  ;;  %2621 = vmatprep.subr.bf16.mxu1 %v3878_v11 }
 0x17d   : > { %2370 = vmatprep.subr.bf16.mxu0 %v3851_v37 }
 0x17f   : > { %2622 = vmatpush3.bf16.msra.mxu1 %v3852_v35 }
 0x180   : > { %2371 = vmatpush3.bf16.msra.mxu0 %v3875_v30  ;;  %2623 = vmatprep.subr.bf16.mxu1 %v3878_v11 }
 0x181   : > { %2372 = vmatprep.subr.bf16.mxu0 %v3854_v31 }
 0x182   : > { %v2161_v48 = vpop.f32.mrb[16].mxu0 }
 0x183   : > { %v2162_v49 = vpop.f32.mrb[17].mxu0  ;;  %2624 = vmatpush3.bf16.msra.mxu1 %v3855_v32 }
 0x184   : > { %v2163_v50 = vadd.f32 %v2162_v49, %v2161_v48  ;;  %v2164_v51 = vpop.f32.mrb[18].mxu0  ;;  %2373 = vmatpush3.bf16.msra.mxu0 %v3856_v23  ;;  %2625 = vmatprep.subr.bf16.mxu1 %v3878_v11 }
 0x185   : > { %v2165_v52 = vpop.f32.mrb[19].mxu0  ;;  %2374 = vmatprep.subr.bf16.mxu0 %v3857_v26 }
 0x186   : > { %v2636_v53 = vadd.f32 %v2163_v50, %v2132_v44 }
 0x187   : > { %2626 = vmatpush3.bf16.msra.mxu1 %v3876_v10 }
 0x188   : > { %2375 = vmatpush3.bf16.msra.mxu0 %v3304_v38  ;;  %2627 = vmatprep.subr.bf16.mxu1 %v3878_v11 }
 0x189   : > { %2376 = vmatprep.subr.bf16.mxu0 %v3310_v39 }
 0x18b   : > { %2628 = vmatpush3.bf16.msra.mxu1 %v3316_v41 }
 0x18c   : > { %2377 = vmatpush3.bf16.msra.mxu0 %v3880_v55 }
 0x18e   : > { %2630 = vmatmul.mubr.bf16.vlgmr.msra.gmra.mrb[12].mxu1 %v1688_v54 }
 0x18f   : > { %1723 = vmatmul.mubr.bf16.vlgmr.msra.gmra.mrb[44].mxu0 %v3881_v56 }
 0x1a1   : > { %v1255_v26 = vpop.f32.mrb[4].mxu1 }
 0x1a2   : > { %v2192_v57 = vpop.f32.mrb[20].mxu0  ;;  %v2511_v58 = vpop.f32.mrb[5].mxu1 }
 0x1a3   : > { %v2193_v59 = vpop.f32.mrb[21].mxu0  ;;  %v1258_v60 = vpop.f32.mrb[6].mxu1 }
 0x1a4   : > { %v2194_v61 = vadd.f32 %v2193_v59, %v2192_v57  ;;  %v2195_v62 = vpop.f32.mrb[22].mxu0  ;;  %v2512_v63 = vpop.f32.mrb[7].mxu1 }
 0x1a5   : > { %v2196_v22 = vpop.f32.mrb[23].mxu0 }
 0x1a6   : > { %v2637_v29 = vadd.f32 %v2636_v53, %v2194_v61 }
 0x1a8   : > { %v2638_v31 = vadd.f32 %v2637_v29, %v1255_v26 }
 0x1aa   : > { %v1775_v32 = vcombine.low %v3659_v12, %v2638_v31 }
 0x1ac   : > { %1779 = vst [vmem:[%s3756_s5] sm:$0xff] %v1775_v32 }
 0x1c2   : > { %v2223_v37 = vpop.f32.mrb[24].mxu0 }
 0x1c3   : > { %v2224_v38 = vpop.f32.mrb[25].mxu0 }
 0x1c4   : > { %v2225_v39 = vadd.f32 %v2224_v38, %v2223_v37  ;;  %v2226_v41 = vpop.f32.mrb[26].mxu0 }
 0x1c5   : > { %v2227_v27 = vpop.f32.mrb[27].mxu0 }
 0x1e2   : > { %v2254_v40 = vpop.f32.mrb[28].mxu0 }
 0x1e3   : > { %v2255_v35 = vpop.f32.mrb[29].mxu0 }
 0x1e4   : > { %v2256_v23 = vadd.f32 %v2255_v35, %v2254_v40  ;;  %v2257_v2 = vpop.f32.mrb[30].mxu0 }
 0x1e5   : > { %v2258_v14 = vpop.f32.mrb[31].mxu0 }
 0x1e6   : > { %v2639_v17 = vadd.f32 %v2256_v23, %v2225_v39 }
 0x201   : > { %v1510_v18 = vpop.f32.mrb[8].mxu1 }
 0x202   : > { %v2285_v19 = vpop.f32.mrb[32].mxu0  ;;  %v2571_v20 = vpop.f32.mrb[9].mxu1 }
 0x203   : > { %v2286_v21 = vpop.f32.mrb[33].mxu0  ;;  %v1513_v24 = vpop.f32.mrb[10].mxu1 }
 0x204   : > { %v2287_v25 = vadd.f32 %v2286_v21, %v2285_v19  ;;  %v2288_v28 = vpop.f32.mrb[34].mxu0  ;;  %v2572_v33 = vpop.f32.mrb[11].mxu1 }
 0x205   : > { %v2289_v36 = vpop.f32.mrb[35].mxu0 }
 0x206   : > { %v2640_v30 = vadd.f32 %v2639_v17, %v2287_v25 }
 0x208   : > { %v2641_v10 = vadd.f32 %v2640_v30, %v1510_v18 }
 0x222   : > { %v2316_v5 = vpop.f32.mrb[36].mxu0 }
 0x223   : > { %v2317_v8 = vpop.f32.mrb[37].mxu0 }
 0x224   : > { %v2318_v11 = vadd.f32 %v2317_v8, %v2316_v5  ;;  %v2319_v13 = vpop.f32.mrb[38].mxu0 }
 0x225   : > { %v2320_v4 = vpop.f32.mrb[39].mxu0 }
 0x242   : > { %v2347_v6 = vpop.f32.mrb[40].mxu0 }
 0x243   : > { %v2348_v0 = vpop.f32.mrb[41].mxu0 }
 0x244   : > { %v2349_v1 = vadd.f32 %v2348_v0, %v2347_v6  ;;  %v2350_v12 = vpop.f32.mrb[42].mxu0 }
 0x245   : > { %v2351_v43 = vpop.f32.mrb[43].mxu0 }
 0x246   : > { %v2642_v9 = vadd.f32 %v2349_v1, %v2318_v11 }
 0x261   : > { %v1764_v15 = vpop.f32.mrb[12].mxu1 }
 0x262   : > { %v2378_v3 = vpop.f32.mrb[44].mxu0  ;;  %v2631_v34 = vpop.f32.mrb[13].mxu1 }
 0x263   : > { %v2379_v7 = vpop.f32.mrb[45].mxu0  ;;  %v1767_v16 = vpop.f32.mrb[14].mxu1 }
 0x264   : > { %v2380_v42 = vadd.f32 %v2379_v7, %v2378_v3  ;;  %v2381_v44 = vpop.f32.mrb[46].mxu0  ;;  %v2632_v45 = vpop.f32.mrb[15].mxu1 }
 0x265   : > { %v2382_v46 = vpop.f32.mrb[47].mxu0 }
 0x266   : > { %v2643_v47 = vadd.f32 %v2642_v9, %v2380_v42 }
 0x268   : > { %v2644_v48 = vadd.f32 %v2643_v47, %v1764_v15 }
 0x26a   : > { %v1776_v49 = vcombine.low %v2641_v10, %v2644_v48 }
 0x26c   : > { %1780 = vst [vmem:[%s3756_s5 + $0x8] sm:$0xff] %v1776_v49 }
 0x26d PF: > { %s12_s9 = sadd.s32 1, %s2797_s9  }
 0x26e   : > { %p9_p4 = scmp.ge.s32.totalorder %s12_s9, 4  }
 0x270   :  { %11 = sbr.rel (!%p9_p4) target bundleno = 1 (0x1), region = 60 }

// kernel: sam_forward.80
= control target key start
LH: loop header
LB: loop body
LE: loop exit
PB: predicated region body
PF: predicated region fallthrough
CT: control target
= control target key end

     0   :  { %v227_v0 = vmov 0.0   ;;  %vm228_vm0 = vmmov 0   ;;  %s282_s1 = inlined_call_operand.vmem [shape: bf16[128,128], index: 1, kind: input, shape index: {}]   ;;  %s283_s0 = inlined_call_operand.vmem [shape: bf16[16,128], index: 0, kind: input, shape index: {}]   ;;  %s284_s2 = inlined_call_operand.vmem [shape: f32[1,128], index: 2, kind: input, shape index: {}]   ;;  %s285_s3 = inlined_call_operand.vmem [shape: bf16[16,128], index: 3, kind: output, shape index: {}]  }
   0x1   :  { %196 = vmatprep.subr.bf16.mxu0 %v227_v0  ;;  %v218_v1 = vld [vmem:[%s282_s1] sm:$0xff]   ;;  %212 = vmatprep.mubr.msk.bf16.mxu0 %vm228_vm0, %v227_v0  ;;  %v219_v2 = vld [vmem:[%s282_s1 + $0x8] sm:$0xff]   ;;  %v220_v3 = vld [vmem:[%s282_s1 + $0x10] sm:$0xff]  }
   0x2   :  { %197 = vmatpush3.bf16.msra.mxu0 %v218_v1  ;;  %v221_v4 = vld [vmem:[%s282_s1 + $0x18] sm:$0xff]   ;;  %v222_v5 = vld [vmem:[%s282_s1 + $0x20] sm:$0xff]   ;;  %v223_v6 = vld [vmem:[%s282_s1 + $0x28] sm:$0xff]  }
   0x3   :  { %198 = vmatprep.subr.bf16.mxu0 %v227_v0  ;;  %v224_v7 = vld [vmem:[%s282_s1 + $0x30] sm:$0xff]   ;;  %v225_v8 = vld [vmem:[%s282_s1 + $0x38] sm:$0xff]   ;;  %v226_v9 = vld [vmem:[%s283_s0] sm:$0xff]  }
   0x4   :  { %v177_v11 = vld [vmem:[%s284_s2] ss:$0 sm:$0xff] }
   0x6   :  { %199 = vmatpush3.bf16.msra.mxu0 %v219_v2 }
   0x7   :  { %200 = vmatprep.subr.bf16.mxu0 %v227_v0 }
   0xa   :  { %201 = vmatpush3.bf16.msra.mxu0 %v220_v3 }
   0xb   :  { %202 = vmatprep.subr.bf16.mxu0 %v227_v0 }
   0xe   :  { %203 = vmatpush3.bf16.msra.mxu0 %v221_v4 }
   0xf   :  { %204 = vmatprep.subr.bf16.mxu0 %v227_v0 }
  0x12   :  { %205 = vmatpush3.bf16.msra.mxu0 %v222_v5 }
  0x13   :  { %206 = vmatprep.subr.bf16.mxu0 %v227_v0 }
  0x16   :  { %207 = vmatpush3.bf16.msra.mxu0 %v223_v6 }
  0x17   :  { %208 = vmatprep.subr.bf16.mxu0 %v227_v0 }
  0x1a   :  { %209 = vmatpush3.bf16.msra.mxu0 %v224_v7 }
  0x1b   :  { %210 = vmatprep.subr.bf16.mxu0 %v227_v0 }
  0x1e   :  { %211 = vmatpush3.bf16.msra.mxu0 %v225_v8 }
  0x21   :  { %213 = vmatmul.mubr.bf16.vlgmr.msra.gmra.mrb[0].mxu0 %v226_v9 }
  0xf4   :  { %v129_v10 = vpop.f32.mrb[0].mxu0 }
  0xf5   :  { %v214_v12 = vpop.f32.mrb[1].mxu0  ;;  %v152_v14 = vadd.f32 %v177_v11, %v129_v10 }
  0xf6   :  { %v132_v13 = vpop.f32.mrb[2].mxu0 }
  0xf7   :  { %v153_v15 = vadd.f32 %v177_v11, %v132_v13  ;;  %v215_v16 = vpop.f32.mrb[3].mxu0 }
  0xf9   :  { %v185_v17 = vpack.c.bf16 %v153_v15, %v152_v14 }
  0xfb   :  { %186 = vst [vmem:[%s285_s3] sm:$0xff] %v185_v17  }

// kernel: sam_forward.88
= control target key start
LH: loop header
LB: loop body
LE: loop exit
PB: predicated region body
PF: predicated region fallthrough
CT: control target
= control target key end

     0   :  { %v274_v1 = vmov 0   ;;  %v191_v18 = vlaneseq  ;;  %s355_s1 = inlined_call_operand.vmem [shape: bf16[128,256], index: 1, kind: input, shape index: {}]   ;;  %s356_s0 = inlined_call_operand.vmem [shape: bf16[16,128], index: 0, kind: input, shape index: {}]   ;;  %s357_s2 = inlined_call_operand.vmem [shape: f32[1,256], index: 2, kind: input, shape index: {}]   ;;  %s358_s3 = inlined_call_operand.vmem [shape: bf16[16,256], index: 3, kind: output, shape index: {}]  }
   0x1   :  { %v249_v0 = vld [vmem:[%s355_s1 + $0x4] ss:$8 sps:$4 sm:$0xff]   ;;  %163 = vmatprep.mubr.bf16.mxu0 %v274_v1  ;;  %v251_v2 = vld [vmem:[%s355_s1] ss:$8 sps:$4 sm:$0xff]   ;;  %v252_v3 = vld [vmem:[%s355_s1 + $0x14] ss:$8 sps:$4 sm:$0xff]  }
   0x2   :  { %131 = vmatprep.subr.bf16.mxu0 %v249_v0  ;;  %v254_v4 = vld [vmem:[%s355_s1 + $0x10] ss:$8 sps:$4 sm:$0xff]   ;;  %v255_v5 = vld [vmem:[%s355_s1 + $0x24] ss:$8 sps:$4 sm:$0xff]   ;;  %v257_v6 = vld [vmem:[%s355_s1 + $0x20] ss:$8 sps:$4 sm:$0xff]  }
   0x3   :  { %132 = vmatpush1.bf16.msra.mxu0 %v251_v2  ;;  %v258_v7 = vld [vmem:[%s355_s1 + $0x34] ss:$8 sps:$4 sm:$0xff]   ;;  %v260_v8 = vld [vmem:[%s355_s1 + $0x30] ss:$8 sps:$4 sm:$0xff]   ;;  %v261_v9 = vld [vmem:[%s355_s1 + $0x44] ss:$8 sps:$4 sm:$0xff]  }
   0x4   :  { %133 = vmatprep.subr.bf16.mxu0 %v252_v3  ;;  %v263_v10 = vld [vmem:[%s355_s1 + $0x40] ss:$8 sps:$4 sm:$0xff]   ;;  %v264_v11 = vld [vmem:[%s355_s1 + $0x54] ss:$8 sps:$4 sm:$0xff]   ;;  %v266_v12 = vld [vmem:[%s355_s1 + $0x50] ss:$8 sps:$4 sm:$0xff]  }
   0x5   :  { %v267_v13 = vld [vmem:[%s355_s1 + $0x64] ss:$8 sps:$4 sm:$0xff]   ;;  %v269_v14 = vld [vmem:[%s355_s1 + $0x60] ss:$8 sps:$4 sm:$0xff]   ;;  %v270_v15 = vld [vmem:[%s355_s1 + $0x74] ss:$8 sps:$4 sm:$0xff]  }
   0x6   :  { %v272_v16 = vld [vmem:[%s355_s1 + $0x70] ss:$8 sps:$4 sm:$0xff]   ;;  %v273_v17 = vld [vmem:[%s356_s0] sm:$0xff]   ;;  %v192_v19 = vshrl.u32 %v191_v18, 7 }
   0x7   :  { %134 = vmatpush1.bf16.msra.mxu0 %v254_v4  ;;  %v189_v21 = vld [vmem:[%s357_s2] sm:$0x3] }
   0x8   :  { %135 = vmatprep.subr.bf16.mxu0 %v255_v5  ;;  %v193_v20 = vsub.s32 0, %v192_v19  ;;  %v197_v22 = vsub.s32 1, %v192_v19 }
   0xa   :  { %v194_v23 = vrot.slane %v189_v21, %v193_v20  ;;  %v198_v24 = vrot.slane %v189_v21, %v197_v22 }
   0xb   :  { %136 = vmatpush1.bf16.msra.mxu0 %v257_v6 }
   0xc   :  { %137 = vmatprep.subr.bf16.mxu0 %v258_v7 }
   0xf   :  { %138 = vmatpush1.bf16.msra.mxu0 %v260_v8 }
  0x10   :  { %139 = vmatprep.subr.bf16.mxu0 %v261_v9 }
  0x13   :  { %140 = vmatpush1.bf16.msra.mxu0 %v263_v10 }
  0x14   :  { %141 = vmatprep.subr.bf16.mxu0 %v264_v11 }
  0x17   :  { %142 = vmatpush1.bf16.msra.mxu0 %v266_v12 }
  0x18   :  { %143 = vmatprep.subr.bf16.mxu0 %v267_v13 }
  0x1b   :  { %144 = vmatpush1.bf16.msra.mxu0 %v269_v14 }
  0x1c   :  { %145 = vmatprep.subr.bf16.mxu0 %v270_v15 }
  0x1f   :  { %146 = vmatpush1.bf16.msra.mxu0 %v272_v16 }
  0x22   :  { %164 = vmatmul.mubr.bf16.vlgmr.msra.gmra.mrb[0].mxu0 %v273_v17 }
  0xf5   :  { %v165_v25 = vpop.f32.mrb[0].mxu0 }
  0xf6   :  { %v201_v26 = vadd.f32 %v194_v23, %v165_v25  ;;  %v167_v27 = vpop.f32.mrb[1].mxu0 }
  0xf7   :  { %v202_v28 = vadd.f32 %v198_v24, %v167_v27  ;;  %v169_v29 = vpop.f32.mrb[2].mxu0 }
  0xf8   :  { %v205_v30 = vmax.f32 %v201_v26, 0.0  ;;  %v203_v31 = vadd.f32 %v194_v23, %v169_v29  ;;  %v171_v32 = vpop.f32.mrb[3].mxu0 }
  0xf9   :  { %v206_v33 = vmax.f32 %v202_v28, 0.0  ;;  %v204_v34 = vadd.f32 %v198_v24, %v171_v32 }
  0xfa   :  { %v207_v35 = vmax.f32 %v203_v31, 0.0 }
  0xfb   :  { %v246_v36 = vpack.c.bf16 %v206_v33, %v205_v30  ;;  %v208_v37 = vmax.f32 %v204_v34, 0.0 }
  0xfd   :  { %221 = vst [vmem:[%s358_s3] sm:$0xff] %v246_v36  ;;  %v247_v38 = vpack.c.bf16 %v208_v37, %v207_v35 }
  0xff   :  { %222 = vst [vmem:[%s358_s3 + $0x8] sm:$0xff] %v247_v38 }

// kernel: sam_forward.89
= control target key start
LH: loop header
LB: loop body
LE: loop exit
PB: predicated region body
PF: predicated region fallthrough
CT: control target
= control target key end

     0   :  { %v290_v34 = vlaneseq  ;;  %s546_s1 = inlined_call_operand.vmem [shape: bf16[256,256], index: 1, kind: input, shape index: {}]   ;;  %s547_s0 = inlined_call_operand.vmem [shape: bf16[16,256], index: 0, kind: input, shape index: {}]   ;;  %s548_s2 = inlined_call_operand.vmem [shape: f32[1,256], index: 2, kind: input, shape index: {}]   ;;  %s549_s3 = inlined_call_operand.vmem [shape: bf16[16,256], index: 3, kind: output, shape index: {}]  }
   0x1   :  { %v364_v0 = vld [vmem:[%s546_s1 + $0x4] ss:$8 sps:$4 sm:$0xff]   ;;  %v366_v1 = vld [vmem:[%s546_s1] ss:$8 sps:$4 sm:$0xff]   ;;  %v367_v2 = vld [vmem:[%s546_s1 + $0x14] ss:$8 sps:$4 sm:$0xff]  }
   0x2   :  { %230 = vmatprep.subr.bf16.mxu0 %v364_v0  ;;  %v369_v3 = vld [vmem:[%s546_s1 + $0x10] ss:$8 sps:$4 sm:$0xff]   ;;  %v370_v4 = vld [vmem:[%s546_s1 + $0x24] ss:$8 sps:$4 sm:$0xff]   ;;  %v372_v5 = vld [vmem:[%s546_s1 + $0x20] ss:$8 sps:$4 sm:$0xff]  }
   0x3   :  { %231 = vmatpush1.bf16.msra.mxu0 %v366_v1  ;;  %v373_v6 = vld [vmem:[%s546_s1 + $0x34] ss:$8 sps:$4 sm:$0xff]   ;;  %v375_v7 = vld [vmem:[%s546_s1 + $0x30] ss:$8 sps:$4 sm:$0xff]   ;;  %v376_v8 = vld [vmem:[%s546_s1 + $0x44] ss:$8 sps:$4 sm:$0xff]  }
   0x4   :  { %232 = vmatprep.subr.bf16.mxu0 %v367_v2  ;;  %v378_v9 = vld [vmem:[%s546_s1 + $0x40] ss:$8 sps:$4 sm:$0xff]   ;;  %v379_v10 = vld [vmem:[%s546_s1 + $0x54] ss:$8 sps:$4 sm:$0xff]   ;;  %v381_v11 = vld [vmem:[%s546_s1 + $0x50] ss:$8 sps:$4 sm:$0xff]  }
   0x5   :  { %v382_v12 = vld [vmem:[%s546_s1 + $0x64] ss:$8 sps:$4 sm:$0xff]   ;;  %v384_v14 = vld [vmem:[%s546_s1 + $0x60] ss:$8 sps:$4 sm:$0xff]   ;;  %v385_v15 = vld [vmem:[%s546_s1 + $0x74] ss:$8 sps:$4 sm:$0xff]  }
   0x6   :  { %v414_v13 = vld [vmem:[%s547_s0 + $0x4] ss:$8 sps:$4 sm:$0xff]   ;;  %v387_v16 = vld [vmem:[%s546_s1 + $0x70] ss:$8 sps:$4 sm:$0xff]   ;;  %v390_v18 = vld [vmem:[%s546_s1 + $0x80] ss:$8 sps:$4 sm:$0xff]  }
   0x7   :  { %233 = vmatpush1.bf16.msra.mxu0 %v369_v3  ;;  %262 = vmatprep.mubr.bf16.mxu0 %v414_v13  ;;  %v388_v17 = vld [vmem:[%s546_s1 + $0x84] ss:$8 sps:$4 sm:$0xff]   ;;  %v391_v19 = vld [vmem:[%s546_s1 + $0x94] ss:$8 sps:$4 sm:$0xff]   ;;  %v393_v20 = vld [vmem:[%s546_s1 + $0x90] ss:$8 sps:$4 sm:$0xff]  }
   0x8   :  { %234 = vmatprep.subr.bf16.mxu0 %v370_v4  ;;  %v394_v21 = vld [vmem:[%s546_s1 + $0xa4] ss:$8 sps:$4 sm:$0xff]   ;;  %v396_v22 = vld [vmem:[%s546_s1 + $0xa0] ss:$8 sps:$4 sm:$0xff]   ;;  %v397_v23 = vld [vmem:[%s546_s1 + $0xb4] ss:$8 sps:$4 sm:$0xff]  }
   0x9   :  { %v399_v24 = vld [vmem:[%s546_s1 + $0xb0] ss:$8 sps:$4 sm:$0xff]   ;;  %v400_v25 = vld [vmem:[%s546_s1 + $0xc4] ss:$8 sps:$4 sm:$0xff]   ;;  %v402_v26 = vld [vmem:[%s546_s1 + $0xc0] ss:$8 sps:$4 sm:$0xff]  }
   0xa   :  { %v403_v27 = vld [vmem:[%s546_s1 + $0xd4] ss:$8 sps:$4 sm:$0xff]   ;;  %v405_v28 = vld [vmem:[%s546_s1 + $0xd0] ss:$8 sps:$4 sm:$0xff]   ;;  %v406_v29 = vld [vmem:[%s546_s1 + $0xe4] ss:$8 sps:$4 sm:$0xff]  }
   0xb   :  { %235 = vmatpush1.bf16.msra.mxu0 %v372_v5  ;;  %v408_v30 = vld [vmem:[%s546_s1 + $0xe0] ss:$8 sps:$4 sm:$0xff]   ;;  %v409_v31 = vld [vmem:[%s546_s1 + $0xf4] ss:$8 sps:$4 sm:$0xff]   ;;  %v411_v32 = vld [vmem:[%s546_s1 + $0xf0] ss:$8 sps:$4 sm:$0xff]  }
   0xc   :  { %236 = vmatprep.subr.bf16.mxu0 %v373_v6  ;;  %v412_v33 = vld [vmem:[%s547_s0] ss:$8 sps:$4 sm:$0xff]   ;;  %v291_v35 = vshrl.u32 %v290_v34, 7 }
   0xd   :  { %v288_v37 = vld [vmem:[%s548_s2] sm:$0x3] }
   0xe   :  { %v292_v36 = vsub.s32 0, %v291_v35  ;;  %v296_v38 = vsub.s32 1, %v291_v35 }
   0xf   :  { %237 = vmatpush1.bf16.msra.mxu0 %v375_v7 }
  0x10   :  { %238 = vmatprep.subr.bf16.mxu0 %v376_v8  ;;  %v293_v39 = vrot.slane %v288_v37, %v292_v36  ;;  %v297_v40 = vrot.slane %v288_v37, %v296_v38 }
  0x13   :  { %239 = vmatpush1.bf16.msra.mxu0 %v378_v9 }
  0x14   :  { %240 = vmatprep.subr.bf16.mxu0 %v379_v10 }
  0x17   :  { %241 = vmatpush1.bf16.msra.mxu0 %v381_v11 }
  0x18   :  { %242 = vmatprep.subr.bf16.mxu0 %v382_v12 }
  0x1b   :  { %243 = vmatpush1.bf16.msra.mxu0 %v384_v14 }
  0x1c   :  { %244 = vmatprep.subr.bf16.mxu0 %v385_v15 }
  0x1f   :  { %245 = vmatpush1.bf16.msra.mxu0 %v387_v16 }
  0x20   :  { %246 = vmatprep.subr.bf16.mxu0 %v388_v17 }
  0x23   :  { %247 = vmatpush1.bf16.msra.mxu0 %v390_v18 }
  0x24   :  { %248 = vmatprep.subr.bf16.mxu0 %v391_v19 }
  0x27   :  { %249 = vmatpush1.bf16.msra.mxu0 %v393_v20 }
  0x28   :  { %250 = vmatprep.subr.bf16.mxu0 %v394_v21 }
  0x2b   :  { %251 = vmatpush1.bf16.msra.mxu0 %v396_v22 }
  0x2c   :  { %252 = vmatprep.subr.bf16.mxu0 %v397_v23 }
  0x2f   :  { %253 = vmatpush1.bf16.msra.mxu0 %v399_v24 }
  0x30   :  { %254 = vmatprep.subr.bf16.mxu0 %v400_v25 }
  0x33   :  { %255 = vmatpush1.bf16.msra.mxu0 %v402_v26 }
  0x34   :  { %256 = vmatprep.subr.bf16.mxu0 %v403_v27 }
  0x37   :  { %257 = vmatpush1.bf16.msra.mxu0 %v405_v28 }
  0x38   :  { %258 = vmatprep.subr.bf16.mxu0 %v406_v29 }
  0x3b   :  { %259 = vmatpush1.bf16.msra.mxu0 %v408_v30 }
  0x3c   :  { %260 = vmatprep.subr.bf16.mxu0 %v409_v31 }
  0x3f   :  { %261 = vmatpush1.bf16.msra.mxu0 %v411_v32 }
  0x42   :  { %263 = vmatmul.mubr.bf16.vlgmr.msra.gmra.mrb[0].mxu0 %v412_v33 }
 0x115   :  { %v264_v41 = vpop.f32.mrb[0].mxu0 }
 0x116   :  { %v300_v42 = vadd.f32 %v293_v39, %v264_v41  ;;  %v266_v43 = vpop.f32.mrb[1].mxu0 }
 0x117   :  { %v301_v44 = vadd.f32 %v297_v40, %v266_v43  ;;  %v268_v45 = vpop.f32.mrb[2].mxu0 }
 0x118   :  { %v304_v46 = vmax.f32 %v300_v42, 0.0  ;;  %v302_v47 = vadd.f32 %v293_v39, %v268_v45  ;;  %v270_v48 = vpop.f32.mrb[3].mxu0 }
 0x119   :  { %v305_v49 = vmax.f32 %v301_v44, 0.0  ;;  %v303_v50 = vadd.f32 %v297_v40, %v270_v48 }
 0x11a   :  { %v306_v51 = vmax.f32 %v302_v47, 0.0 }
 0x11b   :  { %v362_v52 = vpack.c.bf16 %v305_v49, %v304_v46  ;;  %v307_v53 = vmax.f32 %v303_v50, 0.0 }
 0x11d   :  { %320 = vst [vmem:[%s549_s3] sm:$0xff] %v362_v52  ;;  %v363_v54 = vpack.c.bf16 %v307_v53, %v306_v51 }
 0x11f   :  { %321 = vst [vmem:[%s549_s3 + $0x8] sm:$0xff] %v363_v54 }

// kernel: sam_forward.82
= control target key start
LH: loop header
LB: loop body
LE: loop exit
PB: predicated region body
PF: predicated region fallthrough
CT: control target
= control target key end

     0   :  { %s1702_s18 = smov 0   ;;  %s1948_s0 = inlined_call_operand.vmem [shape: bf16[2,8,128], index: 0, kind: input, shape index: {}]   ;;  %s1949_s1 = inlined_call_operand.vmem [shape: bf16[2,8,256], index: 1, kind: input, shape index: {}]   ;;  %s1950_s2 = inlined_call_operand.vmem [shape: bf16[128,128], index: 2, kind: input, shape index: {}]   ;;  %s1951_s3 = inlined_call_operand.vmem [shape: f32[1,128], index: 3, kind: input, shape index: {}]   ;;  %s1952_s4 = inlined_call_operand.vmem [shape: f32[2,8,128], index: 4, kind: input, shape index: {}]   ;;  %s1953_s5 = inlined_call_operand.vmem [shape: f32[2,8,128], index: 5, kind: output, shape index: {}]  }
   0x1 LB: > { %s1397_s19 = sadd.s32 4294967295, %s1661_s18   ;;  %p1401_p0 = scmp.ge.s32.totalorder %s1661_s18, 1  ;;  %s1661_s18 = sphi %s1702_s18, %s15_s18  }
   0x2   : > { %p205_p1 = scmp.lt.s32.totalorder %s1661_s18, 3 }
   0x4   : > { %p206_p2 = pnand %p1401_p0, %p205_p1 }
   0x5   : > { %p240_p3 = scmp.lt.s32.totalorder (!%p206_p2), %s1397_s19, 1  ;;  %v1663_v0 = vmov (!%p206_p2), 0.0   ;;  %vm1664_vm0 = vmmov (!%p206_p2), 0   ;;  %vm263_vm1 = vcmask (!%p206_p2), 130048   ;;  %v260_v4 = vlaneseq (!%p206_p2)  ;;  %s1665_s28 = smov (!%p206_p2), 112  }
   0x6   : > { %209 = sbr.rel (%p206_p2) target bundleno = 1721 (0x6b9), region = 40  ;;  %1479 = vmatprep.subr.bf16.mxu0 (!%p206_p2), %v1663_v0  ;;  %1481 = vmatprep.mubr.msk.bf16.mxu0 (!%p206_p2), %vm1664_vm0, %v1663_v0  ;;  %vm312_vm3 = vcmask (!%p206_p2), 64512   ;;  %s1666_s29 = smov (!%p206_p2), 96   ;;  %vm331_vm4 = vcmask (!%p206_p2), 1043456   ;;  %vm1193_vm5 = vcmask (!%p206_p2), 261120   ;;  %vm1195_vm6 = vcmask (!%p206_p2), 392192  }
   0x7   : > { %1503 = vmatprep.subr.bf16.mxu1 (!%p206_p2), %v1663_v0  ;;  %1505 = vmatprep.mubr.msk.bf16.mxu1 (!%p206_p2), %vm1664_vm0, %v1663_v0  ;;  %v1730_v5 = vand.u32 (!%p206_p2), 127, %v260_v4  ;;  %s1667_s30 = smov (!%p206_p2), 80   ;;  %s1668_s6 = smov (!%p206_p2), 64   ;;  %vm1197_vm7 = vcmask (!%p206_p2), 523264   ;;  %vm1199_vm8 = vcmask (!%p206_p2), 654336   ;;  %vm1201_vm9 = vcmask (!%p206_p2), 785408  }
   0x8   : > { %s1669_s7 = smov (!%p206_p2), 48   ;;  %s1670_s8 = smov (!%p206_p2), 32   ;;  %vm1203_vm10 = vcmask (!%p206_p2), 916480  }
   0x9   : > { %vm262_vm2 = vcmp.lt.s32.totalorder (!%p206_p2), %v1730_v5, 6  ;;  %s1671_s9 = smov (!%p206_p2), 16  }
   0xd   : > { %s1955_s19 = smov (!%p240_p3, %s1397_s19), 1 }
   0xe   : > { %s1716_s20 = sshll.u32 %s1955_s19, 3  ;;  %s1402_s24 = sshll.u32 %s1955_s19, 2 }
   0xf   : > { %s248_s23 = scalar_lea.vmem %s1949_s1, %s1716_s20  ;;  %s243_s27 = scalar_lea.vmem %s1948_s0, %s1402_s24 }
  0x10   : > { %v259_v1 = vld [vmem:[%s248_s23] sm:$0xff]  ;;  %s256_s10 = scalar_lea.vmem %s1953_s5, %s1716_s20 }
  0x11   : > { %v268_v2 = vsel %vm263_vm1, %v259_v1, 0  ;;  %v258_v3 = vld [vmem:[%s243_s27] sm:$0xf]  ;;  %v1411_v13 = vcombine.low %v259_v1, %v259_v1  ;;  %v1747_v20 = vcombine.high %v259_v1, %v259_v1 }
  0x12   : > { %1480 = vmatpush3.bf16.xpose.msra.mxu0 %v268_v2  ;;  %v1410_v14 = vcombine.low %v258_v3, %v258_v3 }
  0x13   : > { %1485 = vmatprep.subr.bf16.mxu0 %v1663_v0  ;;  %382 = vrot.lane.b32.xlu1 %v1411_v13, %s1665_s28  ;;  %v333_v21 = vsel %vm331_vm4, %v1747_v20, 0 }
  0x17   : > { %378 = vrot.lane.b32.xlu1 %v1410_v14, %s1665_s28 }
  0x19   : > { %1482 = vmatmul.mubr.msk.bf16.vlgmr.msra.gmra.mrb[0].mxu0 %vm263_vm1, %v258_v3 }
  0x1a   : > { %1487 = vmatprep.mubr.msk.bf16.mxu0 %vm1664_vm0, %v1663_v0  ;;  %1486 = vmatpush3.bf16.msra.mxu0 %v333_v21 }
  0x1b   : > { %492 = vrot.lane.b32.xlu1 %v1410_v14, %s1666_s29  ;;  %1491 = vmatprep.subr.bf16.mxu0 %v1663_v0 }
  0x1f   : > { %606 = vrot.lane.b32.xlu1 %v1411_v13, %s1667_s30 }
  0x23   : > { %604 = vrot.lane.b32.xlu1 %v1410_v14, %s1667_s30 }
  0x27   : > { %718 = vrot.lane.b32.xlu1 %v1411_v13, %s1668_s6 }
  0x2b   : > { %716 = vrot.lane.b32.xlu1 %v1410_v14, %s1668_s6 }
  0x2f   : > { %830 = vrot.lane.b32.xlu1 %v1411_v13, %s1669_s7 }
  0x33   : > { %942 = vrot.lane.b32.xlu1 %v1411_v13, %s1670_s8 }
  0x37   : > { %1054 = vrot.lane.b32.xlu1 %v1411_v13, %s1671_s9 }
  0x85   : > { %v383_v22 = vpop.permute.xlu1 %382 }
  0x86   : > { %v388_v35 = vsel %vm263_vm1, %v383_v22, 0 }
  0x89   : > { %v379_v23 = vpop.permute.xlu1 %378 }
  0x8d   : > { %v493_v24 = vpop.permute.xlu1 %492 }
  0x91   : > { %v607_v26 = vpop.permute.xlu1 %606 }
  0x92   : > { %v612_v31 = vsel %vm263_vm1, %v607_v26, 0 }
  0x95   : > { %v605_v29 = vpop.permute.xlu1 %604 }
  0x99   : > { %v719_v33 = vpop.permute.xlu1 %718 }
  0x9a   : > { %v724_v37 = vsel %vm263_vm1, %v719_v33, 0 }
  0x9d   : > { %v717_v36 = vpop.permute.xlu1 %716 }
  0xa1   : > { %v831_v38 = vpop.permute.xlu1 %830 }
  0xa2   : > { %v836_v39 = vsel %vm263_vm1, %v831_v38, 0 }
  0xa5   : > { %v943_v40 = vpop.permute.xlu1 %942 }
  0xa6   : > { %v948_v42 = vsel %vm263_vm1, %v943_v40, 0 }
  0xa9   : > { %v1055_v43 = vpop.permute.xlu1 %1054 }
  0xaa   : > { %v1060_v45 = vsel %vm263_vm1, %v1055_v43, 0 }
  0xec   : > { %v304_v6 = vpop.f32.mrb[0].mxu0 }
  0xed   : > { %v310_v7 = vmul.f32 0.25, %v304_v6  ;;  %v1483_v8 = vpop.f32.mrb[1].mxu0 }
  0xee   : > { %v307_v9 = vpop.f32.mrb[2].mxu0 }
  0xef   : > { %v1484_v10 = vpop.f32.mrb[3].mxu0  ;;  %v311_v11 = vsel %vm262_vm2, %v310_v7, -1e+30 }
  0xf0   : > { %v313_v12 = vsel %vm312_vm3, %v311_v11, -inf }
  0xf1   : > { %314 = vmax.xlane.f32.xlu0 %v313_v12 }
 0x17e   : > { %v315_v15 = vpop.xlane.xlu0 %314 }
 0x17f   : > { %v316_v16 = vsub.f32 %v311_v11, %v315_v15 }
 0x181   : > { %v317_v17 = vmul.f32 1.442695, %v316_v16 }
 0x183   : > { %1623 = vpow2.f32 %v317_v17 }
 0x18d   : > { %v1624_v18 = vpop.eup %1623 }
 0x18e   : > { %v319_v19 = vsel %vm312_vm3, %v1624_v18, 0.0 }
 0x18f   : > { %320 = vadd.xlane.f32.xlu0 %v319_v19 }
 0x1a5   : > { %494 = vrot.lane.b32.xlu0 %v1411_v13, %s1666_s29 }
 0x1a9   : > { %828 = vrot.lane.b32.xlu0 %v1410_v14, %s1669_s7 }
 0x1ad   : > { %940 = vrot.lane.b32.xlu0 %v1410_v14, %s1670_s8 }
 0x1b1   : > { %1052 = vrot.lane.b32.xlu0 %v1410_v14, %s1671_s9 }
 0x21c   : > { %v321_v25 = vpop.xlane.xlu0 %320 }
 0x21d   : > { %1625 = vrcp.f32 %v321_v25 }
 0x220   : > { %v495_v27 = vpop.permute.xlu0 %494 }
 0x221   : > { %v500_v28 = vsel %vm263_vm1, %v495_v27, 0 }
 0x222   : > { %1504 = vmatpush3.bf16.xpose.msra.mxu1 %v500_v28 }
 0x223   : > { %1515 = vmatprep.subr.bf16.mxu1 %v1663_v0 }
 0x224   : > { %v829_v41 = vpop.permute.xlu0 %828 }
 0x227   : > { %v1626_v30 = vpop.eup %1625 }
 0x228   : > { %v323_v32 = vmul.f32 %v1626_v30, %v1624_v18  ;;  %v941_v44 = vpop.permute.xlu0 %940 }
 0x229   : > { %1506 = vmatmul.mubr.msk.bf16.vlgmr.msra.gmra.mrb[0].mxu1 %vm263_vm1, %v493_v24 }
 0x22a   : > { %1516 = vmatpush3.bf16.xpose.msra.mxu1 %v612_v31  ;;  %v324_v34 = vpack.c.bf16 %v323_v32, %v323_v32  ;;  %1517 = vmatprep.mubr.msk.bf16.mxu1 %vm1664_vm0, %v1663_v0 }
 0x22b   : > { %1527 = vmatprep.subr.bf16.mxu1 %v1663_v0 }
 0x22c   : > { %1488 = vmatmul.mubr.msk.bf16.vlgmr.msra.gmra.mrb[4].mxu0 %vm312_vm3, %v324_v34  ;;  %v1053_v46 = vpop.permute.xlu0 %1052 }
 0x22d   : > { %1492 = vmatpush3.bf16.xpose.msra.mxu0 %v388_v35  ;;  %1493 = vmatprep.mubr.msk.bf16.mxu0 %vm1664_vm0, %v1663_v0 }
 0x22e   : > { %1497 = vmatprep.subr.bf16.mxu0 %v1663_v0 }
 0x231   : > { %1518 = vmatmul.mubr.msk.bf16.vlgmr.msra.gmra.mrb[4].mxu1 %vm263_vm1, %v605_v29 }
 0x232   : > { %1528 = vmatpush3.bf16.xpose.msra.mxu1 %v724_v37  ;;  %1529 = vmatprep.mubr.msk.bf16.mxu1 %vm1664_vm0, %v1663_v0 }
 0x233   : > { %1539 = vmatprep.subr.bf16.mxu1 %v1663_v0 }
 0x234   : > { %1494 = vmatmul.mubr.msk.bf16.vlgmr.msra.gmra.mrb[8].mxu0 %vm263_vm1, %v379_v23 }
 0x235   : > { %1499 = vmatprep.mubr.msk.bf16.mxu0 %vm1664_vm0, %v1663_v0 }
 0x239   : > { %1530 = vmatmul.mubr.msk.bf16.vlgmr.msra.gmra.mrb[8].mxu1 %vm263_vm1, %v717_v36 }
 0x23a   : > { %1540 = vmatpush3.bf16.xpose.msra.mxu1 %v836_v39  ;;  %1541 = vmatprep.mubr.msk.bf16.mxu1 %vm1664_vm0, %v1663_v0 }
 0x23b   : > { %1551 = vmatprep.subr.bf16.mxu1 %v1663_v0 }
 0x241   : > { %1542 = vmatmul.mubr.msk.bf16.vlgmr.msra.gmra.mrb[12].mxu1 %vm263_vm1, %v829_v41 }
 0x242   : > { %1552 = vmatpush3.bf16.xpose.msra.mxu1 %v948_v42  ;;  %1553 = vmatprep.mubr.msk.bf16.mxu1 %vm1664_vm0, %v1663_v0 }
 0x243   : > { %1563 = vmatprep.subr.bf16.mxu1 %v1663_v0 }
 0x249   : > { %1554 = vmatmul.mubr.msk.bf16.vlgmr.msra.gmra.mrb[16].mxu1 %vm263_vm1, %v941_v44 }
 0x24a   : > { %1564 = vmatpush3.bf16.xpose.msra.mxu1 %v1060_v45  ;;  %1565 = vmatprep.mubr.msk.bf16.mxu1 %vm1664_vm0, %v1663_v0 }
 0x24b   : > { %1575 = vmatprep.subr.bf16.mxu1 %v1663_v0 }
 0x251   : > { %1566 = vmatmul.mubr.msk.bf16.vlgmr.msra.gmra.mrb[20].mxu1 %vm263_vm1, %v1053_v46 }
 0x252   : > { %1591 = vmatprep.mubr.msk.bf16.mxu1 %vm1664_vm0, %v1663_v0 }
 0x2fc   : > { %v536_v47 = vpop.f32.mrb[0].mxu1 }
 0x2fd   : > { %v542_v48 = vmul.f32 0.25, %v536_v47  ;;  %v1507_v49 = vpop.f32.mrb[1].mxu1 }
 0x2fe   : > { %v539_v50 = vpop.f32.mrb[2].mxu1 }
 0x2ff   : > { %v1794_v51 = vpop.f32.mrb[4].mxu0  ;;  %v1508_v52 = vpop.f32.mrb[3].mxu1  ;;  %v543_v53 = vsel %vm262_vm2, %v542_v48, -1e+30 }
 0x300   : > { %v1489_v54 = vpop.f32.mrb[5].mxu0  ;;  %v544_v55 = vsel %vm312_vm3, %v543_v53, -inf }
 0x301   : > { %545 = vmax.xlane.f32.xlu0 %v544_v55  ;;  %v372_v56 = vpop.f32.mrb[6].mxu0 }
 0x302   : > { %v1490_v57 = vpop.f32.mrb[7].mxu0 }
 0x304   : > { %v648_v58 = vpop.f32.mrb[4].mxu1 }
 0x305   : > { %v654_v59 = vmul.f32 0.25, %v648_v58  ;;  %v1519_v60 = vpop.f32.mrb[5].mxu1 }
 0x306   : > { %v651_v61 = vpop.f32.mrb[6].mxu1 }
 0x307   : > { %v424_v62 = vpop.f32.mrb[8].mxu0  ;;  %v1520_v63 = vpop.f32.mrb[7].mxu1  ;;  %v655_v1 = vsel %vm262_vm2, %v654_v59, -1e+30 }
 0x308   : > { %v430_v2 = vmul.f32 0.25, %v424_v62  ;;  %v1495_v3 = vpop.f32.mrb[9].mxu0  ;;  %v656_v4 = vsel %vm312_vm3, %v655_v1, -inf }
 0x309   : > { %657 = vmax.xlane.f32.xlu0 %v656_v4  ;;  %v427_v6 = vpop.f32.mrb[10].mxu0 }
 0x30a   : > { %v1496_v7 = vpop.f32.mrb[11].mxu0  ;;  %v431_v8 = vsel %vm262_vm2, %v430_v2, -1e+30 }
 0x30b   : > { %v432_v9 = vsel %vm312_vm3, %v431_v8, -inf }
 0x30c   : > { %v760_v10 = vpop.f32.mrb[8].mxu1  ;;  %433 = vmax.xlane.f32.xlu1 %v432_v9 }
 0x30d   : > { %v766_v11 = vmul.f32 0.25, %v760_v10  ;;  %v1531_v12 = vpop.f32.mrb[9].mxu1 }
 0x30e   : > { %v763_v13 = vpop.f32.mrb[10].mxu1 }
 0x30f   : > { %v1532_v14 = vpop.f32.mrb[11].mxu1  ;;  %v767_v15 = vsel %vm262_vm2, %v766_v11, -1e+30 }
 0x310   : > { %v768_v16 = vsel %vm312_vm3, %v767_v15, -inf }
 0x311   : > { %769 = vmax.xlane.f32.xlu1 %v768_v16 }
 0x314   : > { %v872_v17 = vpop.f32.mrb[12].mxu1 }
 0x315   : > { %v878_v18 = vmul.f32 0.25, %v872_v17  ;;  %v1543_v19 = vpop.f32.mrb[13].mxu1 }
 0x316   : > { %v875_v21 = vpop.f32.mrb[14].mxu1 }
 0x317   : > { %v1544_v22 = vpop.f32.mrb[15].mxu1  ;;  %v879_v23 = vsel %vm262_vm2, %v878_v18, -1e+30 }
 0x318   : > { %v880_v24 = vsel %vm312_vm3, %v879_v23, -inf }
 0x319   : > { %881 = vmax.xlane.f32.xlu0 %v880_v24 }
 0x31c   : > { %v984_v25 = vpop.f32.mrb[16].mxu1 }
 0x31d   : > { %v990_v26 = vmul.f32 0.25, %v984_v25  ;;  %v1555_v27 = vpop.f32.mrb[17].mxu1 }
 0x31e   : > { %v987_v28 = vpop.f32.mrb[18].mxu1 }
 0x31f   : > { %v991_v29 = vsel %vm262_vm2, %v990_v26, -1e+30  ;;  %v1556_v30 = vpop.f32.mrb[19].mxu1 }
 0x320   : > { %v992_v31 = vsel %vm312_vm3, %v991_v29, -inf }
 0x321   : > { %993 = vmax.xlane.f32.xlu1 %v992_v31 }
 0x324   : > { %v1096_v32 = vpop.f32.mrb[20].mxu1 }
 0x325   : > { %v1102_v33 = vmul.f32 0.25, %v1096_v32  ;;  %v1567_v34 = vpop.f32.mrb[21].mxu1 }
 0x326   : > { %v1099_v35 = vpop.f32.mrb[22].mxu1 }
 0x327   : > { %v1103_v36 = vsel %vm262_vm2, %v1102_v33, -1e+30  ;;  %v1568_v37 = vpop.f32.mrb[23].mxu1 }
 0x328   : > { %v1104_v38 = vsel %vm312_vm3, %v1103_v36, -inf }
 0x329   : > { %1105 = vmax.xlane.f32.xlu0 %v1104_v38 }
 0x38e   : > { %v546_v39 = vpop.xlane.xlu0 %545 }
 0x38f   : > { %v547_v40 = vsub.f32 %v543_v53, %v546_v39 }
 0x391   : > { %v548_v41 = vmul.f32 1.442695, %v547_v40 }
 0x393   : > { %1627 = vpow2.f32 %v548_v41 }
 0x396   : > { %v658_v42 = vpop.xlane.xlu0 %657 }
 0x397   : > { %v659_v43 = vsub.f32 %v655_v1, %v658_v42 }
 0x399   : > { %v660_v44 = vmul.f32 1.442695, %v659_v43  ;;  %v434_v45 = vpop.xlane.xlu1 %433 }
 0x39a   : > { %v435_v46 = vsub.f32 %v431_v8, %v434_v45 }
 0x39b   : > { %1629 = vpow2.f32 %v660_v44 }
 0x39c   : > { %v436_v47 = vmul.f32 1.442695, %v435_v46 }
 0x39d   : > { %v1817_v48 = vpop.eup %1627 }
 0x39e   : > { %1631 = vpow2.f32 %v436_v47  ;;  %v770_v5 = vpop.xlane.xlu1 %769  ;;  %v550_v49 = vsel %vm312_vm3, %v1817_v48, 0.0 }
 0x39f   : > { %v771_v50 = vsub.f32 %v767_v15, %v770_v5  ;;  %551 = vadd.xlane.f32.xlu0 %v550_v49 }
 0x3a1   : > { %v772_v52 = vmul.f32 1.442695, %v771_v50 }
 0x3a3   : > { %1633 = vpow2.f32 %v772_v52 }
 0x3a5   : > { %v1821_v53 = vpop.eup %1629 }
 0x3a6   : > { %v882_v54 = vpop.xlane.xlu0 %881  ;;  %v662_v55 = vsel %vm312_vm3, %v1821_v53, 0.0 }
 0x3a7   : > { %v883_v56 = vsub.f32 %v879_v23, %v882_v54  ;;  %663 = vadd.xlane.f32.xlu1 %v662_v55 }
 0x3a8   : > { %v1632_v57 = vpop.eup %1631 }
 0x3a9   : > { %v884_v58 = vmul.f32 1.442695, %v883_v56  ;;  %v438_v59 = vsel %vm312_vm3, %v1632_v57, 0.0 }
 0x3ab   : > { %1635 = vpow2.f32 %v884_v58  ;;  %439 = vadd.xlane.f32.xlu1 %v438_v59 }
 0x3ad   : > { %v1826_v60 = vpop.eup %1633 }
 0x3ae   : > { %v774_v61 = vsel %vm312_vm3, %v1826_v60, 0.0  ;;  %v994_v1 = vpop.xlane.xlu1 %993 }
 0x3af   : > { %775 = vadd.xlane.f32.xlu0 %v774_v61  ;;  %v995_v2 = vsub.f32 %v991_v29, %v994_v1 }
 0x3b1   : > { %v996_v3 = vmul.f32 1.442695, %v995_v2 }
 0x3b3   : > { %1637 = vpow2.f32 %v996_v3  ;;  %v1615_v3 = vld [vmem:[%s1950_s2] sm:$0xff]  }
 0x3b4   : > { %1576 = vmatpush3.bf16.msra.mxu1 %v1615_v3 }
 0x3b5   : > { %v1830_v62 = vpop.eup %1635  ;;  %1577 = vmatprep.subr.bf16.mxu1 %v1663_v0 }
 0x3b6   : > { %v886_v63 = vsel %vm312_vm3, %v1830_v62, 0.0  ;;  %v1106_v4 = vpop.xlane.xlu0 %1105 }
 0x3b7   : > { %887 = vadd.xlane.f32.xlu0 %v886_v63  ;;  %v1107_v6 = vsub.f32 %v1103_v36, %v1106_v4  ;;  %v1616_v4 = vld [vmem:[%s1950_s2 + $0x8] sm:$0xff]  }
 0x3b8   : > { %1578 = vmatpush3.bf16.msra.mxu1 %v1616_v4 }
 0x3b9   : > { %v1108_v8 = vmul.f32 1.442695, %v1107_v6  ;;  %v1617_v6 = vld [vmem:[%s1950_s2 + $0x10] sm:$0xff]   ;;  %1579 = vmatprep.subr.bf16.mxu1 %v1663_v0 }
 0x3bb   : > { %1639 = vpow2.f32 %v1108_v8 }
 0x3bc   : > { %444 = vrot.lane.b32.xlu1 %v1747_v20, %s1665_s28  ;;  %1580 = vmatpush3.bf16.msra.mxu1 %v1617_v6 }
 0x3bd   : > { %v1840_v7 = vpop.eup %1637  ;;  %1581 = vmatprep.subr.bf16.mxu1 %v1663_v0 }
 0x3be   : > { %v998_v9 = vsel %vm312_vm3, %v1840_v7, 0.0 }
 0x3c5   : > { %v1844_v10 = vpop.eup %1639 }
 0x3c6   : > { %v1110_v11 = vsel %vm312_vm3, %v1844_v10, 0.0 }
 0x3cd   : > { %556 = vrot.lane.b32.xlu0 %v1747_v20, %s1666_s29 }
 0x3d1   : > { %668 = vrot.lane.b32.xlu0 %v1747_v20, %s1667_s30 }
 0x3e0   : > { %999 = vadd.xlane.f32.xlu1 %v998_v9 }
 0x3f0   : > { %1111 = vadd.xlane.f32.xlu0 %v1110_v11  ;;  %v1618_v11 = vld [vmem:[%s1950_s2 + $0x18] sm:$0xff]  }
 0x3f1   : > { %780 = vrot.lane.b32.xlu1 %v1747_v20, %s1668_s6  ;;  %1582 = vmatpush3.bf16.msra.mxu1 %v1618_v11 }
 0x3f2   : > { %1583 = vmatprep.subr.bf16.mxu1 %v1663_v0 }
 0x3f5   : > { %1004 = vrot.lane.b32.xlu1 %v1747_v20, %s1670_s8 }
 0x3f9   : > { %1116 = vrot.lane.b32.xlu1 %v1747_v20, %s1671_s9 }
 0x406   : > { %892 = vrot.lane.b32.xlu0 %v1747_v20, %s1669_s7 }
 0x42c   : > { %v552_v14 = vpop.xlane.xlu0 %551 }
 0x434   : > { %v664_v12 = vpop.xlane.xlu1 %663 }
 0x438   : > { %v440_v13 = vpop.xlane.xlu1 %439 }
 0x439   : > { %1641 = vrcp.f32 %v440_v13  ;;  %v1620_v13 = vld [vmem:[%s1950_s2 + $0x28] sm:$0xff]  }
 0x43a   : > { %1643 = vrcp.f32 %v552_v14  ;;  %v1621_v14 = vld [vmem:[%s1950_s2 + $0x30] sm:$0xff]  }
 0x43b   : > { %1645 = vrcp.f32 %v664_v12  ;;  %v1619_v12 = vld [vmem:[%s1950_s2 + $0x20] sm:$0xff]  }
 0x43c   : > { %v445_v15 = vpop.permute.xlu1 %444  ;;  %v776_v17 = vpop.xlane.xlu0 %775  ;;  %1584 = vmatpush3.bf16.msra.mxu1 %v1619_v12 }
 0x43d   : > { %v450_v16 = vsel %vm331_vm4, %v445_v15, 0  ;;  %1647 = vrcp.f32 %v776_v17  ;;  %1585 = vmatprep.subr.bf16.mxu1 %v1663_v0 }
 0x43e   : > { %1498 = vmatpush3.bf16.msra.mxu0 %v450_v16 }
 0x43f   : > { %1509 = vmatprep.subr.bf16.mxu0 %v1663_v0 }
 0x440   : > { %1586 = vmatpush3.bf16.msra.mxu1 %v1620_v13 }
 0x441   : > { %1587 = vmatprep.subr.bf16.mxu1 %v1663_v0 }
 0x443   : > { %v1642_v18 = vpop.eup %1641 }
 0x444   : > { %v442_v19 = vmul.f32 %v1642_v18, %v1632_v57  ;;  %v888_v21 = vpop.xlane.xlu0 %887  ;;  %v1644_v23 = vpop.eup %1643  ;;  %1588 = vmatpush3.bf16.msra.mxu1 %v1621_v14 }
 0x445   : > { %v554_v25 = vmul.f32 %v1644_v23, %v1817_v48  ;;  %v1646_v28 = vpop.eup %1645  ;;  %1649 = vrcp.f32 %v888_v21  ;;  %1589 = vmatprep.subr.bf16.mxu1 %v1663_v0 }
 0x446   : > { %v443_v22 = vpack.c.bf16 %v442_v19, %v442_v19  ;;  %v666_v30 = vmul.f32 %v1646_v28, %v1821_v53  ;;  %v1622_v19 = vld [vmem:[%s1950_s2 + $0x38] sm:$0xff]  }
 0x447   : > { %v555_v27 = vpack.c.bf16 %v554_v25, %v554_v25  ;;  %v1648_v32 = vpop.eup %1647 }
 0x448   : > { %v557_v24 = vpop.permute.xlu0 %556  ;;  %1500 = vmatmul.mubr.msk.bf16.vlgmr.msra.gmra.mrb[12].mxu0 %vm312_vm3, %v443_v22  ;;  %v667_v31 = vpack.c.bf16 %v666_v30, %v666_v30  ;;  %v778_v34 = vmul.f32 %v1648_v32, %v1826_v60  ;;  %1590 = vmatpush3.bf16.msra.mxu1 %v1622_v19 }
 0x449   : > { %v562_v20 = vsel %vm331_vm4, %v557_v24, 0  ;;  %1511 = vmatprep.mubr.msk.bf16.mxu0 %vm1664_vm0, %v1663_v0 }
 0x44a   : > { %1510 = vmatpush3.bf16.msra.mxu0 %v562_v20  ;;  %v779_v37 = vpack.c.bf16 %v778_v34, %v778_v34 }
 0x44b   : > { %1521 = vmatprep.subr.bf16.mxu0 %v1663_v0 }
 0x44c   : > { %v669_v26 = vpop.permute.xlu0 %668 }
 0x44d   : > { %v674_v29 = vsel %vm331_vm4, %v669_v26, 0 }
 0x44f   : > { %v1650_v38 = vpop.eup %1649 }
 0x450   : > { %1512 = vmatmul.mubr.msk.bf16.vlgmr.msra.gmra.mrb[16].mxu0 %vm312_vm3, %v555_v27  ;;  %v890_v40 = vmul.f32 %v1650_v38, %v1830_v62 }
 0x451   : > { %1522 = vmatpush3.bf16.msra.mxu0 %v674_v29  ;;  %1523 = vmatprep.mubr.msk.bf16.mxu0 %vm1664_vm0, %v1663_v0 }
 0x452   : > { %1533 = vmatprep.subr.bf16.mxu0 %v1663_v0  ;;  %v891_v44 = vpack.c.bf16 %v890_v40, %v890_v40 }
 0x458   : > { %1524 = vmatmul.mubr.msk.bf16.vlgmr.msra.gmra.mrb[20].mxu0 %vm312_vm3, %v667_v31 }
 0x459   : > { %1535 = vmatprep.mubr.msk.bf16.mxu0 %vm1664_vm0, %v1663_v0 }
 0x46d   : > { %v1000_v33 = vpop.xlane.xlu1 %999 }
 0x46e   : > { %1651 = vrcp.f32 %v1000_v33 }
 0x471   : > { %v781_v35 = vpop.permute.xlu1 %780 }
 0x472   : > { %v786_v36 = vsel %vm331_vm4, %v781_v35, 0 }
 0x473   : > { %1534 = vmatpush3.bf16.msra.mxu0 %v786_v36 }
 0x474   : > { %1545 = vmatprep.subr.bf16.mxu0 %v1663_v0 }
 0x475   : > { %v1005_v42 = vpop.permute.xlu1 %1004 }
 0x476   : > { %1536 = vmatmul.mubr.msk.bf16.vlgmr.msra.gmra.mrb[24].mxu0 %vm312_vm3, %v779_v37  ;;  %v1010_v45 = vsel %vm331_vm4, %v1005_v42, 0 }
 0x477   : > { %1547 = vmatprep.mubr.msk.bf16.mxu0 %vm1664_vm0, %v1663_v0 }
 0x478   : > { %v1652_v46 = vpop.eup %1651 }
 0x479   : > { %v1002_v47 = vmul.f32 %v1652_v46, %v1840_v7  ;;  %v1117_v48 = vpop.permute.xlu1 %1116 }
 0x47a   : > { %v1122_v49 = vsel %vm331_vm4, %v1117_v48, 0 }
 0x47b   : > { %v1003_v5 = vpack.c.bf16 %v1002_v47, %v1002_v47 }
 0x47d   : > { %v1112_v39 = vpop.xlane.xlu0 %1111 }
 0x47e   : > { %1653 = vrcp.f32 %v1112_v39 }
 0x481   : > { %v893_v41 = vpop.permute.xlu0 %892 }
 0x482   : > { %v898_v43 = vsel %vm331_vm4, %v893_v41, 0 }
 0x483   : > { %1546 = vmatpush3.bf16.msra.mxu0 %v898_v43 }
 0x484   : > { %1557 = vmatprep.subr.bf16.mxu0 %v1663_v0 }
 0x486   : > { %1548 = vmatmul.mubr.msk.bf16.vlgmr.msra.gmra.mrb[28].mxu0 %vm312_vm3, %v891_v44 }
 0x487   : > { %1558 = vmatpush3.bf16.msra.mxu0 %v1010_v45  ;;  %1559 = vmatprep.mubr.msk.bf16.mxu0 %vm1664_vm0, %v1663_v0 }
 0x488   : > { %1569 = vmatprep.subr.bf16.mxu0 %v1663_v0  ;;  %v1654_v50 = vpop.eup %1653 }
 0x489   : > { %v1114_v52 = vmul.f32 %v1654_v50, %v1844_v10 }
 0x48b   : > { %v1115_v53 = vpack.c.bf16 %v1114_v52, %v1114_v52 }
 0x48e   : > { %1560 = vmatmul.mubr.msk.bf16.vlgmr.msra.gmra.mrb[32].mxu0 %vm312_vm3, %v1003_v5 }
 0x48f   : > { %1570 = vmatpush3.bf16.msra.mxu0 %v1122_v49  ;;  %1571 = vmatprep.mubr.msk.bf16.mxu0 %vm1664_vm0, %v1663_v0 }
 0x496   : > { %1572 = vmatmul.mubr.msk.bf16.vlgmr.msra.gmra.mrb[36].mxu0 %vm312_vm3, %v1115_v53 }
 0x51b   : > { %v486_v54 = vpop.f32.mrb[12].mxu0 }
 0x51c   : > { %1165 = vrot.lane.b32.xlu1 %v486_v54, %s1671_s9  ;;  %v1501_v55 = vpop.f32.mrb[13].mxu0 }
 0x51d   : > { %v489_v56 = vpop.f32.mrb[14].mxu0 }
 0x51e   : > { %v1502_v57 = vpop.f32.mrb[15].mxu0 }
 0x523   : > { %v598_v58 = vpop.f32.mrb[16].mxu0 }
 0x524   : > { %1169 = vrot.lane.b32.xlu1 %v598_v58, %s1670_s8  ;;  %v1513_v59 = vpop.f32.mrb[17].mxu0 }
 0x525   : > { %v601_v60 = vpop.f32.mrb[18].mxu0 }
 0x526   : > { %v1514_v61 = vpop.f32.mrb[19].mxu0 }
 0x52b   : > { %v710_v62 = vpop.f32.mrb[20].mxu0 }
 0x52c   : > { %1173 = vrot.lane.b32.xlu0 %v710_v62, %s1669_s7  ;;  %v1525_v63 = vpop.f32.mrb[21].mxu0 }
 0x52d   : > { %v713_v1 = vpop.f32.mrb[22].mxu0 }
 0x52e   : > { %v1526_v2 = vpop.f32.mrb[23].mxu0 }
 0x549   : > { %v822_v7 = vpop.f32.mrb[24].mxu0 }
 0x54a   : > { %1177 = vrot.lane.b32.xlu1 %v822_v7, %s1668_s6  ;;  %v1537_v8 = vpop.f32.mrb[25].mxu0 }
 0x54b   : > { %v825_v9 = vpop.f32.mrb[26].mxu0 }
 0x54c   : > { %v1538_v10 = vpop.f32.mrb[27].mxu0 }
 0x559   : > { %v934_v15 = vpop.f32.mrb[28].mxu0 }
 0x55a   : > { %1181 = vrot.lane.b32.xlu0 %v934_v15, %s1667_s30  ;;  %v1549_v16 = vpop.f32.mrb[29].mxu0  ;;  %s252_s30 = scalar_lea.vmem %s1952_s4, %s1716_s20 }
 0x55b   : > { %v937_v17 = vpop.f32.mrb[30].mxu0  ;;  %v1317_v43 = vld [vmem:[%s252_s30] sm:$0xff] }
 0x55c   : > { %v1550_v18 = vpop.f32.mrb[31].mxu0 }
 0x561   : > { %v1046_v21 = vpop.f32.mrb[32].mxu0 }
 0x562   : > { %1185 = vrot.lane.b32.xlu1 %v1046_v21, %s1666_s29  ;;  %v1561_v22 = vpop.f32.mrb[33].mxu0 }
 0x563   : > { %v1049_v23 = vpop.f32.mrb[34].mxu0 }
 0x564   : > { %v1562_v24 = vpop.f32.mrb[35].mxu0 }
 0x569   : > { %v1158_v20 = vpop.f32.mrb[36].mxu0 }
 0x56a   : > { %1189 = vrot.lane.b32.xlu0 %v1158_v20, %s1665_s28  ;;  %v1573_v25 = vpop.f32.mrb[37].mxu0 }
 0x56b   : > { %v1161_v26 = vpop.f32.mrb[38].mxu0 }
 0x56c   : > { %v1574_v27 = vpop.f32.mrb[39].mxu0 }
 0x58e   : > { %v1166_v28 = vpop.permute.xlu1 %1165 }
 0x58f   : > { %v1192_v31 = vsel %vm263_vm1, %v1794_v51, %v1166_v28  ;;  %v1426_v51 = vld [vmem:[%s1951_s3] ss:$0 sm:$0xff] }
 0x596   : > { %v1170_v0 = vpop.permute.xlu1 %1169 }
 0x597   : > { %v1194_v32 = vsel %vm1193_vm5, %v1192_v31, %v1170_v0 }
 0x59e   : > { %v1174_v29 = vpop.permute.xlu0 %1173 }
 0x59f   : > { %v1196_v34 = vsel %vm1195_vm6, %v1194_v32, %v1174_v29 }
 0x5bc   : > { %v1178_v30 = vpop.permute.xlu1 %1177 }
 0x5bd   : > { %v1198_v36 = vsel %vm1197_vm7, %v1196_v34, %v1178_v30 }
 0x5cc   : > { %v1182_v33 = vpop.permute.xlu0 %1181 }
 0x5cd   : > { %v1200_v37 = vsel %vm1199_vm8, %v1198_v36, %v1182_v33 }
 0x5d4   : > { %v1186_v35 = vpop.permute.xlu1 %1185 }
 0x5d5   : > { %v1202_v38 = vsel %vm1201_vm9, %v1200_v37, %v1186_v35 }
 0x5dc   : > { %v1190_v39 = vpop.permute.xlu0 %1189 }
 0x5dd   : > { %v1204_v40 = vsel %vm1203_vm10, %v1202_v38, %v1190_v39 }
 0x5de   : > { %v1205_v41 = vpack.c.bf16 %v1204_v40, %v1204_v40 }
 0x5e0   : > { %1592 = vmatmul.mubr.bf16.vlgmr.msra.gmra.mrb[24].mxu1 %v1205_v41 }
 0x6b3   : > { %v1311_v42 = vpop.f32.mrb[24].mxu1 }
 0x6b4   : > { %v1312_v44 = vadd.f32 %v1426_v51, %v1311_v42  ;;  %v1593_v45 = vpop.f32.mrb[25].mxu1 }
 0x6b5   : > { %v1314_v46 = vpop.f32.mrb[26].mxu1 }
 0x6b6   : > { %v1318_v47 = vadd.f32 %v1317_v43, %v1312_v44  ;;  %v1594_v48 = vpop.f32.mrb[27].mxu1 }
 0x6b8   : > { %1319 = vst [vmem:[%s256_s10] sm:$0xff] %v1318_v47 }
 0x6b9 PF: > { %s15_s18 = sadd.s32 1, %s1661_s18  }
 0x6ba   : > { %p12_p4 = scmp.ge.s32.totalorder %s15_s18, 4  }
 0x6bc   :  { %14 = sbr.rel (!%p12_p4) target bundleno = 1 (0x1), region = 76 }

// kernel: sam_forward.86
= control target key start
LH: loop header
LB: loop body
LE: loop exit
PB: predicated region body
PF: predicated region fallthrough
CT: control target
= control target key end

     0   :  { %s1678_s18 = smov 0   ;;  %s1897_s0 = inlined_call_operand.vmem [shape: bf16[2,8,128], index: 0, kind: input, shape index: {}]   ;;  %s1898_s1 = inlined_call_operand.vmem [shape: bf16[2,16,256], index: 1, kind: input, shape index: {}]   ;;  %s1899_s2 = inlined_call_operand.vmem [shape: bf16[128,128], index: 2, kind: input, shape index: {}]   ;;  %s1900_s3 = inlined_call_operand.vmem [shape: f32[1,128], index: 3, kind: input, shape index: {}]   ;;  %s1901_s4 = inlined_call_operand.vmem [shape: f32[2,8,128], index: 4, kind: input, shape index: {}]   ;;  %s1902_s5 = inlined_call_operand.vmem [shape: f32[2,8,128], index: 5, kind: output, shape index: {}]  }
   0x1 LB: > { %s1372_s19 = sadd.s32 4294967295, %s1637_s18   ;;  %p1376_p0 = scmp.ge.s32.totalorder %s1637_s18, 1  ;;  %s1637_s18 = sphi %s1678_s18, %s15_s18  }
   0x2   : > { %p205_p1 = scmp.lt.s32.totalorder %s1637_s18, 3 }
   0x4   : > { %p206_p2 = pnand %p1376_p0, %p205_p1 }
   0x5   : > { %p240_p3 = scmp.lt.s32.totalorder (!%p206_p2), %s1372_s19, 1  ;;  %v1639_v0 = vmov (!%p206_p2), 0.0   ;;  %vm1640_vm0 = vmmov (!%p206_p2), 0   ;;  %vm266_vm1 = vcmask (!%p206_p2), 130048   ;;  %s1641_s28 = smov (!%p206_p2), 112   ;;  %vm1168_vm2 = vcmask (!%p206_p2), 261120  }
   0x6   : > { %209 = sbr.rel (%p206_p2) target bundleno = 1718 (0x6b6), region = 40  ;;  %1454 = vmatprep.subr.bf16.mxu0 (!%p206_p2), %v1639_v0  ;;  %1456 = vmatprep.mubr.msk.bf16.mxu0 (!%p206_p2), %vm1640_vm0, %v1639_v0  ;;  %s1642_s29 = smov (!%p206_p2), 96   ;;  %vm1170_vm3 = vcmask (!%p206_p2), 392192   ;;  %vm1172_vm4 = vcmask (!%p206_p2), 523264   ;;  %vm1174_vm5 = vcmask (!%p206_p2), 654336   ;;  %vm1176_vm6 = vcmask (!%p206_p2), 785408  }
   0x7   : > { %1478 = vmatprep.subr.bf16.mxu1 (!%p206_p2), %v1639_v0  ;;  %1480 = vmatprep.mubr.msk.bf16.mxu1 (!%p206_p2), %vm1640_vm0, %v1639_v0  ;;  %s1643_s30 = smov (!%p206_p2), 80   ;;  %s1644_s6 = smov (!%p206_p2), 64   ;;  %vm1178_vm7 = vcmask (!%p206_p2), 916480  }
   0x8   : > { %s1645_s7 = smov (!%p206_p2), 48   ;;  %s1646_s8 = smov (!%p206_p2), 32  }
   0x9   : > { %s1647_s9 = smov (!%p206_p2), 16  }
   0xd   : > { %s1904_s19 = smov (!%p240_p3, %s1372_s19), 1 }
   0xe   : > { %s1412_s20 = sshll.u32 %s1904_s19, 4  ;;  %s1377_s24 = sshll.u32 %s1904_s19, 2 }
   0xf   : > { %s1698_s23 = scalar_lea.vmem %s1898_s1, %s1412_s20  ;;  %s243_s27 = scalar_lea.vmem %s1897_s0, %s1377_s24 }
  0x10   : > { %v1587_v1 = vld [vmem:[%s1698_s23] ss:$8 sps:$4 sm:$0xff]   ;;  %v1723_v16 = vld [vmem:[%s1698_s23 + $0x4] ss:$8 sps:$4 sm:$0xff]  }
  0x11   : > { %v271_v2 = vsel %vm266_vm1, %v1587_v1, 0  ;;  %v258_v3 = vld [vmem:[%s243_s27] sm:$0xf]  ;;  %378 = vrot.lane.b32.xlu1 %v1587_v1, %s1641_s28 }
  0x12   : > { %1455 = vmatpush3.bf16.xpose.msra.mxu0 %v271_v2  ;;  %v1386_v10 = vcombine.low %v258_v3, %v258_v3 }
  0x13   : > { %1460 = vmatprep.subr.bf16.mxu0 %v1639_v0 }
  0x15   : > { %376 = vrot.lane.b32.xlu1 %v1386_v10, %s1641_s28 }
  0x19   : > { %1457 = vmatmul.mubr.msk.bf16.vlgmr.msra.gmra.mrb[0].mxu0 %vm266_vm1, %v258_v3  ;;  %485 = vrot.lane.b32.xlu1 %v1386_v10, %s1642_s29 }
  0x1a   : > { %1462 = vmatprep.mubr.msk.bf16.mxu0 %vm1640_vm0, %v1639_v0  ;;  %1461 = vmatpush3.bf16.msra.mxu0 %v1723_v16 }
  0x1b   : > { %1466 = vmatprep.subr.bf16.mxu0 %v1639_v0 }
  0x1d   : > { %596 = vrot.lane.b32.xlu1 %v1587_v1, %s1643_s30 }
  0x21   : > { %594 = vrot.lane.b32.xlu1 %v1386_v10, %s1643_s30 }
  0x25   : > { %705 = vrot.lane.b32.xlu1 %v1587_v1, %s1644_s6 }
  0x29   : > { %703 = vrot.lane.b32.xlu1 %v1386_v10, %s1644_s6 }
  0x2d   : > { %814 = vrot.lane.b32.xlu1 %v1587_v1, %s1645_s7 }
  0x31   : > { %923 = vrot.lane.b32.xlu1 %v1587_v1, %s1646_s8 }
  0x35   : > { %1032 = vrot.lane.b32.xlu1 %v1587_v1, %s1647_s9 }
  0x83   : > { %v379_v17 = vpop.permute.xlu1 %378 }
  0x84   : > { %v384_v30 = vsel %vm266_vm1, %v379_v17, 0 }
  0x87   : > { %v377_v18 = vpop.permute.xlu1 %376 }
  0x8b   : > { %v486_v19 = vpop.permute.xlu1 %485 }
  0x8f   : > { %v597_v21 = vpop.permute.xlu1 %596 }
  0x90   : > { %v602_v26 = vsel %vm266_vm1, %v597_v21, 0 }
  0x93   : > { %v595_v24 = vpop.permute.xlu1 %594 }
  0x97   : > { %v706_v28 = vpop.permute.xlu1 %705 }
  0x98   : > { %v711_v32 = vsel %vm266_vm1, %v706_v28, 0 }
  0x9b   : > { %v704_v31 = vpop.permute.xlu1 %703 }
  0x9f   : > { %v815_v33 = vpop.permute.xlu1 %814 }
  0xa0   : > { %v820_v34 = vsel %vm266_vm1, %v815_v33, 0 }
  0xa3   : > { %v924_v35 = vpop.permute.xlu1 %923 }
  0xa4   : > { %v929_v37 = vsel %vm266_vm1, %v924_v35, 0 }
  0xa7   : > { %v1033_v38 = vpop.permute.xlu1 %1032 }
  0xa8   : > { %v1038_v40 = vsel %vm266_vm1, %v1033_v38, 0 }
  0xec   : > { %v307_v4 = vpop.f32.mrb[0].mxu0 }
  0xed   : > { %v313_v5 = vmul.f32 0.25, %v307_v4  ;;  %v1458_v6 = vpop.f32.mrb[1].mxu0 }
  0xee   : > { %v310_v7 = vpop.f32.mrb[2].mxu0 }
  0xef   : > { %v1459_v8 = vpop.f32.mrb[3].mxu0  ;;  %v314_v9 = vsel %vm266_vm1, %v313_v5, -inf }
  0xf0   : > { %315 = vmax.xlane.f32.xlu0 %v314_v9 }
 0x17d   : > { %v316_v11 = vpop.xlane.xlu0 %315 }
 0x17e   : > { %v317_v12 = vsub.f32 %v313_v5, %v316_v11 }
 0x180   : > { %v318_v13 = vmul.f32 1.442695, %v317_v12 }
 0x182   : > { %1599 = vpow2.f32 %v318_v13 }
 0x18c   : > { %v1600_v14 = vpop.eup %1599 }
 0x18d   : > { %v320_v15 = vsel %vm266_vm1, %v1600_v14, 0.0 }
 0x18e   : > { %321 = vadd.xlane.f32.xlu0 %v320_v15 }
 0x1a4   : > { %487 = vrot.lane.b32.xlu0 %v1587_v1, %s1642_s29 }
 0x1a8   : > { %812 = vrot.lane.b32.xlu0 %v1386_v10, %s1645_s7 }
 0x1ac   : > { %921 = vrot.lane.b32.xlu0 %v1386_v10, %s1646_s8 }
 0x1b0   : > { %1030 = vrot.lane.b32.xlu0 %v1386_v10, %s1647_s9 }
 0x21b   : > { %v322_v20 = vpop.xlane.xlu0 %321 }
 0x21c   : > { %1601 = vrcp.f32 %v322_v20 }
 0x21f   : > { %v488_v22 = vpop.permute.xlu0 %487 }
 0x220   : > { %v493_v23 = vsel %vm266_vm1, %v488_v22, 0 }
 0x221   : > { %1479 = vmatpush3.bf16.xpose.msra.mxu1 %v493_v23 }
 0x222   : > { %1490 = vmatprep.subr.bf16.mxu1 %v1639_v0 }
 0x223   : > { %v813_v36 = vpop.permute.xlu0 %812 }
 0x226   : > { %v1602_v25 = vpop.eup %1601 }
 0x227   : > { %v324_v27 = vmul.f32 %v1602_v25, %v1600_v14  ;;  %v922_v39 = vpop.permute.xlu0 %921 }
 0x228   : > { %1481 = vmatmul.mubr.msk.bf16.vlgmr.msra.gmra.mrb[0].mxu1 %vm266_vm1, %v486_v19 }
 0x229   : > { %1491 = vmatpush3.bf16.xpose.msra.mxu1 %v602_v26  ;;  %v325_v29 = vpack.c.bf16 %v324_v27, %v324_v27  ;;  %1492 = vmatprep.mubr.msk.bf16.mxu1 %vm1640_vm0, %v1639_v0 }
 0x22a   : > { %1502 = vmatprep.subr.bf16.mxu1 %v1639_v0 }
 0x22b   : > { %1463 = vmatmul.mubr.msk.bf16.vlgmr.msra.gmra.mrb[4].mxu0 %vm266_vm1, %v325_v29  ;;  %v1031_v41 = vpop.permute.xlu0 %1030 }
 0x22c   : > { %1467 = vmatpush3.bf16.xpose.msra.mxu0 %v384_v30  ;;  %1468 = vmatprep.mubr.msk.bf16.mxu0 %vm1640_vm0, %v1639_v0 }
 0x22d   : > { %1472 = vmatprep.subr.bf16.mxu0 %v1639_v0 }
 0x230   : > { %1493 = vmatmul.mubr.msk.bf16.vlgmr.msra.gmra.mrb[4].mxu1 %vm266_vm1, %v595_v24 }
 0x231   : > { %1503 = vmatpush3.bf16.xpose.msra.mxu1 %v711_v32  ;;  %1504 = vmatprep.mubr.msk.bf16.mxu1 %vm1640_vm0, %v1639_v0 }
 0x232   : > { %1514 = vmatprep.subr.bf16.mxu1 %v1639_v0 }
 0x233   : > { %1469 = vmatmul.mubr.msk.bf16.vlgmr.msra.gmra.mrb[8].mxu0 %vm266_vm1, %v377_v18 }
 0x234   : > { %1474 = vmatprep.mubr.msk.bf16.mxu0 %vm1640_vm0, %v1639_v0 }
 0x238   : > { %1505 = vmatmul.mubr.msk.bf16.vlgmr.msra.gmra.mrb[8].mxu1 %vm266_vm1, %v704_v31 }
 0x239   : > { %1515 = vmatpush3.bf16.xpose.msra.mxu1 %v820_v34  ;;  %1516 = vmatprep.mubr.msk.bf16.mxu1 %vm1640_vm0, %v1639_v0 }
 0x23a   : > { %1526 = vmatprep.subr.bf16.mxu1 %v1639_v0 }
 0x240   : > { %1517 = vmatmul.mubr.msk.bf16.vlgmr.msra.gmra.mrb[12].mxu1 %vm266_vm1, %v813_v36 }
 0x241   : > { %1527 = vmatpush3.bf16.xpose.msra.mxu1 %v929_v37  ;;  %1528 = vmatprep.mubr.msk.bf16.mxu1 %vm1640_vm0, %v1639_v0 }
 0x242   : > { %1538 = vmatprep.subr.bf16.mxu1 %v1639_v0 }
 0x248   : > { %1529 = vmatmul.mubr.msk.bf16.vlgmr.msra.gmra.mrb[16].mxu1 %vm266_vm1, %v922_v39 }
 0x249   : > { %1539 = vmatpush3.bf16.xpose.msra.mxu1 %v1038_v40  ;;  %1540 = vmatprep.mubr.msk.bf16.mxu1 %vm1640_vm0, %v1639_v0 }
 0x24a   : > { %1550 = vmatprep.subr.bf16.mxu1 %v1639_v0 }
 0x250   : > { %1541 = vmatmul.mubr.msk.bf16.vlgmr.msra.gmra.mrb[20].mxu1 %vm266_vm1, %v1031_v41 }
 0x251   : > { %1566 = vmatprep.mubr.msk.bf16.mxu1 %vm1640_vm0, %v1639_v0 }
 0x2fb   : > { %v529_v42 = vpop.f32.mrb[0].mxu1 }
 0x2fc   : > { %v535_v43 = vmul.f32 0.25, %v529_v42  ;;  %v1482_v44 = vpop.f32.mrb[1].mxu1 }
 0x2fd   : > { %v532_v45 = vpop.f32.mrb[2].mxu1 }
 0x2fe   : > { %v1769_v46 = vpop.f32.mrb[4].mxu0  ;;  %v1483_v47 = vpop.f32.mrb[3].mxu1  ;;  %v536_v48 = vsel %vm266_vm1, %v535_v43, -inf }
 0x2ff   : > { %537 = vmax.xlane.f32.xlu0 %v536_v48  ;;  %v1464_v49 = vpop.f32.mrb[5].mxu0 }
 0x300   : > { %v370_v50 = vpop.f32.mrb[6].mxu0 }
 0x301   : > { %v1465_v51 = vpop.f32.mrb[7].mxu0 }
 0x303   : > { %v638_v52 = vpop.f32.mrb[4].mxu1 }
 0x304   : > { %v644_v53 = vmul.f32 0.25, %v638_v52  ;;  %v1494_v54 = vpop.f32.mrb[5].mxu1 }
 0x305   : > { %v641_v55 = vpop.f32.mrb[6].mxu1 }
 0x306   : > { %v420_v56 = vpop.f32.mrb[8].mxu0  ;;  %v1495_v57 = vpop.f32.mrb[7].mxu1  ;;  %v645_v58 = vsel %vm266_vm1, %v644_v53, -inf }
 0x307   : > { %v426_v59 = vmul.f32 0.25, %v420_v56  ;;  %646 = vmax.xlane.f32.xlu0 %v645_v58  ;;  %v1470_v60 = vpop.f32.mrb[9].mxu0 }
 0x308   : > { %v423_v61 = vpop.f32.mrb[10].mxu0 }
 0x309   : > { %v1471_v62 = vpop.f32.mrb[11].mxu0  ;;  %v427_v63 = vsel %vm266_vm1, %v426_v59, -inf }
 0x30a   : > { %428 = vmax.xlane.f32.xlu1 %v427_v63 }
 0x30b   : > { %v747_v1 = vpop.f32.mrb[8].mxu1 }
 0x30c   : > { %v753_v2 = vmul.f32 0.25, %v747_v1  ;;  %v1506_v3 = vpop.f32.mrb[9].mxu1 }
 0x30d   : > { %v750_v4 = vpop.f32.mrb[10].mxu1 }
 0x30e   : > { %v1507_v5 = vpop.f32.mrb[11].mxu1  ;;  %v754_v6 = vsel %vm266_vm1, %v753_v2, -inf }
 0x30f   : > { %755 = vmax.xlane.f32.xlu1 %v754_v6 }
 0x313   : > { %v856_v7 = vpop.f32.mrb[12].mxu1 }
 0x314   : > { %v862_v8 = vmul.f32 0.25, %v856_v7  ;;  %v1518_v9 = vpop.f32.mrb[13].mxu1 }
 0x315   : > { %v859_v10 = vpop.f32.mrb[14].mxu1 }
 0x316   : > { %v1519_v11 = vpop.f32.mrb[15].mxu1  ;;  %v863_v12 = vsel %vm266_vm1, %v862_v8, -inf }
 0x317   : > { %864 = vmax.xlane.f32.xlu0 %v863_v12 }
 0x31b   : > { %v965_v13 = vpop.f32.mrb[16].mxu1 }
 0x31c   : > { %v971_v14 = vmul.f32 0.25, %v965_v13  ;;  %v1530_v15 = vpop.f32.mrb[17].mxu1 }
 0x31d   : > { %v968_v17 = vpop.f32.mrb[18].mxu1 }
 0x31e   : > { %v972_v18 = vsel %vm266_vm1, %v971_v14, -inf  ;;  %v1531_v19 = vpop.f32.mrb[19].mxu1 }
 0x31f   : > { %973 = vmax.xlane.f32.xlu1 %v972_v18 }
 0x323   : > { %v1074_v20 = vpop.f32.mrb[20].mxu1 }
 0x324   : > { %v1080_v21 = vmul.f32 0.25, %v1074_v20  ;;  %v1542_v22 = vpop.f32.mrb[21].mxu1 }
 0x325   : > { %v1077_v23 = vpop.f32.mrb[22].mxu1 }
 0x326   : > { %v1081_v24 = vsel %vm266_vm1, %v1080_v21, -inf  ;;  %v1543_v25 = vpop.f32.mrb[23].mxu1 }
 0x327   : > { %1082 = vmax.xlane.f32.xlu0 %v1081_v24 }
 0x38c   : > { %v538_v26 = vpop.xlane.xlu0 %537 }
 0x38d   : > { %v539_v27 = vsub.f32 %v535_v43, %v538_v26 }
 0x38f   : > { %v540_v28 = vmul.f32 1.442695, %v539_v27 }
 0x391   : > { %1603 = vpow2.f32 %v540_v28 }
 0x394   : > { %v647_v29 = vpop.xlane.xlu0 %646 }
 0x395   : > { %v648_v30 = vsub.f32 %v644_v53, %v647_v29 }
 0x397   : > { %v649_v31 = vmul.f32 1.442695, %v648_v30  ;;  %v429_v32 = vpop.xlane.xlu1 %428 }
 0x398   : > { %v430_v33 = vsub.f32 %v426_v59, %v429_v32 }
 0x399   : > { %1605 = vpow2.f32 %v649_v31 }
 0x39a   : > { %v431_v34 = vmul.f32 1.442695, %v430_v33 }
 0x39b   : > { %v1778_v35 = vpop.eup %1603 }
 0x39c   : > { %1607 = vpow2.f32 %v431_v34  ;;  %v756_v36 = vpop.xlane.xlu1 %755  ;;  %v542_v37 = vsel %vm266_vm1, %v1778_v35, 0.0 }
 0x39d   : > { %v757_v38 = vsub.f32 %v753_v2, %v756_v36  ;;  %543 = vadd.xlane.f32.xlu0 %v542_v37 }
 0x39f   : > { %v758_v39 = vmul.f32 1.442695, %v757_v38 }
 0x3a1   : > { %1609 = vpow2.f32 %v758_v39 }
 0x3a3   : > { %v1782_v40 = vpop.eup %1605 }
 0x3a4   : > { %v865_v41 = vpop.xlane.xlu0 %864  ;;  %v651_v42 = vsel %vm266_vm1, %v1782_v40, 0.0 }
 0x3a5   : > { %v866_v43 = vsub.f32 %v862_v8, %v865_v41  ;;  %652 = vadd.xlane.f32.xlu1 %v651_v42 }
 0x3a6   : > { %v1608_v44 = vpop.eup %1607 }
 0x3a7   : > { %v867_v45 = vmul.f32 1.442695, %v866_v43  ;;  %v433_v47 = vsel %vm266_vm1, %v1608_v44, 0.0 }
 0x3a9   : > { %1611 = vpow2.f32 %v867_v45  ;;  %434 = vadd.xlane.f32.xlu1 %v433_v47  ;;  %v1591_v47 = vld [vmem:[%s1899_s2] sm:$0xff]  }
 0x3aa   : > { %1551 = vmatpush3.bf16.msra.mxu1 %v1591_v47 }
 0x3ab   : > { %v1610_v48 = vpop.eup %1609  ;;  %1552 = vmatprep.subr.bf16.mxu1 %v1639_v0 }
 0x3ac   : > { %v760_v49 = vsel %vm266_vm1, %v1610_v48, 0.0  ;;  %v974_v52 = vpop.xlane.xlu1 %973 }
 0x3ad   : > { %761 = vadd.xlane.f32.xlu0 %v760_v49  ;;  %v975_v53 = vsub.f32 %v971_v14, %v974_v52  ;;  %v1593_v49 = vld [vmem:[%s1899_s2 + $0x10] sm:$0xff]  }
 0x3af   : > { %v976_v54 = vmul.f32 1.442695, %v975_v53 }
 0x3b1   : > { %1613 = vpow2.f32 %v976_v54  ;;  %v1594_v54 = vld [vmem:[%s1899_s2 + $0x18] sm:$0xff]  }
 0x3b3   : > { %v1788_v50 = vpop.eup %1611 }
 0x3b4   : > { %v869_v51 = vsel %vm266_vm1, %v1788_v50, 0.0  ;;  %v1083_v55 = vpop.xlane.xlu0 %1082 }
 0x3b5   : > { %870 = vadd.xlane.f32.xlu0 %v869_v51  ;;  %v1084_v56 = vsub.f32 %v1080_v21, %v1083_v55  ;;  %v1595_v55 = vld [vmem:[%s1899_s2 + $0x20] sm:$0xff]  }
 0x3b7   : > { %v1085_v58 = vmul.f32 1.442695, %v1084_v56  ;;  %v1596_v56 = vld [vmem:[%s1899_s2 + $0x28] sm:$0xff]  }
 0x3b9   : > { %1615 = vpow2.f32 %v1085_v58 }
 0x3ba   : > { %439 = vrot.lane.b32.xlu1 %v1723_v16, %s1641_s28 }
 0x3bb   : > { %v1798_v57 = vpop.eup %1613 }
 0x3bc   : > { %v978_v59 = vsel %vm266_vm1, %v1798_v57, 0.0 }
 0x3c3   : > { %v1802_v60 = vpop.eup %1615 }
 0x3c4   : > { %v1087_v61 = vsel %vm266_vm1, %v1802_v60, 0.0 }
 0x3cb   : > { %548 = vrot.lane.b32.xlu0 %v1723_v16, %s1642_s29 }
 0x3cf   : > { %657 = vrot.lane.b32.xlu0 %v1723_v16, %s1643_s30 }
 0x3de   : > { %979 = vadd.xlane.f32.xlu1 %v978_v59 }
 0x3ee   : > { %1088 = vadd.xlane.f32.xlu0 %v1087_v61 }
 0x3ef   : > { %766 = vrot.lane.b32.xlu1 %v1723_v16, %s1644_s6 }
 0x3f3   : > { %984 = vrot.lane.b32.xlu1 %v1723_v16, %s1646_s8 }
 0x3f7   : > { %1093 = vrot.lane.b32.xlu1 %v1723_v16, %s1647_s9 }
 0x404   : > { %875 = vrot.lane.b32.xlu0 %v1723_v16, %s1645_s7 }
 0x42a   : > { %v544_v1 = vpop.xlane.xlu0 %543 }
 0x432   : > { %v653_v62 = vpop.xlane.xlu1 %652 }
 0x436   : > { %v435_v63 = vpop.xlane.xlu1 %434 }
 0x437   : > { %1617 = vrcp.f32 %v435_v63 }
 0x438   : > { %1619 = vrcp.f32 %v544_v1 }
 0x439   : > { %1621 = vrcp.f32 %v653_v62  ;;  %v1598_v62 = vld [vmem:[%s1899_s2 + $0x38] sm:$0xff]  }
 0x43a   : > { %v440_v2 = vpop.permute.xlu1 %439  ;;  %v762_v3 = vpop.xlane.xlu0 %761 }
 0x43b   : > { %1473 = vmatpush3.bf16.msra.mxu0 %v440_v2  ;;  %1623 = vrcp.f32 %v762_v3 }
 0x43c   : > { %1484 = vmatprep.subr.bf16.mxu0 %v1639_v0 }
 0x441   : > { %v1618_v4 = vpop.eup %1617 }
 0x442   : > { %v437_v5 = vmul.f32 %v1618_v4, %v1608_v44  ;;  %v871_v6 = vpop.xlane.xlu0 %870  ;;  %v1620_v8 = vpop.eup %1619 }
 0x443   : > { %v546_v16 = vmul.f32 %v1620_v8, %v1778_v35  ;;  %v1622_v11 = vpop.eup %1621  ;;  %1625 = vrcp.f32 %v871_v6 }
 0x444   : > { %v438_v7 = vpack.c.bf16 %v437_v5, %v437_v5  ;;  %v655_v13 = vmul.f32 %v1622_v11, %v1782_v40 }
 0x445   : > { %v547_v10 = vpack.c.bf16 %v546_v16, %v546_v16  ;;  %v1624_v15 = vpop.eup %1623 }
 0x446   : > { %v549_v9 = vpop.permute.xlu0 %548  ;;  %1475 = vmatmul.mubr.msk.bf16.vlgmr.msra.gmra.mrb[12].mxu0 %vm266_vm1, %v438_v7  ;;  %v656_v14 = vpack.c.bf16 %v655_v13, %v655_v13  ;;  %v764_v18 = vmul.f32 %v1624_v15, %v1610_v48  ;;  %v1592_v48 = vld [vmem:[%s1899_s2 + $0x8] sm:$0xff]  }
 0x447   : > { %1485 = vmatpush3.bf16.msra.mxu0 %v549_v9  ;;  %1486 = vmatprep.mubr.msk.bf16.mxu0 %vm1640_vm0, %v1639_v0 }
 0x448   : > { %1496 = vmatprep.subr.bf16.mxu0 %v1639_v0  ;;  %v765_v20 = vpack.c.bf16 %v764_v18, %v764_v18  ;;  %1553 = vmatpush3.bf16.msra.mxu1 %v1592_v48 }
 0x449   : > { %1554 = vmatprep.subr.bf16.mxu1 %v1639_v0 }
 0x44a   : > { %v658_v12 = vpop.permute.xlu0 %657 }
 0x44c   : > { %1555 = vmatpush3.bf16.msra.mxu1 %v1593_v49 }
 0x44d   : > { %v1626_v21 = vpop.eup %1625  ;;  %1556 = vmatprep.subr.bf16.mxu1 %v1639_v0 }
 0x44e   : > { %1487 = vmatmul.mubr.msk.bf16.vlgmr.msra.gmra.mrb[16].mxu0 %vm266_vm1, %v547_v10  ;;  %v873_v23 = vmul.f32 %v1626_v21, %v1788_v50 }
 0x44f   : > { %1497 = vmatpush3.bf16.msra.mxu0 %v658_v12  ;;  %1498 = vmatprep.mubr.msk.bf16.mxu0 %vm1640_vm0, %v1639_v0 }
 0x450   : > { %1508 = vmatprep.subr.bf16.mxu0 %v1639_v0  ;;  %v874_v25 = vpack.c.bf16 %v873_v23, %v873_v23  ;;  %1557 = vmatpush3.bf16.msra.mxu1 %v1594_v54 }
 0x451   : > { %1558 = vmatprep.subr.bf16.mxu1 %v1639_v0 }
 0x454   : > { %1559 = vmatpush3.bf16.msra.mxu1 %v1595_v55 }
 0x455   : > { %1560 = vmatprep.subr.bf16.mxu1 %v1639_v0 }
 0x456   : > { %1499 = vmatmul.mubr.msk.bf16.vlgmr.msra.gmra.mrb[20].mxu0 %vm266_vm1, %v656_v14 }
 0x457   : > { %1510 = vmatprep.mubr.msk.bf16.mxu0 %vm1640_vm0, %v1639_v0 }
 0x458   : > { %1561 = vmatpush3.bf16.msra.mxu1 %v1596_v56 }
 0x459   : > { %1562 = vmatprep.subr.bf16.mxu1 %v1639_v0 }
 0x46b   : > { %v980_v17 = vpop.xlane.xlu1 %979 }
 0x46c   : > { %1627 = vrcp.f32 %v980_v17 }
 0x46f   : > { %v767_v19 = vpop.permute.xlu1 %766 }
 0x470   : > { %1509 = vmatpush3.bf16.msra.mxu0 %v767_v19 }
 0x471   : > { %1520 = vmatprep.subr.bf16.mxu0 %v1639_v0 }
 0x473   : > { %1511 = vmatmul.mubr.msk.bf16.vlgmr.msra.gmra.mrb[24].mxu0 %vm266_vm1, %v765_v20  ;;  %v985_v26 = vpop.permute.xlu1 %984 }
 0x474   : > { %1522 = vmatprep.mubr.msk.bf16.mxu0 %vm1640_vm0, %v1639_v0 }
 0x476   : > { %v1628_v27 = vpop.eup %1627 }
 0x477   : > { %v982_v28 = vmul.f32 %v1628_v27, %v1798_v57  ;;  %v1094_v30 = vpop.permute.xlu1 %1093  ;;  %v1597_v57 = vld [vmem:[%s1899_s2 + $0x30] sm:$0xff]  }
 0x478   : > { %1563 = vmatpush3.bf16.msra.mxu1 %v1597_v57 }
 0x479   : > { %v983_v29 = vpack.c.bf16 %v982_v28, %v982_v28  ;;  %1564 = vmatprep.subr.bf16.mxu1 %v1639_v0 }
 0x47b   : > { %v1089_v22 = vpop.xlane.xlu0 %1088 }
 0x47c   : > { %1629 = vrcp.f32 %v1089_v22  ;;  %1565 = vmatpush3.bf16.msra.mxu1 %v1598_v62 }
 0x47f   : > { %v876_v24 = vpop.permute.xlu0 %875 }
 0x480   : > { %1521 = vmatpush3.bf16.msra.mxu0 %v876_v24 }
 0x481   : > { %1532 = vmatprep.subr.bf16.mxu0 %v1639_v0 }
 0x483   : > { %1523 = vmatmul.mubr.msk.bf16.vlgmr.msra.gmra.mrb[28].mxu0 %vm266_vm1, %v874_v25 }
 0x484   : > { %1533 = vmatpush3.bf16.msra.mxu0 %v985_v26  ;;  %1534 = vmatprep.mubr.msk.bf16.mxu0 %vm1640_vm0, %v1639_v0 }
 0x485   : > { %1544 = vmatprep.subr.bf16.mxu0 %v1639_v0 }
 0x486   : > { %v1630_v31 = vpop.eup %1629 }
 0x487   : > { %v1091_v32 = vmul.f32 %v1630_v31, %v1802_v60 }
 0x489   : > { %v1092_v33 = vpack.c.bf16 %v1091_v32, %v1091_v32 }
 0x48b   : > { %1535 = vmatmul.mubr.msk.bf16.vlgmr.msra.gmra.mrb[32].mxu0 %vm266_vm1, %v983_v29 }
 0x48c   : > { %1545 = vmatpush3.bf16.msra.mxu0 %v1094_v30  ;;  %1546 = vmatprep.mubr.msk.bf16.mxu0 %vm1640_vm0, %v1639_v0 }
 0x493   : > { %1547 = vmatmul.mubr.msk.bf16.vlgmr.msra.gmra.mrb[36].mxu0 %vm266_vm1, %v1092_v33 }
 0x519   : > { %v479_v34 = vpop.f32.mrb[12].mxu0 }
 0x51a   : > { %1140 = vrot.lane.b32.xlu1 %v479_v34, %s1647_s9  ;;  %v1476_v35 = vpop.f32.mrb[13].mxu0 }
 0x51b   : > { %v482_v36 = vpop.f32.mrb[14].mxu0 }
 0x51c   : > { %v1477_v37 = vpop.f32.mrb[15].mxu0 }
 0x521   : > { %v588_v38 = vpop.f32.mrb[16].mxu0 }
 0x522   : > { %1144 = vrot.lane.b32.xlu1 %v588_v38, %s1646_s8  ;;  %v1488_v39 = vpop.f32.mrb[17].mxu0 }
 0x523   : > { %v591_v40 = vpop.f32.mrb[18].mxu0 }
 0x524   : > { %v1489_v41 = vpop.f32.mrb[19].mxu0 }
 0x529   : > { %v697_v42 = vpop.f32.mrb[20].mxu0 }
 0x52a   : > { %1148 = vrot.lane.b32.xlu0 %v697_v42, %s1645_s7  ;;  %v1500_v43 = vpop.f32.mrb[21].mxu0 }
 0x52b   : > { %v700_v44 = vpop.f32.mrb[22].mxu0 }
 0x52c   : > { %v1501_v45 = vpop.f32.mrb[23].mxu0 }
 0x546   : > { %v806_v50 = vpop.f32.mrb[24].mxu0 }
 0x547   : > { %1152 = vrot.lane.b32.xlu1 %v806_v50, %s1644_s6  ;;  %v1512_v51 = vpop.f32.mrb[25].mxu0 }
 0x548   : > { %v809_v52 = vpop.f32.mrb[26].mxu0 }
 0x549   : > { %v1513_v53 = vpop.f32.mrb[27].mxu0 }
 0x556   : > { %v915_v58 = vpop.f32.mrb[28].mxu0 }
 0x557   : > { %1156 = vrot.lane.b32.xlu0 %v915_v58, %s1643_s30  ;;  %v1524_v59 = vpop.f32.mrb[29].mxu0 }
 0x558   : > { %v918_v60 = vpop.f32.mrb[30].mxu0 }
 0x559   : > { %v1525_v61 = vpop.f32.mrb[31].mxu0 }
 0x55e   : > { %v1024_v63 = vpop.f32.mrb[32].mxu0 }
 0x55f   : > { %1160 = vrot.lane.b32.xlu1 %v1024_v63, %s1642_s29  ;;  %v1536_v1 = vpop.f32.mrb[33].mxu0 }
 0x560   : > { %v1027_v2 = vpop.f32.mrb[34].mxu0 }
 0x561   : > { %v1537_v3 = vpop.f32.mrb[35].mxu0 }
 0x566   : > { %v1133_v4 = vpop.f32.mrb[36].mxu0 }
 0x567   : > { %1164 = vrot.lane.b32.xlu0 %v1133_v4, %s1641_s28  ;;  %v1548_v5 = vpop.f32.mrb[37].mxu0  ;;  %s1380_s28 = sshll.u32 %s1904_s19, 3 }
 0x568   : > { %v1136_v6 = vpop.f32.mrb[38].mxu0  ;;  %s252_s6 = scalar_lea.vmem %s1901_s4, %s1380_s28  ;;  %s256_s11 = scalar_lea.vmem %s1902_s5, %s1380_s28 }
 0x569   : > { %v1549_v7 = vpop.f32.mrb[39].mxu0  ;;  %v1292_v23 = vld [vmem:[%s252_s6] sm:$0xff] }
 0x58c   : > { %v1141_v8 = vpop.permute.xlu1 %1140 }
 0x58d   : > { %v1167_v10 = vsel %vm266_vm1, %v1769_v46, %v1141_v8  ;;  %v1401_v46 = vld [vmem:[%s1900_s3] ss:$0 sm:$0xff] }
 0x594   : > { %v1145_v0 = vpop.permute.xlu1 %1144 }
 0x595   : > { %v1169_v11 = vsel %vm1168_vm2, %v1167_v10, %v1145_v0 }
 0x59c   : > { %v1149_v9 = vpop.permute.xlu0 %1148 }
 0x59d   : > { %v1171_v13 = vsel %vm1170_vm3, %v1169_v11, %v1149_v9 }
 0x5b9   : > { %v1153_v16 = vpop.permute.xlu1 %1152 }
 0x5ba   : > { %v1173_v15 = vsel %vm1172_vm4, %v1171_v13, %v1153_v16 }
 0x5c9   : > { %v1157_v12 = vpop.permute.xlu0 %1156 }
 0x5ca   : > { %v1175_v17 = vsel %vm1174_vm5, %v1173_v15, %v1157_v12 }
 0x5d1   : > { %v1161_v14 = vpop.permute.xlu1 %1160 }
 0x5d2   : > { %v1177_v18 = vsel %vm1176_vm6, %v1175_v17, %v1161_v14 }
 0x5d9   : > { %v1165_v19 = vpop.permute.xlu0 %1164 }
 0x5da   : > { %v1179_v20 = vsel %vm1178_vm7, %v1177_v18, %v1165_v19 }
 0x5db   : > { %v1180_v21 = vpack.c.bf16 %v1179_v20, %v1179_v20 }
 0x5dd   : > { %1567 = vmatmul.mubr.bf16.vlgmr.msra.gmra.mrb[24].mxu1 %v1180_v21 }
 0x6b0   : > { %v1286_v22 = vpop.f32.mrb[24].mxu1 }
 0x6b1   : > { %v1287_v24 = vadd.f32 %v1401_v46, %v1286_v22  ;;  %v1568_v25 = vpop.f32.mrb[25].mxu1 }
 0x6b2   : > { %v1289_v26 = vpop.f32.mrb[26].mxu1 }
 0x6b3   : > { %v1293_v27 = vadd.f32 %v1292_v23, %v1287_v24  ;;  %v1569_v28 = vpop.f32.mrb[27].mxu1 }
 0x6b5   : > { %1294 = vst [vmem:[%s256_s11] sm:$0xff] %v1293_v27 }
 0x6b6 PF: > { %s15_s18 = sadd.s32 1, %s1637_s18  }
 0x6b7   : > { %p12_p4 = scmp.ge.s32.totalorder %s15_s18, 4  }
 0x6b9   :  { %14 = sbr.rel (!%p12_p4) target bundleno = 1 (0x1), region = 76 }

// kernel: sub.4
= control target key start
LH: loop header
LB: loop body
LE: loop exit
PB: predicated region body
PF: predicated region fallthrough
CT: control target
= control target key end

     0   :  { %s100_s0 = inlined_call_operand.vmem [shape: f32[128,32], index: 0, kind: input, shape index: {}]   ;;  %s101_s1 = inlined_call_operand.vmem [shape: f32[128,32], index: 1, kind: input, shape index: {}]   ;;  %s102_s2 = inlined_call_operand.vmem [shape: f32[128,32], index: 2, kind: output, shape index: {}]  }
   0x1   :  { %v3_v0 = vld [vmem:[%s100_s0] sm:$0xff]  ;;  %v40_v2 = vld [vmem:[%s100_s0 + $0x8] sm:$0xff]  ;;  %v43_v5 = vld [vmem:[%s100_s0 + $0x10] sm:$0xff] }
   0x2   :  { %v4_v1 = vld [vmem:[%s101_s1] sm:$0xff]  ;;  %v41_v4 = vld [vmem:[%s101_s1 + $0x8] sm:$0xff]  ;;  %v44_v6 = vld [vmem:[%s101_s1 + $0x10] sm:$0xff] }
   0x3   :  { %v7_v3 = vsub.f32 %v3_v0, %v4_v1  ;;  %v16_v7 = vsub.f32 %v40_v2, %v41_v4  ;;  %v26_v8 = vsub.f32 %v43_v5, %v44_v6  ;;  %v46_v9 = vld [vmem:[%s100_s0 + $0x18] sm:$0xff] }
   0x4   :  { %v47_v10 = vld [vmem:[%s101_s1 + $0x18] sm:$0xff] }
   0x5   :  { %9 = vst [vmem:[%s102_s2] sm:$0xff] %v7_v3  ;;  %v36_v11 = vsub.f32 %v46_v9, %v47_v10  ;;  %42 = vst [vmem:[%s102_s2 + $0x8] sm:$0xff] %v16_v7 }
   0x6   :  { %45 = vst [vmem:[%s102_s2 + $0x10] sm:$0xff] %v26_v8 }
   0x7   :  { %48 = vst [vmem:[%s102_s2 + $0x18] sm:$0xff] %v36_v11 }

// kernel: sam_forward.90
= control target key start
LH: loop header
LB: loop body
LE: loop exit
PB: predicated region body
PF: predicated region fallthrough
CT: control target
= control target key end

     0   :  { %s389_s1 = inlined_call_operand.vmem [shape: bf16[256,128], index: 1, kind: input, shape index: {}]   ;;  %s390_s0 = inlined_call_operand.vmem [shape: bf16[16,256], index: 0, kind: input, shape index: {}]   ;;  %s391_s2 = inlined_call_operand.vmem [shape: f32[1,128], index: 2, kind: input, shape index: {}]   ;;  %s392_s3 = inlined_call_operand.vmem [shape: f32[16,128], index: 3, kind: input, shape index: {}]   ;;  %s393_s4 = inlined_call_operand.vmem [shape: f32[16,128], index: 4, kind: output, shape index: {}]  }
   0x1   :  { %v276_v0 = vld [vmem:[%s389_s1 + $0x40] sm:$0xff]   ;;  %v278_v2 = vld [vmem:[%s389_s1 + $0x48] sm:$0xff]   ;;  %v280_v4 = vld [vmem:[%s389_s1 + $0x50] sm:$0xff]  }
   0x2   :  { %v277_v1 = vld [vmem:[%s389_s1] sm:$0xff]   ;;  %254 = vmatprep.subr.bf16.mxu0 %v276_v0  ;;  %v279_v3 = vld [vmem:[%s389_s1 + $0x8] sm:$0xff]   ;;  %v281_v5 = vld [vmem:[%s389_s1 + $0x10] sm:$0xff]  }
   0x3   :  { %255 = vmatpush3.bf16.msra.mxu0 %v277_v1  ;;  %v282_v6 = vld [vmem:[%s389_s1 + $0x58] sm:$0xff]   ;;  %v284_v8 = vld [vmem:[%s389_s1 + $0x60] sm:$0xff]   ;;  %v286_v10 = vld [vmem:[%s389_s1 + $0x68] sm:$0xff]  }
   0x4   :  { %256 = vmatprep.subr.bf16.mxu0 %v278_v2  ;;  %v283_v7 = vld [vmem:[%s389_s1 + $0x18] sm:$0xff]   ;;  %v285_v9 = vld [vmem:[%s389_s1 + $0x20] sm:$0xff]   ;;  %v287_v12 = vld [vmem:[%s389_s1 + $0x28] sm:$0xff]  }
   0x5   :  { %v294_v11 = vld [vmem:[%s390_s0 + $0x4] ss:$8 sps:$4 sm:$0xff]   ;;  %v288_v13 = vld [vmem:[%s389_s1 + $0x70] sm:$0xff]   ;;  %v290_v15 = vld [vmem:[%s389_s1 + $0x78] sm:$0xff]  }
   0x6   :  { %198 = vmatprep.mubr.bf16.mxu0 %v294_v11  ;;  %v289_v14 = vld [vmem:[%s389_s1 + $0x30] sm:$0xff]   ;;  %v291_v16 = vld [vmem:[%s389_s1 + $0x38] sm:$0xff]   ;;  %v292_v17 = vld [vmem:[%s390_s0] ss:$8 sps:$4 sm:$0xff]  }
   0x7   :  { %257 = vmatpush3.bf16.msra.mxu0 %v279_v3  ;;  %v253_v20 = vld [vmem:[%s391_s2] ss:$0 sm:$0xff]  ;;  %v226_v27 = vld [vmem:[%s392_s3 + $0x8] sm:$0xff] }
   0x8   :  { %258 = vmatprep.subr.bf16.mxu0 %v280_v4  ;;  %v225_v23 = vld [vmem:[%s392_s3] sm:$0xff] }
   0xb   :  { %259 = vmatpush3.bf16.msra.mxu0 %v281_v5 }
   0xc   :  { %260 = vmatprep.subr.bf16.mxu0 %v282_v6 }
   0xf   :  { %261 = vmatpush3.bf16.msra.mxu0 %v283_v7 }
  0x10   :  { %262 = vmatprep.subr.bf16.mxu0 %v284_v8 }
  0x13   :  { %263 = vmatpush3.bf16.msra.mxu0 %v285_v9 }
  0x14   :  { %264 = vmatprep.subr.bf16.mxu0 %v286_v10 }
  0x17   :  { %265 = vmatpush3.bf16.msra.mxu0 %v287_v12 }
  0x18   :  { %266 = vmatprep.subr.bf16.mxu0 %v288_v13 }
  0x1b   :  { %267 = vmatpush3.bf16.msra.mxu0 %v289_v14 }
  0x1c   :  { %268 = vmatprep.subr.bf16.mxu0 %v290_v15 }
  0x1f   :  { %269 = vmatpush3.bf16.msra.mxu0 %v291_v16 }
  0x22   :  { %199 = vmatmul.mubr.bf16.vlgmr.msra.gmra.mrb[0].mxu0 %v292_v17 }
  0xf5   :  { %v270_v18 = vpop.f32.mrb[0].mxu0 }
  0xf6   :  { %v271_v19 = vpop.f32.mrb[1].mxu0 }
  0xf7   :  { %v272_v21 = vadd.f32 %v271_v19, %v270_v18  ;;  %v273_v22 = vpop.f32.mrb[2].mxu0 }
  0xf8   :  { %v274_v24 = vpop.f32.mrb[3].mxu0 }
  0xf9   :  { %v223_v25 = vadd.f32 %v272_v21, %v253_v20  ;;  %v275_v26 = vadd.f32 %v274_v24, %v273_v22 }
  0xfb   :  { %v227_v28 = vadd.f32 %v225_v23, %v223_v25  ;;  %v224_v29 = vadd.f32 %v275_v26, %v253_v20 }
  0xfd   :  { %229 = vst [vmem:[%s393_s4] sm:$0xff] %v227_v28  ;;  %v228_v30 = vadd.f32 %v226_v27, %v224_v29 }
  0xff   :  { %230 = vst [vmem:[%s393_s4 + $0x8] sm:$0xff] %v228_v30 }

// kernel: sam_forward.112
= control target key start
LH: loop header
LB: loop body
LE: loop exit
PB: predicated region body
PF: predicated region fallthrough
CT: control target
= control target key end

     0   :  { %s586_s1 = inlined_call_operand.vmem [shape: bf16[128,128], index: 1, kind: input, shape index: {}]   ;;  %s587_s0 = inlined_call_operand.vmem [shape: bf16[128,128], index: 0, kind: input, shape index: {}]   ;;  %s588_s2 = inlined_call_operand.vmem [shape: f32[1,128], index: 2, kind: input, shape index: {}]   ;;  %s589_s3 = inlined_call_operand.vmem [shape: f32[128,128], index: 3, kind: output, shape index: {}]  }
   0x1   :  { %v451_v0 = vld [vmem:[%s586_s1] sm:$0xff]   ;;  %v452_v1 = vld [vmem:[%s586_s1 + $0x8] sm:$0xff]   ;;  %v453_v2 = vld [vmem:[%s586_s1 + $0x10] sm:$0xff]  }
   0x2   :  { %403 = vmatprep.subr.bf16.mxu0 %v451_v0  ;;  %435 = vmatprep.subr.bf16.mxu1 %v451_v0  ;;  %v454_v3 = vld [vmem:[%s586_s1 + $0x18] sm:$0xff]   ;;  %v459_v4 = vld [vmem:[%s587_s0] sm:$0xff]   ;;  %v456_v7 = vld [vmem:[%s586_s1 + $0x28] sm:$0xff]  }
   0x3   :  { %404 = vmatpush3.bf16.msra.mxu0 %v451_v0  ;;  %443 = vmatpush3.bf16.msra.mxu1 %v451_v0  ;;  %v460_v5 = vld [vmem:[%s587_s0 + $0x20] sm:$0xff]   ;;  %v457_v8 = vld [vmem:[%s586_s1 + $0x30] sm:$0xff]   ;;  %v458_v9 = vld [vmem:[%s586_s1 + $0x38] sm:$0xff]  }
   0x4   :  { %405 = vmatprep.subr.bf16.mxu0 %v452_v1  ;;  %436 = vmatprep.subr.bf16.mxu1 %v452_v1  ;;  %v455_v6 = vld [vmem:[%s586_s1 + $0x20] sm:$0xff]   ;;  %v461_v10 = vld [vmem:[%s587_s0 + $0x8] sm:$0xff]   ;;  %v463_v12 = vld [vmem:[%s587_s0 + $0x10] sm:$0xff]  }
   0x5   :  { %419 = vmatprep.mubr.bf16.mxu0 %v459_v4  ;;  %427 = vmatprep.mubr.bf16.mxu1 %v460_v5  ;;  %v462_v11 = vld [vmem:[%s587_s0 + $0x28] sm:$0xff]   ;;  %v464_v13 = vld [vmem:[%s587_s0 + $0x30] sm:$0xff]   ;;  %v465_v14 = vld [vmem:[%s587_s0 + $0x18] sm:$0xff]  }
   0x6   :  { %v466_v15 = vld [vmem:[%s587_s0 + $0x38] sm:$0xff]   ;;  %v386_v16 = vld [vmem:[%s588_s2] ss:$0 sm:$0xff] }
   0x7   :  { %406 = vmatpush3.bf16.msra.mxu0 %v452_v1  ;;  %444 = vmatpush3.bf16.msra.mxu1 %v452_v1 }
   0x8   :  { %407 = vmatprep.subr.bf16.mxu0 %v453_v2  ;;  %437 = vmatprep.subr.bf16.mxu1 %v453_v2 }
   0xb   :  { %408 = vmatpush3.bf16.msra.mxu0 %v453_v2  ;;  %445 = vmatpush3.bf16.msra.mxu1 %v453_v2 }
   0xc   :  { %409 = vmatprep.subr.bf16.mxu0 %v454_v3  ;;  %438 = vmatprep.subr.bf16.mxu1 %v454_v3 }
   0xf   :  { %410 = vmatpush3.bf16.msra.mxu0 %v454_v3  ;;  %446 = vmatpush3.bf16.msra.mxu1 %v454_v3 }
  0x10   :  { %411 = vmatprep.subr.bf16.mxu0 %v455_v6  ;;  %439 = vmatprep.subr.bf16.mxu1 %v455_v6 }
  0x13   :  { %412 = vmatpush3.bf16.msra.mxu0 %v455_v6  ;;  %447 = vmatpush3.bf16.msra.mxu1 %v455_v6 }
  0x14   :  { %413 = vmatprep.subr.bf16.mxu0 %v456_v7  ;;  %440 = vmatprep.subr.bf16.mxu1 %v456_v7 }
  0x17   :  { %414 = vmatpush3.bf16.msra.mxu0 %v456_v7  ;;  %448 = vmatpush3.bf16.msra.mxu1 %v456_v7 }
  0x18   :  { %415 = vmatprep.subr.bf16.mxu0 %v457_v8  ;;  %441 = vmatprep.subr.bf16.mxu1 %v457_v8 }
  0x1b   :  { %416 = vmatpush3.bf16.msra.mxu0 %v457_v8  ;;  %449 = vmatpush3.bf16.msra.mxu1 %v457_v8 }
  0x1c   :  { %417 = vmatprep.subr.bf16.mxu0 %v458_v9  ;;  %442 = vmatprep.subr.bf16.mxu1 %v458_v9 }
  0x1f   :  { %418 = vmatpush3.bf16.msra.mxu0 %v458_v9  ;;  %450 = vmatpush3.bf16.msra.mxu1 %v458_v9 }
  0x22   :  { %420 = vmatmul.mubr.bf16.vlgmr.msra.gmra.mrb[0].mxu0 %v461_v10  ;;  %428 = vmatmul.mubr.bf16.vlgmr.msra.gmra.mrb[0].mxu1 %v462_v11 }
  0x23   :  { %423 = vmatprep.mubr.bf16.mxu0 %v463_v12  ;;  %431 = vmatprep.mubr.bf16.mxu1 %v464_v13 }
  0x2a   :  { %424 = vmatmul.mubr.bf16.gmra.mrb[4].mxu0 %v465_v14  ;;  %432 = vmatmul.mubr.bf16.gmra.mrb[4].mxu1 %v466_v15 }
  0xf5   :  { %v421_v17 = vpop.f32.mrb[0].mxu0  ;;  %v429_v18 = vpop.f32.mrb[0].mxu1 }
  0xf6   :  { %v336_v19 = vadd.f32 %v421_v17, %v386_v16  ;;  %v344_v20 = vadd.f32 %v429_v18, %v386_v16  ;;  %v213_v21 = vpop.f32.mrb[1].mxu0  ;;  %v245_v22 = vpop.f32.mrb[1].mxu1 }
  0xf7   :  { %v334_v23 = vadd.f32 %v386_v16, %v213_v21  ;;  %v342_v24 = vadd.f32 %v386_v16, %v245_v22  ;;  %v422_v25 = vpop.f32.mrb[2].mxu0  ;;  %v430_v26 = vpop.f32.mrb[2].mxu1 }
  0xf8   :  { %352 = vst [vmem:[%s589_s3 + $0x10] sm:$0xff] %v336_v19  ;;  %360 = vst [vmem:[%s589_s3 + $0x50] sm:$0xff] %v344_v20  ;;  %v337_v27 = vadd.f32 %v422_v25, %v386_v16  ;;  %v345_v28 = vadd.f32 %v430_v26, %v386_v16  ;;  %v216_v29 = vpop.f32.mrb[3].mxu0  ;;  %v248_v30 = vpop.f32.mrb[3].mxu1 }
  0xf9   :  { %350 = vst [vmem:[%s589_s3] sm:$0xff] %v334_v23  ;;  %358 = vst [vmem:[%s589_s3 + $0x40] sm:$0xff] %v342_v24  ;;  %v335_v31 = vadd.f32 %v386_v16, %v216_v29  ;;  %v343_v32 = vadd.f32 %v386_v16, %v248_v30 }
  0xfa   :  { %353 = vst [vmem:[%s589_s3 + $0x18] sm:$0xff] %v337_v27  ;;  %361 = vst [vmem:[%s589_s3 + $0x58] sm:$0xff] %v345_v28 }
  0xfb   :  { %351 = vst [vmem:[%s589_s3 + $0x8] sm:$0xff] %v335_v31  ;;  %359 = vst [vmem:[%s589_s3 + $0x48] sm:$0xff] %v343_v32 }
  0xfd   :  { %v425_v33 = vpop.f32.mrb[4].mxu0  ;;  %v433_v34 = vpop.f32.mrb[4].mxu1 }
  0xfe   :  { %v340_v35 = vadd.f32 %v425_v33, %v386_v16  ;;  %v348_v36 = vadd.f32 %v433_v34, %v386_v16  ;;  %v229_v37 = vpop.f32.mrb[5].mxu0  ;;  %v261_v38 = vpop.f32.mrb[5].mxu1 }
  0xff   :  { %v338_v39 = vadd.f32 %v386_v16, %v229_v37  ;;  %v346_v40 = vadd.f32 %v386_v16, %v261_v38  ;;  %v426_v41 = vpop.f32.mrb[6].mxu0  ;;  %v434_v42 = vpop.f32.mrb[6].mxu1 }
 0x100   :  { %356 = vst [vmem:[%s589_s3 + $0x30] sm:$0xff] %v340_v35  ;;  %364 = vst [vmem:[%s589_s3 + $0x70] sm:$0xff] %v348_v36  ;;  %v341_v43 = vadd.f32 %v426_v41, %v386_v16  ;;  %v349_v44 = vadd.f32 %v434_v42, %v386_v16  ;;  %v232_v45 = vpop.f32.mrb[7].mxu0  ;;  %v264_v46 = vpop.f32.mrb[7].mxu1 }
 0x101   :  { %354 = vst [vmem:[%s589_s3 + $0x20] sm:$0xff] %v338_v39  ;;  %362 = vst [vmem:[%s589_s3 + $0x60] sm:$0xff] %v346_v40  ;;  %v339_v47 = vadd.f32 %v386_v16, %v232_v45  ;;  %v347_v48 = vadd.f32 %v386_v16, %v264_v46 }
 0x102   :  { %357 = vst [vmem:[%s589_s3 + $0x38] sm:$0xff] %v341_v43  ;;  %365 = vst [vmem:[%s589_s3 + $0x78] sm:$0xff] %v349_v44 }
 0x103   :  { %355 = vst [vmem:[%s589_s3 + $0x28] sm:$0xff] %v339_v47  ;;  %363 = vst [vmem:[%s589_s3 + $0x68] sm:$0xff] %v347_v48 }

// kernel: sam_forward.94
= control target key start
LH: loop header
LB: loop body
LE: loop exit
PB: predicated region body
PF: predicated region fallthrough
CT: control target
= control target key end

     0   :  { %s1947_s18 = smov 0   ;;  %s2322_s0 = inlined_call_operand.vmem [shape: bf16[2,16,128], index: 0, kind: input, shape index: {}]   ;;  %s2323_s1 = inlined_call_operand.vmem [shape: bf16[2,8,256], index: 1, kind: input, shape index: {}]   ;;  %s2324_s2 = inlined_call_operand.vmem [shape: bf16[128,128], index: 2, kind: input, shape index: {}]   ;;  %s2325_s3 = inlined_call_operand.vmem [shape: f32[1,128], index: 3, kind: input, shape index: {}]   ;;  %s2326_s4 = inlined_call_operand.vmem [shape: f32[2,16,128], index: 4, kind: input, shape index: {}]   ;;  %s2327_s5 = inlined_call_operand.vmem [shape: f32[2,16,128], index: 5, kind: output, shape index: {}]  }
   0x1 LB: > { %s1569_s19 = sadd.s32 4294967295, %s1906_s18   ;;  %p1573_p0 = scmp.ge.s32.totalorder %s1906_s18, 1  ;;  %s1906_s18 = sphi %s1947_s18, %s15_s18  }
   0x2   : > { %p207_p1 = scmp.lt.s32.totalorder %s1906_s18, 3 }
   0x4   : > { %p208_p2 = pnand %p1573_p0, %p207_p1 }
   0x5   : > { %p245_p3 = scmp.lt.s32.totalorder (!%p208_p2), %s1569_s19, 1  ;;  %v1908_v0 = vmov (!%p208_p2), 0.0   ;;  %vm1909_vm0 = vmmov (!%p208_p2), 0   ;;  %vm277_vm1 = vcmask (!%p208_p2), 130048   ;;  %v269_v4 = vlaneseq (!%p208_p2)  ;;  %s1910_s27 = smov (!%p208_p2), 112  }
   0x6   : > { %211 = sbr.rel (%p208_p2) target bundleno = 1760 (0x6e0), region = 40  ;;  %1657 = vmatprep.subr.bf16.mxu0 (!%p208_p2), %v1908_v0  ;;  %1659 = vmatprep.mubr.msk.bf16.mxu0 (!%p208_p2), %vm1909_vm0, %v1908_v0  ;;  %vm329_vm3 = vcmask (!%p208_p2), 64512   ;;  %s1911_s28 = smov (!%p208_p2), 80   ;;  %vm359_vm4 = vcmask (!%p208_p2), 1043456   ;;  %vm1353_vm5 = vcmask (!%p208_p2), 261120   ;;  %vm1356_vm6 = vcmask (!%p208_p2), 392192  }
   0x7   : > { %1681 = vmatprep.subr.bf16.mxu1 (!%p208_p2), %v1908_v0  ;;  %1683 = vmatprep.mubr.msk.bf16.mxu1 (!%p208_p2), %vm1909_vm0, %v1908_v0  ;;  %v1975_v5 = vand.u32 (!%p208_p2), 127, %v269_v4  ;;  %s1912_s29 = smov (!%p208_p2), 64   ;;  %s1913_s30 = smov (!%p208_p2), 48   ;;  %vm1359_vm7 = vcmask (!%p208_p2), 523264   ;;  %vm1362_vm8 = vcmask (!%p208_p2), 654336   ;;  %vm1365_vm9 = vcmask (!%p208_p2), 785408  }
   0x8   : > { %s1914_s6 = smov (!%p208_p2), 32   ;;  %s1915_s7 = smov (!%p208_p2), 16   ;;  %vm1368_vm10 = vcmask (!%p208_p2), 916480  }
   0x9   : > { %vm271_vm2 = vcmp.lt.s32.totalorder (!%p208_p2), %v1975_v5, 6  ;;  %s1916_s8 = smov (!%p208_p2), 96  }
   0xd   : > { %s2329_s19 = smov (!%p245_p3, %s1569_s19), 1 }
   0xe   : > { %s1612_s20 = sshll.u32 %s2329_s19, 3 }
   0xf   : > { %s249_s23 = scalar_lea.vmem %s2322_s0, %s1612_s20  ;;  %s254_s26 = scalar_lea.vmem %s2323_s1, %s1612_s20 }
  0x10   : > { %v268_v1 = vld [vmem:[%s254_s26] sm:$0xff] }
  0x11   : > { %v282_v2 = vsel %vm277_vm1, %v268_v1, 0  ;;  %v1825_v3 = vld [vmem:[%s249_s23] sm:$0xff]   ;;  %v1586_v16 = vcombine.low %v268_v1, %v268_v1  ;;  %v1992_v27 = vcombine.high %v268_v1, %v268_v1 }
  0x12   : > { %1658 = vmatpush3.bf16.xpose.msra.mxu0 %v282_v2 }
  0x13   : > { %1663 = vmatprep.subr.bf16.mxu0 %v1908_v0  ;;  %v361_v28 = vsel %vm359_vm4, %v1992_v27, 0 }
  0x19   : > { %1660 = vmatmul.mubr.msk.bf16.vlgmr.msra.gmra.mrb[0].mxu0 %vm277_vm1, %v1825_v3 }
  0x1a   : > { %1665 = vmatprep.mubr.msk.bf16.mxu0 %vm1909_vm0, %v1908_v0  ;;  %1664 = vmatpush3.bf16.msra.mxu0 %v361_v28 }
  0x1b   : > { %1669 = vmatprep.subr.bf16.mxu0 %v1908_v0 }
  0xec   : > { %v318_v6 = vpop.f32.mrb[0].mxu0 }
  0xed   : > { %v325_v7 = vmul.f32 0.25, %v318_v6  ;;  %v1661_v8 = vpop.f32.mrb[1].mxu0 }
  0xee   : > { %v321_v9 = vpop.f32.mrb[2].mxu0 }
  0xef   : > { %v326_v10 = vmul.f32 0.25, %v321_v9  ;;  %v1662_v11 = vpop.f32.mrb[3].mxu0  ;;  %v327_v12 = vsel %vm271_vm2, %v325_v7, -1e+30 }
  0xf0   : > { %v330_v13 = vsel %vm329_vm3, %v327_v12, -inf }
  0xf1   : > { %331 = vmax.xlane.f32.xlu0 %v330_v13  ;;  %v328_v14 = vsel %vm271_vm2, %v326_v10, -1e+30 }
  0xf2   : > { %v333_v15 = vsel %vm329_vm3, %v328_v14, -inf }
  0xf5   : > { %334 = vmax.xlane.f32.xlu0 %v333_v15 }
 0x10b   : > { %408 = vrot.lane.b32.xlu0 %v1586_v16, %s1910_s27 }
 0x10f   : > { %662 = vrot.lane.b32.xlu0 %v1586_v16, %s1911_s28 }
 0x113   : > { %789 = vrot.lane.b32.xlu0 %v1586_v16, %s1912_s29 }
 0x117   : > { %916 = vrot.lane.b32.xlu0 %v1586_v16, %s1913_s30 }
 0x11b   : > { %1043 = vrot.lane.b32.xlu0 %v1586_v16, %s1914_s6 }
 0x11f   : > { %1170 = vrot.lane.b32.xlu0 %v1586_v16, %s1915_s7 }
 0x17e   : > { %v332_v17 = vpop.xlane.xlu0 %331 }
 0x17f   : > { %v336_v18 = vsub.f32 %v327_v12, %v332_v17 }
 0x181   : > { %v338_v19 = vmul.f32 1.442695, %v336_v18 }
 0x182   : > { %v335_v20 = vpop.xlane.xlu0 %334 }
 0x183   : > { %1836 = vpow2.f32 %v338_v19  ;;  %v337_v21 = vsub.f32 %v328_v14, %v335_v20 }
 0x185   : > { %v340_v22 = vmul.f32 1.442695, %v337_v21 }
 0x186   : > { %v409_v32 = vpop.permute.xlu0 %408 }
 0x187   : > { %1838 = vpow2.f32 %v340_v22  ;;  %v414_v40 = vsel %vm277_vm1, %v409_v32, 0 }
 0x18a   : > { %v663_v39 = vpop.permute.xlu0 %662 }
 0x18b   : > { %v668_v43 = vsel %vm277_vm1, %v663_v39, 0 }
 0x18d   : > { %v1837_v23 = vpop.eup %1836 }
 0x18e   : > { %v342_v24 = vsel %vm329_vm3, %v1837_v23, 0.0  ;;  %v790_v44 = vpop.permute.xlu0 %789 }
 0x18f   : > { %343 = vadd.xlane.f32.xlu1 %v342_v24  ;;  %v795_v46 = vsel %vm277_vm1, %v790_v44, 0 }
 0x191   : > { %v1839_v25 = vpop.eup %1838 }
 0x192   : > { %v345_v26 = vsel %vm329_vm3, %v1839_v25, 0.0  ;;  %v917_v47 = vpop.permute.xlu0 %916 }
 0x193   : > { %346 = vadd.xlane.f32.xlu1 %v345_v26  ;;  %v922_v49 = vsel %vm277_vm1, %v917_v47, 0 }
 0x196   : > { %v1044_v50 = vpop.permute.xlu0 %1043 }
 0x197   : > { %v1049_v52 = vsel %vm277_vm1, %v1044_v50, 0 }
 0x19a   : > { %v1171_v53 = vpop.permute.xlu0 %1170 }
 0x19b   : > { %v1176_v55 = vsel %vm277_vm1, %v1171_v53, 0 }
 0x1a4   : > { %404 = vrot.lane.b32.xlu1 %v1825_v3, %s1910_s27 }
 0x1a8   : > { %535 = vrot.lane.b32.xlu1 %v1586_v16, %s1916_s8 }
 0x1ac   : > { %533 = vrot.lane.b32.xlu1 %v1825_v3, %s1916_s8 }
 0x1b0   : > { %660 = vrot.lane.b32.xlu1 %v1825_v3, %s1911_s28 }
 0x1b4   : > { %787 = vrot.lane.b32.xlu1 %v1825_v3, %s1912_s29 }
 0x1b8   : > { %914 = vrot.lane.b32.xlu1 %v1825_v3, %s1913_s30 }
 0x1bc   : > { %1041 = vrot.lane.b32.xlu1 %v1825_v3, %s1914_s6 }
 0x1c0   : > { %1168 = vrot.lane.b32.xlu1 %v1825_v3, %s1915_s7 }
 0x21c   : > { %v344_v29 = vpop.xlane.xlu1 %343 }
 0x21d   : > { %1840 = vrcp.f32 %v344_v29 }
 0x220   : > { %v347_v30 = vpop.xlane.xlu1 %346 }
 0x221   : > { %1842 = vrcp.f32 %v347_v30 }
 0x224   : > { %v405_v31 = vpop.permute.xlu1 %404 }
 0x227   : > { %v1841_v34 = vpop.eup %1840 }
 0x228   : > { %v536_v33 = vpop.permute.xlu1 %535  ;;  %v350_v37 = vmul.f32 %v1841_v34, %v1837_v23 }
 0x229   : > { %v541_v35 = vsel %vm277_vm1, %v536_v33, 0 }
 0x22a   : > { %1682 = vmatpush3.bf16.xpose.msra.mxu1 %v541_v35 }
 0x22b   : > { %v1843_v36 = vpop.eup %1842  ;;  %1693 = vmatprep.subr.bf16.mxu1 %v1908_v0 }
 0x22c   : > { %v351_v38 = vmul.f32 %v1843_v36, %v1839_v25  ;;  %v534_v42 = vpop.permute.xlu1 %533 }
 0x22e   : > { %v352_v41 = vpack.c.bf16 %v351_v38, %v350_v37 }
 0x230   : > { %1666 = vmatmul.mubr.msk.bf16.vlgmr.msra.gmra.mrb[4].mxu0 %vm329_vm3, %v352_v41  ;;  %v661_v45 = vpop.permute.xlu1 %660 }
 0x231   : > { %1670 = vmatpush3.bf16.xpose.msra.mxu0 %v414_v40  ;;  %1684 = vmatmul.mubr.msk.bf16.vlgmr.msra.gmra.mrb[0].mxu1 %vm277_vm1, %v534_v42 }
 0x232   : > { %1694 = vmatpush3.bf16.xpose.msra.mxu1 %v668_v43  ;;  %1671 = vmatprep.mubr.msk.bf16.mxu0 %vm1909_vm0, %v1908_v0 }
 0x233   : > { %1695 = vmatprep.mubr.msk.bf16.mxu1 %vm1909_vm0, %v1908_v0  ;;  %1705 = vmatprep.subr.bf16.mxu1 %v1908_v0 }
 0x234   : > { %1675 = vmatprep.subr.bf16.mxu0 %v1908_v0  ;;  %v788_v48 = vpop.permute.xlu1 %787 }
 0x238   : > { %1672 = vmatmul.mubr.msk.bf16.vlgmr.msra.gmra.mrb[8].mxu0 %vm277_vm1, %v405_v31  ;;  %v915_v51 = vpop.permute.xlu1 %914 }
 0x239   : > { %1696 = vmatmul.mubr.msk.bf16.vlgmr.msra.gmra.mrb[4].mxu1 %vm277_vm1, %v661_v45  ;;  %1677 = vmatprep.mubr.msk.bf16.mxu0 %vm1909_vm0, %v1908_v0 }
 0x23a   : > { %1706 = vmatpush3.bf16.xpose.msra.mxu1 %v795_v46  ;;  %1707 = vmatprep.mubr.msk.bf16.mxu1 %vm1909_vm0, %v1908_v0 }
 0x23b   : > { %1717 = vmatprep.subr.bf16.mxu1 %v1908_v0 }
 0x23c   : > { %v1042_v54 = vpop.permute.xlu1 %1041 }
 0x240   : > { %v1169_v56 = vpop.permute.xlu1 %1168 }
 0x241   : > { %1708 = vmatmul.mubr.msk.bf16.vlgmr.msra.gmra.mrb[8].mxu1 %vm277_vm1, %v788_v48 }
 0x242   : > { %1718 = vmatpush3.bf16.xpose.msra.mxu1 %v922_v49  ;;  %1719 = vmatprep.mubr.msk.bf16.mxu1 %vm1909_vm0, %v1908_v0 }
 0x243   : > { %1729 = vmatprep.subr.bf16.mxu1 %v1908_v0 }
 0x249   : > { %1720 = vmatmul.mubr.msk.bf16.vlgmr.msra.gmra.mrb[12].mxu1 %vm277_vm1, %v915_v51 }
 0x24a   : > { %1730 = vmatpush3.bf16.xpose.msra.mxu1 %v1049_v52  ;;  %1731 = vmatprep.mubr.msk.bf16.mxu1 %vm1909_vm0, %v1908_v0 }
 0x24b   : > { %1741 = vmatprep.subr.bf16.mxu1 %v1908_v0 }
 0x251   : > { %1732 = vmatmul.mubr.msk.bf16.vlgmr.msra.gmra.mrb[16].mxu1 %vm277_vm1, %v1042_v54 }
 0x252   : > { %1742 = vmatpush3.bf16.xpose.msra.mxu1 %v1176_v55  ;;  %1743 = vmatprep.mubr.msk.bf16.mxu1 %vm1909_vm0, %v1908_v0 }
 0x253   : > { %1753 = vmatprep.subr.bf16.mxu1 %v1908_v0 }
 0x259   : > { %1744 = vmatmul.mubr.msk.bf16.vlgmr.msra.gmra.mrb[20].mxu1 %vm277_vm1, %v1169_v56 }
 0x25a   : > { %1769 = vmatprep.mubr.msk.bf16.mxu1 %vm1909_vm0, %v1908_v0 }
 0x303   : > { %v2043_v57 = vpop.f32.mrb[4].mxu0 }
 0x304   : > { %v1667_v58 = vpop.f32.mrb[5].mxu0  ;;  %v577_v59 = vpop.f32.mrb[0].mxu1 }
 0x305   : > { %v2045_v60 = vpop.f32.mrb[6].mxu0  ;;  %v1685_v61 = vpop.f32.mrb[1].mxu1  ;;  %v584_v3 = vmul.f32 0.25, %v577_v59 }
 0x306   : > { %v1668_v62 = vpop.f32.mrb[7].mxu0  ;;  %v580_v63 = vpop.f32.mrb[2].mxu1 }
 0x307   : > { %v1686_v1 = vpop.f32.mrb[3].mxu1  ;;  %v585_v17 = vmul.f32 0.25, %v580_v63  ;;  %v2055_v18 = vsel %vm271_vm2, %v584_v3, -1e+30 }
 0x308   : > { %v588_v21 = vsel %vm329_vm3, %v2055_v18, -inf }
 0x309   : > { %v2071_v25 = vsel %vm271_vm2, %v585_v17, -1e+30 }
 0x30a   : > { %v591_v32 = vsel %vm329_vm3, %v2071_v25, -inf }
 0x30b   : > { %v450_v2 = vpop.f32.mrb[8].mxu0 }
 0x30c   : > { %v457_v4 = vmul.f32 0.25, %v450_v2  ;;  %v1673_v6 = vpop.f32.mrb[9].mxu0  ;;  %v704_v7 = vpop.f32.mrb[4].mxu1 }
 0x30d   : > { %v453_v8 = vpop.f32.mrb[10].mxu0  ;;  %v1697_v9 = vpop.f32.mrb[5].mxu1  ;;  %v711_v23 = vmul.f32 0.25, %v704_v7 }
 0x30e   : > { %v1674_v10 = vpop.f32.mrb[11].mxu0  ;;  %v707_v11 = vpop.f32.mrb[6].mxu1  ;;  %v2049_v12 = vsel %vm271_vm2, %v457_v4, -1e+30  ;;  %v458_v13 = vmul.f32 0.25, %v453_v8 }
 0x30f   : > { %v712_v14 = vmul.f32 0.25, %v707_v11  ;;  %v1698_v15 = vpop.f32.mrb[7].mxu1  ;;  %v461_v16 = vsel %vm329_vm3, %v2049_v12, -inf  ;;  %v2079_v34 = vsel %vm271_vm2, %v711_v23, -1e+30 }
 0x310   : > { %462 = vmax.xlane.f32.xlu0 %v461_v16  ;;  %v2067_v22 = vsel %vm271_vm2, %v458_v13, -1e+30  ;;  %v715_v37 = vsel %vm329_vm3, %v2079_v34, -inf }
 0x311   : > { %v2059_v19 = vsel %vm271_vm2, %v712_v14, -1e+30  ;;  %v464_v29 = vsel %vm329_vm3, %v2067_v22, -inf }
 0x312   : > { %v718_v20 = vsel %vm329_vm3, %v2059_v19, -inf }
 0x313   : > { %719 = vmax.xlane.f32.xlu1 %v718_v20 }
 0x314   : > { %v831_v24 = vpop.f32.mrb[8].mxu1  ;;  %589 = vmax.xlane.f32.xlu0 %v588_v21 }
 0x315   : > { %v1709_v26 = vpop.f32.mrb[9].mxu1  ;;  %v838_v33 = vmul.f32 0.25, %v831_v24 }
 0x316   : > { %v834_v28 = vpop.f32.mrb[10].mxu1 }
 0x317   : > { %v839_v30 = vmul.f32 0.25, %v834_v28  ;;  %v1710_v31 = vpop.f32.mrb[11].mxu1  ;;  %465 = vmax.xlane.f32.xlu1 %v464_v29  ;;  %v2091_v39 = vsel %vm271_vm2, %v838_v33, -1e+30 }
 0x318   : > { %592 = vmax.xlane.f32.xlu0 %v591_v32  ;;  %v842_v45 = vsel %vm329_vm3, %v2091_v39, -inf }
 0x319   : > { %v2083_v35 = vsel %vm271_vm2, %v839_v30, -1e+30 }
 0x31a   : > { %v845_v36 = vsel %vm329_vm3, %v2083_v35, -inf }
 0x31b   : > { %846 = vmax.xlane.f32.xlu1 %v845_v36 }
 0x31c   : > { %v958_v38 = vpop.f32.mrb[12].mxu1  ;;  %716 = vmax.xlane.f32.xlu0 %v715_v37 }
 0x31d   : > { %v965_v40 = vmul.f32 0.25, %v958_v38  ;;  %v1721_v41 = vpop.f32.mrb[13].mxu1 }
 0x31e   : > { %v961_v42 = vpop.f32.mrb[14].mxu1 }
 0x31f   : > { %v966_v43 = vmul.f32 0.25, %v961_v42  ;;  %v1722_v44 = vpop.f32.mrb[15].mxu1  ;;  %v2097_v46 = vsel %vm271_vm2, %v965_v40, -1e+30 }
 0x320   : > { %843 = vmax.xlane.f32.xlu0 %v842_v45  ;;  %v969_v48 = vsel %vm329_vm3, %v2097_v46, -inf }
 0x321   : > { %v2101_v47 = vsel %vm271_vm2, %v966_v43, -1e+30 }
 0x322   : > { %v972_v49 = vsel %vm329_vm3, %v2101_v47, -inf }
 0x323   : > { %973 = vmax.xlane.f32.xlu1 %v972_v49 }
 0x324   : > { %v1085_v50 = vpop.f32.mrb[16].mxu1  ;;  %970 = vmax.xlane.f32.xlu0 %v969_v48 }
 0x325   : > { %v1092_v51 = vmul.f32 0.25, %v1085_v50  ;;  %v1733_v52 = vpop.f32.mrb[17].mxu1 }
 0x326   : > { %v1088_v53 = vpop.f32.mrb[18].mxu1 }
 0x327   : > { %v1093_v54 = vmul.f32 0.25, %v1088_v53  ;;  %v2109_v55 = vsel %vm271_vm2, %v1092_v51, -1e+30  ;;  %v1734_v56 = vpop.f32.mrb[19].mxu1 }
 0x328   : > { %v1096_v58 = vsel %vm329_vm3, %v2109_v55, -inf }
 0x329   : > { %1097 = vmax.xlane.f32.xlu0 %v1096_v58  ;;  %v2115_v59 = vsel %vm271_vm2, %v1093_v54, -1e+30 }
 0x32a   : > { %v1099_v61 = vsel %vm329_vm3, %v2115_v59, -inf }
 0x32b   : > { %1100 = vmax.xlane.f32.xlu1 %v1099_v61 }
 0x32c   : > { %v1212_v62 = vpop.f32.mrb[20].mxu1 }
 0x32d   : > { %v1219_v63 = vmul.f32 0.25, %v1212_v62  ;;  %v1745_v1 = vpop.f32.mrb[21].mxu1 }
 0x32e   : > { %v1215_v2 = vpop.f32.mrb[22].mxu1 }
 0x32f   : > { %v1220_v3 = vmul.f32 0.25, %v1215_v2  ;;  %v2121_v4 = vsel %vm271_vm2, %v1219_v63, -1e+30  ;;  %v1746_v6 = vpop.f32.mrb[23].mxu1 }
 0x330   : > { %v1223_v7 = vsel %vm329_vm3, %v2121_v4, -inf }
 0x331   : > { %1224 = vmax.xlane.f32.xlu0 %v1223_v7  ;;  %v2127_v8 = vsel %vm271_vm2, %v1220_v3, -1e+30 }
 0x332   : > { %v1226_v9 = vsel %vm329_vm3, %v2127_v8, -inf }
 0x333   : > { %1227 = vmax.xlane.f32.xlu1 %v1226_v9 }
 0x39d   : > { %v463_v10 = vpop.xlane.xlu0 %462 }
 0x39e   : > { %v467_v30 = vsub.f32 %v2049_v12, %v463_v10 }
 0x3a0   : > { %v720_v11 = vpop.xlane.xlu1 %719 }
 0x3a1   : > { %v590_v13 = vpop.xlane.xlu0 %589  ;;  %v722_v15 = vsub.f32 %v2059_v19, %v720_v11 }
 0x3a2   : > { %v594_v14 = vsub.f32 %v2055_v18, %v590_v13 }
 0x3a3   : > { %v725_v5 = vmul.f32 1.442695, %v722_v15 }
 0x3a4   : > { %v596_v16 = vmul.f32 1.442695, %v594_v14  ;;  %v466_v17 = vpop.xlane.xlu1 %465 }
 0x3a5   : > { %v593_v20 = vpop.xlane.xlu0 %592 }
 0x3a6   : > { %1844 = vpow2.f32 %v596_v16  ;;  %v595_v21 = vsub.f32 %v2071_v25, %v593_v20  ;;  %v469_v25 = vmul.f32 1.442695, %v467_v30 }
 0x3a8   : > { %v598_v23 = vmul.f32 1.442695, %v595_v21  ;;  %v847_v24 = vpop.xlane.xlu1 %846 }
 0x3a9   : > { %v849_v26 = vsub.f32 %v2083_v35, %v847_v24  ;;  %v717_v28 = vpop.xlane.xlu0 %716 }
 0x3aa   : > { %1846 = vpow2.f32 %v598_v23  ;;  %v721_v29 = vsub.f32 %v2079_v34, %v717_v28 }
 0x3ab   : > { %1848 = vpow2.f32 %v725_v5  ;;  %v852_v18 = vmul.f32 1.442695, %v849_v26 }
 0x3ac   : > { %v723_v19 = vmul.f32 1.442695, %v721_v29 }
 0x3ad   : > { %v844_v31 = vpop.xlane.xlu0 %843 }
 0x3ae   : > { %1850 = vpow2.f32 %v723_v19  ;;  %v848_v32 = vsub.f32 %v2091_v39, %v844_v31  ;;  %v468_v39 = vsub.f32 %v2067_v22, %v466_v17 }
 0x3af   : > { %1852 = vpow2.f32 %v852_v18 }
 0x3b0   : > { %v2138_v33 = vpop.eup %1844  ;;  %v850_v36 = vmul.f32 1.442695, %v848_v32  ;;  %v974_v37 = vpop.xlane.xlu1 %973 }
 0x3b1   : > { %v976_v35 = vsub.f32 %v2101_v47, %v974_v37  ;;  %v971_v38 = vpop.xlane.xlu0 %970  ;;  %v600_v34 = vsel %vm329_vm3, %v2138_v33, 0.0  ;;  %v471_v47 = vmul.f32 1.442695, %v468_v39 }
 0x3b2   : > { %1854 = vpow2.f32 %v850_v36  ;;  %v975_v12 = vsub.f32 %v2097_v46, %v971_v38  ;;  %601 = vadd.xlane.f32.xlu0 %v600_v34 }
 0x3b3   : > { %1856 = vpow2.f32 %v469_v25  ;;  %v979_v41 = vmul.f32 1.442695, %v976_v35 }
 0x3b4   : > { %v2144_v40 = vpop.eup %1846  ;;  %v977_v42 = vmul.f32 1.442695, %v975_v12 }
 0x3b5   : > { %v603_v43 = vsel %vm329_vm3, %v2144_v40, 0.0  ;;  %v2149_v44 = vpop.eup %1848 }
 0x3b6   : > { %1858 = vpow2.f32 %v977_v42  ;;  %604 = vadd.xlane.f32.xlu1 %v603_v43  ;;  %v730_v48 = vsel %vm329_vm3, %v2149_v44, 0.0  ;;  %v1098_v1 = vpop.xlane.xlu0 %1097 }
 0x3b7   : > { %1860 = vpow2.f32 %v979_v41  ;;  %v1102_v2 = vsub.f32 %v2109_v55, %v1098_v1 }
 0x3b8   : > { %v2151_v45 = vpop.eup %1850  ;;  %1862 = vpow2.f32 %v471_v47  ;;  %v1101_v6 = vpop.xlane.xlu1 %1100 }
 0x3b9   : > { %v727_v46 = vsel %vm329_vm3, %v2151_v45, 0.0  ;;  %v2157_v22 = vpop.eup %1852  ;;  %v1104_v3 = vmul.f32 1.442695, %v1102_v2  ;;  %v1103_v7 = vsub.f32 %v2115_v59, %v1101_v6 }
 0x3ba   : > { %728 = vadd.xlane.f32.xlu0 %v727_v46  ;;  %731 = vadd.xlane.f32.xlu1 %v730_v48  ;;  %v857_v51 = vsel %vm329_vm3, %v2157_v22, 0.0 }
 0x3bb   : > { %1864 = vpow2.f32 %v1104_v3  ;;  %v1106_v10 = vmul.f32 1.442695, %v1103_v7 }
 0x3bc   : > { %v2159_v49 = vpop.eup %1854 }
 0x3bd   : > { %v854_v50 = vsel %vm329_vm3, %v2159_v49, 0.0  ;;  %v2165_v52 = vpop.eup %1856  ;;  %1866 = vpow2.f32 %v1106_v10 }
 0x3be   : > { %855 = vadd.xlane.f32.xlu0 %v854_v50  ;;  %858 = vadd.xlane.f32.xlu1 %v857_v51  ;;  %v473_v54 = vsel %vm329_vm3, %v2165_v52, 0.0  ;;  %v1225_v9 = vpop.xlane.xlu0 %1224 }
 0x3bf   : > { %v1229_v11 = vsub.f32 %v2121_v4, %v1225_v9 }
 0x3c0   : > { %v2167_v53 = vpop.eup %1858  ;;  %v1228_v13 = vpop.xlane.xlu1 %1227 }
 0x3c1   : > { %v981_v56 = vsel %vm329_vm3, %v2167_v53, 0.0  ;;  %v2173_v58 = vpop.eup %1860  ;;  %v1231_v14 = vmul.f32 1.442695, %v1229_v11  ;;  %v1230_v15 = vsub.f32 %v2127_v8, %v1228_v13 }
 0x3c2   : > { %474 = vadd.xlane.f32.xlu0 %v473_v54  ;;  %982 = vadd.xlane.f32.xlu1 %v981_v56  ;;  %v984_v61 = vsel %vm329_vm3, %v2173_v58, 0.0  ;;  %v2177_v62 = vpop.eup %1862 }
 0x3c3   : > { %v476_v63 = vsel %vm329_vm3, %v2177_v62, 0.0  ;;  %1868 = vpow2.f32 %v1231_v14  ;;  %v1233_v17 = vmul.f32 1.442695, %v1230_v15 }
 0x3c5   : > { %v2189_v16 = vpop.eup %1864  ;;  %1870 = vpow2.f32 %v1233_v17 }
 0x3c6   : > { %985 = vadd.xlane.f32.xlu1 %v984_v61  ;;  %v1108_v55 = vsel %vm329_vm3, %v2189_v16, 0.0 }
 0x3c7   : > { %v2193_v20 = vpop.eup %1866 }
 0x3c8   : > { %v1111_v59 = vsel %vm329_vm3, %v2193_v20, 0.0 }
 0x3ca   : > { %477 = vadd.xlane.f32.xlu1 %v476_v63 }
 0x3cd   : > { %v2197_v4 = vpop.eup %1868 }
 0x3ce   : > { %v1235_v8 = vsel %vm329_vm3, %v2197_v4, 0.0 }
 0x3cf   : > { %v2201_v21 = vpop.eup %1870 }
 0x3d0   : > { %v1238_v5 = vsel %vm329_vm3, %v2201_v21, 0.0 }
 0x3d8   : > { %484 = vrot.lane.b32.xlu0 %v1992_v27, %s1910_s27 }
 0x3db   : > { %611 = vrot.lane.b32.xlu1 %v1992_v27, %s1916_s8 }
 0x3f7   : > { %1109 = vadd.xlane.f32.xlu0 %v1108_v55 }
 0x3ff   : > { %1112 = vadd.xlane.f32.xlu1 %v1111_v59 }
 0x403   : > { %1236 = vadd.xlane.f32.xlu1 %v1235_v8 }
 0x407   : > { %1239 = vadd.xlane.f32.xlu1 %v1238_v5 }
 0x40d   : > { %738 = vrot.lane.b32.xlu0 %v1992_v27, %s1911_s28 }
 0x411   : > { %992 = vrot.lane.b32.xlu0 %v1992_v27, %s1913_s30 }
 0x415   : > { %1119 = vrot.lane.b32.xlu0 %v1992_v27, %s1914_s6 }
 0x418   : > { %865 = vrot.lane.b32.xlu1 %v1992_v27, %s1912_s29 }
 0x419   : > { %1246 = vrot.lane.b32.xlu0 %v1992_v27, %s1915_s7 }
 0x43f   : > { %v602_v23 = vpop.xlane.xlu0 %601 }
 0x443   : > { %v605_v24 = vpop.xlane.xlu1 %604 }
 0x447   : > { %v729_v26 = vpop.xlane.xlu0 %728  ;;  %v732_v28 = vpop.xlane.xlu1 %731 }
 0x44b   : > { %v856_v29 = vpop.xlane.xlu0 %855  ;;  %v859_v30 = vpop.xlane.xlu1 %858 }
 0x44c   : > { %1872 = vrcp.f32 %v856_v29 }
 0x44d   : > { %1874 = vrcp.f32 %v859_v30 }
 0x44f   : > { %v475_v18 = vpop.xlane.xlu0 %474  ;;  %v983_v19 = vpop.xlane.xlu1 %982 }
 0x450   : > { %1876 = vrcp.f32 %v983_v19 }
 0x453   : > { %v485_v31 = vpop.permute.xlu0 %484  ;;  %v986_v32 = vpop.xlane.xlu1 %985 }
 0x454   : > { %v490_v25 = vsel %vm359_vm4, %v485_v31, 0  ;;  %1878 = vrcp.f32 %v986_v32 }
 0x455   : > { %1676 = vmatpush3.bf16.msra.mxu0 %v490_v25  ;;  %1880 = vrcp.f32 %v475_v18 }
 0x456   : > { %v1873_v36 = vpop.eup %1872  ;;  %1687 = vmatprep.subr.bf16.mxu0 %v1908_v0 }
 0x457   : > { %v1875_v27 = vpop.eup %1874  ;;  %v862_v37 = vmul.f32 %v1873_v36, %v2159_v49  ;;  %v478_v35 = vpop.xlane.xlu1 %477 }
 0x458   : > { %v863_v38 = vmul.f32 %v1875_v27, %v2157_v22  ;;  %1882 = vrcp.f32 %v478_v35 }
 0x459   : > { %1884 = vrcp.f32 %v605_v24 }
 0x45a   : > { %v864_v34 = vpack.c.bf16 %v863_v38, %v862_v37  ;;  %v1877_v12 = vpop.eup %1876  ;;  %1886 = vrcp.f32 %v602_v23 }
 0x45b   : > { %v989_v41 = vmul.f32 %v1877_v12, %v2167_v53  ;;  %v612_v50 = vpop.permute.xlu1 %611  ;;  %1888 = vrcp.f32 %v729_v26 }
 0x45c   : > { %v617_v54 = vsel %vm359_vm4, %v612_v50, 0  ;;  %1890 = vrcp.f32 %v732_v28  ;;  %v1832_v50 = vld [vmem:[%s2324_s2 + $0x20] sm:$0xff]  }
 0x45e   : > { %v1879_v39 = vpop.eup %1878 }
 0x45f   : > { %v990_v42 = vmul.f32 %v1879_v39, %v2173_v58  ;;  %v1881_v43 = vpop.eup %1880  ;;  %v1829_v39 = vld [vmem:[%s2324_s2 + $0x8] sm:$0xff]  }
 0x460   : > { %v481_v48 = vmul.f32 %v1881_v43, %v2165_v52 }
 0x461   : > { %v991_v47 = vpack.c.bf16 %v990_v42, %v989_v41  ;;  %v1830_v41 = vld [vmem:[%s2324_s2 + $0x10] sm:$0xff]  }
 0x462   : > { %v1883_v46 = vpop.eup %1882 }
 0x463   : > { %v482_v49 = vmul.f32 %v1883_v46, %v2177_v62  ;;  %v1885_v22 = vpop.eup %1884 }
 0x464   : > { %v1887_v56 = vpop.eup %1886  ;;  %v609_v53 = vmul.f32 %v1885_v22, %v2144_v40 }
 0x465   : > { %v483_v51 = vpack.c.bf16 %v482_v49, %v481_v48  ;;  %v608_v52 = vmul.f32 %v1887_v56, %v2138_v33  ;;  %v1889_v61 = vpop.eup %1888 }
 0x466   : > { %v1891_v62 = vpop.eup %1890  ;;  %v735_v1 = vmul.f32 %v1889_v61, %v2151_v45 }
 0x467   : > { %1678 = vmatmul.mubr.msk.bf16.vlgmr.msra.gmra.mrb[12].mxu0 %vm329_vm3, %v483_v51  ;;  %v610_v58 = vpack.c.bf16 %v609_v53, %v608_v52  ;;  %v736_v2 = vmul.f32 %v1891_v62, %v2149_v44 }
 0x468   : > { %1688 = vmatpush3.bf16.msra.mxu0 %v617_v54  ;;  %1689 = vmatprep.mubr.msk.bf16.mxu0 %vm1909_vm0, %v1908_v0  ;;  %v1833_v54 = vld [vmem:[%s2324_s2 + $0x28] sm:$0xff]  }
 0x469   : > { %1699 = vmatprep.subr.bf16.mxu0 %v1908_v0  ;;  %v737_v33 = vpack.c.bf16 %v736_v2, %v735_v1 }
 0x46f   : > { %1690 = vmatmul.mubr.msk.bf16.vlgmr.msra.gmra.mrb[16].mxu0 %vm329_vm3, %v610_v58  ;;  %v1834_v58 = vld [vmem:[%s2324_s2 + $0x30] sm:$0xff]  }
 0x470   : > { %1701 = vmatprep.mubr.msk.bf16.mxu0 %vm1909_vm0, %v1908_v0 }
 0x484   : > { %v1110_v63 = vpop.xlane.xlu0 %1109 }
 0x488   : > { %v739_v40 = vpop.permute.xlu0 %738 }
 0x489   : > { %v744_v3 = vsel %vm359_vm4, %v739_v40, 0 }
 0x48a   : > { %1700 = vmatpush3.bf16.msra.mxu0 %v744_v3 }
 0x48b   : > { %1711 = vmatprep.subr.bf16.mxu0 %v1908_v0 }
 0x48c   : > { %v1113_v6 = vpop.xlane.xlu1 %1112  ;;  %v993_v11 = vpop.permute.xlu0 %992 }
 0x48d   : > { %1702 = vmatmul.mubr.msk.bf16.vlgmr.msra.gmra.mrb[20].mxu0 %vm329_vm3, %v737_v33  ;;  %1892 = vrcp.f32 %v1113_v6  ;;  %v998_v44 = vsel %vm359_vm4, %v993_v11, 0 }
 0x48e   : > { %1713 = vmatprep.mubr.msk.bf16.mxu0 %vm1909_vm0, %v1908_v0  ;;  %1894 = vrcp.f32 %v1110_v63  ;;  %v1835_v63 = vld [vmem:[%s2324_s2 + $0x38] sm:$0xff]  }
 0x490   : > { %v1237_v7 = vpop.xlane.xlu1 %1236  ;;  %v1120_v13 = vpop.permute.xlu0 %1119 }
 0x491   : > { %v1125_v14 = vsel %vm359_vm4, %v1120_v13, 0 }
 0x494   : > { %v1240_v9 = vpop.xlane.xlu1 %1239  ;;  %v1247_v59 = vpop.permute.xlu0 %1246 }
 0x495   : > { %1896 = vrcp.f32 %v1240_v9  ;;  %v1252_v23 = vsel %vm359_vm4, %v1247_v59, 0 }
 0x496   : > { %1898 = vrcp.f32 %v1237_v7 }
 0x497   : > { %v1893_v15 = vpop.eup %1892 }
 0x498   : > { %v866_v10 = vpop.permute.xlu1 %865  ;;  %v1895_v17 = vpop.eup %1894  ;;  %v1117_v55 = vmul.f32 %v1893_v15, %v2193_v20 }
 0x499   : > { %v871_v45 = vsel %vm359_vm4, %v866_v10, 0  ;;  %v1116_v8 = vmul.f32 %v1895_v17, %v2189_v16 }
 0x49a   : > { %1712 = vmatpush3.bf16.msra.mxu0 %v871_v45 }
 0x49b   : > { %1723 = vmatprep.subr.bf16.mxu0 %v1908_v0  ;;  %v1118_v5 = vpack.c.bf16 %v1117_v55, %v1116_v8 }
 0x49d   : > { %1714 = vmatmul.mubr.msk.bf16.vlgmr.msra.gmra.mrb[24].mxu0 %vm329_vm3, %v864_v34 }
 0x49e   : > { %1724 = vmatpush3.bf16.msra.mxu0 %v998_v44  ;;  %1725 = vmatprep.mubr.msk.bf16.mxu0 %vm1909_vm0, %v1908_v0 }
 0x49f   : > { %1735 = vmatprep.subr.bf16.mxu0 %v1908_v0  ;;  %v1897_v24 = vpop.eup %1896 }
 0x4a0   : > { %v1899_v26 = vpop.eup %1898  ;;  %v1244_v28 = vmul.f32 %v1897_v24, %v2201_v21 }
 0x4a1   : > { %v1243_v20 = vmul.f32 %v1899_v26, %v2197_v4  ;;  %v1828_v4 = vld [vmem:[%s2324_s2] sm:$0xff]  }
 0x4a2   : > { %1754 = vmatpush3.bf16.msra.mxu1 %v1828_v4 }
 0x4a3   : > { %v1245_v29 = vpack.c.bf16 %v1244_v28, %v1243_v20  ;;  %1755 = vmatprep.subr.bf16.mxu1 %v1908_v0 }
 0x4a5   : > { %1726 = vmatmul.mubr.msk.bf16.vlgmr.msra.gmra.mrb[28].mxu0 %vm329_vm3, %v991_v47  ;;  %v1831_v47 = vld [vmem:[%s2324_s2 + $0x18] sm:$0xff]  }
 0x4a6   : > { %1736 = vmatpush3.bf16.msra.mxu0 %v1125_v14  ;;  %1737 = vmatprep.mubr.msk.bf16.mxu0 %vm1909_vm0, %v1908_v0 }
 0x4a7   : > { %1747 = vmatprep.subr.bf16.mxu0 %v1908_v0  ;;  %1756 = vmatpush3.bf16.msra.mxu1 %v1829_v39 }
 0x4a8   : > { %1757 = vmatprep.subr.bf16.mxu1 %v1908_v0 }
 0x4ab   : > { %1758 = vmatpush3.bf16.msra.mxu1 %v1830_v41 }
 0x4ac   : > { %1759 = vmatprep.subr.bf16.mxu1 %v1908_v0 }
 0x4ad   : > { %1738 = vmatmul.mubr.msk.bf16.vlgmr.msra.gmra.mrb[32].mxu0 %vm329_vm3, %v1118_v5 }
 0x4ae   : > { %1748 = vmatpush3.bf16.msra.mxu0 %v1252_v23  ;;  %1749 = vmatprep.mubr.msk.bf16.mxu0 %vm1909_vm0, %v1908_v0 }
 0x4af   : > { %1760 = vmatpush3.bf16.msra.mxu1 %v1831_v47 }
 0x4b0   : > { %1761 = vmatprep.subr.bf16.mxu1 %v1908_v0 }
 0x4b3   : > { %1762 = vmatpush3.bf16.msra.mxu1 %v1832_v50 }
 0x4b4   : > { %1763 = vmatprep.subr.bf16.mxu1 %v1908_v0 }
 0x4b5   : > { %1750 = vmatmul.mubr.msk.bf16.vlgmr.msra.gmra.mrb[36].mxu0 %vm329_vm3, %v1245_v29 }
 0x4b7   : > { %1764 = vmatpush3.bf16.msra.mxu1 %v1833_v54 }
 0x4b8   : > { %1765 = vmatprep.subr.bf16.mxu1 %v1908_v0 }
 0x4bb   : > { %1766 = vmatpush3.bf16.msra.mxu1 %v1834_v58 }
 0x4bc   : > { %1767 = vmatprep.subr.bf16.mxu1 %v1908_v0 }
 0x4bf   : > { %1768 = vmatpush3.bf16.msra.mxu1 %v1835_v63 }
 0x53a   : > { %v526_v30 = vpop.f32.mrb[12].mxu0 }
 0x53b   : > { %v1679_v16 = vpop.f32.mrb[13].mxu0 }
 0x53c   : > { %v529_v18 = vpop.f32.mrb[14].mxu0 }
 0x53d   : > { %v1790_v19 = vpack.i.bf16 %v529_v18, %v526_v30  ;;  %v1680_v31 = vpop.f32.mrb[15].mxu0 }
 0x53f   : > { %1791 = vrot.lane.b32.xlu1 %v1790_v19, %s1915_s7 }
 0x542   : > { %v653_v32 = vpop.f32.mrb[16].mxu0 }
 0x543   : > { %v1691_v25 = vpop.f32.mrb[17].mxu0 }
 0x544   : > { %v656_v36 = vpop.f32.mrb[18].mxu0 }
 0x545   : > { %v1795_v27 = vpack.i.bf16 %v656_v36, %v653_v32  ;;  %v1692_v37 = vpop.f32.mrb[19].mxu0 }
 0x547   : > { %1796 = vrot.lane.b32.xlu0 %v1795_v27, %s1914_s6 }
 0x560   : > { %v780_v21 = vpop.f32.mrb[20].mxu0 }
 0x561   : > { %v1703_v35 = vpop.f32.mrb[21].mxu0 }
 0x562   : > { %v783_v38 = vpop.f32.mrb[22].mxu0 }
 0x563   : > { %v1800_v34 = vpack.i.bf16 %v783_v38, %v780_v21  ;;  %v1704_v12 = vpop.f32.mrb[23].mxu0 }
 0x564   : > { %v1601_v12 = vld [vmem:[%s2325_s3] ss:$0 sm:$0xff] }
 0x565   : > { %1801 = vrot.lane.b32.xlu1 %v1800_v34, %s1913_s30 }
 0x570   : > { %v907_v42 = vpop.f32.mrb[24].mxu0 }
 0x571   : > { %v1715_v43 = vpop.f32.mrb[25].mxu0 }
 0x572   : > { %v910_v46 = vpop.f32.mrb[26].mxu0 }
 0x573   : > { %v1805_v48 = vpack.i.bf16 %v910_v46, %v907_v42  ;;  %v1716_v49 = vpop.f32.mrb[27].mxu0 }
 0x575   : > { %1806 = vrot.lane.b32.xlu0 %v1805_v48, %s1912_s29 }
 0x578   : > { %v1034_v51 = vpop.f32.mrb[28].mxu0 }
 0x579   : > { %v1727_v22 = vpop.f32.mrb[29].mxu0 }
 0x57a   : > { %v1037_v56 = vpop.f32.mrb[30].mxu0 }
 0x57b   : > { %v1810_v53 = vpack.i.bf16 %v1037_v56, %v1034_v51  ;;  %v1728_v52 = vpop.f32.mrb[31].mxu0 }
 0x57d   : > { %1811 = vrot.lane.b32.xlu1 %v1810_v53, %s1911_s28 }
 0x580   : > { %v1161_v61 = vpop.f32.mrb[32].mxu0 }
 0x581   : > { %v1739_v62 = vpop.f32.mrb[33].mxu0 }
 0x582   : > { %v1164_v1 = vpop.f32.mrb[34].mxu0 }
 0x583   : > { %v1815_v2 = vpack.i.bf16 %v1164_v1, %v1161_v61  ;;  %v1740_v40 = vpop.f32.mrb[35].mxu0 }
 0x585   : > { %1816 = vrot.lane.b32.xlu0 %v1815_v2, %s1916_s8 }
 0x588   : > { %v1288_v3 = vpop.f32.mrb[36].mxu0 }
 0x589   : > { %v1751_v33 = vpop.f32.mrb[37].mxu0 }
 0x58a   : > { %v1291_v6 = vpop.f32.mrb[38].mxu0 }
 0x58b   : > { %v1820_v7 = vpack.i.bf16 %v1291_v6, %v1288_v3  ;;  %v1752_v9 = vpop.f32.mrb[39].mxu0 }
 0x58d   : > { %1821 = vrot.lane.b32.xlu1 %v1820_v7, %s1910_s27  ;;  %s1614_s27 = sshll.u32 %s2329_s19, 4 }
 0x58e   : > { %s259_s30 = scalar_lea.vmem %s2326_s4, %s1614_s27  ;;  %s264_s10 = scalar_lea.vmem %s2327_s5, %s1614_s27 }
 0x58f   : > { %v1484_v41 = vld [vmem:[%s259_s30] sm:$0xff]  ;;  %v1485_v46 = vld [vmem:[%s259_s30 + $0x8] sm:$0xff] }
 0x5b1   : > { %v1792_v10 = vpop.permute.xlu1 %1791 }
 0x5b2   : > { %v1794_v44 = vunpack.i.h.bf16 %v1792_v10  ;;  %v1793_v13 = vunpack.i.l.bf16 %v1792_v10 }
 0x5b4   : > { %v1352_v24 = vsel %vm277_vm1, %v2045_v60, %v1794_v44  ;;  %v1351_v26 = vsel %vm277_vm1, %v2043_v57, %v1793_v13 }
 0x5b9   : > { %v1797_v0 = vpop.permute.xlu0 %1796 }
 0x5ba   : > { %v1799_v14 = vunpack.i.h.bf16 %v1797_v0  ;;  %v1798_v15 = vunpack.i.l.bf16 %v1797_v0 }
 0x5bc   : > { %v1355_v29 = vsel %vm1353_vm5, %v1352_v24, %v1799_v14  ;;  %v1354_v30 = vsel %vm1353_vm5, %v1351_v26, %v1798_v15 }
 0x5d7   : > { %v1802_v11 = vpop.permute.xlu1 %1801 }
 0x5d8   : > { %v1804_v55 = vunpack.i.h.bf16 %v1802_v11  ;;  %v1803_v59 = vunpack.i.l.bf16 %v1802_v11 }
 0x5da   : > { %v1358_v19 = vsel %vm1356_vm6, %v1355_v29, %v1804_v55  ;;  %v1357_v31 = vsel %vm1356_vm6, %v1354_v30, %v1803_v59 }
 0x5e7   : > { %v1807_v45 = vpop.permute.xlu0 %1806 }
 0x5e8   : > { %v1809_v5 = vunpack.i.h.bf16 %v1807_v45  ;;  %v1808_v23 = vunpack.i.l.bf16 %v1807_v45 }
 0x5ea   : > { %v1361_v32 = vsel %vm1359_vm7, %v1358_v19, %v1809_v5  ;;  %v1360_v25 = vsel %vm1359_vm7, %v1357_v31, %v1808_v23 }
 0x5ef   : > { %v1812_v17 = vpop.permute.xlu1 %1811 }
 0x5f0   : > { %v1814_v28 = vunpack.i.h.bf16 %v1812_v17  ;;  %v1813_v20 = vunpack.i.l.bf16 %v1812_v17 }
 0x5f2   : > { %v1364_v57 = vsel %vm1362_vm8, %v1361_v32, %v1814_v28  ;;  %v1363_v36 = vsel %vm1362_vm8, %v1360_v25, %v1813_v20 }
 0x5f7   : > { %v1817_v8 = vpop.permute.xlu0 %1816 }
 0x5f8   : > { %v1819_v16 = vunpack.i.h.bf16 %v1817_v8  ;;  %v1818_v18 = vunpack.i.l.bf16 %v1817_v8 }
 0x5fa   : > { %v1367_v4 = vsel %vm1365_vm9, %v1364_v57, %v1819_v16  ;;  %v1366_v21 = vsel %vm1365_vm9, %v1363_v36, %v1818_v18 }
 0x5ff   : > { %v1822_v60 = vpop.permute.xlu1 %1821 }
 0x600   : > { %v1824_v27 = vunpack.i.h.bf16 %v1822_v60  ;;  %v1823_v37 = vunpack.i.l.bf16 %v1822_v60 }
 0x602   : > { %v1370_v35 = vsel %vm1368_vm10, %v1367_v4, %v1824_v27  ;;  %v1369_v38 = vsel %vm1368_vm10, %v1366_v21, %v1823_v37 }
 0x603   : > { %v1371_v34 = vpack.c.bf16 %v1370_v35, %v1369_v38 }
 0x605   : > { %1770 = vmatmul.mubr.bf16.vlgmr.msra.gmra.mrb[24].mxu1 %v1371_v34 }
 0x6d8   : > { %v1477_v39 = vpop.f32.mrb[24].mxu1 }
 0x6d9   : > { %v1478_v42 = vadd.f32 %v1601_v12, %v1477_v39  ;;  %v1771_v43 = vpop.f32.mrb[25].mxu1 }
 0x6da   : > { %v1480_v47 = vpop.f32.mrb[26].mxu1 }
 0x6db   : > { %v1486_v48 = vadd.f32 %v1484_v41, %v1478_v42  ;;  %v1481_v49 = vadd.f32 %v1601_v12, %v1480_v47  ;;  %v1772_v50 = vpop.f32.mrb[27].mxu1 }
 0x6dd   : > { %1488 = vst [vmem:[%s264_s10] sm:$0xff] %v1486_v48  ;;  %v1487_v51 = vadd.f32 %v1485_v46, %v1481_v49 }
 0x6df   : > { %1489 = vst [vmem:[%s264_s10 + $0x8] sm:$0xff] %v1487_v51 }
 0x6e0 PF: > { %s15_s18 = sadd.s32 1, %s1906_s18  }
 0x6e1   : > { %p12_p4 = scmp.ge.s32.totalorder %s15_s18, 4  }
 0x6e3   :  { %14 = sbr.rel (!%p12_p4) target bundleno = 1 (0x1), region = 76 }

// kernel: sam_forward.116
= control target key start
LH: loop header
LB: loop body
LE: loop exit
PB: predicated region body
PF: predicated region fallthrough
CT: control target
= control target key end

     0   :  { %s345_s9 = smov 0   ;;  %s365_s0 = inlined_call_operand.vmem [shape: bf16[2,3,16], index: 0, kind: input, shape index: {}]   ;;  %s366_s1 = inlined_call_operand.vmem [shape: bf16[2,16,256], index: 1, kind: input, shape index: {}]   ;;  %s367_s2 = inlined_call_operand.vmem [shape: f32[2,3,256], index: 2, kind: output, shape index: {}]  }
   0x1 LB: > { %s292_s10 = sadd.s32 4294967295, %s327_s9   ;;  %p296_p0 = scmp.ge.s32.totalorder %s327_s9, 1  ;;  %s327_s9 = sphi %s345_s9, %s12_s9  }
   0x2   : > { %p121_p1 = scmp.lt.s32.totalorder %s327_s9, 3 }
   0x4   : > { %p122_p2 = pnand %p296_p0, %p121_p1 }
   0x5   : > { %p147_p3 = scmp.lt.s32.totalorder (!%p122_p2), %s292_s10, 1  ;;  %v329_v0 = vmov (!%p122_p2), 0   ;;  %vm175_vm0 = vcmask (!%p122_p2), 130048  }
   0x6   : > { %125 = sbr.rel (%p122_p2) target bundleno = 237 (0xed), region = 28  ;;  %211 = vmatprep.mubr.bf16.mxu0 (!%p122_p2), %v329_v0 }
   0xd   : > { %s369_s10 = smov (!%p147_p3, %s292_s10), 1 }
   0xe   : > { %s307_s11 = sshll.u32 %s369_s10, 4  ;;  %s297_s12 = sshll.u32 %s369_s10, 1 }
   0xf   : > { %s155_s15 = scalar_lea.vmem %s366_s1, %s307_s11  ;;  %s150_s18 = scalar_lea.vmem %s365_s0, %s297_s12 }
  0x10   : > { %v318_v1 = vld [vmem:[%s155_s15 + $0x4] ss:$8 sps:$4 sm:$0xff]   ;;  %v320_v2 = vld [vmem:[%s155_s15] ss:$8 sps:$4 sm:$0xff]   ;;  %s308_s19 = sshll.u32 %s369_s10, 3 }
  0x11   : > { %179 = vmatprep.subr.bf16.mxu0 %v318_v1  ;;  %v162_v3 = vld [vmem:[%s150_s18] sm:$0x3]  ;;  %s160_s22 = scalar_lea.vmem %s367_s2, %s308_s19 }
  0x12   : > { %180 = vmatpush1.bf16.msra.mxu0 %v320_v2 }
  0x15   : > { %304 = vmatmul.mubr.msk.bf16.vlgmr.msra.gmra.mrb[0].mxu0 %vm175_vm0, %v162_v3 }
  0xe8   : > { %v213_v4 = vpop.f32.mrb[0].mxu0 }
  0xe9   : > { %v215_v5 = vpop.f32.mrb[1].mxu0 }
  0xea   : > { %v222_v6 = vcombine.low %v213_v4, %v215_v5  ;;  %v217_v7 = vpop.f32.mrb[2].mxu0 }
  0xeb   : > { %v218_v8 = vpop.f32.mrb[3].mxu0 }
  0xec   : > { %224 = vst [vmem:[%s160_s22] sm:$0x77] %v222_v6 }
  0xed PF: > { %s12_s9 = sadd.s32 1, %s327_s9  }
  0xee   : > { %p9_p4 = scmp.ge.s32.totalorder %s12_s9, 4  }
  0xf0   :  { %11 = sbr.rel (!%p9_p4) target bundleno = 1 (0x1), region = 61 }

// kernel: sam_forward.113
= control target key start
LH: loop header
LB: loop body
LE: loop exit
PB: predicated region body
PF: predicated region fallthrough
CT: control target
= control target key end

     0   :  { %v229_v0 = vmov 0.0   ;;  %vm230_vm0 = vmmov 0   ;;  %s284_s1 = inlined_call_operand.vmem [shape: bf16[128,128], index: 1, kind: input, shape index: {}]   ;;  %s285_s0 = inlined_call_operand.vmem [shape: bf16[16,128], index: 0, kind: input, shape index: {}]   ;;  %s286_s2 = inlined_call_operand.vmem [shape: f32[1,128], index: 2, kind: input, shape index: {}]   ;;  %s287_s3 = inlined_call_operand.vmem [shape: bf16[16,128], index: 3, kind: output, shape index: {}]  }
   0x1   :  { %198 = vmatprep.subr.bf16.mxu0 %v229_v0  ;;  %v220_v1 = vld [vmem:[%s284_s1] sm:$0xff]   ;;  %214 = vmatprep.mubr.msk.bf16.mxu0 %vm230_vm0, %v229_v0  ;;  %v221_v2 = vld [vmem:[%s284_s1 + $0x8] sm:$0xff]   ;;  %v222_v3 = vld [vmem:[%s284_s1 + $0x10] sm:$0xff]  }
   0x2   :  { %199 = vmatpush3.bf16.msra.mxu0 %v220_v1  ;;  %v223_v4 = vld [vmem:[%s284_s1 + $0x18] sm:$0xff]   ;;  %v224_v5 = vld [vmem:[%s284_s1 + $0x20] sm:$0xff]   ;;  %v225_v6 = vld [vmem:[%s284_s1 + $0x28] sm:$0xff]  }
   0x3   :  { %200 = vmatprep.subr.bf16.mxu0 %v229_v0  ;;  %v226_v7 = vld [vmem:[%s284_s1 + $0x30] sm:$0xff]   ;;  %v227_v8 = vld [vmem:[%s284_s1 + $0x38] sm:$0xff]   ;;  %v228_v9 = vld [vmem:[%s285_s0] sm:$0xff]  }
   0x4   :  { %v179_v10 = vld [vmem:[%s286_s2] ss:$0 sm:$0xff] }
   0x6   :  { %201 = vmatpush3.bf16.msra.mxu0 %v221_v2 }
   0x7   :  { %202 = vmatprep.subr.bf16.mxu0 %v229_v0 }
   0xa   :  { %203 = vmatpush3.bf16.msra.mxu0 %v222_v3 }
   0xb   :  { %204 = vmatprep.subr.bf16.mxu0 %v229_v0 }
   0xe   :  { %205 = vmatpush3.bf16.msra.mxu0 %v223_v4 }
   0xf   :  { %206 = vmatprep.subr.bf16.mxu0 %v229_v0 }
  0x12   :  { %207 = vmatpush3.bf16.msra.mxu0 %v224_v5 }
  0x13   :  { %208 = vmatprep.subr.bf16.mxu0 %v229_v0 }
  0x16   :  { %209 = vmatpush3.bf16.msra.mxu0 %v225_v6 }
  0x17   :  { %210 = vmatprep.subr.bf16.mxu0 %v229_v0 }
  0x1a   :  { %211 = vmatpush3.bf16.msra.mxu0 %v226_v7 }
  0x1b   :  { %212 = vmatprep.subr.bf16.mxu0 %v229_v0 }
  0x1e   :  { %213 = vmatpush3.bf16.msra.mxu0 %v227_v8 }
  0x21   :  { %215 = vmatmul.mubr.bf16.vlgmr.msra.gmra.mrb[0].mxu0 %v228_v9 }
  0xf4   :  { %v129_v11 = vpop.f32.mrb[0].mxu0 }
  0xf5   :  { %v152_v12 = vadd.f32 %v179_v10, %v129_v11  ;;  %v216_v13 = vpop.f32.mrb[1].mxu0 }
  0xf6   :  { %v132_v14 = vpop.f32.mrb[2].mxu0 }
  0xf7   :  { %v153_v15 = vadd.f32 %v179_v10, %v132_v14  ;;  %v217_v16 = vpop.f32.mrb[3].mxu0  ;;  %v154_v17 = vmax.f32 %v152_v12, 0.0 }
  0xf9   :  { %v155_v18 = vmax.f32 %v153_v15, 0.0 }
  0xfb   :  { %v187_v19 = vpack.c.bf16 %v155_v18, %v154_v17 }
  0xfd   :  { %188 = vst [vmem:[%s287_s3] sm:$0xff] %v187_v19  }

// kernel: sam_forward.119
= control target key start
LH: loop header
LB: loop body
LE: loop exit
PB: predicated region body
PF: predicated region fallthrough
CT: control target
= control target key end

     0   :  { %s352_s1 = inlined_call_operand.vmem [shape: bf16[256,128], index: 1, kind: input, shape index: {}]   ;;  %s353_s0 = inlined_call_operand.vmem [shape: bf16[8,256], index: 0, kind: input, shape index: {}]   ;;  %s354_s2 = inlined_call_operand.vmem [shape: f32[1,128], index: 2, kind: input, shape index: {}]   ;;  %s355_s3 = inlined_call_operand.vmem [shape: f32[8,128], index: 3, kind: output, shape index: {}]  }
   0x1   :  { %v257_v0 = vld [vmem:[%s352_s1 + $0x40] sm:$0xff]   ;;  %v259_v2 = vld [vmem:[%s352_s1 + $0x48] sm:$0xff]   ;;  %v261_v4 = vld [vmem:[%s352_s1 + $0x50] sm:$0xff]  }
   0x2   :  { %v258_v1 = vld [vmem:[%s352_s1] sm:$0xff]   ;;  %235 = vmatprep.subr.bf16.mxu0 %v257_v0  ;;  %v260_v3 = vld [vmem:[%s352_s1 + $0x8] sm:$0xff]   ;;  %v262_v5 = vld [vmem:[%s352_s1 + $0x10] sm:$0xff]  }
   0x3   :  { %236 = vmatpush3.bf16.msra.mxu0 %v258_v1  ;;  %v263_v6 = vld [vmem:[%s352_s1 + $0x58] sm:$0xff]   ;;  %v265_v8 = vld [vmem:[%s352_s1 + $0x60] sm:$0xff]   ;;  %v267_v10 = vld [vmem:[%s352_s1 + $0x68] sm:$0xff]  }
   0x4   :  { %237 = vmatprep.subr.bf16.mxu0 %v259_v2  ;;  %v264_v7 = vld [vmem:[%s352_s1 + $0x18] sm:$0xff]   ;;  %v266_v9 = vld [vmem:[%s352_s1 + $0x20] sm:$0xff]   ;;  %v268_v13 = vld [vmem:[%s352_s1 + $0x28] sm:$0xff]  }
   0x5   :  { %v21_v11 = vld [vmem:[%s353_s0] sm:$0xff]  ;;  %v269_v14 = vld [vmem:[%s352_s1 + $0x70] sm:$0xff]   ;;  %v271_v16 = vld [vmem:[%s352_s1 + $0x78] sm:$0xff]  }
   0x6   :  { %v217_v12 = vcombine.high %v21_v11, %v21_v11  ;;  %v270_v15 = vld [vmem:[%s352_s1 + $0x30] sm:$0xff]   ;;  %v272_v17 = vld [vmem:[%s352_s1 + $0x38] sm:$0xff]   ;;  %v216_v18 = vcombine.low %v21_v11, %v21_v11  ;;  %v234_v21 = vld [vmem:[%s354_s2] ss:$0 sm:$0xff] }
   0x7   :  { %238 = vmatpush3.bf16.msra.mxu0 %v260_v3 }
   0x8   :  { %239 = vmatprep.subr.bf16.mxu0 %v261_v4  ;;  %189 = vmatprep.mubr.bf16.mxu0 %v217_v12 }
   0xb   :  { %240 = vmatpush3.bf16.msra.mxu0 %v262_v5 }
   0xc   :  { %241 = vmatprep.subr.bf16.mxu0 %v263_v6 }
   0xf   :  { %242 = vmatpush3.bf16.msra.mxu0 %v264_v7 }
  0x10   :  { %243 = vmatprep.subr.bf16.mxu0 %v265_v8 }
  0x13   :  { %244 = vmatpush3.bf16.msra.mxu0 %v266_v9 }
  0x14   :  { %245 = vmatprep.subr.bf16.mxu0 %v267_v10 }
  0x17   :  { %246 = vmatpush3.bf16.msra.mxu0 %v268_v13 }
  0x18   :  { %247 = vmatprep.subr.bf16.mxu0 %v269_v14 }
  0x1b   :  { %248 = vmatpush3.bf16.msra.mxu0 %v270_v15 }
  0x1c   :  { %249 = vmatprep.subr.bf16.mxu0 %v271_v16 }
  0x1f   :  { %250 = vmatpush3.bf16.msra.mxu0 %v272_v17 }
  0x22   :  { %190 = vmatmul.mubr.bf16.vlgmr.msra.gmra.mrb[0].mxu0 %v216_v18 }
  0xf5   :  { %v251_v19 = vpop.f32.mrb[0].mxu0 }
  0xf6   :  { %v252_v20 = vpop.f32.mrb[1].mxu0 }
  0xf7   :  { %v253_v22 = vadd.f32 %v252_v20, %v251_v19  ;;  %v254_v23 = vpop.f32.mrb[2].mxu0 }
  0xf8   :  { %v255_v24 = vpop.f32.mrb[3].mxu0 }
  0xf9   :  { %v210_v25 = vadd.f32 %v253_v22, %v234_v21 }
  0xfb   :  { %211 = vst [vmem:[%s355_s3] sm:$0xff] %v210_v25 }

</bundles_post_ra>
